<compile_context>
chip_gen: v7x
topology: tpu7x:2x2x1
jax: 0.10.0
libtpu: 0.0.40
codegen_flags: <defaults>
</compile_context>

<pallas_src>
import functools
import math

import jax
import jax.numpy as jnp
from jax.experimental import pallas as pl
from jax.experimental.pallas import tpu as pltpu


# -----------------------------------------------------------------------------
# Per-generation VMEM budget (v5e/v6e: 128 MiB physical, v7x: 64 MiB per TC).
# -----------------------------------------------------------------------------
def _vmem_budget_bytes():
    cap = 64 * 1024 * 1024            # conservative fallback (v7x-sized)
    try:
        cap = int(pltpu.get_tpu_info().vmem_capacity_bytes)
    except Exception:
        pass
    return max(32 * 1024 * 1024, min(64 * 1024 * 1024, cap // 2))


_VMEM_BUDGET = _vmem_budget_bytes()
_A_TILE_BUDGET = _VMEM_BUDGET // 12   # cap for one bf16 A tile of the matmul


# -----------------------------------------------------------------------------
# Fused Pallas matmul kernel:
#   out = [relu]( (A @ B) + bias [+ residual] )
# A, B, residual are bf16; accumulation and epilogue math are f32.
# (BN scale is already folded into B's columns at init.)
# -----------------------------------------------------------------------------
def _make_mm_kernel(relu, has_res):
    def kernel(*refs):
        if has_res:
            a_ref, b_ref, bias_ref, r_ref, o_ref, acc_ref = refs
        else:
            a_ref, b_ref, bias_ref, o_ref, acc_ref = refs
            r_ref = None
        k = pl.program_id(2)

        @pl.when(k == 0)
        def _():
            acc_ref[...] = jnp.zeros_like(acc_ref)

        acc_ref[...] += jnp.dot(a_ref[...], b_ref[...],
                                preferred_element_type=jnp.float32)

        @pl.when(k == pl.num_programs(2) - 1)
        def _():
            out = acc_ref[...] + bias_ref[0:1, :]
            if has_res:
                out = out + r_ref[...].astype(jnp.float32)
            if relu:
                out = jnp.maximum(out, 0.0)
            o_ref[...] = out.astype(o_ref.dtype)

    return kernel


def _choose_tiles(M, N, K):
    """Adaptive tile sizes.

    * tn: 256 / 128 when the channel count allows it, else the full N.
    * tk: the largest of (512, 384, 256, 128) dividing K, else all of K in one
      step (full-dim blocks are always legal) so K is never padded.
    * tm: the whole M when it is small, otherwise up to 2048 (narrow N) /
      1024 (wide N), shrunk so one bf16 A tile fits the per-generation budget.
    """
    if N % 256 == 0:
        tn = 256
    elif N % 128 == 0:
        tn = 128
    else:
        tn = N
    if K % 128 == 0:
        tk = next(c for c in (512, 384, 256, 128) if K % c == 0)
    else:
        tk = K
    if M <= 2048:
        tm = M
    else:
        tm = 2048 if tn <= 128 else 1024
        while tm > 128 and tm * tk * 2 > _A_TILE_BUDGET:
            tm //= 2              # stays a multiple of 8
    return tm, tk, tn


@functools.lru_cache(maxsize=None)
def _mm_callable(M, N, K, relu, has_res, out_dtype_name):
    tm, tk, tn = _choose_tiles(M, N, K)
    out_dtype = jnp.dtype(out_dtype_name)

    in_specs = [
        pl.BlockSpec((tm, tk), lambda i, j, k: (i, k)),
        pl.BlockSpec((tk, tn), lambda i, j, k: (k, j)),
        pl.BlockSpec((1, tn), lambda i, j, k: (0, j)),
    ]
    if has_res:
        in_specs.append(pl.BlockSpec((tm, tn), lambda i, j, k: (i, j)))

    out_bytes = M * N * out_dtype.itemsize
    cost = pl.CostEstimate(
        flops=2 * M * N * K,
        transcendentals=0,
        bytes_accessed=int(2 * M * K + 2 * K * N + out_bytes
                           + (2 * M * N if has_res else 0)),
    )

    f = pl.pallas_call(
        _make_mm_kernel(relu, has_res),
        out_shape=jax.ShapeDtypeStruct((M, N), out_dtype),
        grid_spec=pltpu.PrefetchScalarGridSpec(
            num_scalar_prefetch=0,
            grid=(pl.cdiv(M, tm), pl.cdiv(N, tn), pl.cdiv(K, tk)),
            in_specs=in_specs,
            out_specs=pl.BlockSpec((tm, tn), lambda i, j, k: (i, j)),
            scratch_shapes=[pltpu.VMEM((tm, tn), jnp.float32)],
        ),
        compiler_params=pltpu.CompilerParams(
            dimension_semantics=("parallel", "parallel", "arbitrary"),
            vmem_limit_bytes=_VMEM_BUDGET,
        ),
        cost_estimate=cost,
    )
    return jax.jit(f)


def matmul_fused(a, b, bias, *, relu, residual=None, out_dtype=jnp.bfloat16):
    """a: (M, K), b: (K, N) (BN scale pre-folded), bias: (N,),
    residual: (M, N) or None."""
    M, K = a.shape
    _, N = b.shape
    a = a.astype(jnp.bfloat16)
    b = b.astype(jnp.bfloat16)
    bias2d = bias.reshape(1, N).astype(jnp.float32)
    has_res = residual is not None
    f = _mm_callable(int(M), int(N), int(K), bool(relu), has_res,
                     jnp.dtype(out_dtype).name)
    if has_res:
        return f(a, b, bias2d, residual.astype(jnp.bfloat16))
    return f(a, b, bias2d)


# -----------------------------------------------------------------------------
# Fused stride-1 3x3x3 conv + BN + ReLU: the three d-planes of the padded
# activation stay resident in VMEM; the 27 taps are accumulated in-kernel from
# flat (h*w) slices of those planes (no HBM im2col patch matrix).
#
# Flat-slice trick: with the activation padded to (D+2, H+3, W+2) and each
# d-plane flattened to (Hp*Wp, C), tap (i, jj, kk)'s contribution to the
# (H, Wp) output grid is the contiguous row slice [jj*Wp+kk : jj*Wp+kk+H*Wp].
# Only the two padded output columns w' in {W, W+1} pick up wrap-around
# values; they are dropped by the final slice.
# -----------------------------------------------------------------------------
def _make_conv3x3s1_kernel(cin, wp, L, relu):
    def kernel(x0_ref, x1_ref, x2_ref, b_ref, bias_ref, o_ref, acc_ref):
        planes = (x0_ref, x1_ref, x2_ref)
        first = True
        for i in range(3):
            xr = planes[i]
            for jj in range(3):
                for kk in range(3):
                    t = (i * 3 + jj) * 3 + kk
                    s = jj * wp + kk
                    a = xr[0, s:s + L, :]
                    wt = b_ref[t * cin:(t + 1) * cin, :]
                    contrib = jnp.dot(a, wt,
                                      preferred_element_type=jnp.float32)
                    if first:
                        acc_ref[...] = contrib
                        first = False
                    else:
                        acc_ref[...] += contrib
        out = acc_ref[...] + bias_ref[0:1, :]
        if relu:
            out = jnp.maximum(out, 0.0)
        o_ref[0] = out.astype(o_ref.dtype)

    return kernel


@functools.lru_cache(maxsize=None)
def _conv3x3s1_callable(n, d, h, w, cin, cout, relu):
    dp, hp, wp = d + 2, h + 3, w + 2        # extra bottom h row for flat slices
    L = h * wp
    tn = 256 if cout > 256 else cout        # 512 -> two 256-wide cout blocks
    ncout = cout // tn

    in_specs = []
    for i in range(3):
        in_specs.append(pl.BlockSpec(
            (1, hp * wp, cin),
            lambda jc, nn, dd, i=i: (nn * dp + dd + i, 0, 0)))
    in_specs += [
        pl.BlockSpec((27 * cin, tn), lambda jc, nn, dd: (0, jc)),
        pl.BlockSpec((1, tn), lambda jc, nn, dd: (0, jc)),
    ]

    flops = 2 * (n * d * L) * cout * 27 * cin
    bytes_acc = int(3 * ncout * n * d * hp * wp * cin * 2
                    + n * d * 27 * cin * cout * 2
                    + n * d * L * cout * 2)

    f = pl.pallas_call(
        _make_conv3x3s1_kernel(cin, wp, L, relu),
        out_shape=jax.ShapeDtypeStruct((n * d, L, cout), jnp.bfloat16),
        grid_spec=pltpu.PrefetchScalarGridSpec(
            num_scalar_prefetch=0,
            grid=(ncout, n, d),             # weights outer -> fetched once
            in_specs=in_specs,
            out_specs=pl.BlockSpec((1, L, tn),
                                   lambda jc, nn, dd: (nn * d + dd, 0, jc)),
            scratch_shapes=[pltpu.VMEM((L, tn), jnp.float32)],
        ),
        compiler_params=pltpu.CompilerParams(
            dimension_semantics=("parallel", "parallel", "parallel"),
            vmem_limit_bytes=_VMEM_BUDGET,
        ),
        cost_estimate=pl.CostEstimate(flops=flops, transcendentals=0,
                                      bytes_accessed=bytes_acc),
    )

    def call(xflat, bmat, bias2d):
        return f(xflat, xflat, xflat, bmat, bias2d)

    return jax.jit(call)


def _conv3x3s1(x, conv, *, relu):
    n, d, h, w, cin = x.shape
    cout = conv["bmat"].shape[1]
    wp = w + 2
    xp = jnp.pad(x, ((0, 0), (1, 1), (1, 2), (1, 1), (0, 0)))
    xflat = xp.reshape(n * (d + 2), (h + 3) * wp, cin)
    bias2d = conv["bias"].reshape(1, cout).astype(jnp.float32)
    f = _conv3x3s1_callable(int(n), int(d), int(h), int(w),
                            int(cin), int(cout), bool(relu))
    out = f(xflat, conv["bmat"], bias2d)
    # drop the two wrap-around padded output columns
    return out.reshape(n, d, h, wp, cout)[:, :, :, :w, :]


# -----------------------------------------------------------------------------
# Conv3d (+ folded BN + optional residual + optional ReLU).
# Stride-1 3x3x3 convs use the fused tap-accumulation kernel; 1x1 convs use a
# strided view; the remaining convs (7x7x7 stem, stride-2 3x3x3) use im2col.
# -----------------------------------------------------------------------------
def conv3d_bn_act(x, conv, *, stride=(1, 1, 1), padding=(0, 0, 0),
                  relu=True, residual=None):
    n, d, h, wdim, cin = x.shape
    kd, kh, kw = conv["ksize"]
    bmat = conv["bmat"]
    cout = bmat.shape[1]

    if ((kd, kh, kw) == (3, 3, 3) and stride == (1, 1, 1)
            and padding == (1, 1, 1) and residual is None):
        return _conv3x3s1(x, conv, relu=relu)

    sd, sh, sw = stride
    pd, ph, pw = padding
    do = (d + 2 * pd - kd) // sd + 1
    ho = (h + 2 * ph - kh) // sh + 1
    wo = (wdim + 2 * pw - kw) // sw + 1
    m = n * do * ho * wo

    if (kd, kh, kw) == (1, 1, 1) and padding == (0, 0, 0):
        a = x[:, ::sd, ::sh, ::sw, :].reshape(m, cin)
    else:
        # TODO(synk): the 7x7x7 stem and the three stride-2 3x3x3 convs still
        # materialize an im2col patch matrix in HBM; stream their taps from a
        # VMEM halo as done for the stride-1 3x3x3 convs.
        xp = jnp.pad(x, ((0, 0), (pd, pd), (ph, ph), (pw, pw), (0, 0)))
        patches = []
        for i in range(kd):
            for j in range(kh):
                for k in range(kw):
                    patches.append(
                        xp[:, i:i + sd * (do - 1) + 1:sd,
                              j:j + sh * (ho - 1) + 1:sh,
                              k:k + sw * (wo - 1) + 1:sw, :])
        a = jnp.stack(patches, axis=4).reshape(m, kd * kh * kw * cin)

    res2d = None if residual is None else residual.reshape(m, cout)
    out = matmul_fused(a, bmat, conv["bias"], relu=relu, residual=res2d,
                       out_dtype=jnp.bfloat16)
    return out.reshape(n, do, ho, wo, cout)


# -----------------------------------------------------------------------------
# MaxPool3d(kernel=3, stride=2, padding=1): w/h taps folded with fused strided
# jnp.maximum's (no 27x stacked window tensor); final 3-way d-tap max in a
# small lane-dense Pallas kernel.  Input is post-ReLU, so zero padding is
# max-neutral.
# -----------------------------------------------------------------------------
def _maxpool_kernel(x_ref, o_ref):
    o_ref[...] = jnp.max(x_ref[...], axis=0)


def maxpool3d_k3s2p1(x):
    n, d, h, w, c = x.shape
    do = (d + 2 - 3) // 2 + 1
    ho = (h + 2 - 3) // 2 + 1
    wo = (w + 2 - 3) // 2 + 1
    xp = jnp.pad(x, ((0, 0), (1, 1), (1, 1), (1, 1), (0, 0)))

    t = None
    for k in range(3):                        # w taps
        s = xp[:, :, :, k:k + 2 * (wo - 1) + 1:2, :]
        t = s if t is None else jnp.maximum(t, s)
    u = None
    for j in range(3):                        # h taps
        s = t[:, :, j:j + 2 * (ho - 1) + 1:2, :, :]
        u = s if u is None else jnp.maximum(u, s)

    slices = [u[:, i:i + 2 * (do - 1) + 1:2] for i in range(3)]   # d taps
    m = n * do * ho * wo
    total = m * c
    lanes = c
    for width in (512, 256, 128):
        if total % width == 0:
            lanes = width
            break
    rows = total // lanes
    stk = jnp.stack(slices, axis=0).reshape(3, rows, lanes)
    tr = rows if rows <= 4096 else 1024
    out = pl.pallas_call(
        _maxpool_kernel,
        out_shape=jax.ShapeDtypeStruct((rows, lanes), x.dtype),
        grid=(pl.cdiv(rows, tr),),
        in_specs=[pl.BlockSpec((3, tr, lanes), lambda i: (0, i, 0))],
        out_specs=pl.BlockSpec((tr, lanes), lambda i: (i, 0)),
        compiler_params=pltpu.CompilerParams(
            dimension_semantics=("parallel",),
            vmem_limit_bytes=_VMEM_BUDGET),
    )(stk)
    return out.reshape(n, do, ho, wo, c)


# -----------------------------------------------------------------------------
# AvgPool3d((1, H, W), stride=1) over a (N, 1, H, W, C) feature map — in Pallas
# -----------------------------------------------------------------------------
def _avgpool_kernel(x_ref, o_ref):
    o_ref[...] = jnp.mean(x_ref[...].astype(jnp.float32), axis=1)


def avgpool_spatial(x):
    n, d, h, w, c = x.shape
    assert d == 1, "temporal dim must be 1 before the (1,7,7) avgpool"
    xf = x.reshape(n, d * h * w, c)
    out = pl.pallas_call(
        _avgpool_kernel,
        out_shape=jax.ShapeDtypeStruct((n, c), jnp.float32),
        grid=(1,),
        in_specs=[pl.BlockSpec((n, d * h * w, c), lambda i: (0, 0, 0))],
        out_specs=pl.BlockSpec((n, c), lambda i: (0, 0)),
        compiler_params=pltpu.CompilerParams(vmem_limit_bytes=_VMEM_BUDGET),
    )(xf)
    return out


# -----------------------------------------------------------------------------
# Parameters (deterministic, mirroring the PyTorch __init__ initialisation).
# Weights are stored pre-reshaped to matmul layout (K, Cout) in bf16 with the
# folded eval-mode BN scale already multiplied into the columns; BN bias is a
# per-channel f32 vector.
# -----------------------------------------------------------------------------
def init_params(seed, num_classes):
    base = jax.random.PRNGKey(seed)
    counter = [0]

    def nk():
        counter[0] += 1
        return jax.random.fold_in(base, counter[0])

    eps = 1e-5

    def bn_fold(c):
        gamma = jnp.ones((c,), jnp.float32)
        beta = jnp.zeros((c,), jnp.float32)
        mean = jnp.zeros((c,), jnp.float32)
        var = jnp.ones((c,), jnp.float32)
        scale = gamma / jnp.sqrt(var + eps)
        bias = beta - mean * scale
        return scale, bias

    def conv_bn(cin, cout, k):
        kd, kh, kw = k
        # matches the module's init rule: n = kernel[0]*kernel[1]*out_channels
        std = math.sqrt(2.0 / (kd * kh * cout))
        w = std * jax.random.normal(nk(), (cout, cin, kd, kh, kw), jnp.float32)
        bmat = jnp.transpose(w, (2, 3, 4, 1, 0)).reshape(kd * kh * kw * cin,
                                                         cout)
        scale, bias = bn_fold(cout)
        bmat = bmat * scale[None, :]          # fold BN scale into the weights
        return {"bmat": bmat.astype(jnp.bfloat16), "bias": bias, "ksize": k}

    params = {"stem": conv_bn(3, 64, (7, 7, 7))}

    layer_cfg = [(64, 3, 1), (128, 4, 2), (256, 23, 2), (512, 3, 2)]  # ResNet-101
    inplanes = 64
    layers = []
    for planes, nblocks, stride in layer_cfg:
        blocks = []
        for bidx in range(nblocks):
            s = stride if bidx == 0 else 1
            blk = {
                "conv1": conv_bn(inplanes, planes, (1, 1, 1)),
                "conv2": conv_bn(planes, planes, (3, 3, 3)),
                "conv3": conv_bn(planes, planes * 4, (1, 1, 1)),
                "stride": s,
            }
            if bidx == 0 and (s != 1 or inplanes != planes * 4):
                blk["down"] = conv_bn(inplanes, planes * 4, (1, 1, 1))
            blocks.append(blk)
            inplanes = planes * 4
        layers.append(blocks)
    params["layers"] = layers

    # fc_action: xavier_uniform weight, zero bias
    bound = math.sqrt(6.0 / (2048 + num_classes))
    fc_w = jax.random.uniform(nk(), (num_classes, 2048), jnp.float32,
                              -bound, bound)
    params["fc_bmat"] = fc_w.T.astype(jnp.bfloat16)       # (2048, num_classes)
    params["fc_b"] = jnp.zeros((num_classes,), jnp.float32)
    return params


# -----------------------------------------------------------------------------
# Forward pass (rgb_resnet3D101X semantics)
# -----------------------------------------------------------------------------
def bottleneck(x, blk):
    s = blk["stride"]
    if "down" in blk:
        residual = conv3d_bn_act(x, blk["down"], stride=(s, s, s), relu=False)
    else:
        residual = x
    out = conv3d_bn_act(x, blk["conv1"], relu=True)
    out = conv3d_bn_act(out, blk["conv2"], stride=(s, s, s),
                        padding=(1, 1, 1), relu=True)
    # conv3 + bn3 + residual add + relu fused into one Pallas kernel epilogue
    out = conv3d_bn_act(out, blk["conv3"], relu=True, residual=residual)
    return out


def rgb_resnet3d101x_forward(params, x_ncdhw, num_classes):
    # PyTorch input is NCDHW; transpose to channels-last NDHWC, carry bf16.
    x = jnp.transpose(x_ncdhw, (0, 2, 3, 4, 1)).astype(jnp.bfloat16)
    x = conv3d_bn_act(x, params["stem"], stride=(1, 2, 2),
                      padding=(3, 3, 3), relu=True)
    x = maxpool3d_k3s2p1(x)
    for blocks in params["layers"]:
        for blk in blocks:
            x = bottleneck(x, blk)
    pooled = avgpool_spatial(x)                  # AvgPool3d((1,7,7)) + flatten
    # Dropout(p=0.8): identity in eval/inference mode.
    logits = matmul_fused(pooled.astype(jnp.bfloat16), params["fc_bmat"],
                          params["fc_b"], relu=False, out_dtype=jnp.float32)
    return logits


if __name__ == "__main__":
    num_classes = 16
    # Smallest input that yields the (1, 7, 7, 2048) feature map required by
    # AvgPool3d((1, 7, 7)) followed by Linear(2048, num_classes):
    #   D=2 -> temporal 1 after downsampling, H=W=193 -> spatial 7 after /32.
    N, C, D, H, W = 2, 3, 2, 193, 193
    x = jax.random.normal(jax.random.PRNGKey(0), (N, C, D, H, W), jnp.float32)
    params = init_params(0, num_classes)
    out = rgb_resnet3d101x_forward(params, x, num_classes)
    out = jax.block_until_ready(out)
    assert out.shape == (N, num_classes)
    assert bool(jnp.all(jnp.isfinite(out)))
    print("KERNEL_OK")
</pallas_src>

<mosaic_0001>
module attributes {stable_mosaic.version = 11 : i64} {
  func.func @kernel(%arg0: i32, %arg1: i32, %arg2: i32, %arg3: memref<1024x1029xbf16, #tpu.memory_space<vmem>>, %arg4: memref<1029x64xbf16, #tpu.memory_space<vmem>>, %arg5: memref<1x64xf32, #tpu.memory_space<vmem>>, %arg6: memref<1024x64xbf16, #tpu.memory_space<vmem>>, %arg7: memref<1024x64xf32, #tpu.memory_space<vmem>>) attributes {dimension_semantics = [#tpu.dimension_semantics<parallel>, #tpu.dimension_semantics<parallel>, #tpu.dimension_semantics<arbitrary>], iteration_bounds = array<i64: 37, 1, 1>, scalar_prefetch = 0 : i64, scratch_operands = 1 : i64, tpu.core_type = #tpu.core_type<tc>, window_params = [{transform_indices = @transform_0, window_bounds = array<i64: 1024, 1029>}, {transform_indices = @transform_1, window_bounds = array<i64: 1029, 64>}, {transform_indices = @transform_2, window_bounds = array<i64: 1, 64>}, {transform_indices = @transform_3, window_bounds = array<i64: 1024, 64>}]} {
    %c0_i32 = arith.constant 0 : i32
    %0 = arith.cmpi eq, %arg2, %c0_i32 : i32
    %1 = arith.extui %0 : i1 to i32
    %c0_i32_0 = arith.constant 0 : i32
    %2 = arith.cmpi ne, %1, %c0_i32_0 : i32
    scf.if %2 {
      %cst_10 = arith.constant 0.000000e+00 : f32
      %12 = vector.broadcast %cst_10 : f32 to vector<1024x64xf32>
      %c0_11 = arith.constant 0 : index
      %c0_12 = arith.constant 0 : index
      %13 = vector.load %arg7[%c0_11, %c0_12] : memref<1024x64xf32, #tpu.memory_space<vmem>>, vector<1024x64xf32>
      tpu.vector_store %arg7[%c0_11, %c0_12], %12 {strides = array<i32>} : memref<1024x64xf32, #tpu.memory_space<vmem>>, vector<1024x64xf32>,
    } else {
    }
    %c0 = arith.constant 0 : index
    %c0_1 = arith.constant 0 : index
    %3 = vector.load %arg7[%c0, %c0_1] : memref<1024x64xf32, #tpu.memory_space<vmem>>, vector<1024x64xf32>
    %c0_2 = arith.constant 0 : index
    %c0_3 = arith.constant 0 : index
    %4 = vector.load %arg3[%c0_2, %c0_3] : memref<1024x1029xbf16, #tpu.memory_space<vmem>>, vector<1024x1029xbf16>
    %c0_4 = arith.constant 0 : index
    %c0_5 = arith.constant 0 : index
    %5 = vector.load %arg4[%c0_4, %c0_5] : memref<1029x64xbf16, #tpu.memory_space<vmem>>, vector<1029x64xbf16>
    %cst = arith.constant dense<0.000000e+00> : vector<1024x64xf32>
    %6 = tpu.matmul %4, %5, %cst {dimension_numbers = #tpu.dot_dimension_numbers<[1], [0], [0], [1], [0, 0, 1, 1], [], []>} : vector<1024x1029xbf16>, vector<1029x64xbf16>, vector<1024x64xf32> -> vector<1024x64xf32>
    %7 = arith.addf %3, %6 : vector<1024x64xf32>
    %c0_6 = arith.constant 0 : index
    %c0_7 = arith.constant 0 : index
    %8 = vector.load %arg7[%c0_6, %c0_7] : memref<1024x64xf32, #tpu.memory_space<vmem>>, vector<1024x64xf32>
    tpu.vector_store %arg7[%c0_6, %c0_7], %7 {strides = array<i32>} : memref<1024x64xf32, #tpu.memory_space<vmem>>, vector<1024x64xf32>,
    %c0_i32_8 = arith.constant 0 : i32
    %9 = arith.cmpi eq, %arg2, %c0_i32_8 : i32
    %10 = arith.extui %9 : i1 to i32
    %c0_i32_9 = arith.constant 0 : i32
    %11 = arith.cmpi ne, %10, %c0_i32_9 : i32
    scf.if %11 {
      %c0_10 = arith.constant 0 : index
      %c0_11 = arith.constant 0 : index
      %12 = vector.load %arg7[%c0_10, %c0_11] : memref<1024x64xf32, #tpu.memory_space<vmem>>, vector<1024x64xf32>
      %c0_12 = arith.constant 0 : index
      %c0_13 = arith.constant 0 : index
      %13 = vector.load %arg5[%c0_12, %c0_13] : memref<1x64xf32, #tpu.memory_space<vmem>>, vector<1x64xf32>
      %14 = vector.broadcast %13 : vector<1x64xf32> to vector<1024x64xf32>
      %15 = arith.addf %12, %14 : vector<1024x64xf32>
      %cst_14 = arith.constant 0.000000e+00 : f32
      %16 = vector.broadcast %cst_14 : f32 to vector<1024x64xf32>
      %17 = arith.maximumf %15, %16 : vector<1024x64xf32>
      %18 = arith.truncf %17 : vector<1024x64xf32> to vector<1024x64xbf16>
      %c0_15 = arith.constant 0 : index
      %c0_16 = arith.constant 0 : index
      %19 = vector.load %arg6[%c0_15, %c0_16] : memref<1024x64xbf16, #tpu.memory_space<vmem>>, vector<1024x64xbf16>
      tpu.vector_store %arg6[%c0_15, %c0_16], %18 {strides = array<i32>} : memref<1024x64xbf16, #tpu.memory_space<vmem>>, vector<1024x64xbf16>,
    } else {
    }
    return
  }
  func.func @transform_0(%arg0: i32, %arg1: i32, %arg2: i32) -> (i32, i32) {
    %c0_i32 = arith.constant 0 : i32
    return %arg0, %arg2 : i32, i32
  }
  func.func @transform_1(%arg0: i32, %arg1: i32, %arg2: i32) -> (i32, i32) {
    %c0_i32 = arith.constant 0 : i32
    return %arg2, %arg1 : i32, i32
  }
  func.func @transform_2(%arg0: i32, %arg1: i32, %arg2: i32) -> (i32, i32) {
    %c0_i32 = arith.constant 0 : i32
    %c0_i32_0 = arith.constant 0 : i32
    return %c0_i32, %arg1 : i32, i32
  }
  func.func @transform_3(%arg0: i32, %arg1: i32, %arg2: i32) -> (i32, i32) {
    %c0_i32 = arith.constant 0 : i32
    return %arg0, %arg1 : i32, i32
  }
}

</mosaic_0001>

<bundles_post_ra>
// kernel: tpu_custom_call.1
= control target key start
LH: loop header
LB: loop body
LE: loop exit
PB: predicated region body
PF: predicated region fallthrough
CT: control target
= control target key end

     0   :  { %8 = vsyncpa [#allocation4], 0  ;;  %s15207_s0 = inlined_call_operand.hbm [shape: bf16[37636,1029], index: 0, kind: input, shape index: {}]   ;;  %s15208_s1 = inlined_call_operand.vmem [shape: bf16[1029,64], index: 1, kind: input, shape index: {}]   ;;  %s15209_s2 = inlined_call_operand.vmem [shape: f32[1,64], index: 2, kind: input, shape index: {}]   ;;  %s15210_s3 = inlined_call_operand.vmem [shape: bf16[37636,64], index: 3, kind: output, shape index: {}]  }
   0x1   :  { %10 = vsyncpa [#allocation4 + $0x1], 0  ;;  %s12370_s12 = smov 0   ;;  %s12372_s13 = smov 0  }
   0x2   :  { %s12374_s14 = smov 0   ;;  %s12376_s15 = smov 0  }
   0x3   :  { %s12378_s16 = smov 0   ;;  %s12380_s17 = smov 0  }
   0x4 LB: > { %s9316_s18 = sadd.s32 4294967295, %s12310_s17   ;;  %s35_s19 = sadd.s32 1, %s12306_s16  ;;  %s12310_s17 = sphi %s12380_s17, %s16_s17   ;;  %s12306_s16 = sphi %s12378_s16, %s15422_s16   ;;  %s12302_s15 = sphi %s12376_s15, %s15421_s15   ;;  %s12298_s14 = sphi %s12374_s14, %s15420_s14   ;;  %s12294_s13 = sphi %s12372_s13, %s15419_s13   ;;  %s12290_s12 = sphi %s12370_s12, %s15418_s12  }
   0x5   : > { %p37_p0 = scmp.ge.s32.totalorder %s35_s19, 37  ;;  %s44_s20 = sadd.s32 1, %s12298_s14 }
   0x6   : > { %p51_p1 = scmp.ne.s32.totalorder %s12298_s14, %s12294_s13  ;;  %p52_p2 = scmp.eq.s32.totalorder %s12310_s17, 0 }
   0x7   : > { %s15424_s19 = smov (%p37_p0, %s35_s19), 0  ;;  %p57_p4 = scmp.ne.s32.totalorder %s12294_s13, %s12290_s12 }
   0x8   : > { %p53_p3 = por %p52_p2, %p51_p1  ;;  %s39_s21 = ssub.s32 %s12306_s16, %s15424_s19 }
   0x9   : > { %p58_p5 = scmp.eq.s32.totalorder %s9316_s18, 0  ;;  %p42_p6 = scmp.eq.s32.totalorder %s39_s21, 0 }
   0xa   : > { %p137_p7 = scmp.eq.s32.totalorder %s9316_s18, 36  ;;  %p9321_p10 = scmp.ge.s32.totalorder %s12310_s17, 37 }
   0xb   : > { %p12409_p8 = por %p58_p5, %p57_p4 }
   0xc   : > { %s12414_s23 = scalar_select %p42_p6, %s12298_s14, %s44_s20  }
   0xd   : > { %p12416_p9 = por %p137_p7, %p51_p1  ;;  %177 = sbr.rel (%p9321_p10) target bundleno = 56 (0x38), region = 24 }
  0x14   : > { %180 = sbr.rel (!%p53_p3) target bundleno = 56 (0x38), region = 28  ;;  %s181_s25 = sand.u32 (%p53_p3), 1, %s12298_s14  }
  0x15   : > { %s9322_s26 = sshll.u32 (%p53_p3), %s12306_s16, 7  ;;  %s11180_s27 = smul.u32 (%p53_p3), 4608, %s181_s25 }
  0x16   : > { %s188_s28 = ssub.s32 (%p53_p3), 4705, %s9322_s26  ;;  %s12426_s4 = scalar_lea.sflag (%p53_p3), [#allocation4], %s181_s25 }
  0x17   : > { %p189_p11 = scmp.lt.s32.totalorder (%p53_p3), %s188_s28, 128  ;;  %s185_s5 = scalar_lea.vmem (%p53_p3), [#allocation3], %s11180_s27 }
  0x1b   : > { %s15426_s28 = smov (!%p189_p11, %s188_s28), 128 }
  0x1c   : > { %s12423_s29 = smul.u32 576, %s15426_s28 }
  0x1e   : > { %s194_s30 = ssub.s32 73728, %s12423_s29 }
  0x1f   : > { %195 = vsyncadd %s12426_s4, %s194_s30  ;;  %p9325_p12 = scmp.ne.s32.totalorder %s12423_s29, 0  ;;  %s11181_s6 = smul.u32 73728, %s12306_s16 }
  0x20   : > { %s202_s7 = sshll.u32 %s185_s5, 4  ;;  %s12204_s20 = scalar_lea.hbm %s15207_s0, 2710080  ;;  %s12436_s7 = int_to_ptr.vmem [resolvable:$true] %s202_s7 }
  0x21   : > { %s12434_s10 = scalar_lea.hbm %s15207_s0, %s11181_s6 }
  0x22   : > { %s12200_s11 = scalar_lea.hbm %s12434_s10, %s12423_s29  ;;  %p12205_p2 = scmp.lt.u32.totalorder %s12434_s10, %s15207_s0 }
  0x23   : > { %p12201_p13 = scmp.ne.s32.totalorder %s12434_s10, %s12200_s11  ;;  %p12206_p3 = scmp.lt.u32.totalorder %s12204_s20, %s12200_s11 }
  0x24   : > { %p12208_p5 = scmp.lt.u32.totalorder %s12200_s11, %s12434_s10 }
  0x25   : > { %p12202_p0 = pnand %p12201_p13, %p9325_p12  ;;  %p12207_p4 = por %p12206_p3, %p12205_p2 }
  0x27   : > { %p12203_p1 = pneg %p12202_p0  ;;  %p12209_p6 = por %p12208_p5, %p12207_p4 }
  0x29   : > { %p12210_p7 = pnand %p12209_p6, %p12203_p1 }
  0x2b   : > { %12213 = shalt.err (!%p12210_p7)
}
  0x2c   : > { %s12214_s26 = scalar_lea.vmem %s12436_s7, %s12423_s29  ;;  %s12344_s27 = smov [#allocation3]  }
  0x2d   : > { %p12215_p10 = scmp.ne.s32.totalorder %s12436_s7, %s12214_s26  ;;  %s12218_s28 = sshll.u32 %s12344_s27, 4  ;;  %s12219_s28 = int_to_ptr.vmem [resolvable:$false] %s12218_s28 }
  0x2e   : > { %s12220_s30 = scalar_lea.vmem %s12219_s28, 147456  ;;  %p12221_p0 = scmp.lt.s32.totalorder %s12436_s7, %s12219_s28 }
  0x2f   : > { %p12216_p11 = pnand %p12215_p10, %p9325_p12  ;;  %p12222_p2 = scmp.lt.s32.totalorder %s12220_s30, %s12214_s26 }
  0x31   : > { %p12217_p13 = pneg %p12216_p11  ;;  %p12223_p3 = por %p12222_p2, %p12221_p0 }
  0x33   : > { %p12224_p4 = pnand %p12223_p3, %p12217_p13 }
  0x35   : > { %12227 = shalt.err (!%p12224_p4)
}
  0x36   : > { %s12345_s5 = smov 576   ;;  %s12346_s6 = smov 36  }
  0x37   : > { %208 = dma.hbm_to_vmem [thread:$0]  (%p9325_p12), %s12434_s10, %s12423_s29, %s12436_s7, %s12426_s4, %s12345_s5, %s12345_s5, %s12346_s6  }
  0x38 PF: > { %p9329_p1 = scmp.ge.s32.totalorder %s12310_s17, 1  ;;  %p210_p5 = scmp.lt.s32.totalorder %s12310_s17, 38 }
  0x3a   : > { %p211_p6 = pnand %p9329_p1, %p210_p5 }
  0x3c   : > { %214 = sbr.rel (%p211_p6) target bundleno = 1654 (0x676), region = 32 }
  0x43   : > { %s12466_s8 = sand.u32 1, %s12294_s13  }
  0x44   : > { %s11182_s9 = smul.u32 4608, %s12466_s8  ;;  %s217_s11 = scalar_lea.sflag [#allocation4], %s12466_s8 }
  0x46   : > { %s12470_s12 = scalar_lea.vmem [#allocation3], %s11182_s9 }
  0x47   : > { %12285 = dma.done.wait (%p12409_p8), %s217_s11, 73728  }
  0x48   : > { %12287 = vsyncadd (%p12409_p8), %s217_s11, 4294893568  ;;  %v12347_v0 = vmov 0   ;;  %v11301_v1 = vld [vmem:[%s15208_s1] sm:$0xff]   ;;  %v11303_v3 = vld [vmem:[%s15208_s1 + $0x8] sm:$0xff]   ;;  %vm4768_vm0 = vcmask 1041408   ;;  %vm4769_vm1 = vcmask 1042432  }
  0x49   : > { %4775 = vmatprep.subr.bf16.mxu1 %v12347_v0  ;;  %5320 = vmatprep.subr.bf16.mxu0 %v12347_v0  ;;  %v12484_v2 = vld [vmem:[%s15208_s1 + $0x80] sm:$0xff]   ;;  %v12494_v4 = vld [vmem:[%s15208_s1 + $0x88] sm:$0xff]   ;;  %v11305_v5 = vld [vmem:[%s15208_s1 + $0x10] sm:$0xff]   ;;  %vm4575_vm2 = vcmask 39936   ;;  %vm282_vm3 = vcmask 523264   ;;  %s9330_s5 = sshll.u32 %s12466_s8, 9 }
  0x4a   : > { %4776 = vmatpush1.bf16.msra.mxu1 %v11301_v1  ;;  %5321 = vmatpush1.bf16.msra.mxu0 %v12484_v2  ;;  %v12505_v6 = vld [vmem:[%s15208_s1 + $0x90] sm:$0xff]   ;;  %v11307_v7 = vld [vmem:[%s15208_s1 + $0x18] sm:$0xff]   ;;  %v11309_v9 = vld [vmem:[%s15208_s1 + $0x20] sm:$0xff]   ;;  %vm8663_vm4 = vcmask 519168   ;;  %s14199_s6 = scalar_lea.vmem [#allocation5], %s9330_s5   ;;  %s10166_s29 = sshll.u32 (%p12416_p9), %s12302_s15, 7 }
  0x4b   : > { %4777 = vmatprep.subr.bf16.mxu1 %v12347_v0  ;;  %5322 = vmatprep.subr.bf16.mxu0 %v12347_v0  ;;  %v12516_v8 = vld [vmem:[%s15208_s1 + $0x98] sm:$0xff]   ;;  %v12527_v10 = vld [vmem:[%s15208_s1 + $0xa0] sm:$0xff]   ;;  %v11311_v11 = vld [vmem:[%s15208_s1 + $0x28] sm:$0xff]   ;;  %s10310_s4 = sshll.u32 (%p12416_p9), %s12302_s15, 9  ;;  %s8800_s7 = ssub.s32 (%p12416_p9), 4705, %s10166_s29 }
  0x4c   : > { %v12538_v12 = vld [vmem:[%s15208_s1 + $0xa8] sm:$0xff]   ;;  %v11313_v13 = vld [vmem:[%s15208_s1 + $0x30] sm:$0xff]   ;;  %v11315_v15 = vld [vmem:[%s15208_s1 + $0x38] sm:$0xff]   ;;  %s15007_s20 = scalar_lea.vmem (%p12416_p9), %s15210_s3, %s10310_s4   ;;  %p8801_p8 = scmp.lt.s32.totalorder (%p12416_p9), %s8800_s7, 128 }
  0x4d   : > { %v12549_v14 = vld [vmem:[%s15208_s1 + $0xb0] sm:$0xff]   ;;  %v12560_v16 = vld [vmem:[%s15208_s1 + $0xb8] sm:$0xff]   ;;  %v11317_v17 = vld [vmem:[%s15208_s1 + $0x40] sm:$0xff]  }
  0x4e   : > { %4778 = vmatpush1.bf16.msra.mxu1 %v11303_v3  ;;  %5323 = vmatpush1.bf16.msra.mxu0 %v12494_v4  ;;  %v12571_v18 = vld [vmem:[%s15208_s1 + $0xc0] sm:$0xff]   ;;  %v11319_v20 = vld [vmem:[%s15208_s1 + $0x48] sm:$0xff]   ;;  %v11321_v23 = vld [vmem:[%s15208_s1 + $0x50] sm:$0xff]  }
  0x4f   : > { %4779 = vmatprep.subr.bf16.mxu1 %v12347_v0  ;;  %5324 = vmatprep.subr.bf16.mxu0 %v12347_v0  ;;  %v11335_v19 = vld [vmem:[%s12470_s12 + $0x4] ss:$36 sps:$4 sm:$0xff]   ;;  %v11338_v21 = vld [vmem:[%s12470_s12 + $0xc] ss:$36 sps:$4 sm:$0xff]   ;;  %v11323_v25 = vld [vmem:[%s15208_s1 + $0x58] sm:$0xff]  }
  0x50   : > { %v12584_v22 = vld [vmem:[%s15208_s1 + $0xc8] sm:$0xff]   ;;  %4807 = vmatprep.mubr.bf16.mxu1 %v11335_v19  ;;  %5352 = vmatprep.mubr.bf16.mxu0 %v11338_v21  ;;  %v12595_v24 = vld [vmem:[%s15208_s1 + $0xd0] sm:$0xff]   ;;  %v12606_v26 = vld [vmem:[%s15208_s1 + $0xd8] sm:$0xff]  }
  0x51   : > { %v11325_v27 = vld [vmem:[%s15208_s1 + $0x60] sm:$0xff]   ;;  %v11327_v29 = vld [vmem:[%s15208_s1 + $0x68] sm:$0xff]   ;;  %v11329_v31 = vld [vmem:[%s15208_s1 + $0x70] sm:$0xff]  }
  0x52   : > { %4780 = vmatpush1.bf16.msra.mxu1 %v11305_v5  ;;  %5325 = vmatpush1.bf16.msra.mxu0 %v12505_v6  ;;  %v12617_v28 = vld [vmem:[%s15208_s1 + $0xe0] sm:$0xff]   ;;  %v12628_v30 = vld [vmem:[%s15208_s1 + $0xe8] sm:$0xff]   ;;  %v12639_v32 = vld [vmem:[%s15208_s1 + $0xf0] sm:$0xff]  }
  0x53   : > { %4781 = vmatprep.subr.bf16.mxu1 %v12347_v0  ;;  %5326 = vmatprep.subr.bf16.mxu0 %v12347_v0  ;;  %v11331_v33 = vld [vmem:[%s15208_s1 + $0x78] sm:$0xff]   ;;  %v11333_v35 = vld [vmem:[%s12470_s12] ss:$36 sps:$4 sm:$0xff]   ;;  %v11336_v36 = vld [vmem:[%s12470_s12 + $0x8] ss:$36 sps:$4 sm:$0xff]  }
  0x54   : > { %v12650_v34 = vld [vmem:[%s15208_s1 + $0xf8] sm:$0xff]   ;;  %v11339_v37 = vld [vmem:[%s15208_s1 + $0x100] sm:$0xff]   ;;  %v11340_v38 = vld [vmem:[%s12470_s12 + $0x4c] ss:$36 sps:$4 sm:$0xff]  }
  0x55   : > { %v11342_v39 = vld [vmem:[%s12470_s12 + $0x54] ss:$36 sps:$4 sm:$0xff]   ;;  %v11346_v40 = vld [vmem:[%s15208_s1 + $0x108] sm:$0xff]   ;;  %v11349_v44 = vld [vmem:[%s12470_s12 + $0x9c] ss:$36 sps:$4 sm:$0xff]  }
  0x56   : > { %4782 = vmatpush1.bf16.msra.mxu1 %v11307_v7  ;;  %5327 = vmatpush1.bf16.msra.mxu0 %v12516_v8  ;;  %v11344_v41 = vld [vmem:[%s12470_s12 + $0x48] ss:$36 sps:$4 sm:$0xff]   ;;  %v11345_v42 = vld [vmem:[%s12470_s12 + $0x50] ss:$36 sps:$4 sm:$0xff]   ;;  %v11360_v46 = vld [vmem:[%s15208_s1 + $0x118] sm:$0xff]  }
  0x57   : > { %4783 = vmatprep.subr.bf16.mxu1 %v12347_v0  ;;  %5328 = vmatprep.subr.bf16.mxu0 %v12347_v0  ;;  %v11347_v43 = vld [vmem:[%s12470_s12 + $0x94] ss:$36 sps:$4 sm:$0xff]   ;;  %v11354_v49 = vld [vmem:[%s12470_s12 + $0xdc] ss:$36 sps:$4 sm:$0xff]   ;;  %v11356_v50 = vld [vmem:[%s12470_s12 + $0xe4] ss:$36 sps:$4 sm:$0xff]  }
  0x58   : > { %v11353_v45 = vld [vmem:[%s15208_s1 + $0x110] sm:$0xff]   ;;  %v11352_v48 = vld [vmem:[%s12470_s12 + $0x98] ss:$36 sps:$4 sm:$0xff]   ;;  %v11367_v51 = vld [vmem:[%s15208_s1 + $0x120] sm:$0xff]  }
  0x59   : > { %v11351_v47 = vld [vmem:[%s12470_s12 + $0x90] ss:$36 sps:$4 sm:$0xff]   ;;  %v11374_v52 = vld [vmem:[%s15208_s1 + $0x128] sm:$0xff]   ;;  %v11358_v53 = vld [vmem:[%s12470_s12 + $0xd8] ss:$36 sps:$4 sm:$0xff]  }
  0x5a   : > { %4784 = vmatpush1.bf16.msra.mxu1 %v11309_v9  ;;  %5329 = vmatpush1.bf16.msra.mxu0 %v12527_v10  ;;  %v11359_v54 = vld [vmem:[%s12470_s12 + $0xe0] ss:$36 sps:$4 sm:$0xff]   ;;  %v11363_v56 = vld [vmem:[%s12470_s12 + $0x12c] ss:$36 sps:$4 sm:$0xff]   ;;  %v11388_v58 = vld [vmem:[%s15208_s1 + $0x138] sm:$0xff]  }
  0x5b   : > { %4785 = vmatprep.subr.bf16.mxu1 %v12347_v0  ;;  %5330 = vmatprep.subr.bf16.mxu0 %v12347_v0  ;;  %v11361_v55 = vld [vmem:[%s12470_s12 + $0x124] ss:$36 sps:$4 sm:$0xff]   ;;  %v11381_v57 = vld [vmem:[%s15208_s1 + $0x130] sm:$0xff]   ;;  %v11377_v5 = vld [vmem:[%s12470_s12 + $0x1bc] ss:$36 sps:$4 sm:$0xff]  }
  0x5c   : > { %v11365_v59 = vld [vmem:[%s12470_s12 + $0x120] ss:$36 sps:$4 sm:$0xff]   ;;  %v11366_v60 = vld [vmem:[%s12470_s12 + $0x128] ss:$36 sps:$4 sm:$0xff]   ;;  %v11370_v62 = vld [vmem:[%s12470_s12 + $0x174] ss:$36 sps:$4 sm:$0xff]  }
  0x5d   : > { %v11368_v61 = vld [vmem:[%s12470_s12 + $0x16c] ss:$36 sps:$4 sm:$0xff]   ;;  %v11395_v63 = vld [vmem:[%s15208_s1 + $0x140] sm:$0xff]   ;;  %v11416_v7 = vld [vmem:[%s15208_s1 + $0x158] sm:$0xff]  }
  0x5e   : > { %4786 = vmatpush1.bf16.msra.mxu1 %v11311_v11  ;;  %5331 = vmatpush1.bf16.msra.mxu0 %v12538_v12  ;;  %v11402_v1 = vld [vmem:[%s15208_s1 + $0x148] sm:$0xff]   ;;  %v11373_v3 = vld [vmem:[%s12470_s12 + $0x170] ss:$36 sps:$4 sm:$0xff]   ;;  %v11380_v9 = vld [vmem:[%s12470_s12 + $0x1b8] ss:$36 sps:$4 sm:$0xff]  }
  0x5f   : > { %4787 = vmatprep.subr.bf16.mxu1 %v12347_v0  ;;  %5332 = vmatprep.subr.bf16.mxu0 %v12347_v0  ;;  %v11384_v11 = vld [vmem:[%s12470_s12 + $0x204] ss:$36 sps:$4 sm:$0xff]  }
  0x60   : > { %v11393_v19 = vld [vmem:[%s12470_s12 + $0x240] ss:$36 sps:$4 sm:$0xff]   ;;  %v11394_v21 = vld [vmem:[%s12470_s12 + $0x248] ss:$36 sps:$4 sm:$0xff]  }
  0x62   : > { %4788 = vmatpush1.bf16.msra.mxu1 %v11313_v13  ;;  %5333 = vmatpush1.bf16.msra.mxu0 %v12549_v14  ;;  %v11386_v13 = vld [vmem:[%s12470_s12 + $0x1f8] ss:$36 sps:$4 sm:$0xff]  }
  0x63   : > { %4789 = vmatprep.subr.bf16.mxu1 %v12347_v0  ;;  %5334 = vmatprep.subr.bf16.mxu0 %v12347_v0 }
  0x66   : > { %4790 = vmatpush1.bf16.msra.mxu1 %v11315_v15  ;;  %5335 = vmatpush1.bf16.msra.mxu0 %v12560_v16  ;;  %v11387_v15 = vld [vmem:[%s12470_s12 + $0x200] ss:$36 sps:$4 sm:$0xff]  }
  0x67   : > { %4791 = vmatprep.subr.bf16.mxu1 %v12347_v0  ;;  %5336 = vmatprep.subr.bf16.mxu0 %v12347_v0 }
  0x6a   : > { %4792 = vmatpush1.bf16.msra.mxu1 %v11317_v17  ;;  %5337 = vmatpush1.bf16.msra.mxu0 %v12571_v18  ;;  %v11391_v17 = vld [vmem:[%s12470_s12 + $0x24c] ss:$36 sps:$4 sm:$0xff]  }
  0x6b   : > { %4793 = vmatprep.subr.bf16.mxu1 %v12347_v0  ;;  %5338 = vmatprep.subr.bf16.mxu0 %v12347_v0 }
  0x6e   : > { %4794 = vmatpush1.bf16.msra.mxu1 %v11319_v20  ;;  %5339 = vmatpush1.bf16.msra.mxu0 %v12584_v22  ;;  %v11444_v20 = vld [vmem:[%s15208_s1 + $0x178] sm:$0xff]  }
  0x6f   : > { %4795 = vmatprep.subr.bf16.mxu1 %v12347_v0  ;;  %5340 = vmatprep.subr.bf16.mxu0 %v12347_v0 }
  0x72   : > { %4796 = vmatpush1.bf16.msra.mxu1 %v11321_v23  ;;  %5341 = vmatpush1.bf16.msra.mxu0 %v12595_v24  ;;  %v11398_v23 = vld [vmem:[%s12470_s12 + $0x294] ss:$36 sps:$4 sm:$0xff]  }
  0x73   : > { %4797 = vmatprep.subr.bf16.mxu1 %v12347_v0  ;;  %5342 = vmatprep.subr.bf16.mxu0 %v12347_v0 }
  0x76   : > { %4798 = vmatpush1.bf16.msra.mxu1 %v11323_v25  ;;  %5343 = vmatpush1.bf16.msra.mxu0 %v12606_v26  ;;  %v11401_v25 = vld [vmem:[%s12470_s12 + $0x290] ss:$36 sps:$4 sm:$0xff]  }
  0x77   : > { %4799 = vmatprep.subr.bf16.mxu1 %v12347_v0  ;;  %5344 = vmatprep.subr.bf16.mxu0 %v12347_v0 }
  0x7a   : > { %4800 = vmatpush1.bf16.msra.mxu1 %v11325_v27  ;;  %5345 = vmatpush1.bf16.msra.mxu0 %v12617_v28  ;;  %v11405_v27 = vld [vmem:[%s12470_s12 + $0x2dc] ss:$36 sps:$4 sm:$0xff]  }
  0x7b   : > { %4801 = vmatprep.subr.bf16.mxu1 %v12347_v0  ;;  %5346 = vmatprep.subr.bf16.mxu0 %v12347_v0 }
  0x7e   : > { %4802 = vmatpush1.bf16.msra.mxu1 %v11327_v29  ;;  %5347 = vmatpush1.bf16.msra.mxu0 %v12628_v30  ;;  %v11408_v29 = vld [vmem:[%s12470_s12 + $0x2d8] ss:$36 sps:$4 sm:$0xff]  }
  0x7f   : > { %4803 = vmatprep.subr.bf16.mxu1 %v12347_v0  ;;  %5348 = vmatprep.subr.bf16.mxu0 %v12347_v0 }
  0x82   : > { %4804 = vmatpush1.bf16.msra.mxu1 %v11329_v31  ;;  %5349 = vmatpush1.bf16.msra.mxu0 %v12639_v32  ;;  %v11412_v31 = vld [vmem:[%s12470_s12 + $0x324] ss:$36 sps:$4 sm:$0xff]  }
  0x83   : > { %4805 = vmatprep.subr.bf16.mxu1 %v12347_v0  ;;  %5350 = vmatprep.subr.bf16.mxu0 %v12347_v0 }
  0x86   : > { %4806 = vmatpush1.bf16.msra.mxu1 %v11331_v33  ;;  %5351 = vmatpush1.bf16.msra.mxu0 %v12650_v34  ;;  %v11415_v33 = vld [vmem:[%s12470_s12 + $0x320] ss:$36 sps:$4 sm:$0xff]  }
  0x87   : > { %10508 = vmatprep.subr.bf16.mxu1 %v12347_v0  ;;  %5865 = vmatprep.subr.bf16.mxu0 %v12347_v0 }
  0x89   : > { %4808 = vmatmul.mubr.bf16.vlgmr.msra.gmra.mrb[0].mxu1 %v11333_v35  ;;  %5353 = vmatmul.mubr.bf16.vlgmr.msra.gmra.mrb[0].mxu0 %v11336_v36  ;;  %v11419_v35 = vld [vmem:[%s12470_s12 + $0x36c] ss:$36 sps:$4 sm:$0xff]   ;;  %v11421_v36 = vld [vmem:[%s12470_s12 + $0x360] ss:$36 sps:$4 sm:$0xff]  }
  0x8a   : > { %10524 = vmatpush1.bf16.msra.mxu1 %v12484_v2  ;;  %5866 = vmatpush1.bf16.msra.mxu0 %v11339_v37  ;;  %v11372_v2 = vld [vmem:[%s12470_s12 + $0x168] ss:$36 sps:$4 sm:$0xff]  }
  0x8b   : > { %4815 = vmatprep.mubr.bf16.mxu1 %v11340_v38  ;;  %5360 = vmatprep.mubr.bf16.mxu0 %v11342_v39  ;;  %v11422_v37 = vld [vmem:[%s12470_s12 + $0x368] ss:$36 sps:$4 sm:$0xff]   ;;  %v11426_v39 = vld [vmem:[%s12470_s12 + $0x3b4] ss:$36 sps:$4 sm:$0xff]  }
  0x8c   : > { %5867 = vmatprep.subr.bf16.mxu0 %v12347_v0  ;;  %10509 = vmatprep.subr.bf16.mxu1 %v12347_v0  ;;  %v11424_v38 = vld [vmem:[%s12470_s12 + $0x3ac] ss:$36 sps:$4 sm:$0xff]  }
  0x8e   : > { %10525 = vmatpush1.bf16.msra.mxu1 %v12494_v4  ;;  %5868 = vmatpush1.bf16.msra.mxu0 %v11346_v40  ;;  %v11375_v4 = vld [vmem:[%s12470_s12 + $0x1b4] ss:$36 sps:$4 sm:$0xff]   ;;  %v11428_v40 = vld [vmem:[%s12470_s12 + $0x3a8] ss:$36 sps:$4 sm:$0xff]  }
  0x8f   : > { %10510 = vmatprep.subr.bf16.mxu1 %v12347_v0  ;;  %5869 = vmatprep.subr.bf16.mxu0 %v12347_v0 }
  0x91   : > { %4816 = vmatmul.mubr.bf16.gmra.mrb[4].mxu1 %v11344_v41  ;;  %5361 = vmatmul.mubr.bf16.gmra.mrb[4].mxu0 %v11345_v42  ;;  %v11429_v41 = vld [vmem:[%s12470_s12 + $0x3b0] ss:$36 sps:$4 sm:$0xff]  }
  0x92   : > { %4823 = vmatprep.mubr.bf16.mxu1 %v11347_v43  ;;  %5368 = vmatprep.mubr.bf16.mxu0 %v11349_v44  ;;  %v11431_v42 = vld [vmem:[%s12470_s12 + $0x3f4] ss:$36 sps:$4 sm:$0xff]   ;;  %v11433_v43 = vld [vmem:[%s12470_s12 + $0x3fc] ss:$36 sps:$4 sm:$0xff]  }
  0x93   : > { %5870 = vmatpush1.bf16.msra.mxu0 %v11353_v45  ;;  %10526 = vmatpush1.bf16.msra.mxu1 %v12505_v6  ;;  %v11409_v6 = vld [vmem:[%s15208_s1 + $0x150] sm:$0xff]   ;;  %v11436_v45 = vld [vmem:[%s12470_s12 + $0x3f8] ss:$36 sps:$4 sm:$0xff]  }
  0x94   : > { %5871 = vmatprep.subr.bf16.mxu0 %v12347_v0  ;;  %10511 = vmatprep.subr.bf16.mxu1 %v12347_v0  ;;  %v11435_v44 = vld [vmem:[%s12470_s12 + $0x3f0] ss:$36 sps:$4 sm:$0xff]  }
  0x97   : > { %5872 = vmatpush1.bf16.msra.mxu0 %v11360_v46  ;;  %10527 = vmatpush1.bf16.msra.mxu1 %v12516_v8  ;;  %v11379_v8 = vld [vmem:[%s12470_s12 + $0x1b0] ss:$36 sps:$4 sm:$0xff]   ;;  %v11438_v46 = vld [vmem:[%s12470_s12 + $0x43c] ss:$36 sps:$4 sm:$0xff]  }
  0x98   : > { %5873 = vmatprep.subr.bf16.mxu0 %v12347_v0  ;;  %10512 = vmatprep.subr.bf16.mxu1 %v12347_v0 }
  0x99   : > { %4824 = vmatmul.mubr.bf16.gmra.mrb[8].mxu1 %v11351_v47  ;;  %5369 = vmatmul.mubr.bf16.gmra.mrb[8].mxu0 %v11352_v48  ;;  %v11440_v47 = vld [vmem:[%s12470_s12 + $0x444] ss:$36 sps:$4 sm:$0xff]   ;;  %v11442_v48 = vld [vmem:[%s12470_s12 + $0x438] ss:$36 sps:$4 sm:$0xff]  }
  0x9a   : > { %4831 = vmatprep.mubr.bf16.mxu1 %v11354_v49  ;;  %5376 = vmatprep.mubr.bf16.mxu0 %v11356_v50  ;;  %v11443_v49 = vld [vmem:[%s12470_s12 + $0x440] ss:$36 sps:$4 sm:$0xff]  }
  0x9b   : > { %5874 = vmatpush1.bf16.msra.mxu0 %v11367_v51  ;;  %10528 = vmatpush1.bf16.msra.mxu1 %v12527_v10  ;;  %v11382_v10 = vld [vmem:[%s12470_s12 + $0x1fc] ss:$36 sps:$4 sm:$0xff]   ;;  %v11445_v50 = vld [vmem:[%s12470_s12 + $0x484] ss:$36 sps:$4 sm:$0xff]   ;;  %v11449_v51 = vld [vmem:[%s12470_s12 + $0x14] ss:$36 sps:$4 sm:$0xff]  }
  0x9c   : > { %5875 = vmatprep.subr.bf16.mxu0 %v12347_v0  ;;  %10513 = vmatprep.subr.bf16.mxu1 %v12347_v0 }
  0x9f   : > { %5876 = vmatpush1.bf16.msra.mxu0 %v11374_v52  ;;  %10529 = vmatpush1.bf16.msra.mxu1 %v12538_v12  ;;  %v11423_v12 = vld [vmem:[%s15208_s1 + $0x160] sm:$0xff]  }
  0xa0   : > { %5877 = vmatprep.subr.bf16.mxu0 %v12347_v0  ;;  %10514 = vmatprep.subr.bf16.mxu1 %v12347_v0  ;;  %v11450_v52 = vld [vmem:[%s12470_s12 + $0x480] ss:$36 sps:$4 sm:$0xff]  }
  0xa1   : > { %4832 = vmatmul.mubr.bf16.gmra.mrb[12].mxu1 %v11358_v53  ;;  %5377 = vmatmul.mubr.bf16.gmra.mrb[12].mxu0 %v11359_v54  ;;  %v11447_v53 = vld [vmem:[%s12470_s12 + $0x10] ss:$36 sps:$4 sm:$0xff]  }
  0xa2   : > { %4839 = vmatprep.mubr.bf16.mxu1 %v11361_v55  ;;  %5384 = vmatprep.mubr.bf16.mxu0 %v11363_v56  ;;  %v11452_v54 = vld [vmem:[%s12470_s12 + $0x4cc] ss:$36 sps:$4 sm:$0xff]   ;;  %v11451_v55 = vld [vmem:[%s15208_s1 + $0x180] sm:$0xff]  }
  0xa3   : > { %5878 = vmatpush1.bf16.msra.mxu0 %v11381_v57  ;;  %10530 = vmatpush1.bf16.msra.mxu1 %v12549_v14  ;;  %v11430_v14 = vld [vmem:[%s15208_s1 + $0x168] sm:$0xff]   ;;  %v11454_v56 = vld [vmem:[%s12470_s12 + $0x5c] ss:$36 sps:$4 sm:$0xff]  }
  0xa4   : > { %5879 = vmatprep.subr.bf16.mxu0 %v12347_v0  ;;  %10515 = vmatprep.subr.bf16.mxu1 %v12347_v0  ;;  %v11476_v57 = vld [vmem:[%s15208_s1 + $0x188] sm:$0xff]  }
  0xa7   : > { %5880 = vmatpush1.bf16.msra.mxu0 %v11388_v58  ;;  %10531 = vmatpush1.bf16.msra.mxu1 %v12560_v16  ;;  %v11389_v16 = vld [vmem:[%s12470_s12 + $0x244] ss:$36 sps:$4 sm:$0xff]  }
  0xa8   : > { %5881 = vmatprep.subr.bf16.mxu0 %v12347_v0  ;;  %10516 = vmatprep.subr.bf16.mxu1 %v12347_v0  ;;  %v11456_v58 = vld [vmem:[%s12470_s12 + $0x4c8] ss:$36 sps:$4 sm:$0xff]  }
  0xa9   : > { %4840 = vmatmul.mubr.bf16.gmra.mrb[16].mxu1 %v11365_v59  ;;  %5385 = vmatmul.mubr.bf16.gmra.mrb[16].mxu0 %v11366_v60  ;;  %v11457_v59 = vld [vmem:[%s12470_s12 + $0x58] ss:$36 sps:$4 sm:$0xff]  }
  0xaa   : > { %4847 = vmatprep.mubr.bf16.mxu1 %v11368_v61  ;;  %5392 = vmatprep.mubr.bf16.mxu0 %v11370_v62  ;;  %v11458_v60 = vld [vmem:[%s12470_s12 + $0x514] ss:$36 sps:$4 sm:$0xff]   ;;  %v11460_v61 = vld [vmem:[%s12470_s12 + $0xa4] ss:$36 sps:$4 sm:$0xff]  }
  0xab   : > { %5882 = vmatpush1.bf16.msra.mxu0 %v11395_v63  ;;  %10532 = vmatpush1.bf16.msra.mxu1 %v12571_v18  ;;  %v11437_v18 = vld [vmem:[%s15208_s1 + $0x170] sm:$0xff]   ;;  %v11526_v63 = vld [vmem:[%s15208_s1 + $0x198] sm:$0xff]  }
  0xac   : > { %5883 = vmatprep.subr.bf16.mxu0 %v12347_v0  ;;  %10517 = vmatprep.subr.bf16.mxu1 %v12347_v0  ;;  %v11501_v62 = vld [vmem:[%s15208_s1 + $0x190] sm:$0xff]  }
  0xaf   : > { %5884 = vmatpush1.bf16.msra.mxu0 %v11402_v1  ;;  %10533 = vmatpush1.bf16.msra.mxu1 %v12584_v22  ;;  %v11396_v22 = vld [vmem:[%s12470_s12 + $0x28c] ss:$36 sps:$4 sm:$0xff]  }
  0xb0   : > { %5885 = vmatprep.subr.bf16.mxu0 %v12347_v0  ;;  %10518 = vmatprep.subr.bf16.mxu1 %v12347_v0  ;;  %v11462_v1 = vld [vmem:[%s12470_s12 + $0x510] ss:$36 sps:$4 sm:$0xff]  }
  0xb1   : > { %4848 = vmatmul.mubr.bf16.gmra.mrb[20].mxu1 %v11372_v2  ;;  %5393 = vmatmul.mubr.bf16.gmra.mrb[20].mxu0 %v11373_v3  ;;  %v11463_v2 = vld [vmem:[%s12470_s12 + $0xa0] ss:$36 sps:$4 sm:$0xff]  }
  0xb2   : > { %4855 = vmatprep.mubr.bf16.mxu1 %v11375_v4  ;;  %5400 = vmatprep.mubr.bf16.mxu0 %v11377_v5  ;;  %v11464_v3 = vld [vmem:[%s12470_s12 + $0x55c] ss:$36 sps:$4 sm:$0xff]   ;;  %v11466_v4 = vld [vmem:[%s12470_s12 + $0xec] ss:$36 sps:$4 sm:$0xff]  }
  0xb3   : > { %5886 = vmatpush1.bf16.msra.mxu0 %v11409_v6  ;;  %10534 = vmatpush1.bf16.msra.mxu1 %v12595_v24  ;;  %v11400_v24 = vld [vmem:[%s12470_s12 + $0x288] ss:$36 sps:$4 sm:$0xff]   ;;  %v11551_v5 = vld [vmem:[%s15208_s1 + $0x1a0] sm:$0xff]   ;;  %v11468_v6 = vld [vmem:[%s12470_s12 + $0x558] ss:$36 sps:$4 sm:$0xff]  }
  0xb4   : > { %5887 = vmatprep.subr.bf16.mxu0 %v12347_v0  ;;  %10519 = vmatprep.subr.bf16.mxu1 %v12347_v0 }
  0xb7   : > { %5888 = vmatpush1.bf16.msra.mxu0 %v11416_v7  ;;  %10535 = vmatpush1.bf16.msra.mxu1 %v12606_v26  ;;  %v11403_v26 = vld [vmem:[%s12470_s12 + $0x2d4] ss:$36 sps:$4 sm:$0xff]   ;;  %v11469_v7 = vld [vmem:[%s12470_s12 + $0xe8] ss:$36 sps:$4 sm:$0xff]  }
  0xb8   : > { %5889 = vmatprep.subr.bf16.mxu0 %v12347_v0  ;;  %10520 = vmatprep.subr.bf16.mxu1 %v12347_v0 }
  0xb9   : > { %4856 = vmatmul.mubr.bf16.gmra.mrb[24].mxu1 %v11379_v8  ;;  %5401 = vmatmul.mubr.bf16.gmra.mrb[24].mxu0 %v11380_v9  ;;  %v11470_v8 = vld [vmem:[%s12470_s12 + $0x5a4] ss:$36 sps:$4 sm:$0xff]   ;;  %v11472_v9 = vld [vmem:[%s12470_s12 + $0x134] ss:$36 sps:$4 sm:$0xff]  }
  0xba   : > { %4863 = vmatprep.mubr.bf16.mxu1 %v11382_v10  ;;  %5408 = vmatprep.mubr.bf16.mxu0 %v11384_v11  ;;  %v11474_v10 = vld [vmem:[%s12470_s12 + $0x5a0] ss:$36 sps:$4 sm:$0xff]   ;;  %v11475_v11 = vld [vmem:[%s12470_s12 + $0x130] ss:$36 sps:$4 sm:$0xff]  }
  0xbb   : > { %5890 = vmatpush1.bf16.msra.mxu0 %v11423_v12  ;;  %10536 = vmatpush1.bf16.msra.mxu1 %v12617_v28  ;;  %v11407_v28 = vld [vmem:[%s12470_s12 + $0x2d0] ss:$36 sps:$4 sm:$0xff]  }
  0xbc   : > { %5891 = vmatprep.subr.bf16.mxu0 %v12347_v0  ;;  %10521 = vmatprep.subr.bf16.mxu1 %v12347_v0  ;;  %v11477_v12 = vld [vmem:[%s12470_s12 + $0x5ec] ss:$36 sps:$4 sm:$0xff]  }
  0xbf   : > { %5892 = vmatpush1.bf16.msra.mxu0 %v11430_v14  ;;  %10537 = vmatpush1.bf16.msra.mxu1 %v12628_v30  ;;  %v11410_v30 = vld [vmem:[%s12470_s12 + $0x31c] ss:$36 sps:$4 sm:$0xff]   ;;  %v11576_v14 = vld [vmem:[%s15208_s1 + $0x1a8] sm:$0xff]  }
  0xc0   : > { %5893 = vmatprep.subr.bf16.mxu0 %v12347_v0  ;;  %10522 = vmatprep.subr.bf16.mxu1 %v12347_v0 }
  0xc1   : > { %4864 = vmatmul.mubr.bf16.gmra.mrb[28].mxu1 %v11386_v13  ;;  %5409 = vmatmul.mubr.bf16.gmra.mrb[28].mxu0 %v11387_v15  ;;  %v11479_v13 = vld [vmem:[%s12470_s12 + $0x17c] ss:$36 sps:$4 sm:$0xff]   ;;  %v11481_v15 = vld [vmem:[%s12470_s12 + $0x5e8] ss:$36 sps:$4 sm:$0xff]  }
  0xc2   : > { %4871 = vmatprep.mubr.bf16.mxu1 %v11389_v16  ;;  %5416 = vmatprep.mubr.bf16.mxu0 %v11391_v17  ;;  %v11482_v16 = vld [vmem:[%s12470_s12 + $0x178] ss:$36 sps:$4 sm:$0xff]  }
  0xc3   : > { %5894 = vmatpush1.bf16.msra.mxu0 %v11437_v18  ;;  %10538 = vmatpush1.bf16.msra.mxu1 %v12639_v32  ;;  %v11414_v32 = vld [vmem:[%s12470_s12 + $0x318] ss:$36 sps:$4 sm:$0xff]   ;;  %v11485_v18 = vld [vmem:[%s12470_s12 + $0x1c4] ss:$36 sps:$4 sm:$0xff]  }
  0xc4   : > { %5895 = vmatprep.subr.bf16.mxu0 %v12347_v0  ;;  %10523 = vmatprep.subr.bf16.mxu1 %v12347_v0  ;;  %v11483_v17 = vld [vmem:[%s12470_s12 + $0x634] ss:$36 sps:$4 sm:$0xff]  }
  0xc7   : > { %5896 = vmatpush1.bf16.msra.mxu0 %v11444_v20  ;;  %10539 = vmatpush1.bf16.msra.mxu1 %v12650_v34  ;;  %v11417_v34 = vld [vmem:[%s12470_s12 + $0x364] ss:$36 sps:$4 sm:$0xff]  }
  0xc8   : > { %6410 = vmatprep.subr.bf16.mxu0 %v12347_v0  ;;  %v11488_v20 = vld [vmem:[%s12470_s12 + $0x1c0] ss:$36 sps:$4 sm:$0xff]  }
  0xc9   : > { %4872 = vmatmul.mubr.bf16.gmra.mrb[32].mxu1 %v11393_v19  ;;  %5417 = vmatmul.mubr.bf16.gmra.mrb[32].mxu0 %v11394_v21  ;;  %v11487_v19 = vld [vmem:[%s12470_s12 + $0x630] ss:$36 sps:$4 sm:$0xff]   ;;  %v11489_v21 = vld [vmem:[%s12470_s12 + $0x67c] ss:$36 sps:$4 sm:$0xff]  }
  0xca   : > { %4879 = vmatprep.mubr.bf16.mxu1 %v11396_v22  ;;  %5424 = vmatprep.mubr.bf16.mxu0 %v11398_v23  ;;  %v11491_v22 = vld [vmem:[%s12470_s12 + $0x20c] ss:$36 sps:$4 sm:$0xff]   ;;  %v11493_v23 = vld [vmem:[%s12470_s12 + $0x678] ss:$36 sps:$4 sm:$0xff]  }
  0xd1   : > { %4880 = vmatmul.mubr.bf16.gmra.mrb[36].mxu1 %v11400_v24  ;;  %5425 = vmatmul.mubr.bf16.gmra.mrb[36].mxu0 %v11401_v25  ;;  %v11494_v24 = vld [vmem:[%s12470_s12 + $0x208] ss:$36 sps:$4 sm:$0xff]  }
  0xd2   : > { %4887 = vmatprep.mubr.bf16.mxu1 %v11403_v26  ;;  %5432 = vmatprep.mubr.bf16.mxu0 %v11405_v27  ;;  %v11495_v25 = vld [vmem:[%s12470_s12 + $0x6c4] ss:$36 sps:$4 sm:$0xff]   ;;  %v11497_v26 = vld [vmem:[%s12470_s12 + $0x254] ss:$36 sps:$4 sm:$0xff]  }
  0xd3   : > { %v11499_v27 = vld [vmem:[%s12470_s12 + $0x6c0] ss:$36 sps:$4 sm:$0xff]  }
  0xd9   : > { %4888 = vmatmul.mubr.bf16.gmra.mrb[40].mxu1 %v11407_v28  ;;  %5433 = vmatmul.mubr.bf16.gmra.mrb[40].mxu0 %v11408_v29  ;;  %v11500_v28 = vld [vmem:[%s12470_s12 + $0x250] ss:$36 sps:$4 sm:$0xff]  }
  0xda   : > { %4895 = vmatprep.mubr.bf16.mxu1 %v11410_v30  ;;  %5440 = vmatprep.mubr.bf16.mxu0 %v11412_v31  ;;  %v11502_v29 = vld [vmem:[%s12470_s12 + $0x70c] ss:$36 sps:$4 sm:$0xff]   ;;  %v11504_v30 = vld [vmem:[%s12470_s12 + $0x29c] ss:$36 sps:$4 sm:$0xff]  }
  0xdb   : > { %v11601_v31 = vld [vmem:[%s15208_s1 + $0x1b0] sm:$0xff]  }
  0xe1   : > { %4896 = vmatmul.mubr.bf16.gmra.mrb[44].mxu1 %v11414_v32  ;;  %5441 = vmatmul.mubr.bf16.gmra.mrb[44].mxu0 %v11415_v33  ;;  %v11506_v32 = vld [vmem:[%s12470_s12 + $0x708] ss:$36 sps:$4 sm:$0xff]   ;;  %v11507_v33 = vld [vmem:[%s12470_s12 + $0x298] ss:$36 sps:$4 sm:$0xff]  }
  0xe2   : > { %4903 = vmatprep.mubr.bf16.mxu1 %v11417_v34  ;;  %5448 = vmatprep.mubr.bf16.mxu0 %v11419_v35  ;;  %v11508_v34 = vld [vmem:[%s12470_s12 + $0x754] ss:$36 sps:$4 sm:$0xff]   ;;  %v11510_v35 = vld [vmem:[%s12470_s12 + $0x2e4] ss:$36 sps:$4 sm:$0xff]  }
  0xe9   : > { %4904 = vmatmul.mubr.bf16.gmra.mrb[48].mxu1 %v11421_v36  ;;  %5449 = vmatmul.mubr.bf16.gmra.mrb[48].mxu0 %v11422_v37  ;;  %v11512_v36 = vld [vmem:[%s12470_s12 + $0x750] ss:$36 sps:$4 sm:$0xff]   ;;  %v11513_v37 = vld [vmem:[%s12470_s12 + $0x2e0] ss:$36 sps:$4 sm:$0xff]  }
  0xea   : > { %4911 = vmatprep.mubr.bf16.mxu1 %v11424_v38  ;;  %5456 = vmatprep.mubr.bf16.mxu0 %v11426_v39  ;;  %v11514_v38 = vld [vmem:[%s12470_s12 + $0x79c] ss:$36 sps:$4 sm:$0xff]   ;;  %v11516_v39 = vld [vmem:[%s12470_s12 + $0x32c] ss:$36 sps:$4 sm:$0xff]  }
  0xf1   : > { %4912 = vmatmul.mubr.bf16.gmra.mrb[52].mxu1 %v11428_v40  ;;  %5457 = vmatmul.mubr.bf16.gmra.mrb[52].mxu0 %v11429_v41  ;;  %v11518_v40 = vld [vmem:[%s12470_s12 + $0x798] ss:$36 sps:$4 sm:$0xff]  }
  0xf2   : > { %4919 = vmatprep.mubr.bf16.mxu1 %v11431_v42  ;;  %5464 = vmatprep.mubr.bf16.mxu0 %v11433_v43  ;;  %v11519_v42 = vld [vmem:[%s12470_s12 + $0x328] ss:$36 sps:$4 sm:$0xff]  }
  0xf3   : > { %v11520_v43 = vld [vmem:[%s12470_s12 + $0x7e4] ss:$36 sps:$4 sm:$0xff]  }
  0xf9   : > { %4920 = vmatmul.mubr.bf16.gmra.mrb[56].mxu1 %v11435_v44  ;;  %5465 = vmatmul.mubr.bf16.gmra.mrb[56].mxu0 %v11436_v45  ;;  %v11522_v45 = vld [vmem:[%s12470_s12 + $0x374] ss:$36 sps:$4 sm:$0xff]  }
  0xfa   : > { %4927 = vmatprep.mubr.bf16.mxu1 %v11438_v46  ;;  %5472 = vmatprep.mubr.bf16.mxu0 %v11440_v47 }
 0x101   : > { %4928 = vmatmul.mubr.bf16.gmra.mrb[60].mxu1 %v11442_v48  ;;  %5473 = vmatmul.mubr.bf16.gmra.mrb[60].mxu0 %v11443_v49  ;;  %v11524_v48 = vld [vmem:[%s12470_s12 + $0x7e0] ss:$36 sps:$4 sm:$0xff]  }
 0x102   : > { %4935 = vmatprep.mubr.bf16.mxu1 %v11445_v50  ;;  %5897 = vmatprep.mubr.bf16.mxu0 %v11449_v51  ;;  %v11525_v50 = vld [vmem:[%s12470_s12 + $0x370] ss:$36 sps:$4 sm:$0xff]  }
 0x103   : > { %v11527_v51 = vld [vmem:[%s12470_s12 + $0x82c] ss:$36 sps:$4 sm:$0xff]  }
 0x109   : > { %4936 = vmatmul.mubr.bf16.gmra.mrb[64].mxu1 %v11450_v52  ;;  %5898 = vmatmul.mubr.bf16.vlgmr.msra.gmra.mrb[0].mxu0 %v11447_v53  ;;  %v11529_v53 = vld [vmem:[%s12470_s12 + $0x3bc] ss:$36 sps:$4 sm:$0xff]  }
 0x10a   : > { %4943 = vmatprep.mubr.bf16.mxu1 %v11452_v54  ;;  %6411 = vmatpush1.bf16.msra.mxu0 %v11451_v55 }
 0x10b   : > { %5905 = vmatprep.mubr.bf16.mxu0 %v11454_v56  ;;  %6412 = vmatprep.subr.bf16.mxu0 %v12347_v0  ;;  %v11626_v56 = vld [vmem:[%s15208_s1 + $0x1b8] sm:$0xff]  }
 0x10e   : > { %6413 = vmatpush1.bf16.msra.mxu0 %v11476_v57  ;;  %v11531_v57 = vld [vmem:[%s12470_s12 + $0x828] ss:$36 sps:$4 sm:$0xff]  }
 0x10f   : > { %6414 = vmatprep.subr.bf16.mxu0 %v12347_v0 }
 0x111   : > { %4944 = vmatmul.mubr.bf16.gmra.mrb[68].mxu1 %v11456_v58  ;;  %5906 = vmatmul.mubr.bf16.gmra.mrb[4].mxu0 %v11457_v59  ;;  %v11532_v59 = vld [vmem:[%s12470_s12 + $0x3b8] ss:$36 sps:$4 sm:$0xff]  }
 0x112   : > { %4951 = vmatprep.mubr.bf16.mxu1 %v11458_v60  ;;  %5913 = vmatprep.mubr.bf16.mxu0 %v11460_v61  ;;  %v11533_v60 = vld [vmem:[%s12470_s12 + $0x874] ss:$36 sps:$4 sm:$0xff]  }
 0x113   : > { %6415 = vmatpush1.bf16.msra.mxu0 %v11501_v62  ;;  %v11535_v62 = vld [vmem:[%s12470_s12 + $0x404] ss:$36 sps:$4 sm:$0xff]  }
 0x114   : > { %6416 = vmatprep.subr.bf16.mxu0 %v12347_v0 }
 0x117   : > { %6417 = vmatpush1.bf16.msra.mxu0 %v11526_v63 }
 0x118   : > { %6418 = vmatprep.subr.bf16.mxu0 %v12347_v0 }
 0x119   : > { %4952 = vmatmul.mubr.bf16.gmra.mrb[72].mxu1 %v11462_v1  ;;  %5914 = vmatmul.mubr.bf16.gmra.mrb[8].mxu0 %v11463_v2  ;;  %v11537_v2 = vld [vmem:[%s12470_s12 + $0x870] ss:$36 sps:$4 sm:$0xff]  }
 0x11a   : > { %4959 = vmatprep.mubr.bf16.mxu1 %v11464_v3  ;;  %5921 = vmatprep.mubr.bf16.mxu0 %v11466_v4  ;;  %v11538_v4 = vld [vmem:[%s12470_s12 + $0x400] ss:$36 sps:$4 sm:$0xff]  }
 0x11b   : > { %6419 = vmatpush1.bf16.msra.mxu0 %v11551_v5  ;;  %v11539_v5 = vld [vmem:[%s12470_s12 + $0x8bc] ss:$36 sps:$4 sm:$0xff]  }
 0x11c   : > { %6420 = vmatprep.subr.bf16.mxu0 %v12347_v0 }
 0x11f   : > { %6421 = vmatpush1.bf16.msra.mxu0 %v11576_v14 }
 0x120   : > { %6422 = vmatprep.subr.bf16.mxu0 %v12347_v0 }
 0x121   : > { %4960 = vmatmul.mubr.bf16.gmra.mrb[76].mxu1 %v11468_v6  ;;  %5922 = vmatmul.mubr.bf16.gmra.mrb[12].mxu0 %v11469_v7  ;;  %v11541_v7 = vld [vmem:[%s12470_s12 + $0x44c] ss:$36 sps:$4 sm:$0xff]  }
 0x122   : > { %4967 = vmatprep.mubr.bf16.mxu1 %v11470_v8  ;;  %5929 = vmatprep.mubr.bf16.mxu0 %v11472_v9 }
 0x123   : > { %6423 = vmatpush1.bf16.msra.mxu0 %v11601_v31 }
 0x124   : > { %6424 = vmatprep.subr.bf16.mxu0 %v12347_v0 }
 0x127   : > { %6425 = vmatpush1.bf16.msra.mxu0 %v11626_v56 }
 0x128   : > { %6426 = vmatprep.subr.bf16.mxu0 %v12347_v0 }
 0x129   : > { %4968 = vmatmul.mubr.bf16.gmra.mrb[80].mxu1 %v11474_v10  ;;  %5930 = vmatmul.mubr.bf16.gmra.mrb[16].mxu0 %v11475_v11  ;;  %v11543_v10 = vld [vmem:[%s12470_s12 + $0x8b8] ss:$36 sps:$4 sm:$0xff]  }
 0x12a   : > { %4975 = vmatprep.mubr.bf16.mxu1 %v11477_v12  ;;  %5937 = vmatprep.mubr.bf16.mxu0 %v11479_v13  ;;  %v11544_v12 = vld [vmem:[%s12470_s12 + $0x448] ss:$36 sps:$4 sm:$0xff]  }
 0x12b   : > { %v11545_v13 = vld [vmem:[%s12470_s12 + $0x904] ss:$36 sps:$4 sm:$0xff]  }
 0x131   : > { %4976 = vmatmul.mubr.bf16.gmra.mrb[84].mxu1 %v11481_v15  ;;  %5938 = vmatmul.mubr.bf16.gmra.mrb[20].mxu0 %v11482_v16  ;;  %v11547_v15 = vld [vmem:[%s12470_s12 + $0x494] ss:$36 sps:$4 sm:$0xff]  }
 0x132   : > { %4983 = vmatprep.mubr.bf16.mxu1 %v11483_v17  ;;  %5945 = vmatprep.mubr.bf16.mxu0 %v11485_v18  ;;  %v11549_v18 = vld [vmem:[%s12470_s12 + $0x900] ss:$36 sps:$4 sm:$0xff]  }
 0x139   : > { %4984 = vmatmul.mubr.bf16.gmra.mrb[88].mxu1 %v11487_v19  ;;  %5946 = vmatmul.mubr.bf16.gmra.mrb[24].mxu0 %v11488_v20  ;;  %v11550_v20 = vld [vmem:[%s12470_s12 + $0x490] ss:$36 sps:$4 sm:$0xff]  }
 0x13a   : > { %4991 = vmatprep.mubr.bf16.mxu1 %v11489_v21  ;;  %5953 = vmatprep.mubr.bf16.mxu0 %v11491_v22  ;;  %v11552_v21 = vld [vmem:[%s12470_s12 + $0x94c] ss:$36 sps:$4 sm:$0xff]  }
 0x141   : > { %4992 = vmatmul.mubr.bf16.gmra.mrb[92].mxu1 %v11493_v23  ;;  %5954 = vmatmul.mubr.bf16.gmra.mrb[28].mxu0 %v11494_v24  ;;  %v11554_v23 = vld [vmem:[%s12470_s12 + $0x4dc] ss:$36 sps:$4 sm:$0xff]  }
 0x142   : > { %4999 = vmatprep.mubr.bf16.mxu1 %v11495_v25  ;;  %5961 = vmatprep.mubr.bf16.mxu0 %v11497_v26  ;;  %v11651_v26 = vld [vmem:[%s15208_s1 + $0x1c0] sm:$0xff]  }
 0x143   : > { %6427 = vmatpush1.bf16.msra.mxu0 %v11651_v26 }
 0x144   : > { %6428 = vmatprep.subr.bf16.mxu0 %v12347_v0 }
 0x149   : > { %5000 = vmatmul.mubr.bf16.gmra.mrb[96].mxu1 %v11499_v27  ;;  %5962 = vmatmul.mubr.bf16.gmra.mrb[32].mxu0 %v11500_v28  ;;  %v11556_v27 = vld [vmem:[%s12470_s12 + $0x948] ss:$36 sps:$4 sm:$0xff]  }
 0x14a   : > { %5007 = vmatprep.mubr.bf16.mxu1 %v11502_v29  ;;  %5969 = vmatprep.mubr.bf16.mxu0 %v11504_v30  ;;  %v11557_v29 = vld [vmem:[%s12470_s12 + $0x4d8] ss:$36 sps:$4 sm:$0xff]  }
 0x14b   : > { %v11558_v30 = vld [vmem:[%s12470_s12 + $0x994] ss:$36 sps:$4 sm:$0xff]  }
 0x151   : > { %5008 = vmatmul.mubr.bf16.gmra.mrb[100].mxu1 %v11506_v32  ;;  %5970 = vmatmul.mubr.bf16.gmra.mrb[36].mxu0 %v11507_v33  ;;  %v11560_v32 = vld [vmem:[%s12470_s12 + $0x524] ss:$36 sps:$4 sm:$0xff]  }
 0x152   : > { %5015 = vmatprep.mubr.bf16.mxu1 %v11508_v34  ;;  %5977 = vmatprep.mubr.bf16.mxu0 %v11510_v35  ;;  %v11562_v35 = vld [vmem:[%s12470_s12 + $0x990] ss:$36 sps:$4 sm:$0xff]  }
 0x159   : > { %5016 = vmatmul.mubr.bf16.gmra.mrb[104].mxu1 %v11512_v36  ;;  %5978 = vmatmul.mubr.bf16.gmra.mrb[40].mxu0 %v11513_v37  ;;  %v11563_v37 = vld [vmem:[%s12470_s12 + $0x520] ss:$36 sps:$4 sm:$0xff]  }
 0x15a   : > { %5023 = vmatprep.mubr.bf16.mxu1 %v11514_v38  ;;  %5985 = vmatprep.mubr.bf16.mxu0 %v11516_v39  ;;  %v11564_v38 = vld [vmem:[%s12470_s12 + $0x9dc] ss:$36 sps:$4 sm:$0xff]  }
 0x15c   : > { %v12888_v41 = vpop.f32.mrb[0].mxu1 }
 0x15d   : > { %v4811_v44 = vpop.f32.mrb[1].mxu1 }
 0x15e   : > { %v12893_v46 = vpop.f32.mrb[2].mxu1  ;;  %v11568_v44 = vld [vmem:[%s12470_s12 + $0x9d8] ss:$36 sps:$4 sm:$0xff]  }
 0x15f   : > { %v4814_v47 = vpop.f32.mrb[3].mxu1 }
 0x160   : > { %v11569_v47 = vld [vmem:[%s12470_s12 + $0x568] ss:$36 sps:$4 sm:$0xff]  }
 0x161   : > { %5024 = vmatmul.mubr.bf16.gmra.mrb[108].mxu1 %v11518_v40  ;;  %5986 = vmatmul.mubr.bf16.gmra.mrb[44].mxu0 %v11519_v42  ;;  %v11566_v40 = vld [vmem:[%s12470_s12 + $0x56c] ss:$36 sps:$4 sm:$0xff]  }
 0x162   : > { %5031 = vmatprep.mubr.bf16.mxu1 %v11520_v43  ;;  %5993 = vmatprep.mubr.bf16.mxu0 %v11522_v45 }
 0x164   : > { %v12896_v49 = vpop.f32.mrb[4].mxu1 }
 0x165   : > { %v4819_v52 = vpop.f32.mrb[5].mxu1 }
 0x166   : > { %v12901_v54 = vpop.f32.mrb[6].mxu1 }
 0x167   : > { %v4822_v55 = vpop.f32.mrb[7].mxu1 }
 0x169   : > { %5032 = vmatmul.mubr.bf16.gmra.mrb[112].mxu1 %v11524_v48  ;;  %5994 = vmatmul.mubr.bf16.gmra.mrb[48].mxu0 %v11525_v50  ;;  %v11570_v48 = vld [vmem:[%s12470_s12 + $0xa24] ss:$36 sps:$4 sm:$0xff]  }
 0x16a   : > { %5039 = vmatprep.mubr.bf16.mxu1 %v11527_v51  ;;  %6001 = vmatprep.mubr.bf16.mxu0 %v11529_v53  ;;  %v11572_v51 = vld [vmem:[%s12470_s12 + $0x5b4] ss:$36 sps:$4 sm:$0xff]  }
 0x16c   : > { %v12907_v58 = vpop.f32.mrb[8].mxu1 }
 0x16d   : > { %v4827_v61 = vpop.f32.mrb[9].mxu1 }
 0x16e   : > { %v12913_v63 = vpop.f32.mrb[10].mxu1  ;;  %v11577_v61 = vld [vmem:[%s12470_s12 + $0xa6c] ss:$36 sps:$4 sm:$0xff]  }
 0x16f   : > { %v4830_v1 = vpop.f32.mrb[11].mxu1 }
 0x170   : > { %v11579_v1 = vld [vmem:[%s12470_s12 + $0x5fc] ss:$36 sps:$4 sm:$0xff]  }
 0x171   : > { %5040 = vmatmul.mubr.bf16.gmra.mrb[116].mxu1 %v11531_v57  ;;  %6002 = vmatmul.mubr.bf16.gmra.mrb[52].mxu0 %v11532_v59  ;;  %v11574_v57 = vld [vmem:[%s12470_s12 + $0xa20] ss:$36 sps:$4 sm:$0xff]  }
 0x172   : > { %5047 = vmatprep.mubr.bf16.mxu1 %v11533_v60  ;;  %6009 = vmatprep.mubr.bf16.mxu0 %v11535_v62  ;;  %v11575_v60 = vld [vmem:[%s12470_s12 + $0x5b0] ss:$36 sps:$4 sm:$0xff]  }
 0x174   : > { %v12916_v3 = vpop.f32.mrb[12].mxu1 }
 0x175   : > { %v4835_v6 = vpop.f32.mrb[13].mxu1 }
 0x176   : > { %v12921_v8 = vpop.f32.mrb[14].mxu1  ;;  %v11581_v6 = vld [vmem:[%s12470_s12 + $0xa68] ss:$36 sps:$4 sm:$0xff]  }
 0x177   : > { %v4838_v9 = vpop.f32.mrb[15].mxu1 }
 0x178   : > { %v11582_v9 = vld [vmem:[%s12470_s12 + $0x5f8] ss:$36 sps:$4 sm:$0xff]  }
 0x179   : > { %5048 = vmatmul.mubr.bf16.gmra.mrb[120].mxu1 %v11537_v2  ;;  %6010 = vmatmul.mubr.bf16.gmra.mrb[56].mxu0 %v11538_v4  ;;  %v11676_v2 = vld [vmem:[%s15208_s1 + $0x1c8] sm:$0xff]  }
 0x17a   : > { %5055 = vmatprep.mubr.bf16.mxu1 %v11539_v5  ;;  %6017 = vmatprep.mubr.bf16.mxu0 %v11541_v7 }
 0x17b   : > { %6429 = vmatpush1.bf16.msra.mxu0 %v11676_v2 }
 0x17c   : > { %v12924_v11 = vpop.f32.mrb[16].mxu1  ;;  %6430 = vmatprep.subr.bf16.mxu0 %v12347_v0 }
 0x17d   : > { %v4843_v14 = vpop.f32.mrb[17].mxu1 }
 0x17e   : > { %v12929_v16 = vpop.f32.mrb[18].mxu1 }
 0x17f   : > { %v4846_v17 = vpop.f32.mrb[19].mxu1 }
 0x180   : > { %v11587_v17 = vld [vmem:[%s12470_s12 + $0xab0] ss:$36 sps:$4 sm:$0xff]  }
 0x181   : > { %5056 = vmatmul.mubr.bf16.gmra.mrb[124].mxu1 %v11543_v10  ;;  %6018 = vmatmul.mubr.bf16.gmra.mrb[60].mxu0 %v11544_v12  ;;  %v11583_v10 = vld [vmem:[%s12470_s12 + $0xab4] ss:$36 sps:$4 sm:$0xff]  }
 0x182   : > { %5063 = vmatprep.mubr.bf16.mxu1 %v11545_v13  ;;  %6025 = vmatprep.mubr.bf16.mxu0 %v11547_v15  ;;  %v11585_v13 = vld [vmem:[%s12470_s12 + $0x644] ss:$36 sps:$4 sm:$0xff]  }
 0x184   : > { %v12932_v19 = vpop.f32.mrb[20].mxu1 }
 0x185   : > { %v4851_v22 = vpop.f32.mrb[21].mxu1 }
 0x186   : > { %v12937_v24 = vpop.f32.mrb[22].mxu1 }
 0x187   : > { %v4854_v25 = vpop.f32.mrb[23].mxu1 }
 0x189   : > { %5064 = vmatmul.mubr.bf16.gmra.mrb[128].mxu1 %v11549_v18  ;;  %6026 = vmatmul.mubr.bf16.gmra.mrb[64].mxu0 %v11550_v20  ;;  %v11588_v20 = vld [vmem:[%s12470_s12 + $0x640] ss:$36 sps:$4 sm:$0xff]  }
 0x18a   : > { %5071 = vmatprep.mubr.bf16.mxu1 %v11552_v21  ;;  %6033 = vmatprep.mubr.bf16.mxu0 %v11554_v23  ;;  %v11589_v21 = vld [vmem:[%s12470_s12 + $0xafc] ss:$36 sps:$4 sm:$0xff]   ;;  %v11591_v23 = vld [vmem:[%s12470_s12 + $0x68c] ss:$36 sps:$4 sm:$0xff]  }
 0x18c   : > { %v12943_v28 = vpop.f32.mrb[24].mxu1 }
 0x18d   : > { %v4859_v31 = vpop.f32.mrb[25].mxu1 }
 0x18e   : > { %v12949_v33 = vpop.f32.mrb[26].mxu1  ;;  %v11595_v31 = vld [vmem:[%s12470_s12 + $0xb44] ss:$36 sps:$4 sm:$0xff]  }
 0x18f   : > { %v4862_v34 = vpop.f32.mrb[27].mxu1 }
 0x190   : > { %v11597_v34 = vld [vmem:[%s12470_s12 + $0x6d4] ss:$36 sps:$4 sm:$0xff]  }
 0x191   : > { %5072 = vmatmul.mubr.bf16.gmra.mrb[132].mxu1 %v11556_v27  ;;  %6034 = vmatmul.mubr.bf16.gmra.mrb[68].mxu0 %v11557_v29  ;;  %v11593_v27 = vld [vmem:[%s12470_s12 + $0xaf8] ss:$36 sps:$4 sm:$0xff]  }
 0x192   : > { %5079 = vmatprep.mubr.bf16.mxu1 %v11558_v30  ;;  %6041 = vmatprep.mubr.bf16.mxu0 %v11560_v32  ;;  %v11594_v30 = vld [vmem:[%s12470_s12 + $0x688] ss:$36 sps:$4 sm:$0xff]  }
 0x194   : > { %v12952_v36 = vpop.f32.mrb[28].mxu1 }
 0x195   : > { %v4867_v39 = vpop.f32.mrb[29].mxu1 }
 0x196   : > { %v12957_v42 = vpop.f32.mrb[30].mxu1 }
 0x197   : > { %v4870_v43 = vpop.f32.mrb[31].mxu1 }
 0x198   : > { %v11602_v43 = vld [vmem:[%s12470_s12 + $0xb8c] ss:$36 sps:$4 sm:$0xff]  }
 0x199   : > { %5080 = vmatmul.mubr.bf16.gmra.mrb[136].mxu1 %v11562_v35  ;;  %6042 = vmatmul.mubr.bf16.gmra.mrb[72].mxu0 %v11563_v37 }
 0x19a   : > { %5087 = vmatprep.mubr.bf16.mxu1 %v11564_v38  ;;  %6049 = vmatprep.mubr.bf16.mxu0 %v11566_v40  ;;  %v11599_v38 = vld [vmem:[%s12470_s12 + $0xb40] ss:$36 sps:$4 sm:$0xff]   ;;  %v11600_v40 = vld [vmem:[%s12470_s12 + $0x6d0] ss:$36 sps:$4 sm:$0xff]  }
 0x19c   : > { %v12960_v45 = vpop.f32.mrb[32].mxu1 }
 0x19d   : > { %v4875_v50 = vpop.f32.mrb[33].mxu1 }
 0x19e   : > { %v12965_v52 = vpop.f32.mrb[34].mxu1 }
 0x19f   : > { %v4878_v53 = vpop.f32.mrb[35].mxu1 }
 0x1a0   : > { %v11606_v53 = vld [vmem:[%s12470_s12 + $0xb88] ss:$36 sps:$4 sm:$0xff]  }
 0x1a1   : > { %5088 = vmatmul.mubr.bf16.gmra.mrb[140].mxu1 %v11568_v44  ;;  %6050 = vmatmul.mubr.bf16.gmra.mrb[76].mxu0 %v11569_v47  ;;  %v11604_v47 = vld [vmem:[%s12470_s12 + $0x71c] ss:$36 sps:$4 sm:$0xff]  }
 0x1a2   : > { %5095 = vmatprep.mubr.bf16.mxu1 %v11570_v48  ;;  %6057 = vmatprep.mubr.bf16.mxu0 %v11572_v51  ;;  %v11701_v48 = vld [vmem:[%s15208_s1 + $0x1d0] sm:$0xff]  }
 0x1a3   : > { %6431 = vmatpush1.bf16.msra.mxu0 %v11701_v48  ;;  %v11644_v48 = vld [vmem:[%s12470_s12 + $0x8c8] ss:$36 sps:$4 sm:$0xff]  }
 0x1a4   : > { %v12967_v55 = vpop.f32.mrb[36].mxu1  ;;  %6432 = vmatprep.subr.bf16.mxu0 %v12347_v0 }
 0x1a5   : > { %v4883_v56 = vpop.f32.mrb[37].mxu1 }
 0x1a6   : > { %v12970_v59 = vpop.f32.mrb[38].mxu1 }
 0x1a7   : > { %v4886_v62 = vpop.f32.mrb[39].mxu1 }
 0x1a8   : > { %v11610_v62 = vld [vmem:[%s12470_s12 + $0x764] ss:$36 sps:$4 sm:$0xff]  }
 0x1a9   : > { %5096 = vmatmul.mubr.bf16.gmra.mrb[144].mxu1 %v11574_v57  ;;  %6058 = vmatmul.mubr.bf16.gmra.mrb[80].mxu0 %v11575_v60  ;;  %v11607_v57 = vld [vmem:[%s12470_s12 + $0x718] ss:$36 sps:$4 sm:$0xff]  }
 0x1aa   : > { %5103 = vmatprep.mubr.bf16.mxu1 %v11577_v61  ;;  %6065 = vmatprep.mubr.bf16.mxu0 %v11579_v1  ;;  %v11608_v60 = vld [vmem:[%s12470_s12 + $0xbd4] ss:$36 sps:$4 sm:$0xff]  }
 0x1ac   : > { %v12978_v4 = vpop.f32.mrb[40].mxu1 }
 0x1ad   : > { %v4891_v5 = vpop.f32.mrb[41].mxu1 }
 0x1ae   : > { %v12982_v7 = vpop.f32.mrb[42].mxu1  ;;  %v11612_v5 = vld [vmem:[%s12470_s12 + $0xbd0] ss:$36 sps:$4 sm:$0xff]  }
 0x1af   : > { %v4894_v12 = vpop.f32.mrb[43].mxu1 }
 0x1b1   : > { %5104 = vmatmul.mubr.bf16.gmra.mrb[148].mxu1 %v11581_v6  ;;  %6066 = vmatmul.mubr.bf16.gmra.mrb[84].mxu0 %v11582_v9  ;;  %v11613_v9 = vld [vmem:[%s12470_s12 + $0x760] ss:$36 sps:$4 sm:$0xff]  }
 0x1b2   : > { %5111 = vmatprep.mubr.bf16.mxu1 %v11583_v10  ;;  %6073 = vmatprep.mubr.bf16.mxu0 %v11585_v13  ;;  %v11614_v10 = vld [vmem:[%s12470_s12 + $0xc1c] ss:$36 sps:$4 sm:$0xff]   ;;  %v11616_v13 = vld [vmem:[%s12470_s12 + $0x7ac] ss:$36 sps:$4 sm:$0xff]  }
 0x1b4   : > { %v12987_v14 = vpop.f32.mrb[44].mxu1 }
 0x1b5   : > { %v4899_v15 = vpop.f32.mrb[45].mxu1 }
 0x1b6   : > { %v12990_v18 = vpop.f32.mrb[46].mxu1  ;;  %v11618_v15 = vld [vmem:[%s12470_s12 + $0xc18] ss:$36 sps:$4 sm:$0xff]  }
 0x1b7   : > { %v4902_v22 = vpop.f32.mrb[47].mxu1 }
 0x1b8   : > { %v11624_v22 = vld [vmem:[%s12470_s12 + $0xc60] ss:$36 sps:$4 sm:$0xff]  }
 0x1b9   : > { %5112 = vmatmul.mubr.bf16.gmra.mrb[152].mxu1 %v11587_v17  ;;  %6074 = vmatmul.mubr.bf16.gmra.mrb[88].mxu0 %v11588_v20  ;;  %v11619_v17 = vld [vmem:[%s12470_s12 + $0x7a8] ss:$36 sps:$4 sm:$0xff]  }
 0x1ba   : > { %5119 = vmatprep.mubr.bf16.mxu1 %v11589_v21  ;;  %6081 = vmatprep.mubr.bf16.mxu0 %v11591_v23  ;;  %v11620_v20 = vld [vmem:[%s12470_s12 + $0xc64] ss:$36 sps:$4 sm:$0xff]   ;;  %v11622_v21 = vld [vmem:[%s12470_s12 + $0x7f4] ss:$36 sps:$4 sm:$0xff]  }
 0x1bb   : > { %v11625_v23 = vld [vmem:[%s12470_s12 + $0x7f0] ss:$36 sps:$4 sm:$0xff]  }
 0x1bc   : > { %v12995_v25 = vpop.f32.mrb[48].mxu1 }
 0x1bd   : > { %v4907_v26 = vpop.f32.mrb[49].mxu1 }
 0x1be   : > { %v12998_v29 = vpop.f32.mrb[50].mxu1  ;;  %v11627_v26 = vld [vmem:[%s12470_s12 + $0xcac] ss:$36 sps:$4 sm:$0xff]  }
 0x1bf   : > { %v4910_v32 = vpop.f32.mrb[51].mxu1 }
 0x1c0   : > { %v11632_v32 = vld [vmem:[%s12470_s12 + $0x838] ss:$36 sps:$4 sm:$0xff]  }
 0x1c1   : > { %5120 = vmatmul.mubr.bf16.gmra.mrb[156].mxu1 %v11593_v27  ;;  %6082 = vmatmul.mubr.bf16.gmra.mrb[92].mxu0 %v11594_v30  ;;  %v11629_v27 = vld [vmem:[%s12470_s12 + $0x83c] ss:$36 sps:$4 sm:$0xff]  }
 0x1c2   : > { %5127 = vmatprep.mubr.bf16.mxu1 %v11595_v31  ;;  %6089 = vmatprep.mubr.bf16.mxu0 %v11597_v34  ;;  %v11726_v30 = vld [vmem:[%s15208_s1 + $0x1d8] sm:$0xff]   ;;  %v11631_v31 = vld [vmem:[%s12470_s12 + $0xca8] ss:$36 sps:$4 sm:$0xff]  }
 0x1c3   : > { %6433 = vmatpush1.bf16.msra.mxu0 %v11726_v30  ;;  %v11633_v34 = vld [vmem:[%s12470_s12 + $0xcf4] ss:$36 sps:$4 sm:$0xff]  }
 0x1c4   : > { %v13003_v35 = vpop.f32.mrb[52].mxu1  ;;  %6434 = vmatprep.subr.bf16.mxu0 %v12347_v0  ;;  %v11668_v30 = vld [vmem:[%s12470_s12 + $0xe58] ss:$36 sps:$4 sm:$0xff]  }
 0x1c5   : > { %v4915_v37 = vpop.f32.mrb[53].mxu1 }
 0x1c6   : > { %v13006_v39 = vpop.f32.mrb[54].mxu1  ;;  %v11635_v37 = vld [vmem:[%s12470_s12 + $0x884] ss:$36 sps:$4 sm:$0xff]  }
 0x1c7   : > { %v4918_v44 = vpop.f32.mrb[55].mxu1 }
 0x1c8   : > { %v11641_v44 = vld [vmem:[%s12470_s12 + $0x8cc] ss:$36 sps:$4 sm:$0xff]  }
 0x1c9   : > { %5128 = vmatmul.mubr.bf16.gmra.mrb[160].mxu1 %v11599_v38  ;;  %6090 = vmatmul.mubr.bf16.gmra.mrb[96].mxu0 %v11600_v40  ;;  %v11637_v38 = vld [vmem:[%s12470_s12 + $0xcf0] ss:$36 sps:$4 sm:$0xff]   ;;  %v11638_v40 = vld [vmem:[%s12470_s12 + $0x880] ss:$36 sps:$4 sm:$0xff]  }
 0x1ca   : > { %5135 = vmatprep.mubr.bf16.mxu1 %v11602_v43  ;;  %6097 = vmatprep.mubr.bf16.mxu0 %v11604_v47  ;;  %v11639_v43 = vld [vmem:[%s12470_s12 + $0xd3c] ss:$36 sps:$4 sm:$0xff]  }
 0x1cb   : > { %v11643_v47 = vld [vmem:[%s12470_s12 + $0xd38] ss:$36 sps:$4 sm:$0xff]  }
 0x1cc   : > { %v13014_v50 = vpop.f32.mrb[56].mxu1 }
 0x1cd   : > { %v4923_v51 = vpop.f32.mrb[57].mxu1 }
 0x1ce   : > { %v13018_v56 = vpop.f32.mrb[58].mxu1  ;;  %v11645_v51 = vld [vmem:[%s12470_s12 + $0xd84] ss:$36 sps:$4 sm:$0xff]  }
 0x1cf   : > { %v4926_v61 = vpop.f32.mrb[59].mxu1 }
 0x1d0   : > { %v11652_v61 = vld [vmem:[%s12470_s12 + $0xdcc] ss:$36 sps:$4 sm:$0xff]  }
 0x1d1   : > { %5136 = vmatmul.mubr.bf16.gmra.mrb[164].mxu1 %v11606_v53  ;;  %6098 = vmatmul.mubr.bf16.gmra.mrb[100].mxu0 %v11607_v57  ;;  %v11647_v53 = vld [vmem:[%s12470_s12 + $0x914] ss:$36 sps:$4 sm:$0xff]   ;;  %v11649_v57 = vld [vmem:[%s12470_s12 + $0xd80] ss:$36 sps:$4 sm:$0xff]  }
 0x1d2   : > { %5143 = vmatprep.mubr.bf16.mxu1 %v11608_v60  ;;  %6105 = vmatprep.mubr.bf16.mxu0 %v11610_v62  ;;  %v11650_v60 = vld [vmem:[%s12470_s12 + $0x910] ss:$36 sps:$4 sm:$0xff]   ;;  %v11654_v62 = vld [vmem:[%s12470_s12 + $0x95c] ss:$36 sps:$4 sm:$0xff]  }
 0x1d4   : > { %v13023_v1 = vpop.f32.mrb[60].mxu1 }
 0x1d5   : > { %v4931_v2 = vpop.f32.mrb[61].mxu1 }
 0x1d6   : > { %v13026_v6 = vpop.f32.mrb[62].mxu1  ;;  %v11751_v2 = vld [vmem:[%s15208_s1 + $0x1e0] sm:$0xff]  }
 0x1d7   : > { %v4934_v12 = vpop.f32.mrb[63].mxu1  ;;  %6435 = vmatpush1.bf16.msra.mxu0 %v11751_v2  ;;  %v11693_v2 = vld [vmem:[%s12470_s12 + $0xf78] ss:$36 sps:$4 sm:$0xff]  }
 0x1d8   : > { %v11656_v12 = vld [vmem:[%s12470_s12 + $0xdc8] ss:$36 sps:$4 sm:$0xff]   ;;  %6436 = vmatprep.subr.bf16.mxu0 %v12347_v0 }
 0x1d9   : > { %5144 = vmatmul.mubr.bf16.gmra.mrb[168].mxu1 %v11612_v5  ;;  %6106 = vmatmul.mubr.bf16.gmra.mrb[104].mxu0 %v11613_v9  ;;  %v11752_v5 = vld [vmem:[%s15208_s1 + $0x200] ss:$0 sps:$4 sm:$0x77]   ;;  %v12348_v9 = vmov 65535  }
 0x1da   : > { %5151 = vmatprep.mubr.bf16.mxu1 %v11614_v10  ;;  %6113 = vmatprep.mubr.bf16.mxu0 %v11616_v13  ;;  %v4770_v10 = vsel %vm4768_vm0, 4294967295, %v12348_v9  ;;  %v11695_v9 = vld [vmem:[%s12470_s12 + $0xfc4] ss:$36 sps:$4 sm:$0xff]  }
 0x1db   : > { %v4771_v13 = vsel %vm4769_vm1, %v4770_v10, 0  ;;  %v11697_v10 = vld [vmem:[%s12470_s12 + $0xb54] ss:$36 sps:$4 sm:$0xff]  }
 0x1e1   : > { %5152 = vmatmul.mubr.bf16.gmra.mrb[172].mxu1 %v11618_v15  ;;  %6114 = vmatmul.mubr.bf16.gmra.mrb[108].mxu0 %v11619_v17  ;;  %v11657_v15 = vld [vmem:[%s12470_s12 + $0x958] ss:$36 sps:$4 sm:$0xff]  }
 0x1e2   : > { %5159 = vmatprep.mubr.bf16.mxu1 %v11620_v20  ;;  %6121 = vmatprep.mubr.bf16.mxu0 %v11622_v21  ;;  %v11658_v17 = vld [vmem:[%s12470_s12 + $0xe14] ss:$36 sps:$4 sm:$0xff]   ;;  %v13069_v20 = vand.u32 %v11752_v5, %v4771_v13  ;;  %v11660_v21 = vld [vmem:[%s12470_s12 + $0x9a4] ss:$36 sps:$4 sm:$0xff]  }
 0x1e3   : > { %v11694_v5 = vld [vmem:[%s12470_s12 + $0xb08] ss:$36 sps:$4 sm:$0xff]   ;;  %v11700_v13 = vld [vmem:[%s12470_s12 + $0xb50] ss:$36 sps:$4 sm:$0xff]  }
 0x1e4   : > { %10378 = vmatprep.subr.bf16.mxu1 %v13069_v20 }
 0x1e9   : > { %5160 = vmatmul.mubr.bf16.gmra.mrb[176].mxu1 %v11624_v22  ;;  %6122 = vmatmul.mubr.bf16.gmra.mrb[112].mxu0 %v11625_v23  ;;  %v11662_v22 = vld [vmem:[%s12470_s12 + $0xe10] ss:$36 sps:$4 sm:$0xff]   ;;  %v11663_v23 = vld [vmem:[%s12470_s12 + $0x9a0] ss:$36 sps:$4 sm:$0xff]  }
 0x1ea   : > { %5167 = vmatprep.mubr.bf16.mxu1 %v11627_v26  ;;  %6129 = vmatprep.mubr.bf16.mxu0 %v11629_v27  ;;  %v11664_v26 = vld [vmem:[%s12470_s12 + $0xe5c] ss:$36 sps:$4 sm:$0xff]   ;;  %v11666_v27 = vld [vmem:[%s12470_s12 + $0x9ec] ss:$36 sps:$4 sm:$0xff]  }
 0x1f1   : > { %5168 = vmatmul.mubr.bf16.gmra.mrb[180].mxu1 %v11631_v31  ;;  %6130 = vmatmul.mubr.bf16.gmra.mrb[116].mxu0 %v11632_v32  ;;  %v11669_v31 = vld [vmem:[%s12470_s12 + $0x9e8] ss:$36 sps:$4 sm:$0xff]  }
 0x1f2   : > { %5175 = vmatprep.mubr.bf16.mxu1 %v11633_v34  ;;  %6137 = vmatprep.mubr.bf16.mxu0 %v11635_v37  ;;  %v11670_v32 = vld [vmem:[%s12470_s12 + $0xea4] ss:$36 sps:$4 sm:$0xff]   ;;  %v11672_v34 = vld [vmem:[%s12470_s12 + $0xa34] ss:$36 sps:$4 sm:$0xff]  }
 0x1f3   : > { %v11674_v37 = vld [vmem:[%s12470_s12 + $0xea0] ss:$36 sps:$4 sm:$0xff]  }
 0x1f9   : > { %5176 = vmatmul.mubr.bf16.gmra.mrb[184].mxu1 %v11637_v38  ;;  %6138 = vmatmul.mubr.bf16.gmra.mrb[120].mxu0 %v11638_v40  ;;  %v11675_v38 = vld [vmem:[%s12470_s12 + $0xa30] ss:$36 sps:$4 sm:$0xff]  }
 0x1fa   : > { %5183 = vmatprep.mubr.bf16.mxu1 %v11639_v43  ;;  %6145 = vmatprep.mubr.bf16.mxu0 %v11641_v44  ;;  %v11677_v40 = vld [vmem:[%s12470_s12 + $0xeec] ss:$36 sps:$4 sm:$0xff]   ;;  %v11679_v43 = vld [vmem:[%s12470_s12 + $0xa7c] ss:$36 sps:$4 sm:$0xff]  }
 0x1fb   : > { %v11777_v44 = vld [vmem:[%s15208_s1 + $0x1e8] sm:$0xff]  }
 0x1fc   : > { %6437 = vmatpush1.bf16.msra.mxu0 %v11777_v44  ;;  %v11725_v44 = vld [vmem:[%s12470_s12 + $0xc70] ss:$36 sps:$4 sm:$0xff]  }
 0x1fd   : > { %6438 = vmatprep.subr.bf16.mxu0 %v12347_v0 }
 0x201   : > { %5184 = vmatmul.mubr.bf16.gmra.mrb[188].mxu1 %v11643_v47  ;;  %6146 = vmatmul.mubr.bf16.gmra.mrb[124].mxu0 %v11644_v48  ;;  %v11681_v47 = vld [vmem:[%s12470_s12 + $0xee8] ss:$36 sps:$4 sm:$0xff]   ;;  %v11682_v48 = vld [vmem:[%s12470_s12 + $0xa78] ss:$36 sps:$4 sm:$0xff]  }
 0x202   : > { %5191 = vmatprep.mubr.bf16.mxu1 %v11645_v51  ;;  %6153 = vmatprep.mubr.bf16.mxu0 %v11647_v53  ;;  %v11683_v51 = vld [vmem:[%s12470_s12 + $0xf34] ss:$36 sps:$4 sm:$0xff]   ;;  %v11685_v53 = vld [vmem:[%s12470_s12 + $0xac4] ss:$36 sps:$4 sm:$0xff]  }
 0x209   : > { %5192 = vmatmul.mubr.bf16.gmra.mrb[192].mxu1 %v11649_v57  ;;  %6154 = vmatmul.mubr.bf16.gmra.mrb[128].mxu0 %v11650_v60  ;;  %v11687_v57 = vld [vmem:[%s12470_s12 + $0xf30] ss:$36 sps:$4 sm:$0xff]   ;;  %v11688_v60 = vld [vmem:[%s12470_s12 + $0xac0] ss:$36 sps:$4 sm:$0xff]  }
 0x20a   : > { %5199 = vmatprep.mubr.bf16.mxu1 %v11652_v61  ;;  %6161 = vmatprep.mubr.bf16.mxu0 %v11654_v62  ;;  %v11689_v61 = vld [vmem:[%s12470_s12 + $0xf7c] ss:$36 sps:$4 sm:$0xff]   ;;  %v11691_v62 = vld [vmem:[%s12470_s12 + $0xb0c] ss:$36 sps:$4 sm:$0xff]  }
 0x211   : > { %5200 = vmatmul.mubr.bf16.gmra.mrb[196].mxu1 %v11656_v12  ;;  %6162 = vmatmul.mubr.bf16.gmra.mrb[132].mxu0 %v11657_v15  ;;  %v11699_v12 = vld [vmem:[%s12470_s12 + $0xfc0] ss:$36 sps:$4 sm:$0xff]   ;;  %v11702_v15 = vld [vmem:[%s12470_s12 + $0x100c] ss:$36 sps:$4 sm:$0xff]  }
 0x212   : > { %5207 = vmatprep.mubr.bf16.mxu1 %v11658_v17  ;;  %6169 = vmatprep.mubr.bf16.mxu0 %v11660_v21  ;;  %v11704_v17 = vld [vmem:[%s12470_s12 + $0xb9c] ss:$36 sps:$4 sm:$0xff]   ;;  %v11802_v21 = vld [vmem:[%s15208_s1 + $0x1f0] sm:$0xff]  }
 0x213   : > { %6439 = vmatpush1.bf16.msra.mxu0 %v11802_v21  ;;  %v11750_v21 = vld [vmem:[%s12470_s12 + $0xd90] ss:$36 sps:$4 sm:$0xff]  }
 0x214   : > { %6440 = vmatprep.subr.bf16.mxu0 %v12347_v0  ;;  %v11718_v0 = vld [vmem:[%s12470_s12 + $0x1098] ss:$36 sps:$4 sm:$0xff]  }
 0x219   : > { %5208 = vmatmul.mubr.bf16.gmra.mrb[200].mxu1 %v11662_v22  ;;  %6170 = vmatmul.mubr.bf16.gmra.mrb[136].mxu0 %v11663_v23  ;;  %v11706_v22 = vld [vmem:[%s12470_s12 + $0x1008] ss:$36 sps:$4 sm:$0xff]   ;;  %v11707_v23 = vld [vmem:[%s12470_s12 + $0xb98] ss:$36 sps:$4 sm:$0xff]  }
 0x21a   : > { %5215 = vmatprep.mubr.bf16.mxu1 %v11664_v26  ;;  %6177 = vmatprep.mubr.bf16.mxu0 %v11666_v27  ;;  %v11708_v26 = vld [vmem:[%s12470_s12 + $0x1054] ss:$36 sps:$4 sm:$0xff]   ;;  %v11710_v27 = vld [vmem:[%s12470_s12 + $0xbe4] ss:$36 sps:$4 sm:$0xff]  }
 0x221   : > { %5216 = vmatmul.mubr.bf16.gmra.mrb[204].mxu1 %v11668_v30  ;;  %6178 = vmatmul.mubr.bf16.gmra.mrb[140].mxu0 %v11669_v31  ;;  %v11712_v30 = vld [vmem:[%s12470_s12 + $0x1050] ss:$36 sps:$4 sm:$0xff]   ;;  %v11713_v31 = vld [vmem:[%s12470_s12 + $0xbe0] ss:$36 sps:$4 sm:$0xff]  }
 0x222   : > { %5223 = vmatprep.mubr.bf16.mxu1 %v11670_v32  ;;  %6185 = vmatprep.mubr.bf16.mxu0 %v11672_v34  ;;  %v11714_v32 = vld [vmem:[%s12470_s12 + $0x109c] ss:$36 sps:$4 sm:$0xff]   ;;  %v11716_v34 = vld [vmem:[%s12470_s12 + $0xc2c] ss:$36 sps:$4 sm:$0xff]  }
 0x229   : > { %5224 = vmatmul.mubr.bf16.gmra.mrb[208].mxu1 %v11674_v37  ;;  %6186 = vmatmul.mubr.bf16.gmra.mrb[144].mxu0 %v11675_v38  ;;  %v11719_v37 = vld [vmem:[%s12470_s12 + $0xc28] ss:$36 sps:$4 sm:$0xff]  }
 0x22a   : > { %5231 = vmatprep.mubr.bf16.mxu1 %v11677_v40  ;;  %6193 = vmatprep.mubr.bf16.mxu0 %v11679_v43  ;;  %v11720_v38 = vld [vmem:[%s12470_s12 + $0x10e4] ss:$36 sps:$4 sm:$0xff]   ;;  %v11722_v40 = vld [vmem:[%s12470_s12 + $0xc74] ss:$36 sps:$4 sm:$0xff]  }
 0x22b   : > { %v11724_v43 = vld [vmem:[%s12470_s12 + $0x10e0] ss:$36 sps:$4 sm:$0xff]  }
 0x231   : > { %5232 = vmatmul.mubr.bf16.gmra.mrb[212].mxu1 %v11681_v47  ;;  %6194 = vmatmul.mubr.bf16.gmra.mrb[148].mxu0 %v11682_v48  ;;  %v11727_v47 = vld [vmem:[%s12470_s12 + $0x112c] ss:$36 sps:$4 sm:$0xff]   ;;  %v11729_v48 = vld [vmem:[%s12470_s12 + $0xcbc] ss:$36 sps:$4 sm:$0xff]  }
 0x232   : > { %5239 = vmatprep.mubr.bf16.mxu1 %v11683_v51  ;;  %6201 = vmatprep.mubr.bf16.mxu0 %v11685_v53  ;;  %v11827_v51 = vld [vmem:[%s15208_s1 + $0x1f8] sm:$0xff]   ;;  %v11731_v53 = vld [vmem:[%s12470_s12 + $0x1128] ss:$36 sps:$4 sm:$0xff]  }
 0x233   : > { %6441 = vmatpush1.bf16.msra.mxu0 %v11827_v51  ;;  %v11780_v51 = vld [vmem:[%s12470_s12 + $0xefc] ss:$36 sps:$4 sm:$0xff]  }
 0x239   : > { %5240 = vmatmul.mubr.bf16.gmra.mrb[216].mxu1 %v11687_v57  ;;  %6202 = vmatmul.mubr.bf16.gmra.mrb[152].mxu0 %v11688_v60  ;;  %v11732_v57 = vld [vmem:[%s12470_s12 + $0xcb8] ss:$36 sps:$4 sm:$0xff]  }
 0x23a   : > { %5247 = vmatprep.mubr.bf16.mxu1 %v11689_v61  ;;  %6209 = vmatprep.mubr.bf16.mxu0 %v11691_v62  ;;  %v11733_v60 = vld [vmem:[%s12470_s12 + $0x1174] ss:$36 sps:$4 sm:$0xff]   ;;  %v11735_v61 = vld [vmem:[%s12470_s12 + $0xd04] ss:$36 sps:$4 sm:$0xff]  }
 0x23b   : > { %v11737_v62 = vld [vmem:[%s12470_s12 + $0x1170] ss:$36 sps:$4 sm:$0xff]  }
 0x241   : > { %5248 = vmatmul.mubr.bf16.gmra.mrb[220].mxu1 %v11693_v2  ;;  %6210 = vmatmul.mubr.bf16.gmra.mrb[156].mxu0 %v11694_v5  ;;  %v11738_v2 = vld [vmem:[%s12470_s12 + $0xd00] ss:$36 sps:$4 sm:$0xff]  }
 0x242   : > { %5255 = vmatprep.mubr.bf16.mxu1 %v11695_v9  ;;  %6217 = vmatprep.mubr.bf16.mxu0 %v11697_v10  ;;  %v11739_v5 = vld [vmem:[%s12470_s12 + $0x11bc] ss:$36 sps:$4 sm:$0xff]   ;;  %v11741_v9 = vld [vmem:[%s12470_s12 + $0xd4c] ss:$36 sps:$4 sm:$0xff]  }
 0x243   : > { %v11743_v10 = vld [vmem:[%s12470_s12 + $0x11b8] ss:$36 sps:$4 sm:$0xff]  }
 0x249   : > { %5256 = vmatmul.mubr.bf16.gmra.mrb[224].mxu1 %v11699_v12  ;;  %6218 = vmatmul.mubr.bf16.gmra.mrb[160].mxu0 %v11700_v13  ;;  %v11744_v12 = vld [vmem:[%s12470_s12 + $0xd48] ss:$36 sps:$4 sm:$0xff]  }
 0x24a   : > { %5263 = vmatprep.mubr.bf16.mxu1 %v11702_v15  ;;  %6225 = vmatprep.mubr.bf16.mxu0 %v11704_v17  ;;  %v11747_v13 = vld [vmem:[%s12470_s12 + $0x48c] ss:$36 sps:$4 sm:$0xff]   ;;  %v11748_v15 = vld [vmem:[%s12470_s12 + $0xd94] ss:$36 sps:$4 sm:$0xff]  }
 0x24b   : > { %v11745_v17 = vld [vmem:[%s12470_s12 + $0x488] ss:$36 sps:$4 sm:$0xff]  }
 0x251   : > { %5264 = vmatmul.mubr.bf16.gmra.mrb[228].mxu1 %v11706_v22  ;;  %6226 = vmatmul.mubr.bf16.gmra.mrb[164].mxu0 %v11707_v23  ;;  %v11753_v22 = vld [vmem:[%s12470_s12 + $0x4d4] ss:$36 sps:$4 sm:$0xff]   ;;  %v11755_v23 = vld [vmem:[%s12470_s12 + $0xddc] ss:$36 sps:$4 sm:$0xff]  }
 0x252   : > { %5271 = vmatprep.mubr.bf16.mxu1 %v11708_v26  ;;  %6233 = vmatprep.mubr.bf16.mxu0 %v11710_v27  ;;  %v11757_v26 = vld [vmem:[%s12470_s12 + $0x4d0] ss:$36 sps:$4 sm:$0xff]   ;;  %v11758_v27 = vld [vmem:[%s12470_s12 + $0xdd8] ss:$36 sps:$4 sm:$0xff]  }
 0x259   : > { %5272 = vmatmul.mubr.bf16.gmra.mrb[232].mxu1 %v11712_v30  ;;  %6234 = vmatmul.mubr.bf16.gmra.mrb[168].mxu0 %v11713_v31  ;;  %v11759_v30 = vld [vmem:[%s12470_s12 + $0x51c] ss:$36 sps:$4 sm:$0xff]   ;;  %v11761_v31 = vld [vmem:[%s12470_s12 + $0xe24] ss:$36 sps:$4 sm:$0xff]  }
 0x25a   : > { %5279 = vmatprep.mubr.bf16.mxu1 %v11714_v32  ;;  %6241 = vmatprep.mubr.bf16.mxu0 %v11716_v34  ;;  %v11763_v32 = vld [vmem:[%s12470_s12 + $0x518] ss:$36 sps:$4 sm:$0xff]   ;;  %v11764_v34 = vld [vmem:[%s12470_s12 + $0xe20] ss:$36 sps:$4 sm:$0xff]  }
 0x261   : > { %5280 = vmatmul.mubr.bf16.gmra.mrb[236].mxu1 %v11718_v0  ;;  %6242 = vmatmul.mubr.bf16.gmra.mrb[172].mxu0 %v11719_v37  ;;  %v11765_v0 = vld [vmem:[%s12470_s12 + $0x564] ss:$36 sps:$4 sm:$0xff]  }
 0x262   : > { %5287 = vmatprep.mubr.bf16.mxu1 %v11720_v38  ;;  %6249 = vmatprep.mubr.bf16.mxu0 %v11722_v40  ;;  %v11769_v37 = vld [vmem:[%s12470_s12 + $0x560] ss:$36 sps:$4 sm:$0xff]   ;;  %v11770_v38 = vld [vmem:[%s12470_s12 + $0xe68] ss:$36 sps:$4 sm:$0xff]  }
 0x263   : > { %v11771_v40 = vld [vmem:[%s12470_s12 + $0x5ac] ss:$36 sps:$4 sm:$0xff]  }
 0x269   : > { %5288 = vmatmul.mubr.bf16.gmra.mrb[240].mxu1 %v11724_v43  ;;  %6250 = vmatmul.mubr.bf16.gmra.mrb[176].mxu0 %v11725_v44  ;;  %v11773_v43 = vld [vmem:[%s12470_s12 + $0xeb4] ss:$36 sps:$4 sm:$0xff]   ;;  %v11775_v44 = vld [vmem:[%s12470_s12 + $0x5a8] ss:$36 sps:$4 sm:$0xff]  }
 0x26a   : > { %5295 = vmatprep.mubr.bf16.mxu1 %v11727_v47  ;;  %6257 = vmatprep.mubr.bf16.mxu0 %v11729_v48  ;;  %v11776_v47 = vld [vmem:[%s12470_s12 + $0xeb0] ss:$36 sps:$4 sm:$0xff]  }
 0x26b   : > { %v11778_v48 = vld [vmem:[%s12470_s12 + $0x5f4] ss:$36 sps:$4 sm:$0xff]  }
 0x271   : > { %5296 = vmatmul.mubr.bf16.gmra.mrb[244].mxu1 %v11731_v53  ;;  %6258 = vmatmul.mubr.bf16.gmra.mrb[180].mxu0 %v11732_v57  ;;  %v11782_v53 = vld [vmem:[%s12470_s12 + $0x5f0] ss:$36 sps:$4 sm:$0xff]   ;;  %v11783_v57 = vld [vmem:[%s12470_s12 + $0xef8] ss:$36 sps:$4 sm:$0xff]  }
 0x272   : > { %5303 = vmatprep.mubr.bf16.mxu1 %v11733_v60  ;;  %6265 = vmatprep.mubr.bf16.mxu0 %v11735_v61  ;;  %v11784_v60 = vld [vmem:[%s12470_s12 + $0x63c] ss:$36 sps:$4 sm:$0xff]   ;;  %v11786_v61 = vld [vmem:[%s12470_s12 + $0xf44] ss:$36 sps:$4 sm:$0xff]  }
 0x279   : > { %5304 = vmatmul.mubr.bf16.gmra.mrb[248].mxu1 %v11737_v62  ;;  %6266 = vmatmul.mubr.bf16.gmra.mrb[184].mxu0 %v11738_v2  ;;  %v11788_v62 = vld [vmem:[%s12470_s12 + $0x638] ss:$36 sps:$4 sm:$0xff]   ;;  %v11789_v2 = vld [vmem:[%s12470_s12 + $0xf40] ss:$36 sps:$4 sm:$0xff]  }
 0x27a   : > { %5311 = vmatprep.mubr.bf16.mxu1 %v11739_v5  ;;  %6273 = vmatprep.mubr.bf16.mxu0 %v11741_v9  ;;  %v11790_v5 = vld [vmem:[%s12470_s12 + $0x684] ss:$36 sps:$4 sm:$0xff]   ;;  %v11792_v9 = vld [vmem:[%s12470_s12 + $0xf8c] ss:$36 sps:$4 sm:$0xff]  }
 0x281   : > { %5312 = vmatmul.mubr.bf16.gmra.mrb[252].mxu1 %v11743_v10  ;;  %6274 = vmatmul.mubr.bf16.gmra.mrb[188].mxu0 %v11744_v12  ;;  %v11794_v10 = vld [vmem:[%s12470_s12 + $0x680] ss:$36 sps:$4 sm:$0xff]   ;;  %v11795_v12 = vld [vmem:[%s12470_s12 + $0xf88] ss:$36 sps:$4 sm:$0xff]  }
 0x282   : > { %5480 = vmatprep.mubr.bf16.mxu1 %v11747_v13  ;;  %6281 = vmatprep.mubr.bf16.mxu0 %v11748_v15  ;;  %v11796_v13 = vld [vmem:[%s12470_s12 + $0x6cc] ss:$36 sps:$4 sm:$0xff]   ;;  %v11798_v15 = vld [vmem:[%s12470_s12 + $0xfd4] ss:$36 sps:$4 sm:$0xff]  }
 0x289   : > { %5481 = vmatmul.mubr.bf16.vlgmr.msra.gmra.mrb[64].mxu1 %v11745_v17  ;;  %6282 = vmatmul.mubr.bf16.gmra.mrb[192].mxu0 %v11750_v21  ;;  %v11800_v17 = vld [vmem:[%s12470_s12 + $0x6c8] ss:$36 sps:$4 sm:$0xff]   ;;  %v11801_v21 = vld [vmem:[%s12470_s12 + $0xfd0] ss:$36 sps:$4 sm:$0xff]  }
 0x28a   : > { %10379 = vmatpush3.bf16.msra.mxu1 %v13069_v20  ;;  %5488 = vmatprep.mubr.bf16.mxu1 %v11753_v22  ;;  %v11767_v20 = vld [vmem:[%s12470_s12 + $0xe6c] ss:$36 sps:$4 sm:$0xff]   ;;  %v11803_v22 = vld [vmem:[%s12470_s12 + $0x714] ss:$36 sps:$4 sm:$0xff]  }
 0x28b   : > { %6289 = vmatprep.mubr.bf16.mxu0 %v11755_v23  ;;  %v11805_v23 = vld [vmem:[%s12470_s12 + $0x101c] ss:$36 sps:$4 sm:$0xff]  }
 0x291   : > { %5489 = vmatmul.mubr.bf16.gmra.mrb[68].mxu1 %v11757_v26  ;;  %6290 = vmatmul.mubr.bf16.gmra.mrb[196].mxu0 %v11758_v27  ;;  %v11807_v26 = vld [vmem:[%s12470_s12 + $0x710] ss:$36 sps:$4 sm:$0xff]   ;;  %v11808_v27 = vld [vmem:[%s12470_s12 + $0x1018] ss:$36 sps:$4 sm:$0xff]  }
 0x292   : > { %5496 = vmatprep.mubr.bf16.mxu1 %v11759_v30  ;;  %6297 = vmatprep.mubr.bf16.mxu0 %v11761_v31  ;;  %v11809_v30 = vld [vmem:[%s12470_s12 + $0x75c] ss:$36 sps:$4 sm:$0xff]   ;;  %v11811_v31 = vld [vmem:[%s12470_s12 + $0x1064] ss:$36 sps:$4 sm:$0xff]  }
 0x299   : > { %5497 = vmatmul.mubr.bf16.gmra.mrb[72].mxu1 %v11763_v32  ;;  %6298 = vmatmul.mubr.bf16.gmra.mrb[200].mxu0 %v11764_v34  ;;  %v11813_v32 = vld [vmem:[%s12470_s12 + $0x758] ss:$36 sps:$4 sm:$0xff]   ;;  %v11814_v34 = vld [vmem:[%s12470_s12 + $0x1060] ss:$36 sps:$4 sm:$0xff]  }
 0x29a   : > { %5504 = vmatprep.mubr.bf16.mxu1 %v11765_v0  ;;  %6305 = vmatprep.mubr.bf16.mxu0 %v11767_v20  ;;  %v11815_v0 = vld [vmem:[%s12470_s12 + $0x7a4] ss:$36 sps:$4 sm:$0xff]   ;;  %v11817_v20 = vld [vmem:[%s12470_s12 + $0x10ac] ss:$36 sps:$4 sm:$0xff]  }
 0x2a1   : > { %5505 = vmatmul.mubr.bf16.gmra.mrb[76].mxu1 %v11769_v37  ;;  %6306 = vmatmul.mubr.bf16.gmra.mrb[204].mxu0 %v11770_v38  ;;  %v11819_v37 = vld [vmem:[%s12470_s12 + $0x7a0] ss:$36 sps:$4 sm:$0xff]   ;;  %v11820_v38 = vld [vmem:[%s12470_s12 + $0x10a8] ss:$36 sps:$4 sm:$0xff]  }
 0x2a2   : > { %5512 = vmatprep.mubr.bf16.mxu1 %v11771_v40  ;;  %6313 = vmatprep.mubr.bf16.mxu0 %v11773_v43  ;;  %v11821_v40 = vld [vmem:[%s12470_s12 + $0x7ec] ss:$36 sps:$4 sm:$0xff]   ;;  %v11823_v43 = vld [vmem:[%s12470_s12 + $0x10f4] ss:$36 sps:$4 sm:$0xff]  }
 0x2a9   : > { %5513 = vmatmul.mubr.bf16.gmra.mrb[80].mxu1 %v11775_v44  ;;  %6314 = vmatmul.mubr.bf16.gmra.mrb[208].mxu0 %v11776_v47  ;;  %v11825_v44 = vld [vmem:[%s12470_s12 + $0x7e8] ss:$36 sps:$4 sm:$0xff]   ;;  %v11826_v47 = vld [vmem:[%s12470_s12 + $0x10f0] ss:$36 sps:$4 sm:$0xff]  }
 0x2aa   : > { %5520 = vmatprep.mubr.bf16.mxu1 %v11778_v48  ;;  %6321 = vmatprep.mubr.bf16.mxu0 %v11780_v51  ;;  %v11828_v48 = vld [vmem:[%s12470_s12 + $0x834] ss:$36 sps:$4 sm:$0xff]   ;;  %v11830_v51 = vld [vmem:[%s12470_s12 + $0x113c] ss:$36 sps:$4 sm:$0xff]  }
 0x2b1   : > { %5521 = vmatmul.mubr.bf16.gmra.mrb[84].mxu1 %v11782_v53  ;;  %6322 = vmatmul.mubr.bf16.gmra.mrb[212].mxu0 %v11783_v57  ;;  %v11832_v53 = vld [vmem:[%s12470_s12 + $0x830] ss:$36 sps:$4 sm:$0xff]   ;;  %v11833_v57 = vld [vmem:[%s12470_s12 + $0x1138] ss:$36 sps:$4 sm:$0xff]  }
 0x2b2   : > { %5528 = vmatprep.mubr.bf16.mxu1 %v11784_v60  ;;  %6329 = vmatprep.mubr.bf16.mxu0 %v11786_v61  ;;  %v11834_v60 = vld [vmem:[%s12470_s12 + $0x87c] ss:$36 sps:$4 sm:$0xff]   ;;  %v11836_v61 = vld [vmem:[%s12470_s12 + $0x1184] ss:$36 sps:$4 sm:$0xff]  }
 0x2b9   : > { %5529 = vmatmul.mubr.bf16.gmra.mrb[88].mxu1 %v11788_v62  ;;  %6330 = vmatmul.mubr.bf16.gmra.mrb[216].mxu0 %v11789_v2  ;;  %v11838_v62 = vld [vmem:[%s12470_s12 + $0x878] ss:$36 sps:$4 sm:$0xff]   ;;  %v11839_v2 = vld [vmem:[%s12470_s12 + $0x1180] ss:$36 sps:$4 sm:$0xff]  }
 0x2ba   : > { %5536 = vmatprep.mubr.bf16.mxu1 %v11790_v5  ;;  %6337 = vmatprep.mubr.bf16.mxu0 %v11792_v9  ;;  %v11840_v5 = vld [vmem:[%s12470_s12 + $0x8c4] ss:$36 sps:$4 sm:$0xff]   ;;  %v11842_v9 = vld [vmem:[%s12470_s12 + $0x11cc] ss:$36 sps:$4 sm:$0xff]  }
 0x2c1   : > { %5537 = vmatmul.mubr.bf16.gmra.mrb[92].mxu1 %v11794_v10  ;;  %6338 = vmatmul.mubr.bf16.gmra.mrb[220].mxu0 %v11795_v12  ;;  %v11844_v10 = vld [vmem:[%s12470_s12 + $0x8c0] ss:$36 sps:$4 sm:$0xff]   ;;  %v11845_v12 = vld [vmem:[%s12470_s12 + $0x11c8] ss:$36 sps:$4 sm:$0xff]  }
 0x2c2   : > { %5544 = vmatprep.mubr.bf16.mxu1 %v11796_v13  ;;  %6345 = vmatprep.mubr.bf16.mxu0 %v11798_v15  ;;  %v11846_v13 = vld [vmem:[%s12470_s12 + $0x90c] ss:$36 sps:$4 sm:$0xff]   ;;  %v11850_v15 = vld [vmem:[%s12470_s12 + $0x1c] ss:$36 sps:$4 sm:$0xff]  }
 0x2c9   : > { %5545 = vmatmul.mubr.bf16.gmra.mrb[96].mxu1 %v11800_v17  ;;  %6346 = vmatmul.mubr.bf16.gmra.mrb[224].mxu0 %v11801_v21  ;;  %v11851_v17 = vld [vmem:[%s12470_s12 + $0x908] ss:$36 sps:$4 sm:$0xff]   ;;  %v11848_v21 = vld [vmem:[%s12470_s12 + $0x18] ss:$36 sps:$4 sm:$0xff]  }
 0x2ca   : > { %5552 = vmatprep.mubr.bf16.mxu1 %v11803_v22  ;;  %6353 = vmatprep.mubr.bf16.mxu0 %v11805_v23  ;;  %v11852_v22 = vld [vmem:[%s12470_s12 + $0x954] ss:$36 sps:$4 sm:$0xff]   ;;  %v11854_v23 = vld [vmem:[%s12470_s12 + $0x64] ss:$36 sps:$4 sm:$0xff]  }
 0x2d1   : > { %5553 = vmatmul.mubr.bf16.gmra.mrb[100].mxu1 %v11807_v26  ;;  %6354 = vmatmul.mubr.bf16.gmra.mrb[228].mxu0 %v11808_v27  ;;  %v11856_v26 = vld [vmem:[%s12470_s12 + $0x950] ss:$36 sps:$4 sm:$0xff]   ;;  %v11857_v27 = vld [vmem:[%s12470_s12 + $0x60] ss:$36 sps:$4 sm:$0xff]  }
 0x2d2   : > { %5560 = vmatprep.mubr.bf16.mxu1 %v11809_v30  ;;  %6361 = vmatprep.mubr.bf16.mxu0 %v11811_v31  ;;  %v11858_v30 = vld [vmem:[%s12470_s12 + $0x99c] ss:$36 sps:$4 sm:$0xff]   ;;  %v11860_v31 = vld [vmem:[%s12470_s12 + $0xac] ss:$36 sps:$4 sm:$0xff]  }
 0x2d9   : > { %5561 = vmatmul.mubr.bf16.gmra.mrb[104].mxu1 %v11813_v32  ;;  %6362 = vmatmul.mubr.bf16.gmra.mrb[232].mxu0 %v11814_v34  ;;  %v11862_v32 = vld [vmem:[%s12470_s12 + $0x998] ss:$36 sps:$4 sm:$0xff]   ;;  %v11863_v34 = vld [vmem:[%s12470_s12 + $0xa8] ss:$36 sps:$4 sm:$0xff]  }
 0x2da   : > { %5568 = vmatprep.mubr.bf16.mxu1 %v11815_v0  ;;  %6369 = vmatprep.mubr.bf16.mxu0 %v11817_v20  ;;  %v11864_v0 = vld [vmem:[%s12470_s12 + $0x9e4] ss:$36 sps:$4 sm:$0xff]   ;;  %v11866_v20 = vld [vmem:[%s12470_s12 + $0xf4] ss:$36 sps:$4 sm:$0xff]  }
 0x2e1   : > { %5569 = vmatmul.mubr.bf16.gmra.mrb[108].mxu1 %v11819_v37  ;;  %6370 = vmatmul.mubr.bf16.gmra.mrb[236].mxu0 %v11820_v38  ;;  %v11868_v37 = vld [vmem:[%s12470_s12 + $0x9e0] ss:$36 sps:$4 sm:$0xff]   ;;  %v11869_v38 = vld [vmem:[%s12470_s12 + $0xf0] ss:$36 sps:$4 sm:$0xff]  }
 0x2e2   : > { %5576 = vmatprep.mubr.bf16.mxu1 %v11821_v40  ;;  %6377 = vmatprep.mubr.bf16.mxu0 %v11823_v43  ;;  %v11870_v40 = vld [vmem:[%s12470_s12 + $0xa2c] ss:$36 sps:$4 sm:$0xff]   ;;  %v11872_v43 = vld [vmem:[%s12470_s12 + $0x13c] ss:$36 sps:$4 sm:$0xff]  }
 0x2e9   : > { %5577 = vmatmul.mubr.bf16.gmra.mrb[112].mxu1 %v11825_v44  ;;  %6378 = vmatmul.mubr.bf16.gmra.mrb[240].mxu0 %v11826_v47  ;;  %v11874_v44 = vld [vmem:[%s12470_s12 + $0xa28] ss:$36 sps:$4 sm:$0xff]   ;;  %v11875_v47 = vld [vmem:[%s12470_s12 + $0x138] ss:$36 sps:$4 sm:$0xff]  }
 0x2ea   : > { %5584 = vmatprep.mubr.bf16.mxu1 %v11828_v48  ;;  %6385 = vmatprep.mubr.bf16.mxu0 %v11830_v51  ;;  %v11876_v48 = vld [vmem:[%s12470_s12 + $0xa74] ss:$36 sps:$4 sm:$0xff]   ;;  %v11878_v51 = vld [vmem:[%s12470_s12 + $0x184] ss:$36 sps:$4 sm:$0xff]  }
 0x2f1   : > { %5585 = vmatmul.mubr.bf16.gmra.mrb[116].mxu1 %v11832_v53  ;;  %6386 = vmatmul.mubr.bf16.gmra.mrb[244].mxu0 %v11833_v57  ;;  %v11880_v53 = vld [vmem:[%s12470_s12 + $0xa70] ss:$36 sps:$4 sm:$0xff]   ;;  %v11881_v57 = vld [vmem:[%s12470_s12 + $0x180] ss:$36 sps:$4 sm:$0xff]  }
 0x2f2   : > { %5592 = vmatprep.mubr.bf16.mxu1 %v11834_v60  ;;  %6393 = vmatprep.mubr.bf16.mxu0 %v11836_v61  ;;  %v11882_v60 = vld [vmem:[%s12470_s12 + $0xabc] ss:$36 sps:$4 sm:$0xff]   ;;  %v11884_v61 = vld [vmem:[%s12470_s12 + $0x1cc] ss:$36 sps:$4 sm:$0xff]  }
 0x2f9   : > { %5593 = vmatmul.mubr.bf16.gmra.mrb[120].mxu1 %v11838_v62  ;;  %6394 = vmatmul.mubr.bf16.gmra.mrb[248].mxu0 %v11839_v2  ;;  %v11886_v62 = vld [vmem:[%s12470_s12 + $0xab8] ss:$36 sps:$4 sm:$0xff]   ;;  %v11887_v2 = vld [vmem:[%s12470_s12 + $0x1c8] ss:$36 sps:$4 sm:$0xff]  }
 0x2fa   : > { %5600 = vmatprep.mubr.bf16.mxu1 %v11840_v5  ;;  %6401 = vmatprep.mubr.bf16.mxu0 %v11842_v9  ;;  %v11888_v5 = vld [vmem:[%s12470_s12 + $0xb04] ss:$36 sps:$4 sm:$0xff]   ;;  %v11890_v9 = vld [vmem:[%s12470_s12 + $0x214] ss:$36 sps:$4 sm:$0xff]  }
 0x301   : > { %5601 = vmatmul.mubr.bf16.gmra.mrb[124].mxu1 %v11844_v10  ;;  %6402 = vmatmul.mubr.bf16.gmra.mrb[252].mxu0 %v11845_v12  ;;  %v11892_v10 = vld [vmem:[%s12470_s12 + $0xb00] ss:$36 sps:$4 sm:$0xff]   ;;  %v11893_v12 = vld [vmem:[%s12470_s12 + $0x210] ss:$36 sps:$4 sm:$0xff]  }
 0x302   : > { %5608 = vmatprep.mubr.bf16.mxu1 %v11846_v13  ;;  %6442 = vmatprep.mubr.bf16.mxu0 %v11850_v15  ;;  %v11894_v13 = vld [vmem:[%s12470_s12 + $0xb4c] ss:$36 sps:$4 sm:$0xff]   ;;  %v11896_v15 = vld [vmem:[%s12470_s12 + $0x25c] ss:$36 sps:$4 sm:$0xff]  }
 0x309   : > { %5609 = vmatmul.mubr.bf16.gmra.mrb[128].mxu1 %v11851_v17  ;;  %6443 = vmatmul.mubr.bf16.vlgmr.msra.gmra.mrb[0].mxu0 %v11848_v21  ;;  %v11898_v17 = vld [vmem:[%s12470_s12 + $0xb48] ss:$36 sps:$4 sm:$0xff]   ;;  %v11899_v21 = vld [vmem:[%s12470_s12 + $0x258] ss:$36 sps:$4 sm:$0xff]  }
 0x30a   : > { %5616 = vmatprep.mubr.bf16.mxu1 %v11852_v22  ;;  %6450 = vmatprep.mubr.bf16.mxu0 %v11854_v23  ;;  %v11900_v22 = vld [vmem:[%s12470_s12 + $0xb94] ss:$36 sps:$4 sm:$0xff]   ;;  %v11902_v23 = vld [vmem:[%s12470_s12 + $0x2a4] ss:$36 sps:$4 sm:$0xff]  }
 0x311   : > { %5617 = vmatmul.mubr.bf16.gmra.mrb[132].mxu1 %v11856_v26  ;;  %6451 = vmatmul.mubr.bf16.gmra.mrb[4].mxu0 %v11857_v27  ;;  %v11904_v26 = vld [vmem:[%s12470_s12 + $0xb90] ss:$36 sps:$4 sm:$0xff]   ;;  %v11905_v27 = vld [vmem:[%s12470_s12 + $0x2a0] ss:$36 sps:$4 sm:$0xff]  }
 0x312   : > { %5624 = vmatprep.mubr.bf16.mxu1 %v11858_v30  ;;  %6458 = vmatprep.mubr.bf16.mxu0 %v11860_v31  ;;  %v11906_v30 = vld [vmem:[%s12470_s12 + $0xbdc] ss:$36 sps:$4 sm:$0xff]   ;;  %v11908_v31 = vld [vmem:[%s12470_s12 + $0x2ec] ss:$36 sps:$4 sm:$0xff]  }
 0x319   : > { %5625 = vmatmul.mubr.bf16.gmra.mrb[136].mxu1 %v11862_v32  ;;  %6459 = vmatmul.mubr.bf16.gmra.mrb[8].mxu0 %v11863_v34  ;;  %v11910_v32 = vld [vmem:[%s12470_s12 + $0xbd8] ss:$36 sps:$4 sm:$0xff]   ;;  %v11911_v34 = vld [vmem:[%s12470_s12 + $0x2e8] ss:$36 sps:$4 sm:$0xff]  }
 0x31a   : > { %5632 = vmatprep.mubr.bf16.mxu1 %v11864_v0  ;;  %6466 = vmatprep.mubr.bf16.mxu0 %v11866_v20  ;;  %v11912_v0 = vld [vmem:[%s12470_s12 + $0xc24] ss:$36 sps:$4 sm:$0xff]   ;;  %v11914_v20 = vld [vmem:[%s12470_s12 + $0x334] ss:$36 sps:$4 sm:$0xff]  }
 0x321   : > { %5633 = vmatmul.mubr.bf16.gmra.mrb[140].mxu1 %v11868_v37  ;;  %6467 = vmatmul.mubr.bf16.gmra.mrb[12].mxu0 %v11869_v38 }
 0x322   : > { %5640 = vmatprep.mubr.bf16.mxu1 %v11870_v40  ;;  %6474 = vmatprep.mubr.bf16.mxu0 %v11872_v43  ;;  %v11916_v40 = vld [vmem:[%s12470_s12 + $0xc20] ss:$36 sps:$4 sm:$0xff]  }
 0x329   : > { %5641 = vmatmul.mubr.bf16.gmra.mrb[144].mxu1 %v11874_v44  ;;  %6475 = vmatmul.mubr.bf16.gmra.mrb[16].mxu0 %v11875_v47  ;;  %v11917_v44 = vld [vmem:[%s12470_s12 + $0x330] ss:$36 sps:$4 sm:$0xff]  }
 0x32a   : > { %5648 = vmatprep.mubr.bf16.mxu1 %v11876_v48  ;;  %6482 = vmatprep.mubr.bf16.mxu0 %v11878_v51  ;;  %v11918_v47 = vld [vmem:[%s12470_s12 + $0xc6c] ss:$36 sps:$4 sm:$0xff]   ;;  %v11920_v51 = vld [vmem:[%s12470_s12 + $0x37c] ss:$36 sps:$4 sm:$0xff]  }
 0x331   : > { %5649 = vmatmul.mubr.bf16.gmra.mrb[148].mxu1 %v11880_v53  ;;  %6483 = vmatmul.mubr.bf16.gmra.mrb[20].mxu0 %v11881_v57 }
 0x332   : > { %5656 = vmatprep.mubr.bf16.mxu1 %v11882_v60  ;;  %6490 = vmatprep.mubr.bf16.mxu0 %v11884_v61  ;;  %v11922_v60 = vld [vmem:[%s12470_s12 + $0xc68] ss:$36 sps:$4 sm:$0xff]  }
 0x339   : > { %5657 = vmatmul.mubr.bf16.gmra.mrb[152].mxu1 %v11886_v62  ;;  %6491 = vmatmul.mubr.bf16.gmra.mrb[24].mxu0 %v11887_v2  ;;  %v11923_v62 = vld [vmem:[%s12470_s12 + $0x378] ss:$36 sps:$4 sm:$0xff]  }
 0x33a   : > { %5664 = vmatprep.mubr.bf16.mxu1 %v11888_v5  ;;  %6498 = vmatprep.mubr.bf16.mxu0 %v11890_v9  ;;  %v11924_v2 = vld [vmem:[%s12470_s12 + $0xcb4] ss:$36 sps:$4 sm:$0xff]   ;;  %v11926_v9 = vld [vmem:[%s12470_s12 + $0x3c4] ss:$36 sps:$4 sm:$0xff]  }
 0x341   : > { %5665 = vmatmul.mubr.bf16.gmra.mrb[156].mxu1 %v11892_v10  ;;  %6499 = vmatmul.mubr.bf16.gmra.mrb[28].mxu0 %v11893_v12 }
 0x342   : > { %5672 = vmatprep.mubr.bf16.mxu1 %v11894_v13  ;;  %6506 = vmatprep.mubr.bf16.mxu0 %v11896_v15  ;;  %v11928_v13 = vld [vmem:[%s12470_s12 + $0xcb0] ss:$36 sps:$4 sm:$0xff]  }
 0x349   : > { %5673 = vmatmul.mubr.bf16.gmra.mrb[160].mxu1 %v11898_v17  ;;  %6507 = vmatmul.mubr.bf16.gmra.mrb[32].mxu0 %v11899_v21  ;;  %v11929_v17 = vld [vmem:[%s12470_s12 + $0x3c0] ss:$36 sps:$4 sm:$0xff]  }
 0x34a   : > { %5680 = vmatprep.mubr.bf16.mxu1 %v11900_v22  ;;  %6514 = vmatprep.mubr.bf16.mxu0 %v11902_v23  ;;  %v11930_v21 = vld [vmem:[%s12470_s12 + $0xcfc] ss:$36 sps:$4 sm:$0xff]   ;;  %v11932_v23 = vld [vmem:[%s12470_s12 + $0x40c] ss:$36 sps:$4 sm:$0xff]  }
 0x351   : > { %5681 = vmatmul.mubr.bf16.gmra.mrb[164].mxu1 %v11904_v26  ;;  %6515 = vmatmul.mubr.bf16.gmra.mrb[36].mxu0 %v11905_v27 }
 0x352   : > { %5688 = vmatprep.mubr.bf16.mxu1 %v11906_v30  ;;  %6522 = vmatprep.mubr.bf16.mxu0 %v11908_v31  ;;  %v11934_v30 = vld [vmem:[%s12470_s12 + $0xcf8] ss:$36 sps:$4 sm:$0xff]  }
 0x359   : > { %5689 = vmatmul.mubr.bf16.gmra.mrb[168].mxu1 %v11910_v32  ;;  %6523 = vmatmul.mubr.bf16.gmra.mrb[40].mxu0 %v11911_v34  ;;  %v11935_v32 = vld [vmem:[%s12470_s12 + $0x408] ss:$36 sps:$4 sm:$0xff]  }
 0x35a   : > { %5696 = vmatprep.mubr.bf16.mxu1 %v11912_v0  ;;  %6530 = vmatprep.mubr.bf16.mxu0 %v11914_v20  ;;  %v11936_v34 = vld [vmem:[%s12470_s12 + $0xd44] ss:$36 sps:$4 sm:$0xff]   ;;  %v11938_v20 = vld [vmem:[%s12470_s12 + $0x454] ss:$36 sps:$4 sm:$0xff]  }
 0x35c   : > { %v13249_v37 = vpop.f32.mrb[64].mxu1 }
 0x35d   : > { %v5484_v38 = vpop.f32.mrb[65].mxu1 }
 0x35e   : > { %v13252_v43 = vpop.f32.mrb[66].mxu1 }
 0x35f   : > { %v5487_v48 = vpop.f32.mrb[67].mxu1 }
 0x360   : > { %v11941_v48 = vld [vmem:[%s12470_s12 + $0x450] ss:$36 sps:$4 sm:$0xff]  }
 0x361   : > { %5697 = vmatmul.mubr.bf16.gmra.mrb[172].mxu1 %v11916_v40  ;;  %6531 = vmatmul.mubr.bf16.gmra.mrb[44].mxu0 %v11917_v44  ;;  %v11940_v44 = vld [vmem:[%s12470_s12 + $0xd40] ss:$36 sps:$4 sm:$0xff]  }
 0x362   : > { %5704 = vmatprep.mubr.bf16.mxu1 %v11918_v47  ;;  %6538 = vmatprep.mubr.bf16.mxu0 %v11920_v51  ;;  %v11942_v51 = vld [vmem:[%s12470_s12 + $0xd8c] ss:$36 sps:$4 sm:$0xff]  }
 0x364   : > { %v13257_v53 = vpop.f32.mrb[68].mxu1 }
 0x365   : > { %v5492_v57 = vpop.f32.mrb[69].mxu1 }
 0x366   : > { %v13260_v61 = vpop.f32.mrb[70].mxu1 }
 0x367   : > { %v5495_v5 = vpop.f32.mrb[71].mxu1 }
 0x368   : > { %v11946_v5 = vld [vmem:[%s12470_s12 + $0xd88] ss:$36 sps:$4 sm:$0xff]  }
 0x369   : > { %5705 = vmatmul.mubr.bf16.gmra.mrb[176].mxu1 %v11922_v60  ;;  %6539 = vmatmul.mubr.bf16.gmra.mrb[48].mxu0 %v11923_v62  ;;  %v11944_v60 = vld [vmem:[%s12470_s12 + $0x49c] ss:$36 sps:$4 sm:$0xff]  }
 0x36a   : > { %5712 = vmatprep.mubr.bf16.mxu1 %v11924_v2  ;;  %6546 = vmatprep.mubr.bf16.mxu0 %v11926_v9 }
 0x36c   : > { %v13265_v10 = vpop.f32.mrb[72].mxu1 }
 0x36d   : > { %v5500_v12 = vpop.f32.mrb[73].mxu1 }
 0x36e   : > { %v13268_v15 = vpop.f32.mrb[74].mxu1  ;;  %v11947_v12 = vld [vmem:[%s12470_s12 + $0x498] ss:$36 sps:$4 sm:$0xff]  }
 0x36f   : > { %v5503_v22 = vpop.f32.mrb[75].mxu1 }
 0x371   : > { %5713 = vmatmul.mubr.bf16.gmra.mrb[180].mxu1 %v11928_v13  ;;  %6547 = vmatmul.mubr.bf16.gmra.mrb[52].mxu0 %v11929_v17  ;;  %v11948_v13 = vld [vmem:[%s12470_s12 + $0xdd4] ss:$36 sps:$4 sm:$0xff]  }
 0x372   : > { %5720 = vmatprep.mubr.bf16.mxu1 %v11930_v21  ;;  %6554 = vmatprep.mubr.bf16.mxu0 %v11932_v23  ;;  %v11950_v21 = vld [vmem:[%s12470_s12 + $0x4e4] ss:$36 sps:$4 sm:$0xff]  }
 0x374   : > { %v13273_v26 = vpop.f32.mrb[76].mxu1 }
 0x375   : > { %v5508_v27 = vpop.f32.mrb[77].mxu1 }
 0x376   : > { %v13276_v31 = vpop.f32.mrb[78].mxu1  ;;  %v11952_v27 = vld [vmem:[%s12470_s12 + $0xdd0] ss:$36 sps:$4 sm:$0xff]  }
 0x377   : > { %v5511_v0 = vpop.f32.mrb[79].mxu1 }
 0x379   : > { %5721 = vmatmul.mubr.bf16.gmra.mrb[184].mxu1 %v11934_v30  ;;  %6555 = vmatmul.mubr.bf16.gmra.mrb[56].mxu0 %v11935_v32  ;;  %v11953_v32 = vld [vmem:[%s12470_s12 + $0x4e0] ss:$36 sps:$4 sm:$0xff]  }
 0x37a   : > { %5728 = vmatprep.mubr.bf16.mxu1 %v11936_v34  ;;  %6562 = vmatprep.mubr.bf16.mxu0 %v11938_v20  ;;  %v11954_v34 = vld [vmem:[%s12470_s12 + $0xe1c] ss:$36 sps:$4 sm:$0xff]   ;;  %v11956_v20 = vld [vmem:[%s12470_s12 + $0x52c] ss:$36 sps:$4 sm:$0xff]  }
 0x37c   : > { %v13281_v38 = vpop.f32.mrb[80].mxu1 }
 0x37d   : > { %v5516_v40 = vpop.f32.mrb[81].mxu1 }
 0x37e   : > { %v13284_v47 = vpop.f32.mrb[82].mxu1 }
 0x37f   : > { %v5519_v57 = vpop.f32.mrb[83].mxu1 }
 0x380   : > { %v11959_v57 = vld [vmem:[%s12470_s12 + $0x528] ss:$36 sps:$4 sm:$0xff]  }
 0x381   : > { %5729 = vmatmul.mubr.bf16.gmra.mrb[188].mxu1 %v11940_v44  ;;  %6563 = vmatmul.mubr.bf16.gmra.mrb[60].mxu0 %v11941_v48  ;;  %v11958_v48 = vld [vmem:[%s12470_s12 + $0xe18] ss:$36 sps:$4 sm:$0xff]  }
 0x382   : > { %5736 = vmatprep.mubr.bf16.mxu1 %v11942_v51  ;;  %6570 = vmatprep.mubr.bf16.mxu0 %v11944_v60  ;;  %v11960_v60 = vld [vmem:[%s12470_s12 + $0xe64] ss:$36 sps:$4 sm:$0xff]  }
 0x384   : > { %v13289_v62 = vpop.f32.mrb[84].mxu1 }
 0x385   : > { %v5524_v2 = vpop.f32.mrb[85].mxu1 }
 0x386   : > { %v13292_v9 = vpop.f32.mrb[86].mxu1 }
 0x387   : > { %v5527_v17 = vpop.f32.mrb[87].mxu1 }
 0x388   : > { %v11964_v17 = vld [vmem:[%s12470_s12 + $0xe60] ss:$36 sps:$4 sm:$0xff]  }
 0x389   : > { %5737 = vmatmul.mubr.bf16.gmra.mrb[192].mxu1 %v11946_v5  ;;  %6571 = vmatmul.mubr.bf16.gmra.mrb[64].mxu0 %v11947_v12  ;;  %v11962_v5 = vld [vmem:[%s12470_s12 + $0x574] ss:$36 sps:$4 sm:$0xff]  }
 0x38a   : > { %5744 = vmatprep.mubr.bf16.mxu1 %v11948_v13  ;;  %6578 = vmatprep.mubr.bf16.mxu0 %v11950_v21 }
 0x38c   : > { %v13297_v22 = vpop.f32.mrb[88].mxu1 }
 0x38d   : > { %v5532_v23 = vpop.f32.mrb[89].mxu1 }
 0x38e   : > { %v13300_v30 = vpop.f32.mrb[90].mxu1  ;;  %v11965_v23 = vld [vmem:[%s12470_s12 + $0x570] ss:$36 sps:$4 sm:$0xff]  }
 0x38f   : > { %v5535_v0 = vpop.f32.mrb[91].mxu1 }
 0x391   : > { %5745 = vmatmul.mubr.bf16.gmra.mrb[196].mxu1 %v11952_v27  ;;  %6579 = vmatmul.mubr.bf16.gmra.mrb[68].mxu0 %v11953_v32  ;;  %v11966_v27 = vld [vmem:[%s12470_s12 + $0xeac] ss:$36 sps:$4 sm:$0xff]  }
 0x392   : > { %5752 = vmatprep.mubr.bf16.mxu1 %v11954_v34  ;;  %6586 = vmatprep.mubr.bf16.mxu0 %v11956_v20  ;;  %v11968_v34 = vld [vmem:[%s12470_s12 + $0x5bc] ss:$36 sps:$4 sm:$0xff]  }
 0x394   : > { %v13305_v40 = vpop.f32.mrb[92].mxu1 }
 0x395   : > { %v5540_v44 = vpop.f32.mrb[93].mxu1 }
 0x396   : > { %v13308_v51 = vpop.f32.mrb[94].mxu1  ;;  %v11970_v44 = vld [vmem:[%s12470_s12 + $0xea8] ss:$36 sps:$4 sm:$0xff]  }
 0x397   : > { %v5543_v2 = vpop.f32.mrb[95].mxu1 }
 0x399   : > { %5753 = vmatmul.mubr.bf16.gmra.mrb[200].mxu1 %v11958_v48  ;;  %6587 = vmatmul.mubr.bf16.gmra.mrb[72].mxu0 %v11959_v57  ;;  %v11971_v57 = vld [vmem:[%s12470_s12 + $0x5b8] ss:$36 sps:$4 sm:$0xff]  }
 0x39a   : > { %5760 = vmatprep.mubr.bf16.mxu1 %v11960_v60  ;;  %6594 = vmatprep.mubr.bf16.mxu0 %v11962_v5  ;;  %v11972_v60 = vld [vmem:[%s12470_s12 + $0xef4] ss:$36 sps:$4 sm:$0xff]   ;;  %v11974_v5 = vld [vmem:[%s12470_s12 + $0x604] ss:$36 sps:$4 sm:$0xff]  }
 0x39c   : > { %v13313_v12 = vpop.f32.mrb[96].mxu1 }
 0x39d   : > { %v5548_v13 = vpop.f32.mrb[97].mxu1 }
 0x39e   : > { %v13316_v21 = vpop.f32.mrb[98].mxu1 }
 0x39f   : > { %v5551_v32 = vpop.f32.mrb[99].mxu1 }
 0x3a0   : > { %v11977_v32 = vld [vmem:[%s12470_s12 + $0x600] ss:$36 sps:$4 sm:$0xff]  }
 0x3a1   : > { %5761 = vmatmul.mubr.bf16.gmra.mrb[204].mxu1 %v11964_v17  ;;  %6595 = vmatmul.mubr.bf16.gmra.mrb[76].mxu0 %v11965_v23  ;;  %v11976_v23 = vld [vmem:[%s12470_s12 + $0xef0] ss:$36 sps:$4 sm:$0xff]  }
 0x3a2   : > { %5768 = vmatprep.mubr.bf16.mxu1 %v11966_v27  ;;  %6602 = vmatprep.mubr.bf16.mxu0 %v11968_v34  ;;  %v11978_v34 = vld [vmem:[%s12470_s12 + $0xf3c] ss:$36 sps:$4 sm:$0xff]  }
 0x3a4   : > { %v13321_v0 = vpop.f32.mrb[100].mxu1 }
 0x3a5   : > { %15213 = vst [vmem:[#allocation7_spill] sm:$0xff] %v13321_v0  ;;  %v5556_v20 = vpop.f32.mrb[101].mxu1 }
 0x3a6   : > { %v13324_v48 = vpop.f32.mrb[102].mxu1 }
 0x3a7   : > { %15214 = vst [vmem:[#allocation8_spill] sm:$0xff] %v13324_v48  ;;  %v5559_v2 = vpop.f32.mrb[103].mxu1  ;;  %v11980_v48 = vld [vmem:[%s12470_s12 + $0x64c] ss:$36 sps:$4 sm:$0xff]  }
 0x3a9   : > { %5769 = vmatmul.mubr.bf16.gmra.mrb[208].mxu1 %v11970_v44  ;;  %6603 = vmatmul.mubr.bf16.gmra.mrb[80].mxu0 %v11971_v57 }
 0x3aa   : > { %5776 = vmatprep.mubr.bf16.mxu1 %v11972_v60  ;;  %6610 = vmatprep.mubr.bf16.mxu0 %v11974_v5  ;;  %v11982_v60 = vld [vmem:[%s12470_s12 + $0xf38] ss:$36 sps:$4 sm:$0xff]   ;;  %v11983_v5 = vld [vmem:[%s12470_s12 + $0x648] ss:$36 sps:$4 sm:$0xff]  }
 0x3ac   : > { %v13329_v13 = vpop.f32.mrb[104].mxu1 }
 0x3ad   : > { %15215 = vst [vmem:[#allocation9_spill] sm:$0xff] %v13329_v13  ;;  %v5564_v17 = vpop.f32.mrb[105].mxu1  ;;  %v11986_v13 = vld [vmem:[%s12470_s12 + $0x694] ss:$36 sps:$4 sm:$0xff]  }
 0x3ae   : > { %v13332_v27 = vpop.f32.mrb[106].mxu1  ;;  %v11984_v17 = vld [vmem:[%s12470_s12 + $0xf84] ss:$36 sps:$4 sm:$0xff]  }
 0x3af   : > { %15216 = vst [vmem:[#allocation10_spill] sm:$0xff] %v13332_v27  ;;  %v5567_v20 = vpop.f32.mrb[107].mxu1 }
 0x3b0   : > { %v11989_v20 = vld [vmem:[%s12470_s12 + $0x690] ss:$36 sps:$4 sm:$0xff]  }
 0x3b1   : > { %5777 = vmatmul.mubr.bf16.gmra.mrb[212].mxu1 %v11976_v23  ;;  %6611 = vmatmul.mubr.bf16.gmra.mrb[84].mxu0 %v11977_v32  ;;  %v11988_v32 = vld [vmem:[%s12470_s12 + $0xf80] ss:$36 sps:$4 sm:$0xff]  }
 0x3b2   : > { %5784 = vmatprep.mubr.bf16.mxu1 %v11978_v34  ;;  %6618 = vmatprep.mubr.bf16.mxu0 %v11980_v48 }
 0x3b4   : > { %v13337_v44 = vpop.f32.mrb[108].mxu1 }
 0x3b5   : > { %15217 = vst [vmem:[#allocation11_spill] sm:$0xff] %v13337_v44  ;;  %v5572_v57 = vpop.f32.mrb[109].mxu1  ;;  %v11992_v44 = vld [vmem:[%s12470_s12 + $0x6dc] ss:$36 sps:$4 sm:$0xff]  }
 0x3b6   : > { %v13340_v2 = vpop.f32.mrb[110].mxu1  ;;  %v11990_v57 = vld [vmem:[%s12470_s12 + $0xfcc] ss:$36 sps:$4 sm:$0xff]  }
 0x3b7   : > { %15218 = vst [vmem:[#allocation12_spill] sm:$0xff] %v13340_v2  ;;  %v5575_v27 = vpop.f32.mrb[111].mxu1 }
 0x3b9   : > { %5785 = vmatmul.mubr.bf16.gmra.mrb[216].mxu1 %v11982_v60  ;;  %6619 = vmatmul.mubr.bf16.gmra.mrb[88].mxu0 %v11983_v5  ;;  %v11994_v60 = vld [vmem:[%s12470_s12 + $0xfc8] ss:$36 sps:$4 sm:$0xff]  }
 0x3ba   : > { %5792 = vmatprep.mubr.bf16.mxu1 %v11984_v17  ;;  %6626 = vmatprep.mubr.bf16.mxu0 %v11986_v13  ;;  %v11995_v17 = vld [vmem:[%s12470_s12 + $0x6d8] ss:$36 sps:$4 sm:$0xff]  }
 0x3bc   : > { %v13345_v23 = vpop.f32.mrb[112].mxu1 }
 0x3bd   : > { %15219 = vst [vmem:[#allocation13_spill] sm:$0xff] %v13345_v23  ;;  %v5580_v48 = vpop.f32.mrb[113].mxu1  ;;  %v11998_v23 = vld [vmem:[%s12470_s12 + $0x724] ss:$36 sps:$4 sm:$0xff]  }
 0x3be   : > { %v13348_v34 = vpop.f32.mrb[114].mxu1  ;;  %v11996_v48 = vld [vmem:[%s12470_s12 + $0x1014] ss:$36 sps:$4 sm:$0xff]  }
 0x3bf   : > { %15220 = vst [vmem:[#allocation14_spill] sm:$0xff] %v13348_v34  ;;  %v5583_v2 = vpop.f32.mrb[115].mxu1 }
 0x3c1   : > { %5793 = vmatmul.mubr.bf16.gmra.mrb[220].mxu1 %v11988_v32  ;;  %6627 = vmatmul.mubr.bf16.gmra.mrb[92].mxu0 %v11989_v20  ;;  %v12000_v32 = vld [vmem:[%s12470_s12 + $0x1010] ss:$36 sps:$4 sm:$0xff]  }
 0x3c2   : > { %5800 = vmatprep.mubr.bf16.mxu1 %v11990_v57  ;;  %6634 = vmatprep.mubr.bf16.mxu0 %v11992_v44  ;;  %v12001_v57 = vld [vmem:[%s12470_s12 + $0x720] ss:$36 sps:$4 sm:$0xff]  }
 0x3c4   : > { %v13353_v27 = vpop.f32.mrb[116].mxu1 }
 0x3c5   : > { %15221 = vst [vmem:[#allocation15_spill] sm:$0xff] %v13353_v27  ;;  %v5588_v13 = vpop.f32.mrb[117].mxu1  ;;  %v12004_v27 = vld [vmem:[%s12470_s12 + $0x76c] ss:$36 sps:$4 sm:$0xff]  }
 0x3c6   : > { %v13356_v5 = vpop.f32.mrb[118].mxu1  ;;  %v12002_v13 = vld [vmem:[%s12470_s12 + $0x105c] ss:$36 sps:$4 sm:$0xff]  }
 0x3c7   : > { %15222 = vst [vmem:[#allocation16_spill] sm:$0xff] %v13356_v5  ;;  %v5591_v34 = vpop.f32.mrb[119].mxu1 }
 0x3c9   : > { %5801 = vmatmul.mubr.bf16.gmra.mrb[224].mxu1 %v11994_v60  ;;  %6635 = vmatmul.mubr.bf16.gmra.mrb[96].mxu0 %v11995_v17  ;;  %v12006_v60 = vld [vmem:[%s12470_s12 + $0x1058] ss:$36 sps:$4 sm:$0xff]  }
 0x3ca   : > { %5808 = vmatprep.mubr.bf16.mxu1 %v11996_v48  ;;  %6642 = vmatprep.mubr.bf16.mxu0 %v11998_v23  ;;  %v12007_v48 = vld [vmem:[%s12470_s12 + $0x768] ss:$36 sps:$4 sm:$0xff]  }
 0x3cc   : > { %v13361_v2 = vpop.f32.mrb[120].mxu1 }
 0x3cd   : > { %15223 = vst [vmem:[#allocation17_spill] sm:$0xff] %v13361_v2  ;;  %v5596_v44 = vpop.f32.mrb[121].mxu1  ;;  %v12010_v2 = vld [vmem:[%s12470_s12 + $0x7b4] ss:$36 sps:$4 sm:$0xff]  }
 0x3ce   : > { %v13364_v20 = vpop.f32.mrb[122].mxu1  ;;  %v12008_v44 = vld [vmem:[%s12470_s12 + $0x10a4] ss:$36 sps:$4 sm:$0xff]  }
 0x3cf   : > { %15224 = vst [vmem:[#allocation18_spill] sm:$0xff] %v13364_v20  ;;  %v5599_v5 = vpop.f32.mrb[123].mxu1 }
 0x3d1   : > { %5809 = vmatmul.mubr.bf16.gmra.mrb[228].mxu1 %v12000_v32  ;;  %6643 = vmatmul.mubr.bf16.gmra.mrb[100].mxu0 %v12001_v57  ;;  %v12012_v57 = vld [vmem:[%s12470_s12 + $0x10a0] ss:$36 sps:$4 sm:$0xff]  }
 0x3d2   : > { %5816 = vmatprep.mubr.bf16.mxu1 %v12002_v13  ;;  %6650 = vmatprep.mubr.bf16.mxu0 %v12004_v27 }
 0x3d4   : > { %v13369_v34 = vpop.f32.mrb[124].mxu1 }
 0x3d5   : > { %15225 = vst [vmem:[#allocation19_spill] sm:$0xff] %v13369_v34  ;;  %v5604_v23 = vpop.f32.mrb[125].mxu1  ;;  %v12013_v34 = vld [vmem:[%s12470_s12 + $0x7b0] ss:$36 sps:$4 sm:$0xff]  }
 0x3d6   : > { %v13372_v17 = vpop.f32.mrb[126].mxu1 }
 0x3d7   : > { %15226 = vst [vmem:[#allocation20_spill] sm:$0xff] %v13372_v17  ;;  %v5607_v20 = vpop.f32.mrb[127].mxu1 }
 0x3d8   : > { %v12014_v20 = vld [vmem:[%s12470_s12 + $0x10ec] ss:$36 sps:$4 sm:$0xff]  }
 0x3d9   : > { %5817 = vmatmul.mubr.bf16.gmra.mrb[232].mxu1 %v12006_v60  ;;  %6651 = vmatmul.mubr.bf16.gmra.mrb[104].mxu0 %v12007_v48  ;;  %v12016_v48 = vld [vmem:[%s12470_s12 + $0x7fc] ss:$36 sps:$4 sm:$0xff]  }
 0x3da   : > { %5824 = vmatprep.mubr.bf16.mxu1 %v12008_v44  ;;  %6658 = vmatprep.mubr.bf16.mxu0 %v12010_v2 }
 0x3dc   : > { %v13377_v5 = vpop.f32.mrb[128].mxu1  ;;  %v6444_v27 = vpop.f32.mrb[0].mxu0 }
 0x3dd   : > { %v5612_v32 = vpop.f32.mrb[129].mxu1  ;;  %v13381_v13 = vadd.f32 %v6444_v27, %v12888_v41  ;;  %v6446_v23 = vpop.f32.mrb[1].mxu0 }
 0x3de   : > { %v13383_v17 = vpop.f32.mrb[130].mxu1  ;;  %v6447_v0 = vpop.f32.mrb[2].mxu0  ;;  %v12018_v23 = vld [vmem:[%s12470_s12 + $0x10e8] ss:$36 sps:$4 sm:$0xff]  }
 0x3df   : > { %15227 = vst [vmem:[#allocation21_spill] sm:$0xff] %v13381_v13  ;;  %15228 = vst [vmem:[#allocation22_spill] sm:$0xff] %v13383_v17  ;;  %v5615_v60 = vpop.f32.mrb[131].mxu1  ;;  %v13389_v2 = vadd.f32 %v6447_v0, %v12893_v46  ;;  %v6449_v44 = vpop.f32.mrb[3].mxu0  ;;  %v12019_v46 = vld [vmem:[%s12470_s12 + $0x7f8] ss:$36 sps:$4 sm:$0xff]  }
 0x3e0   : > { %v12020_v0 = vld [vmem:[%s12470_s12 + $0x1134] ss:$36 sps:$4 sm:$0xff]  }
 0x3e1   : > { %5825 = vmatmul.mubr.bf16.gmra.mrb[236].mxu1 %v12012_v57  ;;  %6659 = vmatmul.mubr.bf16.gmra.mrb[108].mxu0 %v12013_v34  ;;  %v12022_v34 = vld [vmem:[%s12470_s12 + $0x844] ss:$36 sps:$4 sm:$0xff]  }
 0x3e2   : > { %5832 = vmatprep.mubr.bf16.mxu1 %v12014_v20  ;;  %6666 = vmatprep.mubr.bf16.mxu0 %v12016_v48 }
 0x3e4   : > { %v13391_v41 = vpop.f32.mrb[132].mxu1  ;;  %v6452_v27 = vpop.f32.mrb[4].mxu0 }
 0x3e5   : > { %15229 = vst [vmem:[#allocation23_spill] sm:$0xff] %v13391_v41  ;;  %v5620_v32 = vpop.f32.mrb[133].mxu1  ;;  %v13395_v17 = vadd.f32 %v6452_v27, %v12896_v49  ;;  %v6454_v60 = vpop.f32.mrb[5].mxu0 }
 0x3e6   : > { %v13397_v13 = vpop.f32.mrb[134].mxu1  ;;  %v6455_v44 = vpop.f32.mrb[6].mxu0  ;;  %v12024_v60 = vld [vmem:[%s12470_s12 + $0x1130] ss:$36 sps:$4 sm:$0xff]  }
 0x3e7   : > { %15230 = vst [vmem:[#allocation24_spill] sm:$0xff] %v13397_v13  ;;  %v5623_v57 = vpop.f32.mrb[135].mxu1  ;;  %v13403_v20 = vadd.f32 %v6455_v44, %v12901_v54  ;;  %v6457_v48 = vpop.f32.mrb[7].mxu0  ;;  %v12025_v54 = vld [vmem:[%s12470_s12 + $0x840] ss:$36 sps:$4 sm:$0xff]  }
 0x3e8   : > { %v12026_v44 = vld [vmem:[%s12470_s12 + $0x117c] ss:$36 sps:$4 sm:$0xff]  }
 0x3e9   : > { %5833 = vmatmul.mubr.bf16.gmra.mrb[240].mxu1 %v12018_v23  ;;  %6667 = vmatmul.mubr.bf16.gmra.mrb[112].mxu0 %v12019_v46  ;;  %v12028_v46 = vld [vmem:[%s12470_s12 + $0x88c] ss:$36 sps:$4 sm:$0xff]  }
 0x3ea   : > { %5840 = vmatprep.mubr.bf16.mxu1 %v12020_v0  ;;  %6674 = vmatprep.mubr.bf16.mxu0 %v12022_v34 }
 0x3ec   : > { %v13405_v49 = vpop.f32.mrb[136].mxu1  ;;  %v6460_v27 = vpop.f32.mrb[8].mxu0 }
 0x3ed   : > { %15231 = vst [vmem:[#allocation25_spill] sm:$0xff] %v13405_v49  ;;  %v5628_v32 = vpop.f32.mrb[137].mxu1  ;;  %v13409_v13 = vadd.f32 %v6460_v27, %v12907_v58  ;;  %v6462_v57 = vpop.f32.mrb[9].mxu0 }
 0x3ee   : > { %v13411_v41 = vpop.f32.mrb[138].mxu1  ;;  %v6463_v48 = vpop.f32.mrb[10].mxu0  ;;  %v12030_v57 = vld [vmem:[%s12470_s12 + $0x1178] ss:$36 sps:$4 sm:$0xff]  }
 0x3ef   : > { %15232 = vst [vmem:[#allocation26_spill] sm:$0xff] %v13411_v41  ;;  %v5631_v23 = vpop.f32.mrb[139].mxu1  ;;  %v13417_v0 = vadd.f32 %v6463_v48, %v12913_v63  ;;  %v6465_v34 = vpop.f32.mrb[11].mxu0  ;;  %v12031_v63 = vld [vmem:[%s12470_s12 + $0x888] ss:$36 sps:$4 sm:$0xff]  }
 0x3f0   : > { %v12032_v48 = vld [vmem:[%s12470_s12 + $0x11c4] ss:$36 sps:$4 sm:$0xff]  }
 0x3f1   : > { %15233 = vst [vmem:[#allocation27_spill] sm:$0xff] %v13417_v0  ;;  %5841 = vmatmul.mubr.bf16.gmra.mrb[244].mxu1 %v12024_v60  ;;  %6675 = vmatmul.mubr.bf16.gmra.mrb[116].mxu0 %v12025_v54  ;;  %v12034_v54 = vld [vmem:[%s12470_s12 + $0x8d4] ss:$36 sps:$4 sm:$0xff]  }
 0x3f2   : > { %5848 = vmatprep.mubr.bf16.mxu1 %v12026_v44  ;;  %6682 = vmatprep.mubr.bf16.mxu0 %v12028_v46 }
 0x3f4   : > { %v13419_v58 = vpop.f32.mrb[140].mxu1  ;;  %v6468_v27 = vpop.f32.mrb[12].mxu0 }
 0x3f5   : > { %15234 = vst [vmem:[#allocation28_spill] sm:$0xff] %v13419_v58  ;;  %v5636_v32 = vpop.f32.mrb[141].mxu1  ;;  %v13423_v41 = vadd.f32 %v6468_v27, %v12916_v3  ;;  %v6470_v23 = vpop.f32.mrb[13].mxu0 }
 0x3f6   : > { %v13425_v49 = vpop.f32.mrb[142].mxu1  ;;  %v6471_v34 = vpop.f32.mrb[14].mxu0  ;;  %v12036_v23 = vld [vmem:[%s12470_s12 + $0x11c0] ss:$36 sps:$4 sm:$0xff]  }
 0x3f7   : > { %15235 = vst [vmem:[#allocation29_spill] sm:$0xff] %v13425_v49  ;;  %v5639_v60 = vpop.f32.mrb[143].mxu1  ;;  %v13431_v44 = vadd.f32 %v6471_v34, %v12921_v8  ;;  %v6473_v46 = vpop.f32.mrb[15].mxu0  ;;  %v12037_v8 = vld [vmem:[%s12470_s12 + $0x8d0] ss:$36 sps:$4 sm:$0xff]  }
 0x3f8   : > { %v12040_v34 = vld [vmem:[%s12470_s12 + $0x20] ss:$36 sps:$4 sm:$0xff]  }
 0x3f9   : > { %5849 = vmatmul.mubr.bf16.gmra.mrb[248].mxu1 %v12030_v57  ;;  %6683 = vmatmul.mubr.bf16.gmra.mrb[120].mxu0 %v12031_v63  ;;  %v12038_v57 = vld [vmem:[%s12470_s12 + $0x91c] ss:$36 sps:$4 sm:$0xff]  }
 0x3fa   : > { %5856 = vmatprep.mubr.bf16.mxu1 %v12032_v48  ;;  %6690 = vmatprep.mubr.bf16.mxu0 %v12034_v54 }
 0x3fc   : > { %v13433_v3 = vpop.f32.mrb[144].mxu1  ;;  %v6476_v27 = vpop.f32.mrb[16].mxu0 }
 0x3fd   : > { %v5644_v32 = vpop.f32.mrb[145].mxu1  ;;  %v13437_v49 = vadd.f32 %v6476_v27, %v12924_v11  ;;  %v6478_v60 = vpop.f32.mrb[17].mxu0 }
 0x3fe   : > { %v13439_v58 = vpop.f32.mrb[146].mxu1  ;;  %v6479_v46 = vpop.f32.mrb[18].mxu0  ;;  %v12042_v32 = vld [vmem:[%s12470_s12 + $0x68] ss:$36 sps:$4 sm:$0xff]  }
 0x3ff   : > { %15236 = vst [vmem:[#allocation30_spill] sm:$0xff] %v13439_v58  ;;  %v5647_v0 = vpop.f32.mrb[147].mxu1  ;;  %v13445_v63 = vadd.f32 %v6479_v46, %v12929_v16  ;;  %v6481_v48 = vpop.f32.mrb[19].mxu0  ;;  %v12041_v16 = vld [vmem:[%s12470_s12 + $0x918] ss:$36 sps:$4 sm:$0xff]  }
 0x400   : > { %v12045_v46 = vld [vmem:[%s12470_s12 + $0xb0] ss:$36 sps:$4 sm:$0xff]  }
 0x401   : > { %5857 = vmatmul.mubr.bf16.gmra.mrb[252].mxu1 %v12036_v23  ;;  %6691 = vmatmul.mubr.bf16.gmra.mrb[124].mxu0 %v12037_v8  ;;  %v12043_v8 = vld [vmem:[%s12470_s12 + $0x964] ss:$36 sps:$4 sm:$0xff]  }
 0x402   : > { %10380 = vmatprep.mubr.msk.bf16.mxu1 %vm4575_vm2, %v12040_v34  ;;  %6698 = vmatprep.mubr.bf16.mxu0 %v12038_v57 }
 0x404   : > { %v13448_v11 = vpop.f32.mrb[148].mxu1  ;;  %v6484_v54 = vpop.f32.mrb[20].mxu0 }
 0x405   : > { %15237 = vst [vmem:[#allocation31_spill] sm:$0xff] %v13448_v11  ;;  %v5652_v27 = vpop.f32.mrb[149].mxu1  ;;  %v13452_v0 = vadd.f32 %v6484_v54, %v12932_v19  ;;  %v6486_v60 = vpop.f32.mrb[21].mxu0 }
 0x406   : > { %v13454_v58 = vpop.f32.mrb[150].mxu1  ;;  %v6487_v48 = vpop.f32.mrb[22].mxu0  ;;  %v12047_v60 = vld [vmem:[%s12470_s12 + $0xf8] ss:$36 sps:$4 sm:$0xff]  }
 0x407   : > { %15238 = vst [vmem:[#allocation32_spill] sm:$0xff] %v13454_v58  ;;  %v5655_v23 = vpop.f32.mrb[151].mxu1  ;;  %v13460_v34 = vadd.f32 %v6487_v48, %v12937_v24  ;;  %v6489_v57 = vpop.f32.mrb[23].mxu0  ;;  %v12046_v48 = vld [vmem:[%s12470_s12 + $0x960] ss:$36 sps:$4 sm:$0xff]  }
 0x408   : > { %v12050_v57 = vld [vmem:[%s12470_s12 + $0x140] ss:$36 sps:$4 sm:$0xff]  }
 0x409   : > { %10381 = vmatmul.mubr.msk.bf16.vlgmr.msra.gmra.mrb[0].mxu1 %vm4575_vm2, %v12042_v32  ;;  %6699 = vmatmul.mubr.bf16.gmra.mrb[128].mxu0 %v12041_v16  ;;  %v12048_v16 = vld [vmem:[%s12470_s12 + $0x9ac] ss:$36 sps:$4 sm:$0xff]  }
 0x40a   : > { %10384 = vmatprep.mubr.msk.bf16.mxu1 %vm4575_vm2, %v12045_v46  ;;  %6706 = vmatprep.mubr.bf16.mxu0 %v12043_v8 }
 0x40c   : > { %v13464_v19 = vpop.f32.mrb[152].mxu1  ;;  %v6492_v54 = vpop.f32.mrb[24].mxu0 }
 0x40d   : > { %15239 = vst [vmem:[#allocation33_spill] sm:$0xff] %v13464_v19  ;;  %v5660_v27 = vpop.f32.mrb[153].mxu1  ;;  %v13468_v23 = vadd.f32 %v6492_v54, %v12943_v28  ;;  %v6494_v58 = vpop.f32.mrb[25].mxu0 }
 0x40e   : > { %v13470_v24 = vpop.f32.mrb[154].mxu1  ;;  %v6495_v11 = vpop.f32.mrb[26].mxu0  ;;  %v12052_v27 = vld [vmem:[%s12470_s12 + $0x188] ss:$36 sps:$4 sm:$0xff]  }
 0x40f   : > { %15240 = vst [vmem:[#allocation34_spill] sm:$0xff] %v13470_v24  ;;  %v5663_v32 = vpop.f32.mrb[155].mxu1  ;;  %v13476_v46 = vadd.f32 %v6495_v11, %v12949_v33  ;;  %v6497_v8 = vpop.f32.mrb[27].mxu0  ;;  %v12051_v11 = vld [vmem:[%s12470_s12 + $0x9a8] ss:$36 sps:$4 sm:$0xff]  }
 0x410   : > { %v12055_v8 = vld [vmem:[%s12470_s12 + $0x1d0] ss:$36 sps:$4 sm:$0xff]  }
 0x411   : > { %10385 = vmatmul.mubr.msk.bf16.gmra.mrb[4].mxu1 %vm4575_vm2, %v12047_v60  ;;  %6707 = vmatmul.mubr.bf16.gmra.mrb[132].mxu0 %v12046_v48  ;;  %v12053_v48 = vld [vmem:[%s12470_s12 + $0x9f4] ss:$36 sps:$4 sm:$0xff]  }
 0x412   : > { %10388 = vmatprep.mubr.msk.bf16.mxu1 %vm4575_vm2, %v12050_v57  ;;  %6714 = vmatprep.mubr.bf16.mxu0 %v12048_v16 }
 0x414   : > { %v13480_v28 = vpop.f32.mrb[156].mxu1  ;;  %v6500_v58 = vpop.f32.mrb[28].mxu0 }
 0x415   : > { %15241 = vst [vmem:[#allocation35_spill] sm:$0xff] %v13480_v28  ;;  %v5668_v54 = vpop.f32.mrb[157].mxu1  ;;  %v13484_v32 = vadd.f32 %v6500_v58, %v12952_v36  ;;  %v6502_v24 = vpop.f32.mrb[29].mxu0 }
 0x416   : > { %v13486_v33 = vpop.f32.mrb[158].mxu1  ;;  %v6503_v19 = vpop.f32.mrb[30].mxu0  ;;  %v12057_v54 = vld [vmem:[%s12470_s12 + $0x218] ss:$36 sps:$4 sm:$0xff]  }
 0x417   : > { %15242 = vst [vmem:[#allocation36_spill] sm:$0xff] %v13486_v33  ;;  %v5671_v60 = vpop.f32.mrb[159].mxu1  ;;  %v13492_v57 = vadd.f32 %v6503_v19, %v12957_v42  ;;  %v6505_v16 = vpop.f32.mrb[31].mxu0  ;;  %v12056_v19 = vld [vmem:[%s12470_s12 + $0x9f0] ss:$36 sps:$4 sm:$0xff]  }
 0x418   : > { %v12060_v16 = vld [vmem:[%s12470_s12 + $0x260] ss:$36 sps:$4 sm:$0xff]  }
 0x419   : > { %10389 = vmatmul.mubr.msk.bf16.gmra.mrb[8].mxu1 %vm4575_vm2, %v12052_v27  ;;  %6715 = vmatmul.mubr.bf16.gmra.mrb[136].mxu0 %v12051_v11  ;;  %v12058_v11 = vld [vmem:[%s12470_s12 + $0xa3c] ss:$36 sps:$4 sm:$0xff]  }
 0x41a   : > { %10392 = vmatprep.mubr.msk.bf16.mxu1 %vm4575_vm2, %v12055_v8  ;;  %6722 = vmatprep.mubr.bf16.mxu0 %v12053_v48 }
 0x41c   : > { %v13496_v36 = vpop.f32.mrb[160].mxu1  ;;  %v6508_v24 = vpop.f32.mrb[32].mxu0 }
 0x41d   : > { %15243 = vst [vmem:[#allocation37_spill] sm:$0xff] %v13496_v36  ;;  %v5676_v58 = vpop.f32.mrb[161].mxu1  ;;  %v13500_v60 = vadd.f32 %v6508_v24, %v12960_v45  ;;  %v6510_v33 = vpop.f32.mrb[33].mxu0 }
 0x41e   : > { %v13502_v42 = vpop.f32.mrb[162].mxu1  ;;  %v6511_v28 = vpop.f32.mrb[34].mxu0  ;;  %v12062_v58 = vld [vmem:[%s12470_s12 + $0x2a8] ss:$36 sps:$4 sm:$0xff]  }
 0x41f   : > { %15244 = vst [vmem:[#allocation38_spill] sm:$0xff] %v13502_v42  ;;  %v5679_v27 = vpop.f32.mrb[163].mxu1  ;;  %v13508_v8 = vadd.f32 %v6511_v28, %v12965_v52  ;;  %v6513_v48 = vpop.f32.mrb[35].mxu0  ;;  %v12061_v28 = vld [vmem:[%s12470_s12 + $0xa38] ss:$36 sps:$4 sm:$0xff]  }
 0x420   : > { %v12065_v48 = vld [vmem:[%s12470_s12 + $0x2f0] ss:$36 sps:$4 sm:$0xff]  }
 0x421   : > { %10393 = vmatmul.mubr.msk.bf16.gmra.mrb[12].mxu1 %vm4575_vm2, %v12057_v54  ;;  %6723 = vmatmul.mubr.bf16.gmra.mrb[140].mxu0 %v12056_v19  ;;  %v12063_v19 = vld [vmem:[%s12470_s12 + $0xa84] ss:$36 sps:$4 sm:$0xff]  }
 0x422   : > { %10396 = vmatprep.mubr.msk.bf16.mxu1 %vm4575_vm2, %v12060_v16  ;;  %6730 = vmatprep.mubr.bf16.mxu0 %v12058_v11 }
 0x424   : > { %v13512_v45 = vpop.f32.mrb[164].mxu1  ;;  %v6516_v33 = vpop.f32.mrb[36].mxu0 }
 0x425   : > { %15245 = vst [vmem:[#allocation39_spill] sm:$0xff] %v13512_v45  ;;  %v5684_v24 = vpop.f32.mrb[165].mxu1  ;;  %v13516_v27 = vadd.f32 %v6516_v33, %v12967_v55  ;;  %v6518_v42 = vpop.f32.mrb[37].mxu0 }
 0x426   : > { %v13518_v52 = vpop.f32.mrb[166].mxu1  ;;  %v6519_v36 = vpop.f32.mrb[38].mxu0  ;;  %v12067_v24 = vld [vmem:[%s12470_s12 + $0x338] ss:$36 sps:$4 sm:$0xff]  }
 0x427   : > { %15246 = vst [vmem:[#allocation40_spill] sm:$0xff] %v13518_v52  ;;  %v5687_v54 = vpop.f32.mrb[167].mxu1  ;;  %v13524_v16 = vadd.f32 %v6519_v36, %v12970_v59  ;;  %v6521_v11 = vpop.f32.mrb[39].mxu0  ;;  %v12066_v36 = vld [vmem:[%s12470_s12 + $0xa80] ss:$36 sps:$4 sm:$0xff]  }
 0x428   : > { %v12070_v11 = vld [vmem:[%s12470_s12 + $0x380] ss:$36 sps:$4 sm:$0xff]  }
 0x429   : > { %10397 = vmatmul.mubr.msk.bf16.gmra.mrb[16].mxu1 %vm4575_vm2, %v12062_v58  ;;  %6731 = vmatmul.mubr.bf16.gmra.mrb[144].mxu0 %v12061_v28  ;;  %v12068_v28 = vld [vmem:[%s12470_s12 + $0xacc] ss:$36 sps:$4 sm:$0xff]  }
 0x42a   : > { %10400 = vmatprep.mubr.msk.bf16.mxu1 %vm4575_vm2, %v12065_v48  ;;  %6738 = vmatprep.mubr.bf16.mxu0 %v12063_v19 }
 0x42c   : > { %v13528_v55 = vpop.f32.mrb[168].mxu1  ;;  %v6524_v42 = vpop.f32.mrb[40].mxu0 }
 0x42d   : > { %15247 = vst [vmem:[#allocation41_spill] sm:$0xff] %v13528_v55  ;;  %v5692_v33 = vpop.f32.mrb[169].mxu1  ;;  %v13532_v54 = vadd.f32 %v6524_v42, %v12978_v4  ;;  %v6526_v52 = vpop.f32.mrb[41].mxu0 }
 0x42e   : > { %v13534_v59 = vpop.f32.mrb[170].mxu1  ;;  %v6527_v45 = vpop.f32.mrb[42].mxu0  ;;  %v12072_v33 = vld [vmem:[%s12470_s12 + $0x3c8] ss:$36 sps:$4 sm:$0xff]  }
 0x42f   : > { %15248 = vst [vmem:[#allocation42_spill] sm:$0xff] %v13534_v59  ;;  %v5695_v58 = vpop.f32.mrb[171].mxu1  ;;  %v13540_v48 = vadd.f32 %v6527_v45, %v12982_v7  ;;  %v6529_v19 = vpop.f32.mrb[43].mxu0  ;;  %v12071_v45 = vld [vmem:[%s12470_s12 + $0xac8] ss:$36 sps:$4 sm:$0xff]  }
 0x430   : > { %v12075_v19 = vld [vmem:[%s12470_s12 + $0x410] ss:$36 sps:$4 sm:$0xff]  }
 0x431   : > { %10401 = vmatmul.mubr.msk.bf16.gmra.mrb[20].mxu1 %vm4575_vm2, %v12067_v24  ;;  %6739 = vmatmul.mubr.bf16.gmra.mrb[148].mxu0 %v12066_v36  ;;  %v12073_v36 = vld [vmem:[%s12470_s12 + $0xb14] ss:$36 sps:$4 sm:$0xff]  }
 0x432   : > { %10404 = vmatprep.mubr.msk.bf16.mxu1 %vm4575_vm2, %v12070_v11  ;;  %6746 = vmatprep.mubr.bf16.mxu0 %v12068_v28 }
 0x434   : > { %v13544_v4 = vpop.f32.mrb[172].mxu1  ;;  %v6532_v52 = vpop.f32.mrb[44].mxu0 }
 0x435   : > { %15249 = vst [vmem:[#allocation43_spill] sm:$0xff] %v13544_v4  ;;  %v5700_v42 = vpop.f32.mrb[173].mxu1  ;;  %v13548_v58 = vadd.f32 %v6532_v52, %v12987_v14  ;;  %v6534_v59 = vpop.f32.mrb[45].mxu0 }
 0x436   : > { %v13550_v7 = vpop.f32.mrb[174].mxu1  ;;  %v6535_v55 = vpop.f32.mrb[46].mxu0  ;;  %v12077_v42 = vld [vmem:[%s12470_s12 + $0x458] ss:$36 sps:$4 sm:$0xff]  }
 0x437   : > { %15250 = vst [vmem:[#allocation44_spill] sm:$0xff] %v13550_v7  ;;  %v5703_v24 = vpop.f32.mrb[175].mxu1  ;;  %v13556_v11 = vadd.f32 %v6535_v55, %v12990_v18  ;;  %v6537_v28 = vpop.f32.mrb[47].mxu0  ;;  %v12076_v55 = vld [vmem:[%s12470_s12 + $0xb10] ss:$36 sps:$4 sm:$0xff]  }
 0x438   : > { %v12080_v28 = vld [vmem:[%s12470_s12 + $0x4a0] ss:$36 sps:$4 sm:$0xff]  }
 0x439   : > { %10405 = vmatmul.mubr.msk.bf16.gmra.mrb[24].mxu1 %vm4575_vm2, %v12072_v33  ;;  %6747 = vmatmul.mubr.bf16.gmra.mrb[152].mxu0 %v12071_v45  ;;  %v12078_v45 = vld [vmem:[%s12470_s12 + $0xb5c] ss:$36 sps:$4 sm:$0xff]  }
 0x43a   : > { %10408 = vmatprep.mubr.msk.bf16.mxu1 %vm4575_vm2, %v12075_v19  ;;  %6754 = vmatprep.mubr.bf16.mxu0 %v12073_v36 }
 0x43c   : > { %v13560_v14 = vpop.f32.mrb[176].mxu1  ;;  %v6540_v59 = vpop.f32.mrb[48].mxu0 }
 0x43d   : > { %15251 = vst [vmem:[#allocation45_spill] sm:$0xff] %v13560_v14  ;;  %v5708_v52 = vpop.f32.mrb[177].mxu1  ;;  %v13564_v24 = vadd.f32 %v6540_v59, %v12995_v25  ;;  %v6542_v7 = vpop.f32.mrb[49].mxu0 }
 0x43e   : > { %v13566_v18 = vpop.f32.mrb[178].mxu1  ;;  %v6543_v4 = vpop.f32.mrb[50].mxu0  ;;  %v12082_v52 = vld [vmem:[%s12470_s12 + $0x4e8] ss:$36 sps:$4 sm:$0xff]  }
 0x43f   : > { %15252 = vst [vmem:[#allocation46_spill] sm:$0xff] %v13566_v18  ;;  %v5711_v33 = vpop.f32.mrb[179].mxu1  ;;  %v13572_v19 = vadd.f32 %v6543_v4, %v12998_v29  ;;  %v6545_v36 = vpop.f32.mrb[51].mxu0  ;;  %v12081_v4 = vld [vmem:[%s12470_s12 + $0xb58] ss:$36 sps:$4 sm:$0xff]  }
 0x440   : > { %v12085_v36 = vld [vmem:[%s12470_s12 + $0x530] ss:$36 sps:$4 sm:$0xff]  }
 0x441   : > { %10409 = vmatmul.mubr.msk.bf16.gmra.mrb[28].mxu1 %vm4575_vm2, %v12077_v42  ;;  %6755 = vmatmul.mubr.bf16.gmra.mrb[156].mxu0 %v12076_v55  ;;  %v12083_v55 = vld [vmem:[%s12470_s12 + $0xba4] ss:$36 sps:$4 sm:$0xff]  }
 0x442   : > { %10412 = vmatprep.mubr.msk.bf16.mxu1 %vm4575_vm2, %v12080_v28  ;;  %6762 = vmatprep.mubr.bf16.mxu0 %v12078_v45 }
 0x444   : > { %v13576_v25 = vpop.f32.mrb[180].mxu1  ;;  %v6548_v7 = vpop.f32.mrb[52].mxu0 }
 0x445   : > { %15253 = vst [vmem:[#allocation47_spill] sm:$0xff] %v13576_v25  ;;  %v5716_v59 = vpop.f32.mrb[181].mxu1  ;;  %v13580_v33 = vadd.f32 %v6548_v7, %v13003_v35  ;;  %v6550_v18 = vpop.f32.mrb[53].mxu0 }
 0x446   : > { %v13582_v29 = vpop.f32.mrb[182].mxu1  ;;  %v6551_v14 = vpop.f32.mrb[54].mxu0  ;;  %v12087_v59 = vld [vmem:[%s12470_s12 + $0x578] ss:$36 sps:$4 sm:$0xff]  }
 0x447   : > { %15254 = vst [vmem:[#allocation48_spill] sm:$0xff] %v13582_v29  ;;  %v5719_v42 = vpop.f32.mrb[183].mxu1  ;;  %v13588_v28 = vadd.f32 %v6551_v14, %v13006_v39  ;;  %v6553_v45 = vpop.f32.mrb[55].mxu0  ;;  %v12086_v14 = vld [vmem:[%s12470_s12 + $0xba0] ss:$36 sps:$4 sm:$0xff]  }
 0x448   : > { %v12090_v45 = vld [vmem:[%s12470_s12 + $0x5c0] ss:$36 sps:$4 sm:$0xff]  }
 0x449   : > { %10413 = vmatmul.mubr.msk.bf16.gmra.mrb[32].mxu1 %vm4575_vm2, %v12082_v52  ;;  %6763 = vmatmul.mubr.bf16.gmra.mrb[160].mxu0 %v12081_v4  ;;  %v12088_v4 = vld [vmem:[%s12470_s12 + $0xbec] ss:$36 sps:$4 sm:$0xff]  }
 0x44a   : > { %10416 = vmatprep.mubr.msk.bf16.mxu1 %vm4575_vm2, %v12085_v36  ;;  %6770 = vmatprep.mubr.bf16.mxu0 %v12083_v55 }
 0x44c   : > { %v13592_v35 = vpop.f32.mrb[184].mxu1  ;;  %v6556_v18 = vpop.f32.mrb[56].mxu0 }
 0x44d   : > { %15255 = vst [vmem:[#allocation49_spill] sm:$0xff] %v13592_v35  ;;  %v5724_v7 = vpop.f32.mrb[185].mxu1  ;;  %v13596_v42 = vadd.f32 %v6556_v18, %v13014_v50  ;;  %v6558_v29 = vpop.f32.mrb[57].mxu0 }
 0x44e   : > { %v13598_v39 = vpop.f32.mrb[186].mxu1  ;;  %v6559_v25 = vpop.f32.mrb[58].mxu0  ;;  %v12092_v7 = vld [vmem:[%s12470_s12 + $0x608] ss:$36 sps:$4 sm:$0xff]  }
 0x44f   : > { %15256 = vst [vmem:[#allocation50_spill] sm:$0xff] %v13598_v39  ;;  %v5727_v52 = vpop.f32.mrb[187].mxu1  ;;  %v13604_v36 = vadd.f32 %v6559_v25, %v13018_v56  ;;  %v6561_v55 = vpop.f32.mrb[59].mxu0  ;;  %v12091_v56 = vld [vmem:[%s12470_s12 + $0xbe8] ss:$36 sps:$4 sm:$0xff]  }
 0x450   : > { %v12095_v25 = vld [vmem:[%s12470_s12 + $0x650] ss:$36 sps:$4 sm:$0xff]  }
 0x451   : > { %15257 = vst [vmem:[#allocation51_spill] sm:$0xff] %v13604_v36  ;;  %10417 = vmatmul.mubr.msk.bf16.gmra.mrb[36].mxu1 %vm4575_vm2, %v12087_v59  ;;  %6771 = vmatmul.mubr.bf16.gmra.mrb[164].mxu0 %v12086_v14  ;;  %v13619_v59 = vld [vmem:[%s12470_s12 + $0xc34] ss:$36 sps:$4 sm:$0xff]  }
 0x452   : > { %10420 = vmatprep.mubr.msk.bf16.mxu1 %vm4575_vm2, %v12090_v45  ;;  %6778 = vmatprep.mubr.bf16.mxu0 %v12088_v4 }
 0x454   : > { %v13608_v50 = vpop.f32.mrb[188].mxu1  ;;  %v6564_v29 = vpop.f32.mrb[60].mxu0 }
 0x455   : > { %15258 = vst [vmem:[#allocation52_spill] sm:$0xff] %v13608_v50  ;;  %v5732_v18 = vpop.f32.mrb[189].mxu1  ;;  %v13612_v52 = vadd.f32 %v6564_v29, %v13023_v1  ;;  %v6566_v39 = vpop.f32.mrb[61].mxu0  ;;  %v12349_v1 = vmov 0.0  }
 0x456   : > { %v13614_v35 = vpop.f32.mrb[190].mxu1  ;;  %v6567_v55 = vpop.f32.mrb[62].mxu0  ;;  %285 = vst.msk [vmem:[#allocation2 + $0x10] sm:$0xff] %vm282_vm3, %v12349_v1  ;;  %283 = vst.msk [vmem:[#allocation2] sm:$0xff] %vm282_vm3, %v12349_v1 }
 0x457   : > { %15259 = vst [vmem:[#allocation53_spill] sm:$0xff] %v13614_v35  ;;  %v5735_v36 = vpop.f32.mrb[191].mxu1  ;;  %v13622_v14 = vadd.f32 %v6567_v55, %v13026_v6  ;;  %v6569_v45 = vpop.f32.mrb[63].mxu0  ;;  %284 = vst.msk [vmem:[#allocation2 + $0x8] sm:$0xff] %vm282_vm3, %v12349_v1 }
 0x458   : > { %286 = vst.msk [vmem:[#allocation2 + $0x18] sm:$0xff] %vm282_vm3, %v12349_v1  ;;  %287 = vst.msk [vmem:[#allocation2 + $0x20] sm:$0xff] %vm282_vm3, %v12349_v1  ;;  %v12097_v36 = vld [vmem:[%s12470_s12 + $0x698] ss:$36 sps:$4 sm:$0xff]  }
 0x459   : > { %10421 = vmatmul.mubr.msk.bf16.gmra.mrb[40].mxu1 %vm4575_vm2, %v12092_v7  ;;  %6779 = vmatmul.mubr.bf16.gmra.mrb[168].mxu0 %v12091_v56  ;;  %288 = vst.msk [vmem:[#allocation2 + $0x28] sm:$0xff] %vm282_vm3, %v12349_v1  ;;  %289 = vst.msk [vmem:[#allocation2 + $0x30] sm:$0xff] %vm282_vm3, %v12349_v1  ;;  %v12096_v56 = vld [vmem:[%s12470_s12 + $0xc30] ss:$36 sps:$4 sm:$0xff]  }
 0x45a   : > { %10424 = vmatprep.mubr.msk.bf16.mxu1 %vm4575_vm2, %v12095_v25  ;;  %290 = vst.msk [vmem:[#allocation2 + $0x38] sm:$0xff] %vm282_vm3, %v12349_v1  ;;  %291 = vst.msk [vmem:[#allocation2 + $0x40] sm:$0xff] %vm282_vm3, %v12349_v1  ;;  %6786 = vmatprep.mubr.bf16.mxu0 %v13619_v59  ;;  %v12100_v25 = vld [vmem:[%s12470_s12 + $0x6e0] ss:$36 sps:$4 sm:$0xff]  }
 0x45b   : > { %292 = vst.msk [vmem:[#allocation2 + $0x48] sm:$0xff] %vm282_vm3, %v12349_v1  ;;  %293 = vst.msk [vmem:[#allocation2 + $0x50] sm:$0xff] %vm282_vm3, %v12349_v1 }
 0x45c   : > { %294 = vst.msk [vmem:[#allocation2 + $0x58] sm:$0xff] %vm282_vm3, %v12349_v1  ;;  %295 = vst.msk [vmem:[#allocation2 + $0x60] sm:$0xff] %vm282_vm3, %v12349_v1  ;;  %v13883_v6 = vpop.f32.mrb[192].mxu1  ;;  %v6572_v39 = vpop.f32.mrb[64].mxu0 }
 0x45d   : > { %296 = vst.msk [vmem:[#allocation2 + $0x68] sm:$0xff] %vm282_vm3, %v12349_v1  ;;  %297 = vst.msk [vmem:[#allocation2 + $0x70] sm:$0xff] %vm282_vm3, %v12349_v1  ;;  %v5740_v4 = vpop.f32.mrb[193].mxu1  ;;  %v13887_v29 = vadd.f32 %v6572_v39, %v13249_v37  ;;  %v6574_v18 = vpop.f32.mrb[65].mxu0 }
 0x45e   : > { %298 = vst.msk [vmem:[#allocation2 + $0x78] sm:$0xff] %vm282_vm3, %v12349_v1  ;;  %299 = vst.msk [vmem:[#allocation2 + $0x80] sm:$0xff] %vm282_vm3, %v12349_v1  ;;  %v13889_v7 = vpop.f32.mrb[194].mxu1  ;;  %v6575_v55 = vpop.f32.mrb[66].mxu0  ;;  %v12102_v18 = vld [vmem:[%s12470_s12 + $0x728] ss:$36 sps:$4 sm:$0xff]  }
 0x45f   : > { %300 = vst.msk [vmem:[#allocation2 + $0x88] sm:$0xff] %vm282_vm3, %v12349_v1  ;;  %301 = vst.msk [vmem:[#allocation2 + $0x90] sm:$0xff] %vm282_vm3, %v12349_v1  ;;  %v5743_v45 = vpop.f32.mrb[195].mxu1  ;;  %v13895_v59 = vadd.f32 %v6575_v55, %v13252_v43  ;;  %v12105_v55 = vld [vmem:[%s12470_s12 + $0x770] ss:$36 sps:$4 sm:$0xff]  }
 0x460   : > { %302 = vst.msk [vmem:[#allocation2 + $0x98] sm:$0xff] %vm282_vm3, %v12349_v1  ;;  %303 = vst.msk [vmem:[#allocation2 + $0xa0] sm:$0xff] %vm282_vm3, %v12349_v1 }
 0x461   : > { %304 = vst.msk [vmem:[#allocation2 + $0xa8] sm:$0xff] %vm282_vm3, %v12349_v1  ;;  %305 = vst.msk [vmem:[#allocation2 + $0xb0] sm:$0xff] %vm282_vm3, %v12349_v1  ;;  %10425 = vmatmul.mubr.msk.bf16.gmra.mrb[44].mxu1 %vm4575_vm2, %v12097_v36  ;;  %6787 = vmatmul.mubr.bf16.gmra.mrb[172].mxu0 %v12096_v56  ;;  %v12103_v56 = vld [vmem:[%s12470_s12 + $0xcc4] ss:$36 sps:$4 sm:$0xff]  }
 0x462   : > { %306 = vst.msk [vmem:[#allocation2 + $0xb8] sm:$0xff] %vm282_vm3, %v12349_v1  ;;  %307 = vst.msk [vmem:[#allocation2 + $0xc0] sm:$0xff] %vm282_vm3, %v12349_v1  ;;  %10428 = vmatprep.mubr.msk.bf16.mxu1 %vm4575_vm2, %v12100_v25 }
 0x463   : > { %308 = vst.msk [vmem:[#allocation2 + $0xc8] sm:$0xff] %vm282_vm3, %v12349_v1  ;;  %309 = vst.msk [vmem:[#allocation2 + $0xd0] sm:$0xff] %vm282_vm3, %v12349_v1 }
 0x464   : > { %310 = vst.msk [vmem:[#allocation2 + $0xd8] sm:$0xff] %vm282_vm3, %v12349_v1  ;;  %311 = vst.msk [vmem:[#allocation2 + $0xe0] sm:$0xff] %vm282_vm3, %v12349_v1  ;;  %v13899_v37 = vpop.f32.mrb[196].mxu1 }
 0x465   : > { %312 = vst.msk [vmem:[#allocation2 + $0xe8] sm:$0xff] %vm282_vm3, %v12349_v1  ;;  %313 = vst.msk [vmem:[#allocation2 + $0xf0] sm:$0xff] %vm282_vm3, %v12349_v1  ;;  %v5748_v4 = vpop.f32.mrb[197].mxu1 }
 0x466   : > { %314 = vst.msk [vmem:[#allocation2 + $0xf8] sm:$0xff] %vm282_vm3, %v12349_v1  ;;  %315 = vst.msk [vmem:[#allocation2 + $0x100] sm:$0xff] %vm282_vm3, %v12349_v1  ;;  %v13905_v43 = vpop.f32.mrb[198].mxu1  ;;  %v12107_v4 = vld [vmem:[%s12470_s12 + $0x7b8] ss:$36 sps:$4 sm:$0xff]  }
 0x467   : > { %316 = vst.msk [vmem:[#allocation2 + $0x108] sm:$0xff] %vm282_vm3, %v12349_v1  ;;  %317 = vst.msk [vmem:[#allocation2 + $0x110] sm:$0xff] %vm282_vm3, %v12349_v1  ;;  %v5751_v36 = vpop.f32.mrb[199].mxu1 }
 0x468   : > { %318 = vst.msk [vmem:[#allocation2 + $0x118] sm:$0xff] %vm282_vm3, %v12349_v1  ;;  %319 = vst.msk [vmem:[#allocation2 + $0x120] sm:$0xff] %vm282_vm3, %v12349_v1 }
 0x469   : > { %320 = vst.msk [vmem:[#allocation2 + $0x128] sm:$0xff] %vm282_vm3, %v12349_v1  ;;  %321 = vst.msk [vmem:[#allocation2 + $0x130] sm:$0xff] %vm282_vm3, %v12349_v1  ;;  %10429 = vmatmul.mubr.msk.bf16.gmra.mrb[48].mxu1 %vm4575_vm2, %v12102_v18 }
 0x46a   : > { %322 = vst.msk [vmem:[#allocation2 + $0x138] sm:$0xff] %vm282_vm3, %v12349_v1  ;;  %323 = vst.msk [vmem:[#allocation2 + $0x140] sm:$0xff] %vm282_vm3, %v12349_v1  ;;  %10432 = vmatprep.mubr.msk.bf16.mxu1 %vm4575_vm2, %v12105_v55 }
 0x46b   : > { %324 = vst.msk [vmem:[#allocation2 + $0x148] sm:$0xff] %vm282_vm3, %v12349_v1  ;;  %325 = vst.msk [vmem:[#allocation2 + $0x150] sm:$0xff] %vm282_vm3, %v12349_v1 }
 0x46c   : > { %326 = vst.msk [vmem:[#allocation2 + $0x158] sm:$0xff] %vm282_vm3, %v12349_v1  ;;  %327 = vst.msk [vmem:[#allocation2 + $0x160] sm:$0xff] %vm282_vm3, %v12349_v1 }
 0x46d   : > { %328 = vst.msk [vmem:[#allocation2 + $0x168] sm:$0xff] %vm282_vm3, %v12349_v1  ;;  %329 = vst.msk [vmem:[#allocation2 + $0x170] sm:$0xff] %vm282_vm3, %v12349_v1 }
 0x46e   : > { %330 = vst.msk [vmem:[#allocation2 + $0x178] sm:$0xff] %vm282_vm3, %v12349_v1  ;;  %331 = vst.msk [vmem:[#allocation2 + $0x180] sm:$0xff] %vm282_vm3, %v12349_v1 }
 0x46f   : > { %332 = vst.msk [vmem:[#allocation2 + $0x188] sm:$0xff] %vm282_vm3, %v12349_v1  ;;  %333 = vst.msk [vmem:[#allocation2 + $0x190] sm:$0xff] %vm282_vm3, %v12349_v1 }
 0x470   : > { %334 = vst.msk [vmem:[#allocation2 + $0x198] sm:$0xff] %vm282_vm3, %v12349_v1  ;;  %335 = vst.msk [vmem:[#allocation2 + $0x1a0] sm:$0xff] %vm282_vm3, %v12349_v1 }
 0x471   : > { %336 = vst.msk [vmem:[#allocation2 + $0x1a8] sm:$0xff] %vm282_vm3, %v12349_v1  ;;  %337 = vst.msk [vmem:[#allocation2 + $0x1b0] sm:$0xff] %vm282_vm3, %v12349_v1  ;;  %10433 = vmatmul.mubr.msk.bf16.gmra.mrb[52].mxu1 %vm4575_vm2, %v12107_v4 }
 0x472   : > { %338 = vst.msk [vmem:[#allocation2 + $0x1b8] sm:$0xff] %vm282_vm3, %v12349_v1  ;;  %339 = vst.msk [vmem:[#allocation2 + $0x1c0] sm:$0xff] %vm282_vm3, %v12349_v1 }
 0x473   : > { %340 = vst.msk [vmem:[#allocation2 + $0x1c8] sm:$0xff] %vm282_vm3, %v12349_v1  ;;  %341 = vst.msk [vmem:[#allocation2 + $0x1d0] sm:$0xff] %vm282_vm3, %v12349_v1 }
 0x474   : > { %342 = vst.msk [vmem:[#allocation2 + $0x1d8] sm:$0xff] %vm282_vm3, %v12349_v1  ;;  %343 = vst.msk [vmem:[#allocation2 + $0x1e0] sm:$0xff] %vm282_vm3, %v12349_v1 }
 0x475   : > { %344 = vst.msk [vmem:[#allocation2 + $0x1e8] sm:$0xff] %vm282_vm3, %v12349_v1  ;;  %345 = vst.msk [vmem:[#allocation2 + $0x1f0] sm:$0xff] %vm282_vm3, %v12349_v1 }
 0x476   : > { %346 = vst.msk [vmem:[#allocation2 + $0x1f8] sm:$0xff] %vm282_vm3, %v12349_v1  ;;  %347 = vst.msk [vmem:[#allocation2 + $0x200] sm:$0xff] %vm282_vm3, %v12349_v1 }
 0x477   : > { %348 = vst.msk [vmem:[#allocation2 + $0x208] sm:$0xff] %vm282_vm3, %v12349_v1  ;;  %349 = vst.msk [vmem:[#allocation2 + $0x210] sm:$0xff] %vm282_vm3, %v12349_v1 }
 0x478   : > { %350 = vst.msk [vmem:[#allocation2 + $0x218] sm:$0xff] %vm282_vm3, %v12349_v1  ;;  %351 = vst.msk [vmem:[#allocation2 + $0x220] sm:$0xff] %vm282_vm3, %v12349_v1 }
 0x479   : > { %352 = vst.msk [vmem:[#allocation2 + $0x228] sm:$0xff] %vm282_vm3, %v12349_v1  ;;  %353 = vst.msk [vmem:[#allocation2 + $0x230] sm:$0xff] %vm282_vm3, %v12349_v1 }
 0x47a   : > { %354 = vst.msk [vmem:[#allocation2 + $0x238] sm:$0xff] %vm282_vm3, %v12349_v1  ;;  %355 = vst.msk [vmem:[#allocation2 + $0x240] sm:$0xff] %vm282_vm3, %v12349_v1 }
 0x47b   : > { %356 = vst.msk [vmem:[#allocation2 + $0x248] sm:$0xff] %vm282_vm3, %v12349_v1  ;;  %357 = vst.msk [vmem:[#allocation2 + $0x250] sm:$0xff] %vm282_vm3, %v12349_v1 }
 0x47c   : > { %358 = vst.msk [vmem:[#allocation2 + $0x258] sm:$0xff] %vm282_vm3, %v12349_v1  ;;  %359 = vst.msk [vmem:[#allocation2 + $0x260] sm:$0xff] %vm282_vm3, %v12349_v1 }
 0x47d   : > { %360 = vst.msk [vmem:[#allocation2 + $0x268] sm:$0xff] %vm282_vm3, %v12349_v1  ;;  %361 = vst.msk [vmem:[#allocation2 + $0x270] sm:$0xff] %vm282_vm3, %v12349_v1 }
 0x47e   : > { %362 = vst.msk [vmem:[#allocation2 + $0x278] sm:$0xff] %vm282_vm3, %v12349_v1  ;;  %363 = vst.msk [vmem:[#allocation2 + $0x280] sm:$0xff] %vm282_vm3, %v12349_v1 }
 0x47f   : > { %364 = vst.msk [vmem:[#allocation2 + $0x288] sm:$0xff] %vm282_vm3, %v12349_v1  ;;  %365 = vst.msk [vmem:[#allocation2 + $0x290] sm:$0xff] %vm282_vm3, %v12349_v1 }
 0x480   : > { %366 = vst.msk [vmem:[#allocation2 + $0x298] sm:$0xff] %vm282_vm3, %v12349_v1  ;;  %367 = vst.msk [vmem:[#allocation2 + $0x2a0] sm:$0xff] %vm282_vm3, %v12349_v1 }
 0x481   : > { %368 = vst.msk [vmem:[#allocation2 + $0x2a8] sm:$0xff] %vm282_vm3, %v12349_v1  ;;  %369 = vst.msk [vmem:[#allocation2 + $0x2b0] sm:$0xff] %vm282_vm3, %v12349_v1 }
 0x482   : > { %370 = vst.msk [vmem:[#allocation2 + $0x2b8] sm:$0xff] %vm282_vm3, %v12349_v1  ;;  %371 = vst.msk [vmem:[#allocation2 + $0x2c0] sm:$0xff] %vm282_vm3, %v12349_v1 }
 0x483   : > { %372 = vst.msk [vmem:[#allocation2 + $0x2c8] sm:$0xff] %vm282_vm3, %v12349_v1  ;;  %373 = vst.msk [vmem:[#allocation2 + $0x2d0] sm:$0xff] %vm282_vm3, %v12349_v1 }
 0x484   : > { %374 = vst.msk [vmem:[#allocation2 + $0x2d8] sm:$0xff] %vm282_vm3, %v12349_v1  ;;  %375 = vst.msk [vmem:[#allocation2 + $0x2e0] sm:$0xff] %vm282_vm3, %v12349_v1 }
 0x485   : > { %376 = vst.msk [vmem:[#allocation2 + $0x2e8] sm:$0xff] %vm282_vm3, %v12349_v1  ;;  %377 = vst.msk [vmem:[#allocation2 + $0x2f0] sm:$0xff] %vm282_vm3, %v12349_v1 }
 0x486   : > { %378 = vst.msk [vmem:[#allocation2 + $0x2f8] sm:$0xff] %vm282_vm3, %v12349_v1  ;;  %379 = vst.msk [vmem:[#allocation2 + $0x300] sm:$0xff] %vm282_vm3, %v12349_v1 }
 0x487   : > { %380 = vst.msk [vmem:[#allocation2 + $0x308] sm:$0xff] %vm282_vm3, %v12349_v1  ;;  %381 = vst.msk [vmem:[#allocation2 + $0x310] sm:$0xff] %vm282_vm3, %v12349_v1 }
 0x488   : > { %382 = vst.msk [vmem:[#allocation2 + $0x318] sm:$0xff] %vm282_vm3, %v12349_v1  ;;  %383 = vst.msk [vmem:[#allocation2 + $0x320] sm:$0xff] %vm282_vm3, %v12349_v1 }
 0x489   : > { %384 = vst.msk [vmem:[#allocation2 + $0x328] sm:$0xff] %vm282_vm3, %v12349_v1  ;;  %385 = vst.msk [vmem:[#allocation2 + $0x330] sm:$0xff] %vm282_vm3, %v12349_v1 }
 0x48a   : > { %386 = vst.msk [vmem:[#allocation2 + $0x338] sm:$0xff] %vm282_vm3, %v12349_v1  ;;  %387 = vst.msk [vmem:[#allocation2 + $0x340] sm:$0xff] %vm282_vm3, %v12349_v1 }
 0x48b   : > { %388 = vst.msk [vmem:[#allocation2 + $0x348] sm:$0xff] %vm282_vm3, %v12349_v1  ;;  %389 = vst.msk [vmem:[#allocation2 + $0x350] sm:$0xff] %vm282_vm3, %v12349_v1 }
 0x48c   : > { %390 = vst.msk [vmem:[#allocation2 + $0x358] sm:$0xff] %vm282_vm3, %v12349_v1  ;;  %391 = vst.msk [vmem:[#allocation2 + $0x360] sm:$0xff] %vm282_vm3, %v12349_v1 }
 0x48d   : > { %392 = vst.msk [vmem:[#allocation2 + $0x368] sm:$0xff] %vm282_vm3, %v12349_v1  ;;  %393 = vst.msk [vmem:[#allocation2 + $0x370] sm:$0xff] %vm282_vm3, %v12349_v1 }
 0x48e   : > { %394 = vst.msk [vmem:[#allocation2 + $0x378] sm:$0xff] %vm282_vm3, %v12349_v1  ;;  %395 = vst.msk [vmem:[#allocation2 + $0x380] sm:$0xff] %vm282_vm3, %v12349_v1 }
 0x48f   : > { %396 = vst.msk [vmem:[#allocation2 + $0x388] sm:$0xff] %vm282_vm3, %v12349_v1  ;;  %397 = vst.msk [vmem:[#allocation2 + $0x390] sm:$0xff] %vm282_vm3, %v12349_v1 }
 0x490   : > { %398 = vst.msk [vmem:[#allocation2 + $0x398] sm:$0xff] %vm282_vm3, %v12349_v1  ;;  %399 = vst.msk [vmem:[#allocation2 + $0x3a0] sm:$0xff] %vm282_vm3, %v12349_v1 }
 0x491   : > { %400 = vst.msk [vmem:[#allocation2 + $0x3a8] sm:$0xff] %vm282_vm3, %v12349_v1  ;;  %401 = vst.msk [vmem:[#allocation2 + $0x3b0] sm:$0xff] %vm282_vm3, %v12349_v1 }
 0x492   : > { %402 = vst.msk [vmem:[#allocation2 + $0x3b8] sm:$0xff] %vm282_vm3, %v12349_v1  ;;  %403 = vst.msk [vmem:[#allocation2 + $0x3c0] sm:$0xff] %vm282_vm3, %v12349_v1 }
 0x493   : > { %404 = vst.msk [vmem:[#allocation2 + $0x3c8] sm:$0xff] %vm282_vm3, %v12349_v1  ;;  %405 = vst.msk [vmem:[#allocation2 + $0x3d0] sm:$0xff] %vm282_vm3, %v12349_v1 }
 0x494   : > { %406 = vst.msk [vmem:[#allocation2 + $0x3d8] sm:$0xff] %vm282_vm3, %v12349_v1  ;;  %407 = vst.msk [vmem:[#allocation2 + $0x3e0] sm:$0xff] %vm282_vm3, %v12349_v1 }
 0x495   : > { %408 = vst.msk [vmem:[#allocation2 + $0x3e8] sm:$0xff] %vm282_vm3, %v12349_v1  ;;  %409 = vst.msk [vmem:[#allocation2 + $0x3f0] sm:$0xff] %vm282_vm3, %v12349_v1 }
 0x496   : > { %410 = vst.msk [vmem:[#allocation2 + $0x3f8] sm:$0xff] %vm282_vm3, %v12349_v1  ;;  %15260 = vst [vmem:[#allocation54_spill] sm:$0xff] %v13883_v6  ;;  %v12098_v1 = vld [vmem:[%s12470_s12 + $0xc7c] ss:$36 sps:$4 sm:$0xff]   ;;  %v6577_v6 = vpop.f32.mrb[67].mxu0 }
 0x497   : > { %15261 = vst [vmem:[#allocation55_spill] sm:$0xff] %v13889_v7  ;;  %6794 = vmatprep.mubr.bf16.mxu0 %v12098_v1  ;;  %15262 = vst [vmem:[#allocation56_spill] sm:$0xff] %v13899_v37  ;;  %v6580_v39 = vpop.f32.mrb[68].mxu0  ;;  %v12101_v6 = vld [vmem:[%s12470_s12 + $0xc78] ss:$36 sps:$4 sm:$0xff]  }
 0x498   : > { %v13903_v45 = vadd.f32 %v6580_v39, %v13257_v53  ;;  %v6582_v7 = vpop.f32.mrb[69].mxu0  ;;  %15263 = vst [vmem:[#allocation57_spill] sm:$0xff] %v13905_v43  ;;  %6795 = vmatmul.mubr.bf16.gmra.mrb[176].mxu0 %v12101_v6  ;;  %v13915_v53 = vpop.f32.mrb[200].mxu1  ;;  %v12108_v6 = vld [vmem:[%s12470_s12 + $0xd0c] ss:$36 sps:$4 sm:$0xff]  }
 0x499   : > { %v6583_v35 = vpop.f32.mrb[70].mxu0  ;;  %6802 = vmatprep.mubr.bf16.mxu0 %v12103_v56  ;;  %15264 = vst [vmem:[#allocation58_spill] sm:$0xff] %v13915_v53  ;;  %v5756_v39 = vpop.f32.mrb[201].mxu1 }
 0x49a   : > { %v13911_v25 = vadd.f32 %v6583_v35, %v13260_v61  ;;  %v6585_v1 = vpop.f32.mrb[71].mxu0  ;;  %v13921_v61 = vpop.f32.mrb[202].mxu1  ;;  %v12106_v35 = vld [vmem:[%s12470_s12 + $0xcc0] ss:$36 sps:$4 sm:$0xff]   ;;  %v12112_v39 = vld [vmem:[%s12470_s12 + $0x848] ss:$36 sps:$4 sm:$0xff]  }
 0x49b   : > { %v6588_v7 = vpop.f32.mrb[72].mxu0  ;;  %15265 = vst [vmem:[#allocation59_spill] sm:$0xff] %v13921_v61  ;;  %v12110_v1 = vld [vmem:[%s12470_s12 + $0x800] ss:$36 sps:$4 sm:$0xff]   ;;  %v5759_v18 = vpop.f32.mrb[203].mxu1 }
 0x49c   : > { %v13919_v36 = vadd.f32 %v6588_v7, %v13265_v10  ;;  %v6590_v43 = vpop.f32.mrb[73].mxu0  ;;  %10436 = vmatprep.mubr.msk.bf16.mxu1 %vm4575_vm2, %v12110_v1  ;;  %v13931_v10 = vpop.f32.mrb[204].mxu1 }
 0x49d   : > { %v6591_v37 = vpop.f32.mrb[74].mxu0  ;;  %15266 = vst [vmem:[#allocation60_spill] sm:$0xff] %v13931_v10  ;;  %v5764_v7 = vpop.f32.mrb[205].mxu1  ;;  %10437 = vmatmul.mubr.msk.bf16.gmra.mrb[56].mxu1 %vm4575_vm2, %v12112_v39 }
 0x49e   : > { %v13927_v55 = vadd.f32 %v6591_v37, %v13268_v15  ;;  %v6593_v56 = vpop.f32.mrb[75].mxu0  ;;  %v13937_v15 = vpop.f32.mrb[206].mxu1  ;;  %v12111_v37 = vld [vmem:[%s12470_s12 + $0xd08] ss:$36 sps:$4 sm:$0xff]   ;;  %v12117_v7 = vld [vmem:[%s12470_s12 + $0x8d8] ss:$36 sps:$4 sm:$0xff]  }
 0x49f   : > { %v6596_v43 = vpop.f32.mrb[76].mxu0  ;;  %15267 = vst [vmem:[#allocation61_spill] sm:$0xff] %v13937_v15  ;;  %v12115_v56 = vld [vmem:[%s12470_s12 + $0x890] ss:$36 sps:$4 sm:$0xff]   ;;  %v5767_v4 = vpop.f32.mrb[207].mxu1 }
 0x4a0   : > { %6803 = vmatmul.mubr.bf16.gmra.mrb[180].mxu0 %v12106_v35  ;;  %v13935_v18 = vadd.f32 %v6596_v43, %v13273_v26  ;;  %v6598_v61 = vpop.f32.mrb[77].mxu0  ;;  %v12113_v35 = vld [vmem:[%s12470_s12 + $0xd54] ss:$36 sps:$4 sm:$0xff]   ;;  %10440 = vmatprep.mubr.msk.bf16.mxu1 %vm4575_vm2, %v12115_v56  ;;  %v13947_v26 = vpop.f32.mrb[208].mxu1 }
 0x4a1   : > { %6810 = vmatprep.mubr.bf16.mxu0 %v12108_v6  ;;  %v6599_v53 = vpop.f32.mrb[78].mxu0  ;;  %15268 = vst [vmem:[#allocation62_spill] sm:$0xff] %v13947_v26  ;;  %v5772_v43 = vpop.f32.mrb[209].mxu1 }
 0x4a2   : > { %v13943_v1 = vadd.f32 %v6599_v53, %v13276_v31  ;;  %v6601_v6 = vpop.f32.mrb[79].mxu0  ;;  %v13953_v31 = vpop.f32.mrb[210].mxu1  ;;  %v12116_v53 = vld [vmem:[%s12470_s12 + $0xd50] ss:$36 sps:$4 sm:$0xff]   ;;  %v12122_v43 = vld [vmem:[%s12470_s12 + $0x968] ss:$36 sps:$4 sm:$0xff]  }
 0x4a3   : > { %v6604_v61 = vpop.f32.mrb[80].mxu0  ;;  %15269 = vst [vmem:[#allocation63_spill] sm:$0xff] %v13953_v31  ;;  %v12120_v6 = vld [vmem:[%s12470_s12 + $0x920] ss:$36 sps:$4 sm:$0xff]   ;;  %v5775_v39 = vpop.f32.mrb[211].mxu1 }
 0x4a4   : > { %v13951_v4 = vadd.f32 %v6604_v61, %v13281_v38  ;;  %v6606_v15 = vpop.f32.mrb[81].mxu0  ;;  %v13963_v38 = vpop.f32.mrb[212].mxu1 }
 0x4a5   : > { %v6607_v10 = vpop.f32.mrb[82].mxu0  ;;  %10441 = vmatmul.mubr.msk.bf16.gmra.mrb[60].mxu1 %vm4575_vm2, %v12117_v7  ;;  %15271 = vst [vmem:[#allocation65_spill] sm:$0xff] %v13963_v38  ;;  %v5780_v61 = vpop.f32.mrb[213].mxu1 }
 0x4a6   : > { %v13959_v56 = vadd.f32 %v6607_v10, %v13284_v47  ;;  %10444 = vmatprep.mubr.msk.bf16.mxu1 %vm4575_vm2, %v12120_v6  ;;  %v13969_v47 = vpop.f32.mrb[214].mxu1  ;;  %v12121_v10 = vld [vmem:[%s12470_s12 + $0xd98] ss:$36 sps:$4 sm:$0xff]  }
 0x4a7   : > { %15272 = vst [vmem:[#allocation66_spill] sm:$0xff] %v13969_v47  ;;  %v5783_v7 = vpop.f32.mrb[215].mxu1  ;;  %v12127_v61 = vld [vmem:[%s12470_s12 + $0x9f8] ss:$36 sps:$4 sm:$0xff]  }
 0x4a8   : > { %6811 = vmatmul.mubr.bf16.gmra.mrb[184].mxu0 %v12111_v37  ;;  %v12118_v37 = vld [vmem:[%s12470_s12 + $0xd9c] ss:$36 sps:$4 sm:$0xff]   ;;  %15270 = vst [vmem:[#allocation64_spill] sm:$0xff] %v13959_v56 }
 0x4a9   : > { %6818 = vmatprep.mubr.bf16.mxu0 %v12113_v35  ;;  %v6609_v35 = vpop.f32.mrb[83].mxu0 }
 0x4aa   : > { %v6612_v15 = vpop.f32.mrb[84].mxu0  ;;  %v12125_v35 = vld [vmem:[%s12470_s12 + $0x9b0] ss:$36 sps:$4 sm:$0xff]  }
 0x4ab   : > { %v13967_v39 = vadd.f32 %v6612_v15, %v13289_v62  ;;  %v6614_v31 = vpop.f32.mrb[85].mxu0  ;;  %v13979_v62 = vpop.f32.mrb[216].mxu1 }
 0x4ac   : > { %v6615_v26 = vpop.f32.mrb[86].mxu0  ;;  %15274 = vst [vmem:[#allocation68_spill] sm:$0xff] %v13979_v62  ;;  %v5788_v15 = vpop.f32.mrb[217].mxu1 }
 0x4ad   : > { %v13975_v6 = vadd.f32 %v6615_v26, %v13292_v9  ;;  %10445 = vmatmul.mubr.msk.bf16.gmra.mrb[64].mxu1 %vm4575_vm2, %v12122_v43  ;;  %v13985_v9 = vpop.f32.mrb[218].mxu1  ;;  %v12126_v26 = vld [vmem:[%s12470_s12 + $0xde0] ss:$36 sps:$4 sm:$0xff]   ;;  %v12132_v15 = vld [vmem:[%s12470_s12 + $0xa88] ss:$36 sps:$4 sm:$0xff]  }
 0x4ae   : > { %10448 = vmatprep.mubr.msk.bf16.mxu1 %vm4575_vm2, %v12125_v35  ;;  %15276 = vst [vmem:[#allocation70_spill] sm:$0xff] %v13985_v9  ;;  %v5791_v43 = vpop.f32.mrb[219].mxu1 }
 0x4af   : > { %15273 = vst [vmem:[#allocation67_spill] sm:$0xff] %v13975_v6 }
 0x4b0   : > { %6819 = vmatmul.mubr.bf16.gmra.mrb[188].mxu0 %v12116_v53  ;;  %v12123_v53 = vld [vmem:[%s12470_s12 + $0xde4] ss:$36 sps:$4 sm:$0xff]  }
 0x4b1   : > { %6826 = vmatprep.mubr.bf16.mxu0 %v12118_v37  ;;  %v6617_v37 = vpop.f32.mrb[87].mxu0 }
 0x4b2   : > { %v6620_v31 = vpop.f32.mrb[88].mxu0  ;;  %v12130_v37 = vld [vmem:[%s12470_s12 + $0xa40] ss:$36 sps:$4 sm:$0xff]  }
 0x4b3   : > { %v13983_v7 = vadd.f32 %v6620_v31, %v13297_v22  ;;  %v6622_v47 = vpop.f32.mrb[89].mxu0  ;;  %v13995_v22 = vpop.f32.mrb[220].mxu1 }
 0x4b4   : > { %v6623_v38 = vpop.f32.mrb[90].mxu0  ;;  %15278 = vst [vmem:[#allocation72_spill] sm:$0xff] %v13995_v22  ;;  %v5796_v31 = vpop.f32.mrb[221].mxu1 }
 0x4b5   : > { %15275 = vst [vmem:[#allocation69_spill] sm:$0xff] %v13983_v7  ;;  %v13991_v35 = vadd.f32 %v6623_v38, %v13300_v30  ;;  %10449 = vmatmul.mubr.msk.bf16.gmra.mrb[68].mxu1 %vm4575_vm2, %v12127_v61  ;;  %v14001_v30 = vpop.f32.mrb[222].mxu1  ;;  %v12131_v38 = vld [vmem:[%s12470_s12 + $0xe28] ss:$36 sps:$4 sm:$0xff]   ;;  %v12137_v31 = vld [vmem:[%s12470_s12 + $0xb18] ss:$36 sps:$4 sm:$0xff]  }
 0x4b6   : > { %10452 = vmatprep.mubr.msk.bf16.mxu1 %vm4575_vm2, %v12130_v37  ;;  %15280 = vst [vmem:[#allocation74_spill] sm:$0xff] %v14001_v30  ;;  %v5799_v61 = vpop.f32.mrb[223].mxu1 }
 0x4b7   : > { %15277 = vst [vmem:[#allocation71_spill] sm:$0xff] %v13991_v35 }
 0x4b8   : > { %6827 = vmatmul.mubr.bf16.gmra.mrb[192].mxu0 %v12121_v10  ;;  %v12128_v10 = vld [vmem:[%s12470_s12 + $0xe2c] ss:$36 sps:$4 sm:$0xff]  }
 0x4b9   : > { %6834 = vmatprep.mubr.bf16.mxu0 %v12123_v53  ;;  %v6625_v53 = vpop.f32.mrb[91].mxu0 }
 0x4ba   : > { %v6628_v47 = vpop.f32.mrb[92].mxu0  ;;  %v12135_v53 = vld [vmem:[%s12470_s12 + $0xad0] ss:$36 sps:$4 sm:$0xff]  }
 0x4bb   : > { %v13999_v43 = vadd.f32 %v6628_v47, %v13305_v40  ;;  %v6630_v9 = vpop.f32.mrb[93].mxu0  ;;  %v14011_v40 = vpop.f32.mrb[224].mxu1 }
 0x4bc   : > { %v6631_v62 = vpop.f32.mrb[94].mxu0  ;;  %15282 = vst [vmem:[#allocation76_spill] sm:$0xff] %v14011_v40  ;;  %v5804_v47 = vpop.f32.mrb[225].mxu1 }
 0x4bd   : > { %15279 = vst [vmem:[#allocation73_spill] sm:$0xff] %v13999_v43  ;;  %v14007_v37 = vadd.f32 %v6631_v62, %v13308_v51  ;;  %10453 = vmatmul.mubr.msk.bf16.gmra.mrb[72].mxu1 %vm4575_vm2, %v12132_v15  ;;  %v14017_v51 = vpop.f32.mrb[226].mxu1  ;;  %v12136_v62 = vld [vmem:[%s12470_s12 + $0xe70] ss:$36 sps:$4 sm:$0xff]   ;;  %v12142_v47 = vld [vmem:[%s12470_s12 + $0xba8] ss:$36 sps:$4 sm:$0xff]  }
 0x4be   : > { %10456 = vmatprep.mubr.msk.bf16.mxu1 %vm4575_vm2, %v12135_v53  ;;  %15284 = vst [vmem:[#allocation78_spill] sm:$0xff] %v14017_v51  ;;  %v5807_v15 = vpop.f32.mrb[227].mxu1  ;;  %v15287_v51 = vld [vmem:[#allocation7_spill] sm:$0xff] }
 0x4bf   : > { %15281 = vst [vmem:[#allocation75_spill] sm:$0xff] %v14007_v37  ;;  %v412_v37 = vld [vmem:[#allocation2 + $0x8] sm:$0xff]  ;;  %v12178_v43 = vld [vmem:[%s12470_s12 + $0x10fc] ss:$36 sps:$4 sm:$0xff]  }
 0x4c0   : > { %6835 = vmatmul.mubr.bf16.gmra.mrb[196].mxu0 %v12126_v26  ;;  %v12133_v26 = vld [vmem:[%s12470_s12 + $0xe74] ss:$36 sps:$4 sm:$0xff]  }
 0x4c1   : > { %6842 = vmatprep.mubr.bf16.mxu0 %v12128_v10  ;;  %v6633_v10 = vpop.f32.mrb[95].mxu0 }
 0x4c2   : > { %v6636_v9 = vpop.f32.mrb[96].mxu0  ;;  %v12140_v10 = vld [vmem:[%s12470_s12 + $0xb60] ss:$36 sps:$4 sm:$0xff]  }
 0x4c3   : > { %v14015_v61 = vadd.f32 %v6636_v9, %v13313_v12  ;;  %v6638_v30 = vpop.f32.mrb[97].mxu0  ;;  %v14027_v12 = vpop.f32.mrb[228].mxu1 }
 0x4c4   : > { %v6639_v22 = vpop.f32.mrb[98].mxu0  ;;  %15286 = vst [vmem:[#allocation80_spill] sm:$0xff] %v14027_v12  ;;  %v5812_v9 = vpop.f32.mrb[229].mxu1 }
 0x4c5   : > { %15283 = vst [vmem:[#allocation77_spill] sm:$0xff] %v14015_v61  ;;  %v14023_v53 = vadd.f32 %v6639_v22, %v13316_v21  ;;  %10457 = vmatmul.mubr.msk.bf16.gmra.mrb[76].mxu1 %vm4575_vm2, %v12137_v31  ;;  %v14033_v21 = vpop.f32.mrb[230].mxu1  ;;  %v12141_v22 = vld [vmem:[%s12470_s12 + $0xeb8] ss:$36 sps:$4 sm:$0xff]  }
 0x4c6   : > { %10460 = vmatprep.mubr.msk.bf16.mxu1 %vm4575_vm2, %v12140_v10  ;;  %15289 = vst [vmem:[#allocation81_spill] sm:$0xff] %v14033_v21  ;;  %v5815_v31 = vpop.f32.mrb[231].mxu1  ;;  %v15290_v10 = vld [vmem:[#allocation8_spill] sm:$0xff]  ;;  %v12147_v9 = vld [vmem:[%s12470_s12 + $0xc38] ss:$36 sps:$4 sm:$0xff]   ;;  %v15293_v21 = vld [vmem:[#allocation9_spill] sm:$0xff] }
 0x4c7   : > { %15285 = vst [vmem:[#allocation79_spill] sm:$0xff] %v14023_v53  ;;  %v12177_v61 = vld [vmem:[%s12470_s12 + $0xf98] ss:$36 sps:$4 sm:$0xff]  }
 0x4c8   : > { %6843 = vmatmul.mubr.bf16.gmra.mrb[200].mxu0 %v12131_v38  ;;  %v12138_v38 = vld [vmem:[%s12470_s12 + $0xebc] ss:$36 sps:$4 sm:$0xff]  }
 0x4c9   : > { %6850 = vmatprep.mubr.bf16.mxu0 %v12133_v26  ;;  %v6641_v26 = vpop.f32.mrb[99].mxu0 }
 0x4ca   : > { %v6644_v30 = vpop.f32.mrb[100].mxu0  ;;  %v12145_v26 = vld [vmem:[%s12470_s12 + $0xbf0] ss:$36 sps:$4 sm:$0xff]  }
 0x4cb   : > { %v14031_v15 = vadd.f32 %v6644_v30, %v15287_v51  ;;  %v6646_v40 = vpop.f32.mrb[101].mxu0 }
 0x4cc   : > { %v6647_v50 = vpop.f32.mrb[102].mxu0  ;;  %v14043_v40 = vpop.f32.mrb[232].mxu1 }
 0x4cd   : > { %15288 = vst [vmem:[#allocation7_spill] sm:$0xff] %v14031_v15  ;;  %v6649_v12 = vpop.f32.mrb[103].mxu0  ;;  %10461 = vmatmul.mubr.msk.bf16.gmra.mrb[80].mxu1 %vm4575_vm2, %v12142_v47  ;;  %15292 = vst [vmem:[#allocation82_spill] sm:$0xff] %v14043_v40  ;;  %v5820_v30 = vpop.f32.mrb[233].mxu1 }
 0x4ce   : > { %10464 = vmatprep.mubr.msk.bf16.mxu1 %vm4575_vm2, %v12145_v26  ;;  %v6652_v51 = vpop.f32.mrb[104].mxu0  ;;  %v12146_v12 = vld [vmem:[%s12470_s12 + $0xf00] ss:$36 sps:$4 sm:$0xff]   ;;  %v15296_v26 = vld [vmem:[#allocation10_spill] sm:$0xff]  ;;  %v12152_v30 = vld [vmem:[%s12470_s12 + $0xcc8] ss:$36 sps:$4 sm:$0xff]  }
 0x4cf   : > { %v14047_v31 = vadd.f32 %v6652_v51, %v15293_v21  ;;  %v6654_v53 = vpop.f32.mrb[105].mxu0 }
 0x4d0   : > { %6851 = vmatmul.mubr.bf16.gmra.mrb[204].mxu0 %v12136_v62  ;;  %v12143_v62 = vld [vmem:[%s12470_s12 + $0xf04] ss:$36 sps:$4 sm:$0xff]  }
 0x4d1   : > { %6858 = vmatprep.mubr.bf16.mxu0 %v12138_v38  ;;  %v14039_v38 = vadd.f32 %v6647_v50, %v15290_v10  ;;  %15294 = vst [vmem:[#allocation9_spill] sm:$0xff] %v14047_v31  ;;  %v14049_v50 = vpop.f32.mrb[234].mxu1  ;;  %v12150_v10 = vld [vmem:[%s12470_s12 + $0xc80] ss:$36 sps:$4 sm:$0xff]  }
 0x4d2   : > { %15295 = vst [vmem:[#allocation83_spill] sm:$0xff] %v14049_v50  ;;  %v5823_v47 = vpop.f32.mrb[235].mxu1  ;;  %v15299_v50 = vld [vmem:[#allocation11_spill] sm:$0xff] }
 0x4d3   : > { %15291 = vst [vmem:[#allocation8_spill] sm:$0xff] %v14039_v38  ;;  %v6655_v38 = vpop.f32.mrb[106].mxu0  ;;  %v14059_v53 = vpop.f32.mrb[236].mxu1 }
 0x4d4   : > { %v6657_v40 = vpop.f32.mrb[107].mxu0  ;;  %15298 = vst [vmem:[#allocation84_spill] sm:$0xff] %v14059_v53  ;;  %v5828_v51 = vpop.f32.mrb[237].mxu1 }
 0x4d5   : > { %10465 = vmatmul.mubr.msk.bf16.gmra.mrb[84].mxu1 %vm4575_vm2, %v12147_v9  ;;  %v6660_v21 = vpop.f32.mrb[108].mxu0  ;;  %v12151_v40 = vld [vmem:[%s12470_s12 + $0xf48] ss:$36 sps:$4 sm:$0xff]   ;;  %v12157_v51 = vld [vmem:[%s12470_s12 + $0xd58] ss:$36 sps:$4 sm:$0xff]  }
 0x4d6   : > { %10468 = vmatprep.mubr.msk.bf16.mxu1 %vm4575_vm2, %v12150_v10  ;;  %v14063_v47 = vadd.f32 %v6660_v21, %v15299_v50  ;;  %v6662_v31 = vpop.f32.mrb[109].mxu0  ;;  %v15302_v10 = vld [vmem:[#allocation12_spill] sm:$0xff] }
 0x4d8   : > { %6859 = vmatmul.mubr.bf16.gmra.mrb[208].mxu0 %v12141_v22  ;;  %v12148_v22 = vld [vmem:[%s12470_s12 + $0xf4c] ss:$36 sps:$4 sm:$0xff]   ;;  %15300 = vst [vmem:[#allocation11_spill] sm:$0xff] %v14063_v47 }
 0x4d9   : > { %6866 = vmatprep.mubr.bf16.mxu0 %v12143_v62  ;;  %v14055_v62 = vadd.f32 %v6655_v38, %v15296_v26  ;;  %v14065_v38 = vpop.f32.mrb[238].mxu1  ;;  %v12155_v26 = vld [vmem:[%s12470_s12 + $0xd10] ss:$36 sps:$4 sm:$0xff]  }
 0x4da   : > { %15301 = vst [vmem:[#allocation85_spill] sm:$0xff] %v14065_v38  ;;  %v5831_v9 = vpop.f32.mrb[239].mxu1  ;;  %v15305_v38 = vld [vmem:[#allocation13_spill] sm:$0xff] }
 0x4db   : > { %15297 = vst [vmem:[#allocation10_spill] sm:$0xff] %v14055_v62  ;;  %v6663_v62 = vpop.f32.mrb[110].mxu0  ;;  %v14075_v31 = vpop.f32.mrb[240].mxu1 }
 0x4dc   : > { %v6665_v53 = vpop.f32.mrb[111].mxu0  ;;  %15304 = vst [vmem:[#allocation86_spill] sm:$0xff] %v14075_v31  ;;  %v5836_v21 = vpop.f32.mrb[241].mxu1 }
 0x4dd   : > { %10469 = vmatmul.mubr.msk.bf16.gmra.mrb[88].mxu1 %vm4575_vm2, %v12152_v30  ;;  %v6668_v50 = vpop.f32.mrb[112].mxu0  ;;  %v12156_v53 = vld [vmem:[%s12470_s12 + $0xf90] ss:$36 sps:$4 sm:$0xff]   ;;  %v12162_v21 = vld [vmem:[%s12470_s12 + $0xde8] ss:$36 sps:$4 sm:$0xff]  }
 0x4de   : > { %10472 = vmatprep.mubr.msk.bf16.mxu1 %vm4575_vm2, %v12155_v26  ;;  %v14079_v9 = vadd.f32 %v6668_v50, %v15305_v38  ;;  %v6670_v47 = vpop.f32.mrb[113].mxu0  ;;  %v15308_v26 = vld [vmem:[#allocation14_spill] sm:$0xff] }
 0x4e0   : > { %6867 = vmatmul.mubr.bf16.gmra.mrb[212].mxu0 %v12146_v12  ;;  %v12153_v12 = vld [vmem:[%s12470_s12 + $0xf94] ss:$36 sps:$4 sm:$0xff]   ;;  %15306 = vst [vmem:[#allocation13_spill] sm:$0xff] %v14079_v9 }
 0x4e1   : > { %6874 = vmatprep.mubr.bf16.mxu0 %v12148_v22  ;;  %v14071_v22 = vadd.f32 %v6663_v62, %v15302_v10  ;;  %v14081_v62 = vpop.f32.mrb[242].mxu1  ;;  %v12160_v10 = vld [vmem:[%s12470_s12 + $0xda0] ss:$36 sps:$4 sm:$0xff]  }
 0x4e2   : > { %15307 = vst [vmem:[#allocation87_spill] sm:$0xff] %v14081_v62  ;;  %v5839_v30 = vpop.f32.mrb[243].mxu1  ;;  %v15311_v62 = vld [vmem:[#allocation15_spill] sm:$0xff] }
 0x4e3   : > { %15303 = vst [vmem:[#allocation12_spill] sm:$0xff] %v14071_v22  ;;  %v6671_v22 = vpop.f32.mrb[114].mxu0  ;;  %v14091_v47 = vpop.f32.mrb[244].mxu1 }
 0x4e4   : > { %v6673_v31 = vpop.f32.mrb[115].mxu0  ;;  %15310 = vst [vmem:[#allocation88_spill] sm:$0xff] %v14091_v47  ;;  %v5844_v50 = vpop.f32.mrb[245].mxu1 }
 0x4e5   : > { %10473 = vmatmul.mubr.msk.bf16.gmra.mrb[92].mxu1 %vm4575_vm2, %v12157_v51  ;;  %v6676_v38 = vpop.f32.mrb[116].mxu0  ;;  %v12161_v31 = vld [vmem:[%s12470_s12 + $0xfd8] ss:$36 sps:$4 sm:$0xff]  }
 0x4e6   : > { %10476 = vmatprep.mubr.msk.bf16.mxu1 %vm4575_vm2, %v12160_v10  ;;  %v14095_v30 = vadd.f32 %v6676_v38, %v15311_v62  ;;  %v6678_v9 = vpop.f32.mrb[117].mxu0  ;;  %v15314_v10 = vld [vmem:[#allocation16_spill] sm:$0xff]  ;;  %v12167_v50 = vld [vmem:[%s12470_s12 + $0xe78] ss:$36 sps:$4 sm:$0xff]  }
 0x4e8   : > { %6875 = vmatmul.mubr.bf16.gmra.mrb[216].mxu0 %v12151_v40  ;;  %v12158_v40 = vld [vmem:[%s12470_s12 + $0xfdc] ss:$36 sps:$4 sm:$0xff]   ;;  %15312 = vst [vmem:[#allocation15_spill] sm:$0xff] %v14095_v30 }
 0x4e9   : > { %6882 = vmatprep.mubr.bf16.mxu0 %v12153_v12  ;;  %v14087_v12 = vadd.f32 %v6671_v22, %v15308_v26  ;;  %v14097_v22 = vpop.f32.mrb[246].mxu1  ;;  %v12165_v26 = vld [vmem:[%s12470_s12 + $0xe30] ss:$36 sps:$4 sm:$0xff]  }
 0x4ea   : > { %15313 = vst [vmem:[#allocation89_spill] sm:$0xff] %v14097_v22  ;;  %v5847_v51 = vpop.f32.mrb[247].mxu1  ;;  %v15317_v22 = vld [vmem:[#allocation17_spill] sm:$0xff] }
 0x4eb   : > { %15309 = vst [vmem:[#allocation14_spill] sm:$0xff] %v14087_v12  ;;  %v6679_v12 = vpop.f32.mrb[118].mxu0  ;;  %v14107_v9 = vpop.f32.mrb[248].mxu1 }
 0x4ec   : > { %v6681_v47 = vpop.f32.mrb[119].mxu0  ;;  %15316 = vst [vmem:[#allocation90_spill] sm:$0xff] %v14107_v9  ;;  %v5852_v38 = vpop.f32.mrb[249].mxu1 }
 0x4ed   : > { %10477 = vmatmul.mubr.msk.bf16.gmra.mrb[96].mxu1 %vm4575_vm2, %v12162_v21  ;;  %v6684_v62 = vpop.f32.mrb[120].mxu0  ;;  %v12166_v47 = vld [vmem:[%s12470_s12 + $0x1020] ss:$36 sps:$4 sm:$0xff]   ;;  %v12172_v38 = vld [vmem:[%s12470_s12 + $0xf08] ss:$36 sps:$4 sm:$0xff]  }
 0x4ee   : > { %10480 = vmatprep.mubr.msk.bf16.mxu1 %vm4575_vm2, %v12165_v26  ;;  %v14111_v51 = vadd.f32 %v6684_v62, %v15317_v22  ;;  %v6686_v30 = vpop.f32.mrb[121].mxu0  ;;  %v15320_v26 = vld [vmem:[#allocation18_spill] sm:$0xff] }
 0x4f0   : > { %6883 = vmatmul.mubr.bf16.gmra.mrb[220].mxu0 %v12156_v53  ;;  %v12163_v53 = vld [vmem:[%s12470_s12 + $0x1024] ss:$36 sps:$4 sm:$0xff]   ;;  %15318 = vst [vmem:[#allocation17_spill] sm:$0xff] %v14111_v51 }
 0x4f1   : > { %6890 = vmatprep.mubr.bf16.mxu0 %v12158_v40  ;;  %v14103_v40 = vadd.f32 %v6679_v12, %v15314_v10  ;;  %v14113_v12 = vpop.f32.mrb[250].mxu1  ;;  %v12170_v10 = vld [vmem:[%s12470_s12 + $0xec0] ss:$36 sps:$4 sm:$0xff]  }
 0x4f2   : > { %15319 = vst [vmem:[#allocation91_spill] sm:$0xff] %v14113_v12  ;;  %v5855_v21 = vpop.f32.mrb[251].mxu1  ;;  %v15323_v12 = vld [vmem:[#allocation19_spill] sm:$0xff] }
 0x4f3   : > { %15315 = vst [vmem:[#allocation16_spill] sm:$0xff] %v14103_v40  ;;  %v6687_v40 = vpop.f32.mrb[122].mxu0  ;;  %v14123_v30 = vpop.f32.mrb[252].mxu1 }
 0x4f4   : > { %v6689_v9 = vpop.f32.mrb[123].mxu0  ;;  %15322 = vst [vmem:[#allocation92_spill] sm:$0xff] %v14123_v30  ;;  %v5860_v62 = vpop.f32.mrb[253].mxu1 }
 0x4f5   : > { %10481 = vmatmul.mubr.msk.bf16.gmra.mrb[100].mxu1 %vm4575_vm2, %v12167_v50  ;;  %v6692_v22 = vpop.f32.mrb[124].mxu0  ;;  %v12171_v9 = vld [vmem:[%s12470_s12 + $0x1068] ss:$36 sps:$4 sm:$0xff]  }
 0x4f6   : > { %10484 = vmatprep.mubr.msk.bf16.mxu1 %vm4575_vm2, %v12170_v10  ;;  %v14127_v21 = vadd.f32 %v6692_v22, %v15323_v12  ;;  %v6694_v51 = vpop.f32.mrb[125].mxu0  ;;  %v15326_v10 = vld [vmem:[#allocation20_spill] sm:$0xff]  ;;  %v12176_v22 = vld [vmem:[%s12470_s12 + $0x10b0] ss:$36 sps:$4 sm:$0xff]  }
 0x4f7   : > { %v413_v51 = vld [vmem:[#allocation2 + $0x10] sm:$0xff] }
 0x4f8   : > { %6891 = vmatmul.mubr.bf16.gmra.mrb[224].mxu0 %v12161_v31  ;;  %v12168_v31 = vld [vmem:[%s12470_s12 + $0x106c] ss:$36 sps:$4 sm:$0xff]   ;;  %15324 = vst [vmem:[#allocation19_spill] sm:$0xff] %v14127_v21 }
 0x4f9   : > { %6898 = vmatprep.mubr.bf16.mxu0 %v12163_v53  ;;  %v14119_v53 = vadd.f32 %v6687_v40, %v15320_v26  ;;  %v14129_v40 = vpop.f32.mrb[254].mxu1  ;;  %v12175_v26 = vld [vmem:[%s12470_s12 + $0xf50] ss:$36 sps:$4 sm:$0xff]  }
 0x4fa   : > { %15325 = vst [vmem:[#allocation93_spill] sm:$0xff] %v14129_v40  ;;  %v5863_v50 = vpop.f32.mrb[255].mxu1 }
 0x4fb   : > { %15321 = vst [vmem:[#allocation18_spill] sm:$0xff] %v14119_v53  ;;  %v6695_v53 = vpop.f32.mrb[126].mxu0  ;;  %v10382_v12 = vpop.f32.mrb[0].mxu1  ;;  %v411_v50 = vld [vmem:[#allocation2] sm:$0xff] }
 0x4fc   : > { %v6697_v30 = vpop.f32.mrb[127].mxu0  ;;  %v6998_v40 = vadd.f32 %v13395_v17, %v10382_v12  ;;  %v6989_v21 = vpop.f32.mrb[1].mxu1  ;;  %v15329_v12 = vld [vmem:[#allocation22_spill] sm:$0xff] }
 0x4fd   : > { %10485 = vmatmul.mubr.msk.bf16.gmra.mrb[104].mxu1 %vm4575_vm2, %v12172_v38  ;;  %v6700_v62 = vpop.f32.mrb[128].mxu0  ;;  %v15328_v38 = vld [vmem:[#allocation21_spill] sm:$0xff] }
 0x4fe   : > { %10488 = vmatprep.mubr.msk.bf16.mxu1 %vm4575_vm2, %v12175_v26  ;;  %v6702_v30 = vpop.f32.mrb[129].mxu0  ;;  %v12180_v26 = vld [vmem:[%s12470_s12 + $0xfe0] ss:$36 sps:$4 sm:$0xff]  }
 0x4ff   : > { %v6703_v15 = vpop.f32.mrb[130].mxu0  ;;  %v12181_v30 = vld [vmem:[%s12470_s12 + $0x10f8] ss:$36 sps:$4 sm:$0xff]  }
 0x500   : > { %6899 = vmatmul.mubr.bf16.gmra.mrb[228].mxu0 %v12166_v47  ;;  %v12173_v47 = vld [vmem:[%s12470_s12 + $0x10b4] ss:$36 sps:$4 sm:$0xff]   ;;  %v14150_v56 = vadd.f32 %v6703_v15, %v15329_v12  ;;  %v6705_v6 = vpop.f32.mrb[131].mxu0 }
 0x501   : > { %6906 = vmatprep.mubr.bf16.mxu0 %v12168_v31  ;;  %v14135_v31 = vadd.f32 %v6695_v53, %v15326_v10  ;;  %v14143_v53 = vadd.f32 %v6700_v62, %v13377_v5  ;;  %v414_v10 = vld [vmem:[#allocation2 + $0x18] sm:$0xff] }
 0x502   : > { %v418_v15 = vld [vmem:[#allocation2 + $0x38] sm:$0xff] }
 0x503   : > { %15327 = vst [vmem:[#allocation20_spill] sm:$0xff] %v14135_v31  ;;  %v10383_v31 = vpop.f32.mrb[2].mxu1 }
 0x504   : > { %v7001_v35 = vadd.f32 %v13403_v20, %v10383_v31  ;;  %v6992_v7 = vpop.f32.mrb[3].mxu1  ;;  %v417_v20 = vld [vmem:[#allocation2 + $0x30] sm:$0xff]  ;;  %v12182_v31 = vld [vmem:[%s12470_s12 + $0x1028] ss:$36 sps:$4 sm:$0xff]  }
 0x505   : > { %v6993_v5 = vadd.f32 %v13389_v2, %v6992_v7  ;;  %10489 = vmatmul.mubr.msk.bf16.gmra.mrb[108].mxu1 %vm4575_vm2, %v12177_v61  ;;  %v14161_v2 = vld [vmem:[%s15209_s2] ss:$0 sm:$0xff]  ;;  %v10386_v6 = vpop.f32.mrb[4].mxu1  ;;  %v6708_v7 = vpop.f32.mrb[132].mxu0 }
 0x506   : > { %10492 = vmatprep.mubr.msk.bf16.mxu1 %vm4575_vm2, %v12180_v26  ;;  %v7005_v61 = vpop.f32.mrb[5].mxu1 }
 0x507   : > { %v7006_v62 = vadd.f32 %v13409_v13, %v7005_v61 }
 0x508   : > { %6907 = vmatmul.mubr.bf16.gmra.mrb[232].mxu0 %v12171_v9  ;;  %v6990_v9 = vadd.f32 %v15328_v38, %v6989_v21  ;;  %v7503_v21 = vadd.f32 %v7001_v35, %v414_v10  ;;  %v7014_v35 = vadd.f32 %v13423_v41, %v10386_v6  ;;  %v12185_v38 = vld [vmem:[%s12470_s12 + $0x1070] ss:$36 sps:$4 sm:$0xff]   ;;  %v416_v41 = vld [vmem:[#allocation2 + $0x28] sm:$0xff] }
 0x509   : > { %6914 = vmatprep.mubr.bf16.mxu0 %v12173_v47  ;;  %v7502_v47 = vadd.f32 %v6998_v40, %v413_v51  ;;  %v7501_v40 = vadd.f32 %v6993_v5, %v412_v37  ;;  %v415_v37 = vld [vmem:[#allocation2 + $0x20] sm:$0xff] }
 0x50a   : > { %v7500_v17 = vadd.f32 %v6990_v9, %v411_v50  ;;  %7632 = vst.msk [vmem:[#allocation2 + $0x18] sm:$0xff] %vm282_vm3, %v7503_v21  ;;  %v10387_v50 = vpop.f32.mrb[6].mxu1  ;;  %v7506_v9 = vadd.f32 %v7014_v35, %v417_v20  ;;  %v7504_v5 = vadd.f32 %v7006_v62, %v415_v37  ;;  %v15331_v21 = vld [vmem:[#allocation24_spill] sm:$0xff] }
 0x50b   : > { %7631 = vst.msk [vmem:[#allocation2 + $0x10] sm:$0xff] %vm282_vm3, %v7502_v47  ;;  %7630 = vst.msk [vmem:[#allocation2 + $0x8] sm:$0xff] %vm282_vm3, %v7501_v40  ;;  %v7017_v26 = vadd.f32 %v13431_v44, %v10387_v50  ;;  %v7008_v47 = vpop.f32.mrb[7].mxu1 }
 0x50c   : > { %7629 = vst.msk [vmem:[#allocation2] sm:$0xff] %vm282_vm3, %v7500_v17  ;;  %v12183_v17 = vld [vmem:[%s12470_s12 + $0x1144] ss:$36 sps:$4 sm:$0xff]   ;;  %7635 = vst.msk [vmem:[#allocation2 + $0x30] sm:$0xff] %vm282_vm3, %v7506_v9  ;;  %v421_v9 = vld [vmem:[#allocation2 + $0x50] sm:$0xff] }
 0x50d   : > { %v7507_v20 = vadd.f32 %v7017_v26, %v418_v15  ;;  %10493 = vmatmul.mubr.msk.bf16.gmra.mrb[112].mxu1 %vm4575_vm2, %v12182_v31  ;;  %7633 = vst.msk [vmem:[#allocation2 + $0x20] sm:$0xff] %vm282_vm3, %v7504_v5 }
 0x50e   : > { %10496 = vmatprep.mubr.msk.bf16.mxu1 %vm4575_vm2, %v12185_v38 }
 0x50f   : > { %7636 = vst.msk [vmem:[#allocation2 + $0x38] sm:$0xff] %vm282_vm3, %v7507_v20  ;;  %v422_v20 = vld [vmem:[#allocation2 + $0x58] sm:$0xff] }
 0x510   : > { %6915 = vmatmul.mubr.bf16.gmra.mrb[236].mxu0 %v12176_v22  ;;  %v6710_v22 = vpop.f32.mrb[133].mxu0 }
 0x511   : > { %6922 = vmatprep.mubr.bf16.mxu0 %v12178_v43  ;;  %v15330_v43 = vld [vmem:[#allocation23_spill] sm:$0xff]  ;;  %v6711_v10 = vpop.f32.mrb[134].mxu0  ;;  %v7763_v35 = vld [vmem:[#allocation2 + $0x18] sm:$0xff] }
 0x512   : > { %v14167_v51 = vadd.f32 %v6708_v7, %v15330_v43  ;;  %v7762_v12 = vld [vmem:[#allocation2 + $0x10] sm:$0xff]  ;;  %v14176_v40 = vadd.f32 %v6711_v10, %v15331_v21  ;;  %v6713_v6 = vpop.f32.mrb[135].mxu0  ;;  %v15332_v7 = vld [vmem:[#allocation27_spill] sm:$0xff]  ;;  %v7898_v62 = vadd.f32 %v14161_v2, %v7763_v35  ;;  %v7761_v50 = vld [vmem:[#allocation2 + $0x8] sm:$0xff]  ;;  %v10390_v10 = vpop.f32.mrb[8].mxu1 }
 0x513   : > { %v7009_v43 = vadd.f32 %v15332_v7, %v7008_v47  ;;  %v7897_v13 = vadd.f32 %v14161_v2, %v7762_v12  ;;  %v7760_v61 = vld [vmem:[#allocation2] sm:$0xff]  ;;  %v7896_v31 = vadd.f32 %v14161_v2, %v7761_v50  ;;  %v7030_v47 = vadd.f32 %v13452_v0, %v10390_v10  ;;  %v7021_v5 = vpop.f32.mrb[9].mxu1  ;;  %v12187_v21 = vld [vmem:[%s12470_s12 + $0x10b8] ss:$36 sps:$4 sm:$0xff]   ;;  %v15333_v7 = vld [vmem:[#allocation25_spill] sm:$0xff] }
 0x514   : > { %v7895_v44 = vadd.f32 %v14161_v2, %v7760_v61  ;;  %v8026_v26 = vmax.f32 %v7898_v62, 0.0  ;;  %v419_v12 = vld [vmem:[#allocation2 + $0x40] sm:$0xff]  ;;  %v7022_v61 = vadd.f32 %v13437_v49, %v7021_v5  ;;  %v420_v50 = vld [vmem:[#allocation2 + $0x48] sm:$0xff]  ;;  %v7766_v10 = vld [vmem:[#allocation2 + $0x30] sm:$0xff] }
 0x515   : > { %v7505_v37 = vadd.f32 %v7009_v43, %v416_v41  ;;  %v8025_v22 = vmax.f32 %v7897_v13, 0.0  ;;  %v6716_v41 = vpop.f32.mrb[136].mxu0  ;;  %v8024_v6 = vmax.f32 %v7896_v31, 0.0  ;;  %v12190_v35 = vld [vmem:[%s12470_s12 + $0x1100] ss:$36 sps:$4 sm:$0xff]   ;;  %v15334_v5 = vld [vmem:[#allocation26_spill] sm:$0xff]  ;;  %10497 = vmatmul.mubr.msk.bf16.gmra.mrb[116].mxu1 %vm4575_vm2, %v12187_v21 }
 0x516   : > { %v8023_v15 = vmax.f32 %v7895_v44, 0.0  ;;  %v14193_v43 = vadd.f32 %v6716_v41, %v15333_v7  ;;  %v6718_v13 = vpop.f32.mrb[137].mxu0  ;;  %v10391_v44 = vpop.f32.mrb[10].mxu1  ;;  %v10185_v0 = vpack.c.bf16 %v8026_v26, %v8026_v26  ;;  %v12188_v49 = vld [vmem:[%s12470_s12 + $0x118c] ss:$36 sps:$4 sm:$0xff]   ;;  %v7508_v41 = vadd.f32 %v7022_v61, %v419_v12  ;;  %v7767_v12 = vld [vmem:[#allocation2 + $0x38] sm:$0xff]  ;;  %10500 = vmatprep.mubr.msk.bf16.mxu1 %vm4575_vm2, %v12190_v35 }
 0x517   : > { %7634 = vst.msk [vmem:[#allocation2 + $0x28] sm:$0xff] %vm282_vm3, %v7505_v37  ;;  %v10184_v38 = vpack.c.bf16 %v8025_v22, %v8025_v22  ;;  %v7510_v37 = vadd.f32 %v7030_v47, %v421_v9  ;;  %v6719_v22 = vpop.f32.mrb[138].mxu0  ;;  %v7033_v62 = vadd.f32 %v13460_v34, %v10391_v44  ;;  %v10183_v31 = vpack.c.bf16 %v8024_v6, %v8024_v6  ;;  %v7764_v34 = vld [vmem:[#allocation2 + $0x20] sm:$0xff]  ;;  %v425_v44 = vld [vmem:[#allocation2 + $0x70] sm:$0xff] }
 0x518   : > { %6923 = vmatmul.mubr.bf16.gmra.mrb[240].mxu0 %v12181_v30  ;;  %v12186_v30 = vld [vmem:[%s12470_s12 + $0x1140] ss:$36 sps:$4 sm:$0xff]   ;;  %v14208_v7 = vadd.f32 %v6719_v22, %v15334_v5  ;;  %v6721_v13 = vpop.f32.mrb[139].mxu0  ;;  %8667 = vst.msk [vmem:[%s14199_s6 + $0xc] sm:$0xf] %vm8663_vm4, %v10185_v0  ;;  %v7901_v9 = vadd.f32 %v14161_v2, %v7766_v10  ;;  %v7899_v47 = vadd.f32 %v14161_v2, %v7764_v34 }
 0x519   : > { %6930 = vmatprep.mubr.bf16.mxu0 %v12183_v17  ;;  %v10182_v17 = vpack.c.bf16 %v8023_v15, %v8023_v15  ;;  %8666 = vst.msk [vmem:[%s14199_s6 + $0x8] sm:$0xf] %vm8663_vm4, %v10184_v38  ;;  %v7024_v15 = vpop.f32.mrb[11].mxu1  ;;  %v7511_v26 = vadd.f32 %v7033_v62, %v422_v20  ;;  %8665 = vst.msk [vmem:[%s14199_s6 + $0x4] sm:$0xf] %vm8663_vm4, %v10183_v31  ;;  %v7902_v6 = vadd.f32 %v14161_v2, %v7767_v12  ;;  %v6724_v22 = vpop.f32.mrb[140].mxu0 }
 0x51a   : > { %v7025_v38 = vadd.f32 %v13445_v63, %v7024_v15  ;;  %7639 = vst.msk [vmem:[#allocation2 + $0x50] sm:$0xff] %vm282_vm3, %v7510_v37  ;;  %7637 = vst.msk [vmem:[#allocation2 + $0x40] sm:$0xff] %vm282_vm3, %v7508_v41  ;;  %v8029_v63 = vmax.f32 %v7901_v9, 0.0  ;;  %v8027_v21 = vmax.f32 %v7899_v47, 0.0  ;;  %v10394_v0 = vpop.f32.mrb[12].mxu1  ;;  %v15335_v41 = vld [vmem:[#allocation28_spill] sm:$0xff] }
 0x51b   : > { %8664 = vst.msk [vmem:[%s14199_s6] sm:$0xf] %vm8663_vm4, %v10182_v17  ;;  %v12191_v37 = vld [vmem:[%s12470_s12 + $0x1188] ss:$36 sps:$4 sm:$0xff]   ;;  %v8030_v35 = vmax.f32 %v7902_v6, 0.0  ;;  %v7046_v62 = vadd.f32 %v13484_v32, %v10394_v0  ;;  %v7037_v15 = vpop.f32.mrb[13].mxu1  ;;  %v14229_v5 = vadd.f32 %v6724_v22, %v15335_v41 }
 0x51c   : > { %v7509_v17 = vadd.f32 %v7025_v38, %v420_v50  ;;  %7640 = vst.msk [vmem:[#allocation2 + $0x58] sm:$0xff] %vm282_vm3, %v7511_v26  ;;  %v423_v50 = vld [vmem:[#allocation2 + $0x60] sm:$0xff]  ;;  %v12192_v31 = vld [vmem:[%s12470_s12 + $0x1148] ss:$36 sps:$4 sm:$0xff]   ;;  %v6726_v13 = vpop.f32.mrb[141].mxu0  ;;  %v7038_v38 = vadd.f32 %v13468_v23, %v7037_v15  ;;  %v426_v9 = vld [vmem:[#allocation2 + $0x78] sm:$0xff] }
 0x51d   : > { %v10395_v34 = vpop.f32.mrb[14].mxu1  ;;  %v12195_v26 = vld [vmem:[%s12470_s12 + $0x1190] ss:$36 sps:$4 sm:$0xff]   ;;  %v10189_v32 = vpack.c.bf16 %v8030_v35, %v8030_v35  ;;  %v7514_v47 = vadd.f32 %v7046_v62, %v425_v44  ;;  %v6727_v12 = vpop.f32.mrb[142].mxu0  ;;  %10501 = vmatmul.mubr.msk.bf16.gmra.mrb[120].mxu1 %vm4575_vm2, %v12192_v31 }
 0x51e   : > { %v7765_v61 = vld [vmem:[#allocation2 + $0x28] sm:$0xff]  ;;  %7638 = vst.msk [vmem:[#allocation2 + $0x48] sm:$0xff] %vm282_vm3, %v7509_v17  ;;  %v7049_v17 = vadd.f32 %v13492_v57, %v10395_v34  ;;  %v7040_v6 = vpop.f32.mrb[15].mxu1  ;;  %v7512_v23 = vadd.f32 %v7038_v38, %v423_v50  ;;  %v15336_v0 = vld [vmem:[#allocation29_spill] sm:$0xff]  ;;  %v6729_v15 = vpop.f32.mrb[143].mxu0  ;;  %10504 = vmatprep.mubr.msk.bf16.mxu1 %vm4575_vm2, %v12195_v26 }
 0x51f   : > { %v7900_v20 = vadd.f32 %v14161_v2, %v7765_v61  ;;  %v12193_v61 = vld [vmem:[%s12470_s12 + $0x11d4] ss:$36 sps:$4 sm:$0xff]   ;;  %v14240_v22 = vadd.f32 %v6727_v12, %v15336_v0  ;;  %8671 = vst.msk [vmem:[%s14199_s6 + $0x1c] sm:$0xf] %vm8663_vm4, %v10189_v32  ;;  %v6732_v26 = vpop.f32.mrb[144].mxu0 }
 0x520   : > { %6931 = vmatmul.mubr.bf16.gmra.mrb[244].mxu0 %v12186_v30  ;;  %v10188_v30 = vpack.c.bf16 %v8029_v63, %v8029_v63  ;;  %v424_v63 = vld [vmem:[#allocation2 + $0x68] sm:$0xff]  ;;  %7643 = vst.msk [vmem:[#allocation2 + $0x70] sm:$0xff] %vm282_vm3, %v7514_v47  ;;  %v7515_v35 = vadd.f32 %v7049_v17, %v426_v9  ;;  %7641 = vst.msk [vmem:[#allocation2 + $0x60] sm:$0xff] %vm282_vm3, %v7512_v23  ;;  %v429_v38 = vld [vmem:[#allocation2 + $0x90] sm:$0xff]  ;;  %v10398_v9 = vpop.f32.mrb[16].mxu1 }
 0x521   : > { %6938 = vmatprep.mubr.bf16.mxu0 %v12188_v49  ;;  %v10186_v49 = vpack.c.bf16 %v8027_v21, %v8027_v21  ;;  %v8028_v10 = vmax.f32 %v7900_v20, 0.0  ;;  %v7770_v20 = vld [vmem:[#allocation2 + $0x50] sm:$0xff]  ;;  %v7768_v57 = vld [vmem:[#allocation2 + $0x40] sm:$0xff]  ;;  %v7062_v32 = vadd.f32 %v13516_v27, %v10398_v9  ;;  %v7053_v12 = vpop.f32.mrb[17].mxu1  ;;  %v12197_v17 = vld [vmem:[%s12470_s12 + $0x11d8] ss:$36 sps:$4 sm:$0xff]  }
 0x522   : > { %8670 = vst.msk [vmem:[%s14199_s6 + $0x18] sm:$0xf] %vm8663_vm4, %v10188_v30  ;;  %v7041_v30 = vadd.f32 %v13476_v46, %v7040_v6  ;;  %v7905_v44 = vadd.f32 %v14161_v2, %v7770_v20  ;;  %v7903_v62 = vadd.f32 %v14161_v2, %v7768_v57  ;;  %v427_v47 = vld [vmem:[#allocation2 + $0x80] sm:$0xff]  ;;  %v7054_v20 = vadd.f32 %v13500_v60, %v7053_v12  ;;  %v430_v23 = vld [vmem:[#allocation2 + $0x98] sm:$0xff]  ;;  %v10399_v0 = vpop.f32.mrb[18].mxu1  ;;  %v433_v12 = vld [vmem:[#allocation2 + $0xb0] sm:$0xff] }
 0x523   : > { %8668 = vst.msk [vmem:[%s14199_s6 + $0x10] sm:$0xf] %vm8663_vm4, %v10186_v49  ;;  %v10187_v21 = vpack.c.bf16 %v8028_v10, %v8028_v10  ;;  %v7771_v50 = vld [vmem:[#allocation2 + $0x58] sm:$0xff]  ;;  %v12196_v15 = vld [vmem:[%s12470_s12 + $0x11d0] ss:$36 sps:$4 sm:$0xff]   ;;  %v7518_v27 = vadd.f32 %v7062_v32, %v429_v38  ;;  %v7065_v57 = vadd.f32 %v13524_v16, %v10399_v0 }
 0x524   : > { %v7513_v49 = vadd.f32 %v7041_v30, %v424_v63  ;;  %v8033_v46 = vmax.f32 %v7905_v44, 0.0  ;;  %v7906_v10 = vadd.f32 %v14161_v2, %v7771_v50  ;;  %7644 = vst.msk [vmem:[#allocation2 + $0x78] sm:$0xff] %vm282_vm3, %v7515_v35  ;;  %v8031_v31 = vmax.f32 %v7903_v62, 0.0  ;;  %v428_v35 = vld [vmem:[#allocation2 + $0x88] sm:$0xff]  ;;  %v7056_v62 = vpop.f32.mrb[19].mxu1  ;;  %v15337_v60 = vld [vmem:[#allocation30_spill] sm:$0xff] }
 0x525   : > { %8669 = vst.msk [vmem:[%s14199_s6 + $0x14] sm:$0xf] %vm8663_vm4, %v10187_v21  ;;  %v7769_v41 = vld [vmem:[#allocation2 + $0x48] sm:$0xff]  ;;  %v6734_v21 = vpop.f32.mrb[145].mxu0  ;;  %v7519_v16 = vadd.f32 %v7065_v57, %v430_v23  ;;  %10505 = vmatmul.mubr.msk.bf16.gmra.mrb[124].mxu1 %vm4575_vm2, %v12197_v17  ;;  %v10402_v17 = vpop.f32.mrb[20].mxu1  ;;  %v431_v23 = vld [vmem:[#allocation2 + $0xa0] sm:$0xff] }
 0x526   : > { %v7904_v13 = vadd.f32 %v14161_v2, %v7769_v41  ;;  %7642 = vst.msk [vmem:[#allocation2 + $0x68] sm:$0xff] %vm282_vm3, %v7513_v49  ;;  %v8034_v34 = vmax.f32 %v7906_v10, 0.0  ;;  %v10190_v63 = vpack.c.bf16 %v8031_v31, %v8031_v31  ;;  %v6735_v44 = vpop.f32.mrb[146].mxu0  ;;  %v7516_v49 = vadd.f32 %v7054_v20, %v427_v47  ;;  %7647 = vst.msk [vmem:[#allocation2 + $0x90] sm:$0xff] %vm282_vm3, %v7518_v27  ;;  %v7069_v0 = vpop.f32.mrb[21].mxu1  ;;  %v15338_v27 = vld [vmem:[#allocation31_spill] sm:$0xff] }
 0x527   : > { %v7774_v50 = vld [vmem:[#allocation2 + $0x70] sm:$0xff]  ;;  %v6737_v10 = vpop.f32.mrb[147].mxu0  ;;  %v7057_v41 = vadd.f32 %v13508_v8, %v7056_v62  ;;  %7648 = vst.msk [vmem:[#allocation2 + $0x98] sm:$0xff] %vm282_vm3, %v7519_v16  ;;  %v7078_v20 = vadd.f32 %v13548_v58, %v10402_v17  ;;  %v434_v62 = vld [vmem:[#allocation2 + $0xb8] sm:$0xff] }
 0x528   : > { %6939 = vmatmul.mubr.bf16.gmra.mrb[248].mxu0 %v12191_v37  ;;  %v10192_v37 = vpack.c.bf16 %v8033_v46, %v8033_v46  ;;  %v8032_v6 = vmax.f32 %v7904_v13, 0.0  ;;  %v10193_v30 = vpack.c.bf16 %v8034_v34, %v8034_v34  ;;  %8672 = vst.msk [vmem:[%s14199_s6 + $0x20] sm:$0xf] %vm8663_vm4, %v10190_v63  ;;  %v14270_v46 = vadd.f32 %v6735_v44, %v15337_v60  ;;  %v7772_v13 = vld [vmem:[#allocation2 + $0x60] sm:$0xff]  ;;  %v6740_v21 = vpop.f32.mrb[148].mxu0  ;;  %v432_v10 = vld [vmem:[#allocation2 + $0xa8] sm:$0xff] }
 0x529   : > { %6946 = vmatprep.mubr.bf16.mxu0 %v12193_v61  ;;  %v14260_v61 = vadd.f32 %v6732_v26, %v13433_v3  ;;  %v7909_v31 = vadd.f32 %v14161_v2, %v7774_v50  ;;  %v7907_v38 = vadd.f32 %v14161_v2, %v7772_v13  ;;  %7645 = vst.msk [vmem:[#allocation2 + $0x80] sm:$0xff] %vm282_vm3, %v7516_v49  ;;  %v6742_v57 = vpop.f32.mrb[149].mxu0 }
 0x52a   : > { %8674 = vst.msk [vmem:[%s14199_s6 + $0x28] sm:$0xf] %vm8663_vm4, %v10192_v37  ;;  %v10191_v3 = vpack.c.bf16 %v8032_v6, %v8032_v6  ;;  %8675 = vst.msk [vmem:[%s14199_s6 + $0x2c] sm:$0xf] %vm8663_vm4, %v10193_v30  ;;  %v7517_v37 = vadd.f32 %v7057_v41, %v428_v35  ;;  %v14288_v44 = vadd.f32 %v6740_v21, %v15338_v27  ;;  %v6743_v60 = vpop.f32.mrb[150].mxu0  ;;  %v437_v21 = vld [vmem:[#allocation2 + $0xd0] sm:$0xff] }
 0x52b   : > { %v7775_v9 = vld [vmem:[#allocation2 + $0x78] sm:$0xff]  ;;  %v8037_v8 = vmax.f32 %v7909_v31, 0.0  ;;  %v8035_v32 = vmax.f32 %v7907_v38, 0.0  ;;  %v7070_v35 = vadd.f32 %v13532_v54, %v7069_v0  ;;  %v7522_v49 = vadd.f32 %v7078_v20, %v433_v12  ;;  %v15339_v38 = vld [vmem:[#allocation32_spill] sm:$0xff]  ;;  %v435_v27 = vld [vmem:[#allocation2 + $0xc0] sm:$0xff] }
 0x52c   : > { %8673 = vst.msk [vmem:[%s14199_s6 + $0x24] sm:$0xf] %vm8663_vm4, %v10191_v3  ;;  %v7910_v34 = vadd.f32 %v14161_v2, %v7775_v9  ;;  %v10403_v3 = vpop.f32.mrb[22].mxu1  ;;  %v14297_v54 = vadd.f32 %v6743_v60, %v15339_v38  ;;  %v6745_v9 = vpop.f32.mrb[151].mxu0 }
 0x52d   : > { %v7773_v26 = vld [vmem:[#allocation2 + $0x68] sm:$0xff]  ;;  %7646 = vst.msk [vmem:[#allocation2 + $0x88] sm:$0xff] %vm282_vm3, %v7517_v37  ;;  %v10196_v63 = vpack.c.bf16 %v8037_v8, %v8037_v8  ;;  %v7081_v58 = vadd.f32 %v13556_v11, %v10403_v3  ;;  %v7072_v41 = vpop.f32.mrb[23].mxu1  ;;  %v7778_v13 = vld [vmem:[#allocation2 + $0x90] sm:$0xff]  ;;  %v7520_v16 = vadd.f32 %v7070_v35, %v431_v23  ;;  %7651 = vst.msk [vmem:[#allocation2 + $0xb0] sm:$0xff] %vm282_vm3, %v7522_v49 }
 0x52e   : > { %v7908_v47 = vadd.f32 %v14161_v2, %v7773_v26  ;;  %v8038_v6 = vmax.f32 %v7910_v34, 0.0  ;;  %v7073_v37 = vadd.f32 %v13540_v48, %v7072_v41  ;;  %v7913_v8 = vadd.f32 %v14161_v2, %v7778_v13  ;;  %v10406_v20 = vpop.f32.mrb[24].mxu1  ;;  %v15340_v3 = vld [vmem:[#allocation33_spill] sm:$0xff] }
 0x52f   : > { %8678 = vst.msk [vmem:[%s14199_s6 + $0x38] sm:$0xf] %vm8663_vm4, %v10196_v63  ;;  %v7523_v11 = vadd.f32 %v7081_v58, %v434_v62  ;;  %v7085_v57 = vpop.f32.mrb[25].mxu1  ;;  %v438_v58 = vld [vmem:[#allocation2 + $0xd8] sm:$0xff] }
 0x530   : > { %6947 = vmatmul.mubr.bf16.gmra.mrb[252].mxu0 %v12196_v15  ;;  %v10194_v15 = vpack.c.bf16 %v8035_v32, %v8035_v32  ;;  %v8036_v30 = vmax.f32 %v7908_v47, 0.0  ;;  %v10197_v50 = vpack.c.bf16 %v8038_v6, %v8038_v6  ;;  %v7776_v34 = vld [vmem:[#allocation2 + $0x80] sm:$0xff]  ;;  %v7779_v32 = vld [vmem:[#allocation2 + $0x98] sm:$0xff]  ;;  %7649 = vst.msk [vmem:[#allocation2 + $0xa0] sm:$0xff] %vm282_vm3, %v7520_v16  ;;  %v7521_v47 = vadd.f32 %v7073_v37, %v432_v10  ;;  %v10407_v10 = vpop.f32.mrb[26].mxu1  ;;  %v436_v16 = vld [vmem:[#allocation2 + $0xc8] sm:$0xff] }
 0x531   : > { %v7911_v26 = vadd.f32 %v14161_v2, %v7776_v34  ;;  %v8041_v12 = vmax.f32 %v7913_v8, 0.0  ;;  %v7914_v17 = vadd.f32 %v14161_v2, %v7779_v32  ;;  %7652 = vst.msk [vmem:[#allocation2 + $0xb8] sm:$0xff] %vm282_vm3, %v7523_v11  ;;  %v7086_v60 = vadd.f32 %v13564_v24, %v7085_v57  ;;  %v7088_v38 = vpop.f32.mrb[27].mxu1  ;;  %v15341_v34 = vld [vmem:[#allocation34_spill] sm:$0xff] }
 0x532   : > { %8676 = vst.msk [vmem:[%s14199_s6 + $0x30] sm:$0xf] %vm8663_vm4, %v10194_v15  ;;  %v10195_v31 = vpack.c.bf16 %v8036_v30, %v8036_v30  ;;  %8679 = vst.msk [vmem:[%s14199_s6 + $0x3c] sm:$0xf] %vm8663_vm4, %v10197_v50  ;;  %v6748_v15 = vpop.f32.mrb[152].mxu0  ;;  %v7094_v30 = vadd.f32 %v13580_v33, %v10406_v20  ;;  %v7097_v33 = vadd.f32 %v13588_v28, %v10407_v10 }
 0x533   : > { %v8039_v63 = vmax.f32 %v7911_v26, 0.0  ;;  %7650 = vst.msk [vmem:[#allocation2 + $0xa8] sm:$0xff] %vm282_vm3, %v7521_v47  ;;  %v10200_v23 = vpack.c.bf16 %v8041_v12, %v8041_v12  ;;  %v8042_v0 = vmax.f32 %v7914_v17, 0.0  ;;  %v14314_v50 = vadd.f32 %v6748_v15, %v15340_v3  ;;  %v6750_v49 = vpop.f32.mrb[153].mxu0 }
 0x534   : > { %8677 = vst.msk [vmem:[%s14199_s6 + $0x34] sm:$0xf] %vm8663_vm4, %v10195_v31  ;;  %v7777_v48 = vld [vmem:[#allocation2 + $0x88] sm:$0xff]  ;;  %v7526_v31 = vadd.f32 %v7094_v30, %v437_v21  ;;  %v6751_v13 = vpop.f32.mrb[154].mxu0  ;;  %v7782_v37 = vld [vmem:[#allocation2 + $0xb0] sm:$0xff]  ;;  %v7524_v8 = vadd.f32 %v7086_v60, %v435_v27  ;;  %v7089_v26 = vadd.f32 %v13572_v19, %v7088_v38  ;;  %v7527_v28 = vadd.f32 %v7097_v33, %v438_v58  ;;  %v15342_v60 = vld [vmem:[#allocation35_spill] sm:$0xff] }
 0x535   : > { %v7912_v6 = vadd.f32 %v14161_v2, %v7777_v48  ;;  %v10198_v35 = vpack.c.bf16 %v8039_v63, %v8039_v63  ;;  %8682 = vst.msk [vmem:[%s14199_s6 + $0x48] sm:$0xf] %vm8663_vm4, %v10200_v23  ;;  %v10201_v41 = vpack.c.bf16 %v8042_v0, %v8042_v0  ;;  %v14323_v24 = vadd.f32 %v6751_v13, %v15341_v34  ;;  %v6753_v11 = vpop.f32.mrb[155].mxu0  ;;  %v441_v23 = vld [vmem:[#allocation2 + $0xf0] sm:$0xff]  ;;  %v10410_v0 = vpop.f32.mrb[28].mxu1 }
 0x536   : > { %v7917_v32 = vadd.f32 %v14161_v2, %v7782_v37  ;;  %7655 = vst.msk [vmem:[#allocation2 + $0xd0] sm:$0xff] %vm282_vm3, %v7526_v31  ;;  %7653 = vst.msk [vmem:[#allocation2 + $0xc0] sm:$0xff] %vm282_vm3, %v7524_v8  ;;  %v7525_v48 = vadd.f32 %v7089_v26, %v436_v16  ;;  %v6756_v27 = vpop.f32.mrb[156].mxu0  ;;  %v7110_v57 = vadd.f32 %v13612_v52, %v10410_v0  ;;  %v442_v31 = vld [vmem:[#allocation2 + $0xf8] sm:$0xff]  ;;  %v15343_v26 = vld [vmem:[#allocation36_spill] sm:$0xff] }
 0x537   : > { %v8040_v62 = vmax.f32 %v7912_v6, 0.0  ;;  %8680 = vst.msk [vmem:[%s14199_s6 + $0x40] sm:$0xf] %vm8663_vm4, %v10198_v35  ;;  %8683 = vst.msk [vmem:[%s14199_s6 + $0x4c] sm:$0xf] %vm8663_vm4, %v10201_v41  ;;  %v7780_v47 = vld [vmem:[#allocation2 + $0xa0] sm:$0xff]  ;;  %v14340_v58 = vadd.f32 %v6756_v27, %v15342_v60 }
 0x538   : > { %v7915_v12 = vadd.f32 %v14161_v2, %v7780_v47  ;;  %v7783_v17 = vld [vmem:[#allocation2 + $0xb8] sm:$0xff]  ;;  %v8045_v63 = vmax.f32 %v7917_v32, 0.0  ;;  %7656 = vst.msk [vmem:[#allocation2 + $0xd8] sm:$0xff] %vm282_vm3, %v7527_v28  ;;  %7654 = vst.msk [vmem:[#allocation2 + $0xc8] sm:$0xff] %vm282_vm3, %v7525_v48  ;;  %v439_v35 = vld [vmem:[#allocation2 + $0xe0] sm:$0xff]  ;;  %v6758_v10 = vpop.f32.mrb[157].mxu0  ;;  %v7530_v16 = vadd.f32 %v7110_v57, %v441_v23 }
 0x539   : > { %v10199_v9 = vpack.c.bf16 %v8040_v62, %v8040_v62  ;;  %v7918_v6 = vadd.f32 %v14161_v2, %v7783_v17  ;;  %v7101_v62 = vpop.f32.mrb[29].mxu1  ;;  %v6759_v38 = vpop.f32.mrb[158].mxu0  ;;  %v15344_v47 = vld [vmem:[#allocation51_spill] sm:$0xff] }
 0x53a   : > { %v7781_v19 = vld [vmem:[#allocation2 + $0xa8] sm:$0xff]  ;;  %v8043_v21 = vmax.f32 %v7915_v12, 0.0  ;;  %v10204_v15 = vpack.c.bf16 %v8045_v63, %v8045_v63  ;;  %v7102_v41 = vadd.f32 %v13596_v42, %v7101_v62  ;;  %v10411_v13 = vpop.f32.mrb[30].mxu1  ;;  %v14349_v42 = vadd.f32 %v6759_v38, %v15343_v26  ;;  %v6761_v32 = vpop.f32.mrb[159].mxu0  ;;  %7659 = vst.msk [vmem:[#allocation2 + $0xf0] sm:$0xff] %vm282_vm3, %v7530_v16  ;;  %v446_v16 = vld [vmem:[#allocation2 + $0x118] sm:$0xff] }
 0x53b   : > { %8681 = vst.msk [vmem:[%s14199_s6 + $0x44] sm:$0xf] %vm8663_vm4, %v10199_v9  ;;  %v7916_v20 = vadd.f32 %v14161_v2, %v7781_v19  ;;  %v8046_v30 = vmax.f32 %v7918_v6, 0.0  ;;  %v7113_v52 = vadd.f32 %v13622_v14, %v10411_v13  ;;  %v440_v9 = vld [vmem:[#allocation2 + $0xe8] sm:$0xff]  ;;  %v7104_v37 = vpop.f32.mrb[31].mxu1 }
 0x53c   : > { %v10202_v3 = vpack.c.bf16 %v8043_v21, %v8043_v21  ;;  %8686 = vst.msk [vmem:[%s14199_s6 + $0x58] sm:$0xf] %vm8663_vm4, %v10204_v15  ;;  %v7528_v11 = vadd.f32 %v7102_v41, %v439_v35  ;;  %v7105_v28 = vadd.f32 %v15344_v47, %v7104_v37  ;;  %v445_v15 = vld [vmem:[#allocation2 + $0x110] sm:$0xff]  ;;  %v6764_v35 = vpop.f32.mrb[160].mxu0  ;;  %v15346_v47 = vld [vmem:[#allocation38_spill] sm:$0xff] }
 0x53d   : > { %v8044_v49 = vmax.f32 %v7916_v20, 0.0  ;;  %v10205_v33 = vpack.c.bf16 %v8046_v30, %v8046_v30  ;;  %v7786_v34 = vld [vmem:[#allocation2 + $0xd0] sm:$0xff]  ;;  %v7784_v17 = vld [vmem:[#allocation2 + $0xc0] sm:$0xff]  ;;  %v7531_v14 = vadd.f32 %v7113_v52, %v442_v31  ;;  %v10414_v30 = vpop.f32.mrb[32].mxu1  ;;  %v6766_v13 = vpop.f32.mrb[161].mxu0 }
 0x53e   : > { %8684 = vst.msk [vmem:[%s14199_s6 + $0x50] sm:$0xf] %vm8663_vm4, %v10202_v3  ;;  %v7921_v12 = vadd.f32 %v14161_v2, %v7786_v34  ;;  %v7919_v48 = vadd.f32 %v14161_v2, %v7784_v17  ;;  %v7529_v6 = vadd.f32 %v7105_v28, %v440_v9  ;;  %v7126_v62 = vadd.f32 %v13903_v45, %v10414_v30  ;;  %v443_v3 = vld [vmem:[#allocation2 + $0x100] sm:$0xff]  ;;  %v15345_v41 = vld [vmem:[#allocation37_spill] sm:$0xff]  ;;  %v6767_v37 = vpop.f32.mrb[162].mxu0 }
 0x53f   : > { %v10203_v8 = vpack.c.bf16 %v8044_v49, %v8044_v49  ;;  %8687 = vst.msk [vmem:[%s14199_s6 + $0x5c] sm:$0xf] %vm8663_vm4, %v10205_v33  ;;  %v7787_v63 = vld [vmem:[#allocation2 + $0xd8] sm:$0xff]  ;;  %v7785_v20 = vld [vmem:[#allocation2 + $0xc8] sm:$0xff]  ;;  %v7117_v49 = vpop.f32.mrb[33].mxu1  ;;  %v14366_v31 = vadd.f32 %v6764_v35, %v15345_v41  ;;  %v6769_v28 = vpop.f32.mrb[163].mxu0 }
 0x540   : > { %7657 = vst.msk [vmem:[#allocation2 + $0xe0] sm:$0xff] %vm282_vm3, %v7528_v11  ;;  %v8049_v19 = vmax.f32 %v7921_v12, 0.0  ;;  %v7922_v21 = vadd.f32 %v14161_v2, %v7787_v63  ;;  %7660 = vst.msk [vmem:[#allocation2 + $0xf8] sm:$0xff] %vm282_vm3, %v7531_v14  ;;  %v8047_v23 = vmax.f32 %v7919_v48, 0.0  ;;  %v7920_v0 = vadd.f32 %v14161_v2, %v7785_v20  ;;  %v10415_v38 = vpop.f32.mrb[34].mxu1 }
 0x541   : > { %8685 = vst.msk [vmem:[%s14199_s6 + $0x54] sm:$0xf] %vm8663_vm4, %v10203_v8  ;;  %v7118_v33 = vadd.f32 %v13887_v29, %v7117_v49  ;;  %v7534_v9 = vadd.f32 %v7126_v62, %v445_v15  ;;  %v7129_v45 = vadd.f32 %v13911_v25, %v10415_v38  ;;  %v444_v8 = vld [vmem:[#allocation2 + $0x108] sm:$0xff]  ;;  %v7120_v34 = vpop.f32.mrb[35].mxu1  ;;  %v7790_v26 = vld [vmem:[#allocation2 + $0xf0] sm:$0xff]  ;;  %v14375_v29 = vadd.f32 %v6767_v37, %v15346_v47  ;;  %v447_v62 = vld [vmem:[#allocation2 + $0x120] sm:$0xff] }
 0x542   : > { %7658 = vst.msk [vmem:[#allocation2 + $0xe8] sm:$0xff] %vm282_vm3, %v7529_v6  ;;  %v10208_v27 = vpack.c.bf16 %v8049_v19, %v8049_v19  ;;  %v8050_v57 = vmax.f32 %v7922_v21, 0.0  ;;  %v10206_v60 = vpack.c.bf16 %v8047_v23, %v8047_v23  ;;  %v8048_v10 = vmax.f32 %v7920_v0, 0.0  ;;  %v449_v0 = vld [vmem:[#allocation2 + $0x130] sm:$0xff]  ;;  %v10418_v15 = vpop.f32.mrb[36].mxu1 }
 0x543   : > { %v7532_v32 = vadd.f32 %v7118_v33, %v443_v3  ;;  %v7121_v12 = vadd.f32 %v13895_v59, %v7120_v34  ;;  %v7925_v17 = vadd.f32 %v14161_v2, %v7790_v26  ;;  %7663 = vst.msk [vmem:[#allocation2 + $0x110] sm:$0xff] %vm282_vm3, %v7534_v9  ;;  %v7535_v25 = vadd.f32 %v7129_v45, %v446_v16  ;;  %v7133_v3 = vpop.f32.mrb[37].mxu1  ;;  %v450_v16 = vld [vmem:[#allocation2 + $0x138] sm:$0xff]  ;;  %v448_v45 = vld [vmem:[#allocation2 + $0x128] sm:$0xff] }
 0x544   : > { %8690 = vst.msk [vmem:[%s14199_s6 + $0x68] sm:$0xf] %vm8663_vm4, %v10208_v27  ;;  %v10209_v52 = vpack.c.bf16 %v8050_v57, %v8050_v57  ;;  %8688 = vst.msk [vmem:[%s14199_s6 + $0x60] sm:$0xf] %vm8663_vm4, %v10206_v60  ;;  %v10207_v11 = vpack.c.bf16 %v8048_v10, %v8048_v10  ;;  %v6772_v57 = vpop.f32.mrb[164].mxu0  ;;  %v7142_v35 = vadd.f32 %v13935_v18, %v10418_v15  ;;  %v15347_v10 = vld [vmem:[#allocation39_spill] sm:$0xff] }
 0x545   : > { %7661 = vst.msk [vmem:[#allocation2 + $0x100] sm:$0xff] %vm282_vm3, %v7532_v32  ;;  %v7533_v6 = vadd.f32 %v7121_v12, %v444_v8  ;;  %v8053_v19 = vmax.f32 %v7925_v17, 0.0  ;;  %7664 = vst.msk [vmem:[#allocation2 + $0x118] sm:$0xff] %vm282_vm3, %v7535_v25  ;;  %v14392_v41 = vadd.f32 %v6772_v57, %v15347_v10  ;;  %v6774_v13 = vpop.f32.mrb[165].mxu0  ;;  %v7134_v33 = vadd.f32 %v13919_v36, %v7133_v3  ;;  %v10419_v38 = vpop.f32.mrb[38].mxu1  ;;  %v15348_v32 = vld [vmem:[#allocation40_spill] sm:$0xff] }
 0x546   : > { %8691 = vst.msk [vmem:[%s14199_s6 + $0x6c] sm:$0xf] %vm8663_vm4, %v10209_v52  ;;  %8689 = vst.msk [vmem:[%s14199_s6 + $0x64] sm:$0xf] %vm8663_vm4, %v10207_v11  ;;  %v7538_v9 = vadd.f32 %v7142_v35, %v449_v0  ;;  %v6775_v37 = vpop.f32.mrb[166].mxu0  ;;  %v7145_v18 = vadd.f32 %v13943_v1, %v10419_v38  ;;  %v7136_v8 = vpop.f32.mrb[39].mxu1 }
 0x547   : > { %v7788_v14 = vld [vmem:[#allocation2 + $0xe0] sm:$0xff]  ;;  %v7791_v63 = vld [vmem:[#allocation2 + $0xf8] sm:$0xff]  ;;  %7662 = vst.msk [vmem:[#allocation2 + $0x108] sm:$0xff] %vm282_vm3, %v7533_v6  ;;  %v10212_v30 = vpack.c.bf16 %v8053_v19, %v8053_v19  ;;  %v7536_v26 = vadd.f32 %v7134_v33, %v447_v62  ;;  %v14401_v36 = vadd.f32 %v6775_v37, %v15348_v32  ;;  %v6777_v47 = vpop.f32.mrb[167].mxu0  ;;  %v7137_v28 = vadd.f32 %v13927_v55, %v7136_v8  ;;  %v15349_v3 = vld [vmem:[#allocation41_spill] sm:$0xff] }
 0x548   : > { %v7923_v48 = vadd.f32 %v14161_v2, %v7788_v14  ;;  %v7926_v21 = vadd.f32 %v14161_v2, %v7791_v63  ;;  %7667 = vst.msk [vmem:[#allocation2 + $0x130] sm:$0xff] %vm282_vm3, %v7538_v9  ;;  %v7539_v1 = vadd.f32 %v7145_v18, %v450_v16  ;;  %v6780_v15 = vpop.f32.mrb[168].mxu0  ;;  %v454_v13 = vld [vmem:[#allocation2 + $0x158] sm:$0xff]  ;;  %v452_v37 = vld [vmem:[#allocation2 + $0x148] sm:$0xff] }
 0x549   : > { %v7789_v59 = vld [vmem:[#allocation2 + $0xe8] sm:$0xff]  ;;  %8694 = vst.msk [vmem:[%s14199_s6 + $0x78] sm:$0xf] %vm8663_vm4, %v10212_v30 }
 0x54a   : > { %v8051_v20 = vmax.f32 %v7923_v48, 0.0  ;;  %v7924_v23 = vadd.f32 %v14161_v2, %v7789_v59  ;;  %v8054_v27 = vmax.f32 %v7926_v21, 0.0  ;;  %v7794_v11 = vld [vmem:[#allocation2 + $0x110] sm:$0xff]  ;;  %7665 = vst.msk [vmem:[#allocation2 + $0x120] sm:$0xff] %vm282_vm3, %v7536_v26  ;;  %v7537_v48 = vadd.f32 %v7137_v28, %v448_v45  ;;  %7668 = vst.msk [vmem:[#allocation2 + $0x138] sm:$0xff] %vm282_vm3, %v7539_v1  ;;  %v15352_v32 = vld [vmem:[#allocation64_spill] sm:$0xff] }
 0x54b   : > { %v7929_v12 = vadd.f32 %v14161_v2, %v7794_v11  ;;  %v453_v59 = vld [vmem:[#allocation2 + $0x150] sm:$0xff]  ;;  %v15351_v11 = vld [vmem:[#allocation42_spill] sm:$0xff] }
 0x54c   : > { %v10210_v49 = vpack.c.bf16 %v8051_v20, %v8051_v20  ;;  %v8052_v60 = vmax.f32 %v7924_v23, 0.0  ;;  %v10213_v52 = vpack.c.bf16 %v8054_v27, %v8054_v27  ;;  %v7792_v17 = vld [vmem:[#allocation2 + $0x100] sm:$0xff]  ;;  %v7795_v25 = vld [vmem:[#allocation2 + $0x118] sm:$0xff]  ;;  %7666 = vst.msk [vmem:[#allocation2 + $0x128] sm:$0xff] %vm282_vm3, %v7537_v48  ;;  %v10422_v20 = vpop.f32.mrb[40].mxu1 }
 0x54d   : > { %v7927_v14 = vadd.f32 %v14161_v2, %v7792_v17  ;;  %v8057_v63 = vmax.f32 %v7929_v12, 0.0  ;;  %v7930_v6 = vadd.f32 %v14161_v2, %v7795_v25  ;;  %v7158_v30 = vadd.f32 %v13967_v39, %v10422_v20  ;;  %v451_v27 = vld [vmem:[#allocation2 + $0x140] sm:$0xff]  ;;  %v7149_v57 = vpop.f32.mrb[41].mxu1 }
 0x54e   : > { %8692 = vst.msk [vmem:[%s14199_s6 + $0x70] sm:$0xf] %vm8663_vm4, %v10210_v49  ;;  %v10211_v34 = vpack.c.bf16 %v8052_v60, %v8052_v60  ;;  %8695 = vst.msk [vmem:[%s14199_s6 + $0x7c] sm:$0xf] %vm8663_vm4, %v10213_v52  ;;  %v7793_v55 = vld [vmem:[#allocation2 + $0x108] sm:$0xff]  ;;  %v14418_v49 = vadd.f32 %v6780_v15, %v15349_v3  ;;  %v6782_v60 = vpop.f32.mrb[169].mxu0  ;;  %v7150_v10 = vadd.f32 %v13951_v4, %v7149_v57 }
 0x54f   : > { %v8055_v19 = vmax.f32 %v7927_v14, 0.0  ;;  %v7928_v21 = vadd.f32 %v14161_v2, %v7793_v55  ;;  %v10216_v23 = vpack.c.bf16 %v8057_v63, %v8057_v63  ;;  %v8058_v0 = vmax.f32 %v7930_v6, 0.0  ;;  %v10423_v33 = vpop.f32.mrb[42].mxu1  ;;  %v6783_v52 = vpop.f32.mrb[170].mxu0  ;;  %v15350_v39 = vld [vmem:[#allocation67_spill] sm:$0xff]  ;;  %v7798_v8 = vld [vmem:[#allocation2 + $0x130] sm:$0xff] }
 0x550   : > { %8693 = vst.msk [vmem:[%s14199_s6 + $0x74] sm:$0xf] %vm8663_vm4, %v10211_v34  ;;  %v7542_v38 = vadd.f32 %v7158_v30, %v453_v59  ;;  %v7161_v9 = vadd.f32 %v15350_v39, %v10423_v33  ;;  %v7152_v18 = vpop.f32.mrb[43].mxu1  ;;  %v7540_v34 = vadd.f32 %v7150_v10, %v451_v27  ;;  %v14427_v4 = vadd.f32 %v6783_v52, %v15351_v11  ;;  %v6785_v26 = vpop.f32.mrb[171].mxu0  ;;  %v15353_v15 = vld [vmem:[#allocation73_spill] sm:$0xff]  ;;  %v455_v27 = vld [vmem:[#allocation2 + $0x160] sm:$0xff] }
 0x551   : > { %v10214_v35 = vpack.c.bf16 %v8055_v19, %v8055_v19  ;;  %v8056_v62 = vmax.f32 %v7928_v21, 0.0  ;;  %8698 = vst.msk [vmem:[%s14199_s6 + $0x88] sm:$0xf] %vm8663_vm4, %v10216_v23  ;;  %v10217_v16 = vpack.c.bf16 %v8058_v0, %v8058_v0  ;;  %v7153_v47 = vadd.f32 %v15352_v32, %v7152_v18  ;;  %v7796_v12 = vld [vmem:[#allocation2 + $0x120] sm:$0xff]  ;;  %v7799_v14 = vld [vmem:[#allocation2 + $0x138] sm:$0xff]  ;;  %v457_v21 = vld [vmem:[#allocation2 + $0x170] sm:$0xff] }
 0x552   : > { %v7933_v28 = vadd.f32 %v14161_v2, %v7798_v8  ;;  %7671 = vst.msk [vmem:[#allocation2 + $0x150] sm:$0xff] %vm282_vm3, %v7542_v38  ;;  %v7543_v17 = vadd.f32 %v7161_v9, %v454_v13  ;;  %v7931_v1 = vadd.f32 %v14161_v2, %v7796_v12  ;;  %7669 = vst.msk [vmem:[#allocation2 + $0x140] sm:$0xff] %vm282_vm3, %v7540_v34  ;;  %v10426_v59 = vpop.f32.mrb[44].mxu1  ;;  %v6788_v0 = vpop.f32.mrb[172].mxu0  ;;  %v15354_v3 = vld [vmem:[#allocation43_spill] sm:$0xff]  ;;  %v458_v33 = vld [vmem:[#allocation2 + $0x178] sm:$0xff] }
 0x553   : > { %8696 = vst.msk [vmem:[%s14199_s6 + $0x80] sm:$0xf] %vm8663_vm4, %v10214_v35  ;;  %v10215_v45 = vpack.c.bf16 %v8056_v62, %v8056_v62  ;;  %8699 = vst.msk [vmem:[%s14199_s6 + $0x8c] sm:$0xf] %vm8663_vm4, %v10217_v16  ;;  %v7541_v25 = vadd.f32 %v7153_v47, %v452_v37  ;;  %v7934_v63 = vadd.f32 %v14161_v2, %v7799_v14  ;;  %v7797_v6 = vld [vmem:[#allocation2 + $0x128] sm:$0xff]  ;;  %v7165_v57 = vpop.f32.mrb[45].mxu1 }
 0x554   : > { %v8061_v48 = vmax.f32 %v7933_v28, 0.0  ;;  %7672 = vst.msk [vmem:[#allocation2 + $0x158] sm:$0xff] %vm282_vm3, %v7543_v17  ;;  %v8059_v55 = vmax.f32 %v7931_v1, 0.0  ;;  %v7932_v19 = vadd.f32 %v14161_v2, %v7797_v6  ;;  %v7174_v30 = vadd.f32 %v15353_v15, %v10426_v59  ;;  %v6790_v10 = vpop.f32.mrb[173].mxu0  ;;  %v15355_v2 = vld [vmem:[#allocation69_spill] sm:$0xff]  ;;  %v10427_v16 = vpop.f32.mrb[46].mxu1 }
 0x555   : > { %8697 = vst.msk [vmem:[%s14199_s6 + $0x84] sm:$0xf] %vm8663_vm4, %v10215_v45  ;;  %v8062_v23 = vmax.f32 %v7934_v63, 0.0  ;;  %v14444_v60 = vadd.f32 %v6788_v0, %v15354_v3  ;;  %v7166_v13 = vadd.f32 %v15355_v2, %v7165_v57  ;;  %v6791_v39 = vpop.f32.mrb[174].mxu0  ;;  %v15356_v9 = vld [vmem:[#allocation75_spill] sm:$0xff]  ;;  %v456_v18 = vld [vmem:[#allocation2 + $0x168] sm:$0xff] }
 0x556   : > { %7670 = vst.msk [vmem:[#allocation2 + $0x148] sm:$0xff] %vm282_vm3, %v7541_v25  ;;  %v10220_v20 = vpack.c.bf16 %v8061_v48, %v8061_v48  ;;  %v10218_v35 = vpack.c.bf16 %v8059_v55, %v8059_v55  ;;  %v8060_v62 = vmax.f32 %v7932_v19, 0.0  ;;  %v7546_v52 = vadd.f32 %v7174_v30, %v457_v21  ;;  %v7168_v45 = vpop.f32.mrb[47].mxu1  ;;  %v15357_v26 = vld [vmem:[#allocation44_spill] sm:$0xff]  ;;  %v6793_v47 = vpop.f32.mrb[175].mxu0  ;;  %v15358_v28 = vld [vmem:[#allocation71_spill] sm:$0xff] }
 0x557   : > { %v10221_v38 = vpack.c.bf16 %v8062_v23, %v8062_v23  ;;  %v7177_v37 = vadd.f32 %v15356_v9, %v10427_v16  ;;  %v7544_v11 = vadd.f32 %v7166_v13, %v455_v27  ;;  %v14453_v32 = vadd.f32 %v6791_v39, %v15357_v26  ;;  %v14461_v17 = vld [vmem:[%s15209_s2] ss:$0 sm:$0xff]  ;;  %v461_v23 = vld [vmem:[#allocation2 + $0x190] sm:$0xff]  ;;  %v10430_v0 = vpop.f32.mrb[48].mxu1  ;;  %v462_v39 = vld [vmem:[#allocation2 + $0x198] sm:$0xff] }
 0x558   : > { %8702 = vst.msk [vmem:[%s14199_s6 + $0x98] sm:$0xf] %vm8663_vm4, %v10220_v20  ;;  %8700 = vst.msk [vmem:[%s14199_s6 + $0x90] sm:$0xf] %vm8663_vm4, %v10218_v35  ;;  %v10219_v8 = vpack.c.bf16 %v8060_v62, %v8060_v62  ;;  %v7169_v12 = vadd.f32 %v15358_v28, %v7168_v45  ;;  %v15359_v57 = vld [vmem:[#allocation7_spill] sm:$0xff]  ;;  %v7181_v3 = vpop.f32.mrb[49].mxu1 }
 0x559   : > { %v7802_v34 = vld [vmem:[#allocation2 + $0x150] sm:$0xff]  ;;  %8703 = vst.msk [vmem:[%s14199_s6 + $0x9c] sm:$0xf] %vm8663_vm4, %v10221_v38  ;;  %v7800_v14 = vld [vmem:[#allocation2 + $0x140] sm:$0xff]  ;;  %v7547_v25 = vadd.f32 %v7177_v37, %v458_v33  ;;  %v7190_v35 = vadd.f32 %v15359_v57, %v10430_v0  ;;  %v10431_v9 = vpop.f32.mrb[50].mxu1 }
 0x55a   : > { %v7937_v1 = vadd.f32 %v14461_v17, %v7802_v34  ;;  %7675 = vst.msk [vmem:[#allocation2 + $0x170] sm:$0xff] %vm282_vm3, %v7546_v52  ;;  %v7935_v48 = vadd.f32 %v14461_v17, %v7800_v14  ;;  %7673 = vst.msk [vmem:[#allocation2 + $0x160] sm:$0xff] %vm282_vm3, %v7544_v11  ;;  %v7545_v6 = vadd.f32 %v7169_v12, %v456_v18  ;;  %v459_v62 = vld [vmem:[#allocation2 + $0x180] sm:$0xff]  ;;  %v15360_v13 = vld [vmem:[#allocation45_spill] sm:$0xff]  ;;  %v7184_v26 = vpop.f32.mrb[51].mxu1 }
 0x55b   : > { %8701 = vst.msk [vmem:[%s14199_s6 + $0x94] sm:$0xf] %vm8663_vm4, %v10219_v8  ;;  %v7803_v63 = vld [vmem:[#allocation2 + $0x158] sm:$0xff]  ;;  %v15361_v38 = vld [vmem:[#allocation77_spill] sm:$0xff]  ;;  %v7550_v18 = vadd.f32 %v7190_v35, %v461_v23  ;;  %v15362_v8 = vld [vmem:[#allocation8_spill] sm:$0xff]  ;;  %v10434_v35 = vpop.f32.mrb[52].mxu1 }
 0x55c   : > { %v8065_v55 = vmax.f32 %v7937_v1, 0.0  ;;  %v7938_v19 = vadd.f32 %v14461_v17, %v7803_v63  ;;  %7676 = vst.msk [vmem:[#allocation2 + $0x178] sm:$0xff] %vm282_vm3, %v7547_v25  ;;  %v8063_v59 = vmax.f32 %v7935_v48, 0.0  ;;  %7674 = vst.msk [vmem:[#allocation2 + $0x168] sm:$0xff] %vm282_vm3, %v7545_v6  ;;  %v7182_v52 = vadd.f32 %v15361_v38, %v7181_v3  ;;  %v460_v11 = vld [vmem:[#allocation2 + $0x188] sm:$0xff]  ;;  %v15363_v1 = vld [vmem:[#allocation46_spill] sm:$0xff] }
 0x55d   : > { %v7801_v21 = vld [vmem:[#allocation2 + $0x148] sm:$0xff]  ;;  %v7193_v34 = vadd.f32 %v15362_v8, %v10431_v9  ;;  %v15364_v48 = vld [vmem:[#allocation79_spill] sm:$0xff]  ;;  %7679 = vst.msk [vmem:[#allocation2 + $0x190] sm:$0xff] %vm282_vm3, %v7550_v18  ;;  %v465_v57 = vld [vmem:[#allocation2 + $0x1b0] sm:$0xff]  ;;  %v7197_v38 = vpop.f32.mrb[53].mxu1 }
 0x55e   : > { %v7936_v20 = vadd.f32 %v14461_v17, %v7801_v21  ;;  %v10224_v15 = vpack.c.bf16 %v8065_v55, %v8065_v55  ;;  %v8066_v30 = vmax.f32 %v7938_v19, 0.0  ;;  %v10222_v10 = vpack.c.bf16 %v8063_v59, %v8063_v59  ;;  %v15366_v9 = vld [vmem:[#allocation47_spill] sm:$0xff] }
 0x55f   : > { %v7548_v12 = vadd.f32 %v7182_v52, %v459_v62  ;;  %v7185_v63 = vadd.f32 %v15364_v48, %v7184_v26  ;;  %v7551_v19 = vadd.f32 %v7193_v34, %v462_v39  ;;  %v466_v34 = vld [vmem:[#allocation2 + $0x1b8] sm:$0xff] }
 0x560   : > { %v8064_v2 = vmax.f32 %v7936_v20, 0.0  ;;  %8706 = vst.msk [vmem:[%s14199_s6 + $0xa8] sm:$0xf] %vm8663_vm4, %v10224_v15  ;;  %v10225_v37 = vpack.c.bf16 %v8066_v30, %v8066_v30  ;;  %8704 = vst.msk [vmem:[%s14199_s6 + $0xa0] sm:$0xf] %vm8663_vm4, %v10222_v10 }
 0x561   : > { %v7806_v28 = vld [vmem:[#allocation2 + $0x170] sm:$0xff]  ;;  %v7804_v55 = vld [vmem:[#allocation2 + $0x160] sm:$0xff]  ;;  %7677 = vst.msk [vmem:[#allocation2 + $0x180] sm:$0xff] %vm282_vm3, %v7548_v12  ;;  %v7549_v20 = vadd.f32 %v7185_v63, %v460_v11  ;;  %7680 = vst.msk [vmem:[#allocation2 + $0x198] sm:$0xff] %vm282_vm3, %v7551_v19  ;;  %v10435_v11 = vpop.f32.mrb[54].mxu1 }
 0x562   : > { %v10223_v47 = vpack.c.bf16 %v8064_v2, %v8064_v2  ;;  %8707 = vst.msk [vmem:[%s14199_s6 + $0xac] sm:$0xf] %vm8663_vm4, %v10225_v37  ;;  %v7941_v6 = vadd.f32 %v14461_v17, %v7806_v28  ;;  %v7939_v21 = vadd.f32 %v14461_v17, %v7804_v55  ;;  %v15365_v2 = vld [vmem:[#allocation11_spill] sm:$0xff]  ;;  %v15368_v12 = vld [vmem:[#allocation12_spill] sm:$0xff]  ;;  %v7200_v48 = vpop.f32.mrb[55].mxu1 }
 0x563   : > { %v7807_v59 = vld [vmem:[#allocation2 + $0x178] sm:$0xff]  ;;  %v7805_v15 = vld [vmem:[#allocation2 + $0x168] sm:$0xff]  ;;  %7678 = vst.msk [vmem:[#allocation2 + $0x188] sm:$0xff] %vm282_vm3, %v7549_v20 }
 0x564   : > { %8705 = vst.msk [vmem:[%s14199_s6 + $0xa4] sm:$0xf] %vm8663_vm4, %v10223_v47  ;;  %v8069_v23 = vmax.f32 %v7941_v6, 0.0  ;;  %v7942_v0 = vadd.f32 %v14461_v17, %v7807_v59  ;;  %v8067_v30 = vmax.f32 %v7939_v21, 0.0  ;;  %v7810_v6 = vld [vmem:[#allocation2 + $0x190] sm:$0xff]  ;;  %v15369_v19 = vld [vmem:[#allocation48_spill] sm:$0xff] }
 0x565   : > { %v15370_v20 = vld [vmem:[#allocation10_spill] sm:$0xff] }
 0x566   : > { %v10228_v62 = vpack.c.bf16 %v8069_v23, %v8069_v23  ;;  %v8070_v3 = vmax.f32 %v7942_v0, 0.0  ;;  %v10226_v52 = vpack.c.bf16 %v8067_v30, %v8067_v30  ;;  %v7201_v23 = vadd.f32 %v15370_v20, %v7200_v48  ;;  %v470_v48 = vld [vmem:[#allocation2 + $0x1d8] sm:$0xff] }
 0x567   : > { %v7945_v0 = vadd.f32 %v14461_v17, %v7810_v6 }
 0x568   : > { %8710 = vst.msk [vmem:[%s14199_s6 + $0xb8] sm:$0xf] %vm8663_vm4, %v10228_v62  ;;  %v10229_v26 = vpack.c.bf16 %v8070_v3, %v8070_v3  ;;  %8708 = vst.msk [vmem:[%s14199_s6 + $0xb0] sm:$0xf] %vm8663_vm4, %v10226_v52 }
 0x569   : > { %v8073_v62 = vmax.f32 %v7945_v0, 0.0 }
 0x56a   : > { %8711 = vst.msk [vmem:[%s14199_s6 + $0xbc] sm:$0xf] %vm8663_vm4, %v10229_v26 }
 0x56b   : > { %v6796_v27 = vpop.f32.mrb[176].mxu0  ;;  %v10232_v52 = vpack.c.bf16 %v8073_v62, %v8073_v62 }
 0x56c   : > { %v14475_v33 = vadd.f32 %v6796_v27, %v15360_v13  ;;  %v6798_v16 = vpop.f32.mrb[177].mxu0  ;;  %v7940_v27 = vadd.f32 %v14461_v17, %v7805_v15  ;;  %v7206_v13 = vadd.f32 %v15365_v2, %v10434_v35  ;;  %v7808_v15 = vld [vmem:[#allocation2 + $0x180] sm:$0xff] }
 0x56d   : > { %v6799_v45 = vpop.f32.mrb[178].mxu0  ;;  %v463_v16 = vld [vmem:[#allocation2 + $0x1a0] sm:$0xff]  ;;  %8714 = vst.msk [vmem:[%s14199_s6 + $0xc8] sm:$0xf] %vm8663_vm4, %v10232_v52 }
 0x56e   : > { %v14484_v14 = vadd.f32 %v6799_v45, %v15363_v1  ;;  %v6801_v25 = vpop.f32.mrb[179].mxu0  ;;  %v8068_v39 = vmax.f32 %v7940_v27, 0.0  ;;  %v15367_v45 = vld [vmem:[#allocation9_spill] sm:$0xff]  ;;  %v7554_v47 = vadd.f32 %v7206_v13, %v465_v57  ;;  %v7209_v1 = vadd.f32 %v15368_v12, %v10435_v11  ;;  %v7811_v57 = vld [vmem:[#allocation2 + $0x198] sm:$0xff] }
 0x56f   : > { %v7198_v8 = vadd.f32 %v15367_v45, %v7197_v38  ;;  %v464_v25 = vld [vmem:[#allocation2 + $0x1a8] sm:$0xff]  ;;  %v7943_v27 = vadd.f32 %v14461_v17, %v7808_v15  ;;  %v7946_v3 = vadd.f32 %v14461_v17, %v7811_v57  ;;  %v15375_v57 = vld [vmem:[#allocation50_spill] sm:$0xff] }
 0x570   : > { %v10227_v63 = vpack.c.bf16 %v8068_v39, %v8068_v39  ;;  %7683 = vst.msk [vmem:[#allocation2 + $0x1b0] sm:$0xff] %vm282_vm3, %v7554_v47  ;;  %v7555_v30 = vadd.f32 %v7209_v1, %v466_v34  ;;  %v7553_v35 = vadd.f32 %v7201_v23, %v464_v25  ;;  %v10438_v38 = vpop.f32.mrb[56].mxu1  ;;  %v15372_v47 = vld [vmem:[#allocation49_spill] sm:$0xff]  ;;  %v468_v23 = vld [vmem:[#allocation2 + $0x1c8] sm:$0xff] }
 0x571   : > { %v7552_v55 = vadd.f32 %v7198_v8, %v463_v16  ;;  %v8071_v2 = vmax.f32 %v7943_v27, 0.0  ;;  %v469_v16 = vld [vmem:[#allocation2 + $0x1d0] sm:$0xff]  ;;  %v8074_v39 = vmax.f32 %v7946_v3, 0.0  ;;  %v467_v8 = vld [vmem:[#allocation2 + $0x1c0] sm:$0xff]  ;;  %v7213_v34 = vpop.f32.mrb[57].mxu1  ;;  %v15376_v3 = vld [vmem:[#allocation14_spill] sm:$0xff] }
 0x572   : > { %8709 = vst.msk [vmem:[%s14199_s6 + $0xb4] sm:$0xf] %vm8663_vm4, %v10227_v63  ;;  %v15373_v1 = vld [vmem:[#allocation13_spill] sm:$0xff]  ;;  %v10439_v63 = vpop.f32.mrb[58].mxu1 }
 0x573   : > { %v6804_v10 = vpop.f32.mrb[180].mxu0  ;;  %7681 = vst.msk [vmem:[#allocation2 + $0x1a0] sm:$0xff] %vm282_vm3, %v7552_v55  ;;  %7684 = vst.msk [vmem:[#allocation2 + $0x1b8] sm:$0xff] %vm282_vm3, %v7555_v30  ;;  %v10230_v11 = vpack.c.bf16 %v8071_v2, %v8071_v2  ;;  %v7214_v25 = vadd.f32 %v15373_v1, %v7213_v34  ;;  %v10233_v6 = vpack.c.bf16 %v8074_v39, %v8074_v39  ;;  %v7216_v0 = vpop.f32.mrb[59].mxu1 }
 0x574   : > { %v14501_v37 = vadd.f32 %v6804_v10, %v15366_v9  ;;  %v6806_v18 = vpop.f32.mrb[181].mxu0  ;;  %v7809_v10 = vld [vmem:[#allocation2 + $0x188] sm:$0xff]  ;;  %7682 = vst.msk [vmem:[#allocation2 + $0x1a8] sm:$0xff] %vm282_vm3, %v7553_v35 }
 0x575   : > { %v6807_v28 = vpop.f32.mrb[182].mxu0  ;;  %v7944_v13 = vadd.f32 %v14461_v17, %v7809_v10  ;;  %v15371_v18 = vld [vmem:[#allocation15_spill] sm:$0xff]  ;;  %8712 = vst.msk [vmem:[%s14199_s6 + $0xc0] sm:$0xf] %vm8663_vm4, %v10230_v11  ;;  %v7556_v27 = vadd.f32 %v7214_v25, %v467_v8  ;;  %v7217_v10 = vadd.f32 %v15376_v3, %v7216_v0  ;;  %8715 = vst.msk [vmem:[%s14199_s6 + $0xcc] sm:$0xf] %vm8663_vm4, %v10233_v6 }
 0x576   : > { %v14510_v21 = vadd.f32 %v6807_v28, %v15369_v19  ;;  %v6809_v59 = vpop.f32.mrb[183].mxu0  ;;  %v7222_v45 = vadd.f32 %v15371_v18, %v10438_v38  ;;  %v473_v11 = vld [vmem:[#allocation2 + $0x1f0] sm:$0xff]  ;;  %v15377_v25 = vld [vmem:[#allocation19_spill] sm:$0xff] }
 0x577   : > { %v8072_v26 = vmax.f32 %v7944_v13, 0.0  ;;  %v15374_v59 = vld [vmem:[#allocation16_spill] sm:$0xff]  ;;  %v7814_v30 = vld [vmem:[#allocation2 + $0x1b0] sm:$0xff]  ;;  %7685 = vst.msk [vmem:[#allocation2 + $0x1c0] sm:$0xff] %vm282_vm3, %v7556_v27  ;;  %v7557_v39 = vadd.f32 %v7217_v10, %v468_v23 }
 0x578   : > { %v7558_v55 = vadd.f32 %v7222_v45, %v469_v16  ;;  %v7225_v20 = vadd.f32 %v15374_v59, %v10439_v63  ;;  %v7949_v2 = vadd.f32 %v14461_v17, %v7814_v30  ;;  %v471_v63 = vld [vmem:[#allocation2 + $0x1e0] sm:$0xff]  ;;  %v15378_v59 = vld [vmem:[#allocation52_spill] sm:$0xff]  ;;  %v15379_v0 = vld [vmem:[#allocation17_spill] sm:$0xff] }
 0x579   : > { %v10231_v15 = vpack.c.bf16 %v8072_v26, %v8072_v26  ;;  %7686 = vst.msk [vmem:[#allocation2 + $0x1c8] sm:$0xff] %vm282_vm3, %v7557_v39  ;;  %v10442_v26 = vpop.f32.mrb[60].mxu1  ;;  %v474_v30 = vld [vmem:[#allocation2 + $0x1f8] sm:$0xff]  ;;  %v15380_v10 = vld [vmem:[#allocation20_spill] sm:$0xff] }
 0x57a   : > { %v7812_v13 = vld [vmem:[#allocation2 + $0x1a0] sm:$0xff]  ;;  %7687 = vst.msk [vmem:[#allocation2 + $0x1d0] sm:$0xff] %vm282_vm3, %v7558_v55  ;;  %v7559_v16 = vadd.f32 %v7225_v20, %v470_v48  ;;  %v7815_v52 = vld [vmem:[#allocation2 + $0x1b8] sm:$0xff]  ;;  %v7238_v48 = vadd.f32 %v15377_v25, %v10442_v26  ;;  %v7229_v6 = vpop.f32.mrb[61].mxu1 }
 0x57b   : > { %v6812_v9 = vpop.f32.mrb[184].mxu0  ;;  %8713 = vst.msk [vmem:[%s14199_s6 + $0xc4] sm:$0xf] %vm8663_vm4, %v10231_v15  ;;  %v7947_v38 = vadd.f32 %v14461_v17, %v7812_v13  ;;  %v7950_v18 = vadd.f32 %v14461_v17, %v7815_v52  ;;  %v7813_v45 = vld [vmem:[#allocation2 + $0x1a8] sm:$0xff]  ;;  %v7230_v15 = vadd.f32 %v15379_v0, %v7229_v6  ;;  %v10443_v27 = vpop.f32.mrb[62].mxu1 }
 0x57c   : > { %v14527_v28 = vadd.f32 %v6812_v9, %v15372_v47  ;;  %v6814_v12 = vpop.f32.mrb[185].mxu0  ;;  %v8077_v9 = vmax.f32 %v7949_v2, 0.0  ;;  %7688 = vst.msk [vmem:[#allocation2 + $0x1d8] sm:$0xff] %vm282_vm3, %v7559_v16  ;;  %v7948_v34 = vadd.f32 %v14461_v17, %v7813_v45  ;;  %v7241_v2 = vadd.f32 %v15380_v10, %v10443_v27  ;;  %v472_v13 = vld [vmem:[#allocation2 + $0x1e8] sm:$0xff]  ;;  %v7232_v16 = vpop.f32.mrb[63].mxu1 }
 0x57d   : > { %v6815_v19 = vpop.f32.mrb[186].mxu0  ;;  %v8075_v8 = vmax.f32 %v7947_v38, 0.0  ;;  %v8078_v12 = vmax.f32 %v7950_v18, 0.0  ;;  %v7560_v39 = vadd.f32 %v7230_v15, %v471_v63 }
 0x57e   : > { %v14536_v35 = vadd.f32 %v6815_v19, %v15375_v57  ;;  %v6817_v62 = vpop.f32.mrb[187].mxu0  ;;  %v10236_v47 = vpack.c.bf16 %v8077_v9, %v8077_v9  ;;  %v8076_v19 = vmax.f32 %v7948_v34, 0.0  ;;  %v15381_v9 = vld [vmem:[#allocation53_spill] sm:$0xff]  ;;  %v7816_v26 = vld [vmem:[#allocation2 + $0x1c0] sm:$0xff] }
 0x57f   : > { %v10234_v55 = vpack.c.bf16 %v8075_v8, %v8075_v8  ;;  %v10237_v57 = vpack.c.bf16 %v8078_v12, %v8078_v12  ;;  %v7562_v62 = vadd.f32 %v7238_v48, %v473_v11  ;;  %v15382_v8 = vld [vmem:[#allocation18_spill] sm:$0xff]  ;;  %v7951_v12 = vadd.f32 %v14461_v17, %v7816_v26  ;;  %7689 = vst.msk [vmem:[#allocation2 + $0x1e0] sm:$0xff] %vm282_vm3, %v7560_v39 }
 0x580   : > { %8718 = vst.msk [vmem:[%s14199_s6 + $0xd8] sm:$0xf] %vm8663_vm4, %v10236_v47  ;;  %v10235_v38 = vpack.c.bf16 %v8076_v19, %v8076_v19  ;;  %v7233_v34 = vadd.f32 %v15382_v8, %v7232_v16  ;;  %v7563_v47 = vadd.f32 %v7241_v2, %v474_v30  ;;  %v7817_v6 = vld [vmem:[#allocation2 + $0x1c8] sm:$0xff]  ;;  %v15383_v2 = vld [vmem:[#allocation54_spill] sm:$0xff] }
 0x581   : > { %8716 = vst.msk [vmem:[%s14199_s6 + $0xd0] sm:$0xf] %vm8663_vm4, %v10234_v55  ;;  %v7818_v52 = vld [vmem:[#allocation2 + $0x1d0] sm:$0xff]  ;;  %8719 = vst.msk [vmem:[%s14199_s6 + $0xdc] sm:$0xf] %vm8663_vm4, %v10237_v57  ;;  %v8079_v55 = vmax.f32 %v7951_v12, 0.0  ;;  %v7952_v19 = vadd.f32 %v14461_v17, %v7817_v6 }
 0x582   : > { %v7953_v11 = vadd.f32 %v14461_v17, %v7818_v52  ;;  %7691 = vst.msk [vmem:[#allocation2 + $0x1f0] sm:$0xff] %vm282_vm3, %v7562_v62  ;;  %v7561_v25 = vadd.f32 %v7233_v34, %v472_v13  ;;  %7692 = vst.msk [vmem:[#allocation2 + $0x1f8] sm:$0xff] %vm282_vm3, %v7563_v47  ;;  %v475_v57 = vld [vmem:[#allocation2 + $0x200] sm:$0xff]  ;;  %v478_v52 = vld [vmem:[#allocation2 + $0x218] sm:$0xff] }
 0x583   : > { %v6820_v1 = vpop.f32.mrb[188].mxu0  ;;  %8717 = vst.msk [vmem:[%s14199_s6 + $0xd4] sm:$0xf] %vm8663_vm4, %v10235_v38  ;;  %v8080_v10 = vmax.f32 %v7952_v19, 0.0  ;;  %v476_v34 = vld [vmem:[#allocation2 + $0x208] sm:$0xff] }
 0x584   : > { %v14553_v20 = vadd.f32 %v6820_v1, %v15378_v59  ;;  %v6822_v23 = vpop.f32.mrb[189].mxu0  ;;  %v7819_v1 = vld [vmem:[#allocation2 + $0x1d8] sm:$0xff]  ;;  %v8081_v48 = vmax.f32 %v7953_v11, 0.0  ;;  %7690 = vst.msk [vmem:[#allocation2 + $0x1e8] sm:$0xff] %vm282_vm3, %v7561_v25  ;;  %v477_v59 = vld [vmem:[#allocation2 + $0x210] sm:$0xff] }
 0x585   : > { %v6823_v3 = vpop.f32.mrb[190].mxu0  ;;  %v7954_v63 = vadd.f32 %v14461_v17, %v7819_v1  ;;  %v10446_v23 = vpop.f32.mrb[64].mxu1  ;;  %v10239_v26 = vpack.c.bf16 %v8080_v10, %v8080_v10  ;;  %v15384_v1 = vld [vmem:[#allocation55_spill] sm:$0xff] }
 0x586   : > { %v14562_v18 = vadd.f32 %v6823_v3, %v15381_v9  ;;  %v6825_v45 = vpop.f32.mrb[191].mxu0  ;;  %v10240_v0 = vpack.c.bf16 %v8081_v48, %v8081_v48  ;;  %v7254_v27 = vadd.f32 %v14167_v51, %v10446_v23  ;;  %v7245_v62 = vpop.f32.mrb[65].mxu1  ;;  %v10238_v3 = vpack.c.bf16 %v8079_v55, %v8079_v55  ;;  %v7820_v6 = vld [vmem:[#allocation2 + $0x1e0] sm:$0xff] }
 0x587   : > { %v8082_v15 = vmax.f32 %v7954_v63, 0.0  ;;  %v7246_v38 = vadd.f32 %v14143_v53, %v7245_v62  ;;  %v10447_v39 = vpop.f32.mrb[66].mxu1  ;;  %8721 = vst.msk [vmem:[%s14199_s6 + $0xe4] sm:$0xf] %vm8663_vm4, %v10239_v26  ;;  %v7955_v55 = vadd.f32 %v14461_v17, %v7820_v6 }
 0x588   : > { %8722 = vst.msk [vmem:[%s14199_s6 + $0xe8] sm:$0xf] %vm8663_vm4, %v10240_v0  ;;  %v7566_v45 = vadd.f32 %v7254_v27, %v477_v59  ;;  %v7257_v51 = vadd.f32 %v14176_v40, %v10447_v39  ;;  %v7248_v11 = vpop.f32.mrb[67].mxu1  ;;  %8720 = vst.msk [vmem:[%s14199_s6 + $0xe0] sm:$0xf] %vm8663_vm4, %v10238_v3  ;;  %v481_v27 = vld [vmem:[#allocation2 + $0x230] sm:$0xff] }
 0x589   : > { %v10241_v9 = vpack.c.bf16 %v8082_v15, %v8082_v15  ;;  %v7822_v47 = vld [vmem:[#allocation2 + $0x1f0] sm:$0xff]  ;;  %v7564_v12 = vadd.f32 %v7246_v38, %v475_v57  ;;  %v7249_v48 = vadd.f32 %v14150_v56, %v7248_v11  ;;  %v7823_v19 = vld [vmem:[#allocation2 + $0x1f8] sm:$0xff]  ;;  %v8083_v15 = vmax.f32 %v7955_v55, 0.0  ;;  %v10450_v57 = vpop.f32.mrb[68].mxu1 }
 0x58a   : > { %v7957_v63 = vadd.f32 %v14461_v17, %v7822_v47  ;;  %7695 = vst.msk [vmem:[#allocation2 + $0x210] sm:$0xff] %vm282_vm3, %v7566_v45  ;;  %v7567_v40 = vadd.f32 %v7257_v51, %v478_v52  ;;  %v7958_v0 = vadd.f32 %v14461_v17, %v7823_v19  ;;  %v7261_v38 = vpop.f32.mrb[69].mxu1 }
 0x58b   : > { %v6828_v30 = vpop.f32.mrb[192].mxu0  ;;  %8723 = vst.msk [vmem:[%s14199_s6 + $0xec] sm:$0xf] %vm8663_vm4, %v10241_v9  ;;  %v7565_v59 = vadd.f32 %v7249_v48, %v476_v34  ;;  %v7821_v56 = vld [vmem:[#allocation2 + $0x1e8] sm:$0xff]  ;;  %v10242_v52 = vpack.c.bf16 %v8083_v15, %v8083_v15  ;;  %v7262_v51 = vadd.f32 %v14193_v43, %v7261_v38  ;;  %v482_v34 = vld [vmem:[#allocation2 + $0x238] sm:$0xff]  ;;  %v10451_v11 = vpop.f32.mrb[70].mxu1 }
 0x58c   : > { %v14579_v13 = vadd.f32 %v6828_v30, %v15383_v2  ;;  %v6830_v16 = vpop.f32.mrb[193].mxu0  ;;  %7693 = vst.msk [vmem:[#allocation2 + $0x200] sm:$0xff] %vm282_vm3, %v7564_v12  ;;  %v8085_v23 = vmax.f32 %v7957_v63, 0.0  ;;  %7696 = vst.msk [vmem:[#allocation2 + $0x218] sm:$0xff] %vm282_vm3, %v7567_v40  ;;  %v7956_v30 = vadd.f32 %v14461_v17, %v7821_v56  ;;  %v8086_v3 = vmax.f32 %v7958_v0, 0.0  ;;  %v15385_v9 = vld [vmem:[#allocation56_spill] sm:$0xff] }
 0x58d   : > { %v6831_v8 = vpop.f32.mrb[194].mxu0  ;;  %7694 = vst.msk [vmem:[#allocation2 + $0x208] sm:$0xff] %vm282_vm3, %v7565_v59  ;;  %v7270_v2 = vadd.f32 %v14229_v5, %v10450_v57  ;;  %v479_v16 = vld [vmem:[#allocation2 + $0x220] sm:$0xff]  ;;  %v7273_v5 = vadd.f32 %v14240_v22, %v10451_v11  ;;  %v15386_v40 = vld [vmem:[#allocation57_spill] sm:$0xff] }
 0x58e   : > { %v14588_v53 = vadd.f32 %v6831_v8, %v15384_v1  ;;  %v6833_v25 = vpop.f32.mrb[195].mxu0  ;;  %v10244_v62 = vpack.c.bf16 %v8085_v23, %v8085_v23  ;;  %v8084_v39 = vmax.f32 %v7956_v30, 0.0  ;;  %v10245_v26 = vpack.c.bf16 %v8086_v3, %v8086_v3  ;;  %v480_v1 = vld [vmem:[#allocation2 + $0x228] sm:$0xff]  ;;  %8724 = vst.msk [vmem:[%s14199_s6 + $0xf0] sm:$0xf] %vm8663_vm4, %v10242_v52  ;;  %v485_v3 = vld [vmem:[#allocation2 + $0x250] sm:$0xff] }
 0x58f   : > { %v7570_v47 = vadd.f32 %v7270_v2, %v481_v27  ;;  %v7264_v25 = vpop.f32.mrb[71].mxu1  ;;  %v7568_v6 = vadd.f32 %v7262_v51, %v479_v16  ;;  %v7571_v22 = vadd.f32 %v7273_v5, %v482_v34  ;;  %v15387_v34 = vld [vmem:[#allocation58_spill] sm:$0xff] }
 0x590   : > { %8726 = vst.msk [vmem:[%s14199_s6 + $0xf8] sm:$0xf] %vm8663_vm4, %v10244_v62  ;;  %v10243_v48 = vpack.c.bf16 %v8084_v39, %v8084_v39  ;;  %v7265_v19 = vadd.f32 %v14208_v7, %v7264_v25  ;;  %8727 = vst.msk [vmem:[%s14199_s6 + $0xfc] sm:$0xf] %vm8663_vm4, %v10245_v26  ;;  %v483_v39 = vld [vmem:[#allocation2 + $0x240] sm:$0xff] }
 0x591   : > { %v7826_v63 = vld [vmem:[#allocation2 + $0x210] sm:$0xff]  ;;  %7699 = vst.msk [vmem:[#allocation2 + $0x230] sm:$0xff] %vm282_vm3, %v7570_v47  ;;  %7697 = vst.msk [vmem:[#allocation2 + $0x220] sm:$0xff] %vm282_vm3, %v7568_v6 }
 0x592   : > { %v7961_v59 = vadd.f32 %v14461_v17, %v7826_v63  ;;  %8725 = vst.msk [vmem:[%s14199_s6 + $0xf4] sm:$0xf] %vm8663_vm4, %v10243_v48  ;;  %v7569_v15 = vadd.f32 %v7265_v19, %v480_v1  ;;  %v484_v63 = vld [vmem:[#allocation2 + $0x248] sm:$0xff] }
 0x593   : > { %v6836_v10 = vpop.f32.mrb[196].mxu0  ;;  %v7824_v23 = vld [vmem:[#allocation2 + $0x200] sm:$0xff]  ;;  %v7827_v56 = vld [vmem:[#allocation2 + $0x218] sm:$0xff]  ;;  %7700 = vst.msk [vmem:[#allocation2 + $0x238] sm:$0xff] %vm282_vm3, %v7571_v22 }
 0x594   : > { %v14605_v45 = vadd.f32 %v6836_v10, %v15385_v9  ;;  %v6838_v8 = vpop.f32.mrb[197].mxu0  ;;  %v7959_v0 = vadd.f32 %v14461_v17, %v7824_v23  ;;  %v8089_v30 = vmax.f32 %v7961_v59, 0.0  ;;  %v7962_v27 = vadd.f32 %v14461_v17, %v7827_v56  ;;  %v7825_v7 = vld [vmem:[#allocation2 + $0x208] sm:$0xff]  ;;  %7698 = vst.msk [vmem:[#allocation2 + $0x228] sm:$0xff] %vm282_vm3, %v7569_v15  ;;  %v10454_v10 = vpop.f32.mrb[72].mxu1  ;;  %v15388_v59 = vld [vmem:[#allocation59_spill] sm:$0xff] }
 0x595   : > { %v6839_v12 = vpop.f32.mrb[198].mxu0  ;;  %v7960_v62 = vadd.f32 %v14461_v17, %v7825_v7  ;;  %v7286_v52 = vadd.f32 %v14288_v44, %v10454_v10  ;;  %v7277_v9 = vpop.f32.mrb[73].mxu1  ;;  %v489_v10 = vld [vmem:[#allocation2 + $0x270] sm:$0xff] }
 0x596   : > { %v14614_v43 = vadd.f32 %v6839_v12, %v15386_v40  ;;  %v6841_v55 = vpop.f32.mrb[199].mxu0  ;;  %v8087_v57 = vmax.f32 %v7959_v0, 0.0  ;;  %v10248_v2 = vpack.c.bf16 %v8089_v30, %v8089_v30  ;;  %v8090_v16 = vmax.f32 %v7962_v27, 0.0  ;;  %v486_v12 = vld [vmem:[#allocation2 + $0x258] sm:$0xff]  ;;  %v10455_v5 = vpop.f32.mrb[74].mxu1 }
 0x597   : > { %v8088_v51 = vmax.f32 %v7960_v62, 0.0  ;;  %v7278_v47 = vadd.f32 %v14260_v61, %v7277_v9  ;;  %v7574_v25 = vadd.f32 %v7286_v52, %v485_v3  ;;  %v7289_v44 = vadd.f32 %v14297_v54, %v10455_v5  ;;  %v7280_v6 = vpop.f32.mrb[75].mxu1  ;;  %v487_v9 = vld [vmem:[#allocation2 + $0x260] sm:$0xff] }
 0x598   : > { %v10246_v8 = vpack.c.bf16 %v8087_v57, %v8087_v57  ;;  %8730 = vst.msk [vmem:[%s14199_s6 + $0x108] sm:$0xf] %vm8663_vm4, %v10248_v2  ;;  %v10249_v1 = vpack.c.bf16 %v8090_v16, %v8090_v16  ;;  %v7830_v55 = vld [vmem:[#allocation2 + $0x230] sm:$0xff]  ;;  %v7281_v22 = vadd.f32 %v14270_v46, %v7280_v6  ;;  %v7828_v56 = vld [vmem:[#allocation2 + $0x220] sm:$0xff]  ;;  %v10458_v2 = vpop.f32.mrb[76].mxu1  ;;  %v488_v6 = vld [vmem:[#allocation2 + $0x268] sm:$0xff] }
 0x599   : > { %v10247_v40 = vpack.c.bf16 %v8088_v51, %v8088_v51  ;;  %v7572_v19 = vadd.f32 %v7278_v47, %v483_v39  ;;  %v7965_v0 = vadd.f32 %v14461_v17, %v7830_v55  ;;  %7703 = vst.msk [vmem:[#allocation2 + $0x250] sm:$0xff] %vm282_vm3, %v7574_v25  ;;  %v7575_v54 = vadd.f32 %v7289_v44, %v486_v12 }
 0x59a   : > { %8728 = vst.msk [vmem:[%s14199_s6 + $0x100] sm:$0xf] %vm8663_vm4, %v10246_v8  ;;  %8731 = vst.msk [vmem:[%s14199_s6 + $0x10c] sm:$0xf] %vm8663_vm4, %v10249_v1  ;;  %v7963_v15 = vadd.f32 %v14461_v17, %v7828_v56  ;;  %v7831_v30 = vld [vmem:[#allocation2 + $0x238] sm:$0xff]  ;;  %v7573_v27 = vadd.f32 %v7281_v22, %v484_v63  ;;  %v7302_v39 = vadd.f32 %v14340_v58, %v10458_v2  ;;  %v7293_v8 = vpop.f32.mrb[77].mxu1 }
 0x59b   : > { %v6844_v38 = vpop.f32.mrb[200].mxu0  ;;  %8729 = vst.msk [vmem:[%s14199_s6 + $0x104] sm:$0xf] %vm8663_vm4, %v10247_v40  ;;  %v8093_v7 = vmax.f32 %v7965_v0, 0.0  ;;  %v7966_v57 = vadd.f32 %v14461_v17, %v7831_v30  ;;  %v7829_v46 = vld [vmem:[#allocation2 + $0x228] sm:$0xff]  ;;  %v7294_v5 = vadd.f32 %v14314_v50, %v7293_v8  ;;  %v490_v1 = vld [vmem:[#allocation2 + $0x278] sm:$0xff] }
 0x59c   : > { %v14631_v11 = vadd.f32 %v6844_v38, %v15387_v34  ;;  %v6846_v26 = vpop.f32.mrb[201].mxu0  ;;  %7701 = vst.msk [vmem:[#allocation2 + $0x240] sm:$0xff] %vm282_vm3, %v7572_v19  ;;  %7704 = vst.msk [vmem:[#allocation2 + $0x258] sm:$0xff] %vm282_vm3, %v7575_v54  ;;  %v8091_v62 = vmax.f32 %v7963_v15, 0.0  ;;  %v7964_v3 = vadd.f32 %v14461_v17, %v7829_v46  ;;  %v10459_v25 = vpop.f32.mrb[78].mxu1  ;;  %v7578_v44 = vadd.f32 %v7302_v39, %v489_v10  ;;  %v491_v39 = vld [vmem:[#allocation2 + $0x280] sm:$0xff] }
 0x59d   : > { %v6847_v48 = vpop.f32.mrb[202].mxu0  ;;  %7702 = vst.msk [vmem:[#allocation2 + $0x248] sm:$0xff] %vm282_vm3, %v7573_v27  ;;  %v10252_v16 = vpack.c.bf16 %v8093_v7, %v8093_v7  ;;  %v8094_v38 = vmax.f32 %v7966_v57, 0.0  ;;  %v15389_v26 = vld [vmem:[#allocation60_spill] sm:$0xff]  ;;  %v7305_v58 = vadd.f32 %v14349_v42, %v10459_v25  ;;  %v7296_v40 = vpop.f32.mrb[79].mxu1 }
 0x59e   : > { %v14640_v61 = vadd.f32 %v6847_v48, %v15388_v59  ;;  %v6849_v23 = vpop.f32.mrb[203].mxu0  ;;  %v10250_v51 = vpack.c.bf16 %v8091_v62, %v8091_v62  ;;  %v8092_v34 = vmax.f32 %v7964_v3, 0.0  ;;  %v7576_v59 = vadd.f32 %v7294_v5, %v487_v9  ;;  %7707 = vst.msk [vmem:[#allocation2 + $0x270] sm:$0xff] %vm282_vm3, %v7578_v44  ;;  %v493_v3 = vld [vmem:[#allocation2 + $0x290] sm:$0xff] }
 0x59f   : > { %8734 = vst.msk [vmem:[%s14199_s6 + $0x118] sm:$0xf] %vm8663_vm4, %v10252_v16  ;;  %v10253_v48 = vpack.c.bf16 %v8094_v38, %v8094_v38  ;;  %v15390_v23 = vld [vmem:[#allocation61_spill] sm:$0xff]  ;;  %v7297_v0 = vadd.f32 %v14323_v24, %v7296_v40  ;;  %v7579_v42 = vadd.f32 %v7305_v58, %v490_v1  ;;  %v494_v1 = vld [vmem:[#allocation2 + $0x298] sm:$0xff]  ;;  %v492_v58 = vld [vmem:[#allocation2 + $0x288] sm:$0xff] }
 0x5a0   : > { %8732 = vst.msk [vmem:[%s14199_s6 + $0x110] sm:$0xf] %vm8663_vm4, %v10250_v51  ;;  %v10251_v55 = vpack.c.bf16 %v8092_v34, %v8092_v34  ;;  %v7834_v19 = vld [vmem:[#allocation2 + $0x250] sm:$0xff]  ;;  %v10462_v10 = vpop.f32.mrb[80].mxu1  ;;  %v15391_v34 = vld [vmem:[#allocation62_spill] sm:$0xff] }
 0x5a1   : > { %8735 = vst.msk [vmem:[%s14199_s6 + $0x11c] sm:$0xf] %vm8663_vm4, %v10253_v48  ;;  %v7969_v56 = vadd.f32 %v14461_v17, %v7834_v19  ;;  %v7577_v27 = vadd.f32 %v7297_v0, %v488_v6  ;;  %v7309_v9 = vpop.f32.mrb[81].mxu1 }
 0x5a2   : > { %8733 = vst.msk [vmem:[%s14199_s6 + $0x114] sm:$0xf] %vm8663_vm4, %v10251_v55  ;;  %v7310_v5 = vadd.f32 %v14366_v31, %v7309_v9  ;;  %v10463_v25 = vpop.f32.mrb[82].mxu1  ;;  %v15393_v9 = vld [vmem:[#allocation65_spill] sm:$0xff] }
 0x5a3   : > { %v6852_v52 = vpop.f32.mrb[204].mxu0  ;;  %v7832_v54 = vld [vmem:[#allocation2 + $0x240] sm:$0xff]  ;;  %v7835_v30 = vld [vmem:[#allocation2 + $0x258] sm:$0xff]  ;;  %7705 = vst.msk [vmem:[#allocation2 + $0x260] sm:$0xff] %vm282_vm3, %v7576_v59  ;;  %v8097_v7 = vmax.f32 %v7969_v56, 0.0  ;;  %7708 = vst.msk [vmem:[#allocation2 + $0x278] sm:$0xff] %vm282_vm3, %v7579_v42 }
 0x5a4   : > { %v14657_v47 = vadd.f32 %v6852_v52, %v15389_v26  ;;  %v6854_v12 = vpop.f32.mrb[205].mxu0  ;;  %v7967_v15 = vadd.f32 %v14461_v17, %v7832_v54  ;;  %v7970_v57 = vadd.f32 %v14461_v17, %v7835_v30  ;;  %v7833_v24 = vld [vmem:[#allocation2 + $0x248] sm:$0xff]  ;;  %7706 = vst.msk [vmem:[#allocation2 + $0x268] sm:$0xff] %vm282_vm3, %v7577_v27  ;;  %v7318_v52 = vadd.f32 %v14392_v41, %v10462_v10  ;;  %v7312_v6 = vpop.f32.mrb[83].mxu1  ;;  %v15392_v59 = vld [vmem:[#allocation63_spill] sm:$0xff] }
 0x5a5   : > { %v6855_v63 = vpop.f32.mrb[206].mxu0  ;;  %v7968_v62 = vadd.f32 %v14461_v17, %v7833_v24  ;;  %v10256_v2 = vpack.c.bf16 %v8097_v7, %v8097_v7  ;;  %v7321_v41 = vadd.f32 %v14401_v36, %v10463_v25  ;;  %v7838_v55 = vld [vmem:[#allocation2 + $0x270] sm:$0xff]  ;;  %v7580_v19 = vadd.f32 %v7310_v5, %v491_v39 }
 0x5a6   : > { %v14666_v50 = vadd.f32 %v6855_v63, %v15390_v23  ;;  %v6857_v22 = vpop.f32.mrb[207].mxu0  ;;  %v8095_v46 = vmax.f32 %v7967_v15, 0.0  ;;  %v8098_v16 = vmax.f32 %v7970_v57, 0.0  ;;  %v7582_v44 = vadd.f32 %v7318_v52, %v493_v3  ;;  %v497_v24 = vld [vmem:[#allocation2 + $0x2b0] sm:$0xff] }
 0x5a7   : > { %v8096_v51 = vmax.f32 %v7968_v62, 0.0  ;;  %8738 = vst.msk [vmem:[%s14199_s6 + $0x128] sm:$0xf] %vm8663_vm4, %v10256_v2  ;;  %v7313_v22 = vadd.f32 %v14375_v29, %v7312_v6  ;;  %v7973_v0 = vadd.f32 %v14461_v17, %v7838_v55  ;;  %v7583_v36 = vadd.f32 %v7321_v41, %v494_v1 }
 0x5a8   : > { %v10254_v8 = vpack.c.bf16 %v8095_v46, %v8095_v46  ;;  %v10257_v48 = vpack.c.bf16 %v8098_v16, %v8098_v16  ;;  %7711 = vst.msk [vmem:[#allocation2 + $0x290] sm:$0xff] %vm282_vm3, %v7582_v44  ;;  %7709 = vst.msk [vmem:[#allocation2 + $0x280] sm:$0xff] %vm282_vm3, %v7580_v19  ;;  %v10466_v46 = vpop.f32.mrb[84].mxu1  ;;  %v495_v16 = vld [vmem:[#allocation2 + $0x2a0] sm:$0xff]  ;;  %v496_v44 = vld [vmem:[#allocation2 + $0x2a8] sm:$0xff] }
 0x5a9   : > { %v10255_v40 = vpack.c.bf16 %v8096_v51, %v8096_v51  ;;  %v7581_v15 = vadd.f32 %v7313_v22, %v492_v58  ;;  %v8101_v30 = vmax.f32 %v7973_v0, 0.0  ;;  %7712 = vst.msk [vmem:[#allocation2 + $0x298] sm:$0xff] %vm282_vm3, %v7583_v36  ;;  %v7334_v2 = vadd.f32 %v14444_v60, %v10466_v46  ;;  %v499_v46 = vld [vmem:[#allocation2 + $0x2c0] sm:$0xff] }
 0x5aa   : > { %8736 = vst.msk [vmem:[%s14199_s6 + $0x120] sm:$0xf] %vm8663_vm4, %v10254_v8  ;;  %8739 = vst.msk [vmem:[%s14199_s6 + $0x12c] sm:$0xf] %vm8663_vm4, %v10257_v48  ;;  %v7836_v56 = vld [vmem:[#allocation2 + $0x260] sm:$0xff]  ;;  %v7839_v42 = vld [vmem:[#allocation2 + $0x278] sm:$0xff] }
 0x5ab   : > { %v6860_v38 = vpop.f32.mrb[208].mxu0  ;;  %8737 = vst.msk [vmem:[%s14199_s6 + $0x124] sm:$0xf] %vm8663_vm4, %v10255_v40  ;;  %v7971_v54 = vadd.f32 %v14461_v17, %v7836_v56  ;;  %v7974_v27 = vadd.f32 %v14461_v17, %v7839_v42  ;;  %v7837_v29 = vld [vmem:[#allocation2 + $0x268] sm:$0xff]  ;;  %v10260_v62 = vpack.c.bf16 %v8101_v30, %v8101_v30  ;;  %v7586_v25 = vadd.f32 %v7334_v2, %v497_v24  ;;  %v15394_v40 = vld [vmem:[#allocation66_spill] sm:$0xff]  ;;  %v501_v30 = vld [vmem:[#allocation2 + $0x2d0] sm:$0xff] }
 0x5ac   : > { %v14683_v26 = vadd.f32 %v6860_v38, %v15391_v34  ;;  %v6862_v12 = vpop.f32.mrb[209].mxu0  ;;  %v7972_v57 = vadd.f32 %v14461_v17, %v7837_v29  ;;  %7710 = vst.msk [vmem:[#allocation2 + $0x288] sm:$0xff] %vm282_vm3, %v7581_v15  ;;  %v7325_v38 = vpop.f32.mrb[85].mxu1  ;;  %v15395_v2 = vld [vmem:[#allocation68_spill] sm:$0xff] }
 0x5ad   : > { %v6863_v63 = vpop.f32.mrb[210].mxu0  ;;  %v8099_v7 = vmax.f32 %v7971_v54, 0.0  ;;  %v8102_v3 = vmax.f32 %v7974_v27, 0.0  ;;  %v7326_v34 = vadd.f32 %v14418_v49, %v7325_v38  ;;  %v498_v12 = vld [vmem:[#allocation2 + $0x2b8] sm:$0xff]  ;;  %v10467_v5 = vpop.f32.mrb[86].mxu1  ;;  %7715 = vst.msk [vmem:[#allocation2 + $0x2b0] sm:$0xff] %vm282_vm3, %v7586_v25 }
 0x5ae   : > { %v14692_v31 = vadd.f32 %v6863_v63, %v15392_v59  ;;  %v6865_v23 = vpop.f32.mrb[211].mxu0  ;;  %v8100_v39 = vmax.f32 %v7972_v57, 0.0  ;;  %8742 = vst.msk [vmem:[%s14199_s6 + $0x138] sm:$0xf] %vm8663_vm4, %v10260_v62  ;;  %v7337_v60 = vadd.f32 %v14453_v32, %v10467_v5  ;;  %v7328_v63 = vpop.f32.mrb[87].mxu1  ;;  %v500_v5 = vld [vmem:[#allocation2 + $0x2c8] sm:$0xff] }
 0x5af   : > { %v10258_v52 = vpack.c.bf16 %v8099_v7, %v8099_v7  ;;  %v10261_v1 = vpack.c.bf16 %v8102_v3, %v8102_v3  ;;  %v7842_v58 = vld [vmem:[#allocation2 + $0x290] sm:$0xff]  ;;  %v7584_v6 = vadd.f32 %v7326_v34, %v495_v16  ;;  %v7329_v19 = vadd.f32 %v14427_v4, %v7328_v63  ;;  %v7840_v23 = vld [vmem:[#allocation2 + $0x280] sm:$0xff] }
 0x5b0   : > { %v10259_v41 = vpack.c.bf16 %v8100_v39, %v8100_v39  ;;  %v7977_v59 = vadd.f32 %v14461_v17, %v7842_v58  ;;  %v7587_v32 = vadd.f32 %v7337_v60, %v498_v12  ;;  %v7975_v22 = vadd.f32 %v14461_v17, %v7840_v23  ;;  %v7843_v0 = vld [vmem:[#allocation2 + $0x298] sm:$0xff]  ;;  %v10470_v27 = vpop.f32.mrb[88].mxu1 }
 0x5b1   : > { %8740 = vst.msk [vmem:[%s14199_s6 + $0x130] sm:$0xf] %vm8663_vm4, %v10258_v52  ;;  %8743 = vst.msk [vmem:[%s14199_s6 + $0x13c] sm:$0xf] %vm8663_vm4, %v10261_v1  ;;  %v7585_v56 = vadd.f32 %v7329_v19, %v496_v44  ;;  %v7978_v54 = vadd.f32 %v14461_v17, %v7843_v0  ;;  %v7350_v24 = vadd.f32 %v14501_v37, %v10470_v27  ;;  %v7341_v62 = vpop.f32.mrb[89].mxu1  ;;  %v502_v39 = vld [vmem:[#allocation2 + $0x2d8] sm:$0xff] }
 0x5b2   : > { %8741 = vst.msk [vmem:[%s14199_s6 + $0x134] sm:$0xf] %vm8663_vm4, %v10259_v41  ;;  %v8105_v36 = vmax.f32 %v7977_v59, 0.0  ;;  %v8103_v42 = vmax.f32 %v7975_v22, 0.0  ;;  %v7342_v52 = vadd.f32 %v14475_v33, %v7341_v62  ;;  %v15396_v44 = vld [vmem:[#allocation70_spill] sm:$0xff] }
 0x5b3   : > { %v6868_v10 = vpop.f32.mrb[212].mxu0  ;;  %7713 = vst.msk [vmem:[#allocation2 + $0x2a0] sm:$0xff] %vm282_vm3, %v7584_v6  ;;  %v7841_v4 = vld [vmem:[#allocation2 + $0x288] sm:$0xff]  ;;  %7716 = vst.msk [vmem:[#allocation2 + $0x2b8] sm:$0xff] %vm282_vm3, %v7587_v32  ;;  %v8106_v7 = vmax.f32 %v7978_v54, 0.0  ;;  %v7590_v34 = vadd.f32 %v7350_v24, %v501_v30  ;;  %v506_v62 = vld [vmem:[#allocation2 + $0x2f8] sm:$0xff] }
 0x5b4   : > { %v14709_v8 = vadd.f32 %v6868_v10, %v15393_v9  ;;  %v6870_v51 = vpop.f32.mrb[213].mxu0  ;;  %v7976_v15 = vadd.f32 %v14461_v17, %v7841_v4  ;;  %7714 = vst.msk [vmem:[#allocation2 + $0x2a8] sm:$0xff] %vm282_vm3, %v7585_v56  ;;  %v10264_v29 = vpack.c.bf16 %v8105_v36, %v8105_v36  ;;  %v10262_v3 = vpack.c.bf16 %v8103_v42, %v8103_v42  ;;  %v10471_v9 = vpop.f32.mrb[90].mxu1 }
 0x5b5   : > { %v6871_v48 = vpop.f32.mrb[214].mxu0  ;;  %v10265_v51 = vpack.c.bf16 %v8106_v7, %v8106_v7  ;;  %v7353_v37 = vadd.f32 %v14510_v21, %v10471_v9  ;;  %v7344_v1 = vpop.f32.mrb[91].mxu1  ;;  %v7588_v60 = vadd.f32 %v7342_v52, %v499_v46  ;;  %7719 = vst.msk [vmem:[#allocation2 + $0x2d0] sm:$0xff] %vm282_vm3, %v7590_v34  ;;  %v15397_v7 = vld [vmem:[#allocation72_spill] sm:$0xff] }
 0x5b6   : > { %v14718_v49 = vadd.f32 %v6871_v48, %v15394_v40  ;;  %v6873_v55 = vpop.f32.mrb[215].mxu0  ;;  %v8104_v10 = vmax.f32 %v7976_v15, 0.0  ;;  %8746 = vst.msk [vmem:[%s14199_s6 + $0x148] sm:$0xf] %vm8663_vm4, %v10264_v29  ;;  %8744 = vst.msk [vmem:[%s14199_s6 + $0x140] sm:$0xf] %vm8663_vm4, %v10262_v3  ;;  %v7345_v41 = vadd.f32 %v14484_v14, %v7344_v1 }
 0x5b7   : > { %v7846_v48 = vld [vmem:[#allocation2 + $0x2b0] sm:$0xff]  ;;  %8747 = vst.msk [vmem:[%s14199_s6 + $0x14c] sm:$0xf] %vm8663_vm4, %v10265_v51  ;;  %v7591_v21 = vadd.f32 %v7353_v37, %v502_v39  ;;  %v14758_v14 = vld [vmem:[%s15209_s2] ss:$0 sm:$0xff]  ;;  %v504_v52 = vld [vmem:[#allocation2 + $0x2e8] sm:$0xff] }
 0x5b8   : > { %v10263_v25 = vpack.c.bf16 %v8104_v10, %v8104_v10  ;;  %v7981_v58 = vadd.f32 %v14461_v17, %v7846_v48  ;;  %7717 = vst.msk [vmem:[#allocation2 + $0x2c0] sm:$0xff] %vm282_vm3, %v7588_v60  ;;  %v7589_v19 = vadd.f32 %v7345_v41, %v500_v5  ;;  %v10474_v56 = vpop.f32.mrb[92].mxu1  ;;  %v503_v15 = vld [vmem:[#allocation2 + $0x2e0] sm:$0xff] }
 0x5b9   : > { %7720 = vst.msk [vmem:[#allocation2 + $0x2d8] sm:$0xff] %vm282_vm3, %v7591_v21  ;;  %v7366_v42 = vadd.f32 %v14553_v20, %v10474_v56  ;;  %v7357_v30 = vpop.f32.mrb[93].mxu1  ;;  %v509_v21 = vld [vmem:[#allocation2 + $0x310] sm:$0xff]  ;;  %v15399_v56 = vld [vmem:[#allocation76_spill] sm:$0xff] }
 0x5ba   : > { %v7844_v6 = vld [vmem:[#allocation2 + $0x2a0] sm:$0xff]  ;;  %8745 = vst.msk [vmem:[%s14199_s6 + $0x144] sm:$0xf] %vm8663_vm4, %v10263_v25  ;;  %v7847_v55 = vld [vmem:[#allocation2 + $0x2b8] sm:$0xff]  ;;  %v8109_v59 = vmax.f32 %v7981_v58, 0.0  ;;  %v7358_v46 = vadd.f32 %v14527_v28, %v7357_v30  ;;  %v10475_v3 = vpop.f32.mrb[94].mxu1 }
 0x5bb   : > { %v6876_v57 = vpop.f32.mrb[216].mxu0  ;;  %v7979_v40 = vadd.f32 %v14461_v17, %v7844_v6  ;;  %v7982_v23 = vadd.f32 %v14758_v14, %v7847_v55  ;;  %v7845_v32 = vld [vmem:[#allocation2 + $0x2a8] sm:$0xff]  ;;  %7718 = vst.msk [vmem:[#allocation2 + $0x2c8] sm:$0xff] %vm282_vm3, %v7589_v19  ;;  %v505_v17 = vld [vmem:[#allocation2 + $0x2f0] sm:$0xff]  ;;  %v7369_v20 = vadd.f32 %v14562_v18, %v10475_v3  ;;  %v7360_v39 = vpop.f32.mrb[95].mxu1 }
 0x5bc   : > { %v14735_v16 = vadd.f32 %v6876_v57, %v15395_v2  ;;  %v6878_v38 = vpop.f32.mrb[217].mxu0  ;;  %v7980_v0 = vadd.f32 %v14758_v14, %v7845_v32  ;;  %v10268_v36 = vpack.c.bf16 %v8109_v59, %v8109_v59  ;;  %v7594_v2 = vadd.f32 %v7366_v42, %v505_v17  ;;  %v7850_v51 = vld [vmem:[#allocation2 + $0x2d0] sm:$0xff]  ;;  %v507_v32 = vld [vmem:[#allocation2 + $0x300] sm:$0xff]  ;;  %v510_v42 = vld [vmem:[#allocation2 + $0x318] sm:$0xff] }
 0x5bd   : > { %v6879_v12 = vpop.f32.mrb[218].mxu0  ;;  %v8107_v22 = vmax.f32 %v7979_v40, 0.0  ;;  %v8110_v54 = vmax.f32 %v7982_v23, 0.0  ;;  %v7592_v34 = vadd.f32 %v7358_v46, %v503_v15  ;;  %v7361_v5 = vadd.f32 %v14536_v35, %v7360_v39 }
 0x5be   : > { %v14744_v33 = vadd.f32 %v6879_v12, %v15396_v44  ;;  %v6881_v63 = vpop.f32.mrb[219].mxu0  ;;  %v8108_v29 = vmax.f32 %v7980_v0, 0.0  ;;  %8750 = vst.msk [vmem:[%s14199_s6 + $0x158] sm:$0xf] %vm8663_vm4, %v10268_v36  ;;  %v15398_v12 = vld [vmem:[#allocation74_spill] sm:$0xff]  ;;  %v7985_v1 = vadd.f32 %v14758_v14, %v7850_v51  ;;  %v7595_v18 = vadd.f32 %v7369_v20, %v506_v62 }
 0x5bf   : > { %v10266_v27 = vpack.c.bf16 %v8107_v22, %v8107_v22  ;;  %v10269_v10 = vpack.c.bf16 %v8110_v54, %v8110_v54  ;;  %v7848_v25 = vld [vmem:[#allocation2 + $0x2c0] sm:$0xff]  ;;  %7723 = vst.msk [vmem:[#allocation2 + $0x2f0] sm:$0xff] %vm282_vm3, %v7594_v2  ;;  %7721 = vst.msk [vmem:[#allocation2 + $0x2e0] sm:$0xff] %vm282_vm3, %v7592_v34  ;;  %v7593_v44 = vadd.f32 %v7361_v5, %v504_v52 }
 0x5c0   : > { %v10267_v9 = vpack.c.bf16 %v8108_v29, %v8108_v29  ;;  %v7983_v48 = vadd.f32 %v14758_v14, %v7848_v25  ;;  %v7851_v60 = vld [vmem:[#allocation2 + $0x2d8] sm:$0xff]  ;;  %v8113_v63 = vmax.f32 %v7985_v1, 0.0  ;;  %7724 = vst.msk [vmem:[#allocation2 + $0x2f8] sm:$0xff] %vm282_vm3, %v7595_v18  ;;  %v10478_v40 = vpop.f32.mrb[96].mxu1  ;;  %v513_v1 = vld [vmem:[#allocation2 + $0x330] sm:$0xff] }
 0x5c1   : > { %8748 = vst.msk [vmem:[%s14199_s6 + $0x150] sm:$0xf] %vm8663_vm4, %v10266_v27  ;;  %8751 = vst.msk [vmem:[%s14199_s6 + $0x15c] sm:$0xf] %vm8663_vm4, %v10269_v10  ;;  %v7986_v41 = vadd.f32 %v14758_v14, %v7851_v60  ;;  %v7382_v23 = vadd.f32 %v14605_v45, %v10478_v40  ;;  %v7373_v22 = vpop.f32.mrb[97].mxu1  ;;  %v15400_v10 = vld [vmem:[#allocation78_spill] sm:$0xff] }
 0x5c2   : > { %8749 = vst.msk [vmem:[%s14199_s6 + $0x154] sm:$0xf] %vm8663_vm4, %v10267_v9  ;;  %v7849_v35 = vld [vmem:[#allocation2 + $0x2c8] sm:$0xff]  ;;  %v8111_v58 = vmax.f32 %v7983_v48, 0.0  ;;  %v10272_v55 = vpack.c.bf16 %v8113_v63, %v8113_v63  ;;  %v10479_v15 = vpop.f32.mrb[98].mxu1  ;;  %v511_v63 = vld [vmem:[#allocation2 + $0x320] sm:$0xff] }
 0x5c3   : > { %v6884_v4 = vpop.f32.mrb[220].mxu0  ;;  %v7984_v6 = vadd.f32 %v14758_v14, %v7849_v35  ;;  %7722 = vst.msk [vmem:[#allocation2 + $0x2e8] sm:$0xff] %vm282_vm3, %v7593_v44  ;;  %v8114_v19 = vmax.f32 %v7986_v41, 0.0  ;;  %v7598_v27 = vadd.f32 %v7382_v23, %v509_v21  ;;  %v7385_v45 = vadd.f32 %v14614_v43, %v10479_v15 }
 0x5c4   : > { %v14766_v57 = vadd.f32 %v6884_v4, %v15397_v7  ;;  %v6886_v24 = vpop.f32.mrb[221].mxu0  ;;  %v10270_v0 = vpack.c.bf16 %v8111_v58, %v8111_v58  ;;  %v7374_v4 = vadd.f32 %v14579_v13, %v7373_v22  ;;  %8754 = vst.msk [vmem:[%s14199_s6 + $0x168] sm:$0xf] %vm8663_vm4, %v10272_v55  ;;  %v508_v7 = vld [vmem:[#allocation2 + $0x308] sm:$0xff] }
 0x5c5   : > { %v6887_v38 = vpop.f32.mrb[222].mxu0  ;;  %v8112_v17 = vmax.f32 %v7984_v6, 0.0  ;;  %v10273_v30 = vpack.c.bf16 %v8114_v19, %v8114_v19  ;;  %v7376_v24 = vpop.f32.mrb[99].mxu1  ;;  %7727 = vst.msk [vmem:[#allocation2 + $0x310] sm:$0xff] %vm282_vm3, %v7598_v27  ;;  %v7599_v43 = vadd.f32 %v7385_v45, %v510_v42  ;;  %v15401_v6 = vld [vmem:[#allocation80_spill] sm:$0xff]  ;;  %v514_v19 = vld [vmem:[#allocation2 + $0x338] sm:$0xff] }
 0x5c6   : > { %v14775_v28 = vadd.f32 %v6887_v38, %v15398_v12  ;;  %v6889_v37 = vpop.f32.mrb[223].mxu0  ;;  %8752 = vst.msk [vmem:[%s14199_s6 + $0x160] sm:$0xf] %vm8663_vm4, %v10270_v0  ;;  %v7854_v62 = vld [vmem:[#allocation2 + $0x2f0] sm:$0xff]  ;;  %v7596_v3 = vadd.f32 %v7374_v4, %v507_v32  ;;  %v7377_v38 = vadd.f32 %v14588_v53, %v7376_v24  ;;  %v7852_v52 = vld [vmem:[#allocation2 + $0x2e0] sm:$0xff]  ;;  %v512_v0 = vld [vmem:[#allocation2 + $0x328] sm:$0xff] }
 0x5c7   : > { %v10271_v46 = vpack.c.bf16 %v8112_v17, %v8112_v17  ;;  %8755 = vst.msk [vmem:[%s14199_s6 + $0x16c] sm:$0xf] %vm8663_vm4, %v10273_v30  ;;  %v7989_v20 = vadd.f32 %v14758_v14, %v7854_v62  ;;  %v7987_v39 = vadd.f32 %v14758_v14, %v7852_v52  ;;  %v7855_v9 = vld [vmem:[#allocation2 + $0x2f8] sm:$0xff]  ;;  %v15402_v42 = vld [vmem:[#allocation81_spill] sm:$0xff] }
 0x5c8   : > { %7725 = vst.msk [vmem:[#allocation2 + $0x300] sm:$0xff] %vm282_vm3, %v7596_v3  ;;  %v7597_v51 = vadd.f32 %v7377_v38, %v508_v7  ;;  %v7990_v12 = vadd.f32 %v14758_v14, %v7855_v9  ;;  %7728 = vst.msk [vmem:[#allocation2 + $0x318] sm:$0xff] %vm282_vm3, %v7599_v43  ;;  %v10482_v25 = vpop.f32.mrb[100].mxu1  ;;  %v515_v9 = vld [vmem:[#allocation2 + $0x340] sm:$0xff] }
 0x5c9   : > { %8753 = vst.msk [vmem:[%s14199_s6 + $0x164] sm:$0xf] %vm8663_vm4, %v10271_v46  ;;  %v8117_v34 = vmax.f32 %v7989_v20, 0.0  ;;  %v8115_v37 = vmax.f32 %v7987_v39, 0.0  ;;  %v7398_v44 = vadd.f32 %v14657_v47, %v10482_v25  ;;  %v7389_v41 = vpop.f32.mrb[101].mxu1  ;;  %v518_v25 = vld [vmem:[#allocation2 + $0x358] sm:$0xff] }
 0x5ca   : > { %v7853_v53 = vld [vmem:[#allocation2 + $0x2e8] sm:$0xff]  ;;  %7726 = vst.msk [vmem:[#allocation2 + $0x308] sm:$0xff] %vm282_vm3, %v7597_v51  ;;  %v8118_v48 = vmax.f32 %v7990_v12, 0.0  ;;  %v7390_v55 = vadd.f32 %v14631_v11, %v7389_v41 }
 0x5cb   : > { %v6892_v59 = vpop.f32.mrb[224].mxu0  ;;  %v7988_v5 = vadd.f32 %v14758_v14, %v7853_v53  ;;  %v10276_v18 = vpack.c.bf16 %v8117_v34, %v8117_v34  ;;  %v10274_v35 = vpack.c.bf16 %v8115_v37, %v8115_v37  ;;  %v7602_v32 = vadd.f32 %v7398_v44, %v513_v1  ;;  %v15403_v53 = vld [vmem:[#allocation82_spill] sm:$0xff] }
 0x5cc   : > { %v14792_v36 = vadd.f32 %v6892_v59, %v15399_v56  ;;  %v6894_v54 = vpop.f32.mrb[225].mxu0  ;;  %v10483_v59 = vpop.f32.mrb[102].mxu1  ;;  %v10277_v23 = vpack.c.bf16 %v8118_v48, %v8118_v48  ;;  %v7600_v4 = vadd.f32 %v7390_v55, %v511_v63  ;;  %v516_v63 = vld [vmem:[#allocation2 + $0x348] sm:$0xff] }
 0x5cd   : > { %v6895_v29 = vpop.f32.mrb[226].mxu0  ;;  %v8116_v58 = vmax.f32 %v7988_v5, 0.0  ;;  %8758 = vst.msk [vmem:[%s14199_s6 + $0x178] sm:$0xf] %vm8663_vm4, %v10276_v18  ;;  %v7401_v47 = vadd.f32 %v14666_v50, %v10483_v59  ;;  %v7392_v17 = vpop.f32.mrb[103].mxu1  ;;  %v7858_v54 = vld [vmem:[#allocation2 + $0x310] sm:$0xff] }
 0x5ce   : > { %v14801_v13 = vadd.f32 %v6895_v29, %v15400_v10  ;;  %v6897_v2 = vpop.f32.mrb[227].mxu0  ;;  %8756 = vst.msk [vmem:[%s14199_s6 + $0x170] sm:$0xf] %vm8663_vm4, %v10274_v35  ;;  %v7393_v30 = vadd.f32 %v14640_v61, %v7392_v17  ;;  %8759 = vst.msk [vmem:[%s14199_s6 + $0x17c] sm:$0xf] %vm8663_vm4, %v10277_v23  ;;  %v7993_v27 = vadd.f32 %v14758_v14, %v7858_v54 }
 0x5cf   : > { %v10275_v56 = vpack.c.bf16 %v8116_v58, %v8116_v58  ;;  %v7856_v29 = vld [vmem:[#allocation2 + $0x300] sm:$0xff]  ;;  %7731 = vst.msk [vmem:[#allocation2 + $0x330] sm:$0xff] %vm282_vm3, %v7602_v32  ;;  %v7603_v50 = vadd.f32 %v7401_v47, %v514_v19  ;;  %v7859_v7 = vld [vmem:[#allocation2 + $0x318] sm:$0xff]  ;;  %7729 = vst.msk [vmem:[#allocation2 + $0x320] sm:$0xff] %vm282_vm3, %v7600_v4 }
 0x5d0   : > { %v7991_v45 = vadd.f32 %v14758_v14, %v7856_v29  ;;  %v7601_v24 = vadd.f32 %v7393_v30, %v512_v0  ;;  %v8121_v46 = vmax.f32 %v7993_v27, 0.0  ;;  %v7994_v62 = vadd.f32 %v14758_v14, %v7859_v7  ;;  %v517_v2 = vld [vmem:[#allocation2 + $0x350] sm:$0xff]  ;;  %v10486_v38 = vpop.f32.mrb[104].mxu1 }
 0x5d1   : > { %8757 = vst.msk [vmem:[%s14199_s6 + $0x174] sm:$0xf] %vm8663_vm4, %v10275_v56  ;;  %v7857_v61 = vld [vmem:[#allocation2 + $0x308] sm:$0xff]  ;;  %v7414_v39 = vadd.f32 %v14709_v8, %v10486_v38  ;;  %v7405_v51 = vpop.f32.mrb[105].mxu1  ;;  %v521_v4 = vld [vmem:[#allocation2 + $0x370] sm:$0xff] }
 0x5d2   : > { %7732 = vst.msk [vmem:[#allocation2 + $0x338] sm:$0xff] %vm282_vm3, %v7603_v50  ;;  %v8119_v3 = vmax.f32 %v7991_v45, 0.0  ;;  %v7992_v10 = vadd.f32 %v14758_v14, %v7857_v61  ;;  %7730 = vst.msk [vmem:[#allocation2 + $0x328] sm:$0xff] %vm282_vm3, %v7601_v24  ;;  %v10280_v20 = vpack.c.bf16 %v8121_v46, %v8121_v46  ;;  %v8122_v52 = vmax.f32 %v7994_v62, 0.0  ;;  %v10487_v18 = vpop.f32.mrb[106].mxu1  ;;  %v519_v50 = vld [vmem:[#allocation2 + $0x360] sm:$0xff] }
 0x5d3   : > { %v6900_v60 = vpop.f32.mrb[228].mxu0  ;;  %v7406_v1 = vadd.f32 %v14683_v26, %v7405_v51  ;;  %v7417_v8 = vadd.f32 %v14718_v49, %v10487_v18  ;;  %v7408_v41 = vpop.f32.mrb[107].mxu1  ;;  %v15405_v46 = vld [vmem:[#allocation84_spill] sm:$0xff] }
 0x5d4   : > { %v14818_v21 = vadd.f32 %v6900_v60, %v15401_v6  ;;  %v6902_v40 = vpop.f32.mrb[229].mxu0  ;;  %v10278_v34 = vpack.c.bf16 %v8119_v3, %v8119_v3  ;;  %v8120_v12 = vmax.f32 %v7992_v10, 0.0  ;;  %8762 = vst.msk [vmem:[%s14199_s6 + $0x188] sm:$0xf] %vm8663_vm4, %v10280_v20  ;;  %v10281_v48 = vpack.c.bf16 %v8122_v52, %v8122_v52  ;;  %v522_v10 = vld [vmem:[#allocation2 + $0x378] sm:$0xff] }
 0x5d5   : > { %v6903_v22 = vpop.f32.mrb[230].mxu0  ;;  %v7606_v60 = vadd.f32 %v7414_v39, %v517_v2  ;;  %v7604_v6 = vadd.f32 %v7406_v1, %v515_v9  ;;  %v15404_v40 = vld [vmem:[#allocation83_spill] sm:$0xff]  ;;  %v7409_v19 = vadd.f32 %v14692_v31, %v7408_v41  ;;  %v7607_v49 = vadd.f32 %v7417_v8, %v518_v25 }
 0x5d6   : > { %v14827_v11 = vadd.f32 %v6903_v22, %v15402_v42  ;;  %v6905_v15 = vpop.f32.mrb[231].mxu0  ;;  %8760 = vst.msk [vmem:[%s14199_s6 + $0x180] sm:$0xf] %vm8663_vm4, %v10278_v34  ;;  %v10279_v35 = vpack.c.bf16 %v8120_v12, %v8120_v12  ;;  %v7862_v58 = vld [vmem:[#allocation2 + $0x330] sm:$0xff]  ;;  %8763 = vst.msk [vmem:[%s14199_s6 + $0x18c] sm:$0xf] %vm8663_vm4, %v10281_v48 }
 0x5d7   : > { %v7997_v59 = vadd.f32 %v14758_v14, %v7862_v58  ;;  %v7860_v23 = vld [vmem:[#allocation2 + $0x320] sm:$0xff]  ;;  %7735 = vst.msk [vmem:[#allocation2 + $0x350] sm:$0xff] %vm282_vm3, %v7606_v60  ;;  %7733 = vst.msk [vmem:[#allocation2 + $0x340] sm:$0xff] %vm282_vm3, %v7604_v6  ;;  %v7605_v47 = vadd.f32 %v7409_v19, %v516_v63  ;;  %v15406_v12 = vld [vmem:[#allocation85_spill] sm:$0xff] }
 0x5d8   : > { %8761 = vst.msk [vmem:[%s14199_s6 + $0x184] sm:$0xf] %vm8663_vm4, %v10279_v35  ;;  %v7995_v32 = vadd.f32 %v14758_v14, %v7860_v23  ;;  %v10490_v42 = vpop.f32.mrb[108].mxu1  ;;  %v525_v35 = vld [vmem:[#allocation2 + $0x390] sm:$0xff] }
 0x5d9   : > { %v7863_v22 = vld [vmem:[#allocation2 + $0x338] sm:$0xff]  ;;  %v8125_v0 = vmax.f32 %v7997_v59, 0.0  ;;  %v7861_v31 = vld [vmem:[#allocation2 + $0x328] sm:$0xff]  ;;  %7736 = vst.msk [vmem:[#allocation2 + $0x358] sm:$0xff] %vm282_vm3, %v7607_v49  ;;  %7734 = vst.msk [vmem:[#allocation2 + $0x348] sm:$0xff] %vm282_vm3, %v7605_v47  ;;  %v7430_v29 = vadd.f32 %v14766_v57, %v10490_v42  ;;  %v7421_v45 = vpop.f32.mrb[109].mxu1 }
 0x5da   : > { %v7998_v17 = vadd.f32 %v14758_v14, %v7863_v22  ;;  %v8123_v56 = vmax.f32 %v7995_v32, 0.0  ;;  %v7996_v54 = vadd.f32 %v14758_v14, %v7861_v31  ;;  %v7422_v3 = vadd.f32 %v14735_v16, %v7421_v45  ;;  %v10491_v2 = vpop.f32.mrb[110].mxu1  ;;  %v523_v59 = vld [vmem:[#allocation2 + $0x380] sm:$0xff]  ;;  %v15407_v22 = vld [vmem:[#allocation86_spill] sm:$0xff] }
 0x5db   : > { %v6908_v43 = vpop.f32.mrb[232].mxu0  ;;  %v10284_v15 = vpack.c.bf16 %v8125_v0, %v8125_v0  ;;  %v7610_v20 = vadd.f32 %v7430_v29, %v521_v4  ;;  %v7433_v57 = vadd.f32 %v14775_v28, %v10491_v2  ;;  %v7424_v39 = vpop.f32.mrb[111].mxu1  ;;  %v526_v31 = vld [vmem:[#allocation2 + $0x398] sm:$0xff]  ;;  %v15408_v45 = vld [vmem:[#allocation87_spill] sm:$0xff] }
 0x5dc   : > { %v14844_v37 = vadd.f32 %v6908_v43, %v15403_v53  ;;  %v6910_v5 = vpop.f32.mrb[233].mxu0  ;;  %v8126_v30 = vmax.f32 %v7998_v17, 0.0  ;;  %v10282_v7 = vpack.c.bf16 %v8123_v56, %v8123_v56  ;;  %v8124_v24 = vmax.f32 %v7996_v54, 0.0  ;;  %v520_v43 = vld [vmem:[#allocation2 + $0x368] sm:$0xff] }
 0x5dd   : > { %v6911_v44 = vpop.f32.mrb[234].mxu0  ;;  %8766 = vst.msk [vmem:[%s14199_s6 + $0x198] sm:$0xf] %vm8663_vm4, %v10284_v15  ;;  %v7608_v34 = vadd.f32 %v7422_v3, %v519_v50  ;;  %v7425_v5 = vadd.f32 %v14744_v33, %v7424_v39  ;;  %v7611_v28 = vadd.f32 %v7433_v57, %v522_v10  ;;  %v524_v15 = vld [vmem:[#allocation2 + $0x388] sm:$0xff] }
 0x5de   : > { %v14853_v26 = vadd.f32 %v6911_v44, %v15404_v40  ;;  %v6913_v55 = vpop.f32.mrb[235].mxu0  ;;  %v10285_v38 = vpack.c.bf16 %v8126_v30, %v8126_v30  ;;  %8764 = vst.msk [vmem:[%s14199_s6 + $0x190] sm:$0xf] %vm8663_vm4, %v10282_v7  ;;  %v10283_v9 = vpack.c.bf16 %v8124_v24, %v8124_v24  ;;  %v7866_v51 = vld [vmem:[#allocation2 + $0x350] sm:$0xff]  ;;  %v7864_v25 = vld [vmem:[#allocation2 + $0x340] sm:$0xff] }
 0x5df   : > { %v8001_v1 = vadd.f32 %v14758_v14, %v7866_v51  ;;  %7739 = vst.msk [vmem:[#allocation2 + $0x370] sm:$0xff] %vm282_vm3, %v7610_v20  ;;  %v7999_v18 = vadd.f32 %v14758_v14, %v7864_v25  ;;  %7737 = vst.msk [vmem:[#allocation2 + $0x360] sm:$0xff] %vm282_vm3, %v7608_v34  ;;  %v7609_v60 = vadd.f32 %v7425_v5, %v520_v43  ;;  %v529_v43 = vld [vmem:[#allocation2 + $0x3b0] sm:$0xff] }
 0x5e0   : > { %8767 = vst.msk [vmem:[%s14199_s6 + $0x19c] sm:$0xf] %vm8663_vm4, %v10285_v38  ;;  %8765 = vst.msk [vmem:[%s14199_s6 + $0x194] sm:$0xf] %vm8663_vm4, %v10283_v9  ;;  %v7867_v48 = vld [vmem:[#allocation2 + $0x358] sm:$0xff]  ;;  %v7865_v33 = vld [vmem:[#allocation2 + $0x348] sm:$0xff] }
 0x5e1   : > { %v8129_v44 = vmax.f32 %v8001_v1, 0.0  ;;  %v8002_v8 = vadd.f32 %v14758_v14, %v7867_v48  ;;  %7740 = vst.msk [vmem:[#allocation2 + $0x378] sm:$0xff] %vm282_vm3, %v7611_v28  ;;  %v8127_v63 = vmax.f32 %v7999_v18, 0.0  ;;  %v8000_v41 = vadd.f32 %v14758_v14, %v7865_v33  ;;  %7738 = vst.msk [vmem:[#allocation2 + $0x368] sm:$0xff] %vm282_vm3, %v7609_v60  ;;  %v10494_v58 = vpop.f32.mrb[112].mxu1  ;;  %v15409_v28 = vld [vmem:[#allocation88_spill] sm:$0xff] }
 0x5e2   : > { %v7446_v19 = vadd.f32 %v14818_v21, %v10494_v58  ;;  %v7437_v23 = vpop.f32.mrb[113].mxu1 }
 0x5e3   : > { %v6916_v27 = vpop.f32.mrb[236].mxu0  ;;  %v10288_v6 = vpack.c.bf16 %v8129_v44, %v8129_v44  ;;  %v8130_v40 = vmax.f32 %v8002_v8, 0.0  ;;  %v10286_v49 = vpack.c.bf16 %v8127_v63, %v8127_v63  ;;  %v8128_v32 = vmax.f32 %v8000_v41, 0.0  ;;  %v10495_v56 = vpop.f32.mrb[114].mxu1  ;;  %v530_v44 = vld [vmem:[#allocation2 + $0x3b8] sm:$0xff] }
 0x5e4   : > { %v14870_v62 = vadd.f32 %v6916_v27, %v15405_v46  ;;  %v6918_v61 = vpop.f32.mrb[237].mxu0  ;;  %v7438_v17 = vadd.f32 %v14792_v36, %v7437_v23  ;;  %v7614_v4 = vadd.f32 %v7446_v19, %v525_v35  ;;  %v7449_v21 = vadd.f32 %v14827_v11, %v10495_v56  ;;  %v7440_v30 = vpop.f32.mrb[115].mxu1  ;;  %v528_v35 = vld [vmem:[#allocation2 + $0x3a8] sm:$0xff]  ;;  %v15410_v19 = vld [vmem:[#allocation89_spill] sm:$0xff] }
 0x5e5   : > { %v6919_v52 = vpop.f32.mrb[238].mxu0  ;;  %8770 = vst.msk [vmem:[%s14199_s6 + $0x1a8] sm:$0xf] %vm8663_vm4, %v10288_v6  ;;  %v10289_v54 = vpack.c.bf16 %v8130_v40, %v8130_v40  ;;  %8768 = vst.msk [vmem:[%s14199_s6 + $0x1a0] sm:$0xf] %vm8663_vm4, %v10286_v49  ;;  %v10287_v27 = vpack.c.bf16 %v8128_v32, %v8128_v32  ;;  %v7441_v24 = vadd.f32 %v14801_v13, %v7440_v30 }
 0x5e6   : > { %v14879_v16 = vadd.f32 %v6919_v52, %v15406_v12  ;;  %v6921_v53 = vpop.f32.mrb[239].mxu0  ;;  %v7870_v29 = vld [vmem:[#allocation2 + $0x370] sm:$0xff]  ;;  %v7612_v50 = vadd.f32 %v7438_v17, %v523_v59  ;;  %v7868_v61 = vld [vmem:[#allocation2 + $0x360] sm:$0xff]  ;;  %7743 = vst.msk [vmem:[#allocation2 + $0x390] sm:$0xff] %vm282_vm3, %v7614_v4  ;;  %v7615_v11 = vadd.f32 %v7449_v21, %v526_v31 }
 0x5e7   : > { %8771 = vst.msk [vmem:[%s14199_s6 + $0x1ac] sm:$0xf] %vm8663_vm4, %v10289_v54  ;;  %v8005_v46 = vadd.f32 %v14758_v14, %v7870_v29  ;;  %8769 = vst.msk [vmem:[%s14199_s6 + $0x1a4] sm:$0xf] %vm8663_vm4, %v10287_v27  ;;  %v8003_v3 = vadd.f32 %v14758_v14, %v7868_v61  ;;  %v7613_v2 = vadd.f32 %v7441_v24, %v524_v15  ;;  %v527_v53 = vld [vmem:[#allocation2 + $0x3a0] sm:$0xff] }
 0x5e8   : > { %v7871_v10 = vld [vmem:[#allocation2 + $0x378] sm:$0xff]  ;;  %7741 = vst.msk [vmem:[#allocation2 + $0x380] sm:$0xff] %vm282_vm3, %v7612_v50  ;;  %v7869_v13 = vld [vmem:[#allocation2 + $0x368] sm:$0xff]  ;;  %7744 = vst.msk [vmem:[#allocation2 + $0x398] sm:$0xff] %vm282_vm3, %v7615_v11  ;;  %v10498_v39 = vpop.f32.mrb[116].mxu1 }
 0x5e9   : > { %v8133_v38 = vmax.f32 %v8005_v46, 0.0  ;;  %v8006_v20 = vadd.f32 %v14758_v14, %v7871_v10  ;;  %v8131_v52 = vmax.f32 %v8003_v3, 0.0  ;;  %v8004_v57 = vadd.f32 %v14758_v14, %v7869_v13  ;;  %7742 = vst.msk [vmem:[#allocation2 + $0x388] sm:$0xff] %vm282_vm3, %v7613_v2  ;;  %v7453_v5 = vpop.f32.mrb[117].mxu1  ;;  %v531_v50 = vld [vmem:[#allocation2 + $0x3c0] sm:$0xff]  ;;  %v15411_v46 = vld [vmem:[#allocation90_spill] sm:$0xff] }
 0x5ea   : > { %v7462_v12 = vadd.f32 %v14870_v62, %v10498_v39  ;;  %v7454_v60 = vadd.f32 %v14844_v37, %v7453_v5  ;;  %v10499_v8 = vpop.f32.mrb[118].mxu1  ;;  %v534_v10 = vld [vmem:[#allocation2 + $0x3d8] sm:$0xff] }
 0x5eb   : > { %v6924_v55 = vpop.f32.mrb[240].mxu0  ;;  %v10292_v9 = vpack.c.bf16 %v8133_v38, %v8133_v38  ;;  %v8134_v51 = vmax.f32 %v8006_v20, 0.0  ;;  %v10290_v1 = vpack.c.bf16 %v8131_v52, %v8131_v52  ;;  %v8132_v25 = vmax.f32 %v8004_v57, 0.0  ;;  %v7456_v58 = vpop.f32.mrb[119].mxu1  ;;  %v532_v57 = vld [vmem:[#allocation2 + $0x3c8] sm:$0xff] }
 0x5ec   : > { %v14896_v47 = vadd.f32 %v6924_v55, %v15407_v22  ;;  %v6926_v0 = vpop.f32.mrb[241].mxu0  ;;  %v7618_v63 = vadd.f32 %v7462_v12, %v529_v43  ;;  %v7465_v62 = vadd.f32 %v14879_v16, %v10499_v8  ;;  %v7616_v55 = vadd.f32 %v7454_v60, %v527_v53 }
 0x5ed   : > { %v6927_v42 = vpop.f32.mrb[242].mxu0  ;;  %8774 = vst.msk [vmem:[%s14199_s6 + $0x1b8] sm:$0xf] %vm8663_vm4, %v10292_v9  ;;  %v10293_v33 = vpack.c.bf16 %v8134_v51, %v8134_v51  ;;  %8772 = vst.msk [vmem:[%s14199_s6 + $0x1b0] sm:$0xf] %vm8663_vm4, %v10290_v1  ;;  %v10291_v6 = vpack.c.bf16 %v8132_v25, %v8132_v25  ;;  %v7874_v40 = vld [vmem:[#allocation2 + $0x390] sm:$0xff]  ;;  %v7457_v23 = vadd.f32 %v14853_v26, %v7456_v58 }
 0x5ee   : > { %v14905_v36 = vadd.f32 %v6927_v42, %v15408_v45  ;;  %v6929_v7 = vpop.f32.mrb[243].mxu0  ;;  %v8009_v49 = vadd.f32 %v14758_v14, %v7874_v40  ;;  %7747 = vst.msk [vmem:[#allocation2 + $0x3b0] sm:$0xff] %vm282_vm3, %v7618_v63  ;;  %v7619_v16 = vadd.f32 %v7465_v62, %v530_v44  ;;  %7745 = vst.msk [vmem:[#allocation2 + $0x3a0] sm:$0xff] %vm282_vm3, %v7616_v55  ;;  %v533_v42 = vld [vmem:[#allocation2 + $0x3d0] sm:$0xff]  ;;  %v535_v58 = vld [vmem:[#allocation2 + $0x3e0] sm:$0xff] }
 0x5ef   : > { %8775 = vst.msk [vmem:[%s14199_s6 + $0x1bc] sm:$0xf] %vm8663_vm4, %v10293_v33  ;;  %v7872_v32 = vld [vmem:[#allocation2 + $0x380] sm:$0xff]  ;;  %8773 = vst.msk [vmem:[%s14199_s6 + $0x1b4] sm:$0xf] %vm8663_vm4, %v10291_v6  ;;  %v7875_v0 = vld [vmem:[#allocation2 + $0x398] sm:$0xff]  ;;  %v7617_v17 = vadd.f32 %v7457_v23, %v528_v35 }
 0x5f0   : > { %v8007_v22 = vadd.f32 %v14758_v14, %v7872_v32  ;;  %v8137_v31 = vmax.f32 %v8009_v49, 0.0  ;;  %v8010_v56 = vadd.f32 %v14758_v14, %v7875_v0  ;;  %v7873_v26 = vld [vmem:[#allocation2 + $0x388] sm:$0xff]  ;;  %7748 = vst.msk [vmem:[#allocation2 + $0x3b8] sm:$0xff] %vm282_vm3, %v7619_v16  ;;  %v10502_v21 = vpop.f32.mrb[120].mxu1  ;;  %v537_v16 = vld [vmem:[#allocation2 + $0x3f0] sm:$0xff] }
 0x5f1   : > { %v8008_v4 = vadd.f32 %v14758_v14, %v7873_v26  ;;  %7746 = vst.msk [vmem:[#allocation2 + $0x3a8] sm:$0xff] %vm282_vm3, %v7617_v17  ;;  %v7469_v45 = vpop.f32.mrb[121].mxu1 }
 0x5f2   : > { %v8135_v54 = vmax.f32 %v8007_v22, 0.0  ;;  %v10296_v15 = vpack.c.bf16 %v8137_v31, %v8137_v31  ;;  %v8138_v30 = vmax.f32 %v8010_v56, 0.0  ;;  %v7470_v3 = vadd.f32 %v14896_v47, %v7469_v45  ;;  %v10503_v2 = vpop.f32.mrb[122].mxu1 }
 0x5f3   : > { %v6932_v34 = vpop.f32.mrb[244].mxu0  ;;  %v8136_v24 = vmax.f32 %v8008_v4, 0.0  ;;  %v7472_v43 = vpop.f32.mrb[123].mxu1 }
 0x5f4   : > { %v10662_v18 = vadd.f32 %v6932_v34, %v15409_v28  ;;  %v6934_v48 = vpop.f32.mrb[245].mxu0  ;;  %v10294_v7 = vpack.c.bf16 %v8135_v54, %v8135_v54  ;;  %8778 = vst.msk [vmem:[%s14199_s6 + $0x1c8] sm:$0xf] %vm8663_vm4, %v10296_v15  ;;  %v10297_v38 = vpack.c.bf16 %v8138_v30, %v8138_v30  ;;  %v7620_v51 = vadd.f32 %v7470_v3, %v531_v50  ;;  %v15412_v34 = vld [vmem:[#allocation91_spill] sm:$0xff]  ;;  %v15414_v54 = vld [vmem:[#allocation93_spill] sm:$0xff] }
 0x5f5   : > { %v6935_v41 = vpop.f32.mrb[246].mxu0  ;;  %v10295_v39 = vpack.c.bf16 %v8136_v24, %v8136_v24  ;;  %v7878_v9 = vld [vmem:[#allocation2 + $0x3b0] sm:$0xff]  ;;  %v7473_v53 = vadd.f32 %v14905_v36, %v7472_v43  ;;  %v7876_v1 = vld [vmem:[#allocation2 + $0x3a0] sm:$0xff] }
 0x5f6   : > { %v10663_v37 = vadd.f32 %v6935_v41, %v15410_v19  ;;  %v6937_v59 = vpop.f32.mrb[247].mxu0  ;;  %v7478_v29 = vadd.f32 %v10662_v18, %v10502_v21  ;;  %8776 = vst.msk [vmem:[%s14199_s6 + $0x1c0] sm:$0xf] %vm8663_vm4, %v10294_v7  ;;  %8779 = vst.msk [vmem:[%s14199_s6 + $0x1cc] sm:$0xf] %vm8663_vm4, %v10297_v38  ;;  %v8013_v5 = vadd.f32 %v14758_v14, %v7878_v9  ;;  %v15413_v19 = vld [vmem:[#allocation92_spill] sm:$0xff] }
 0x5f7   : > { %8777 = vst.msk [vmem:[%s14199_s6 + $0x1c4] sm:$0xf] %vm8663_vm4, %v10295_v39  ;;  %v8011_v28 = vadd.f32 %v14758_v14, %v7876_v1  ;;  %v7879_v18 = vld [vmem:[#allocation2 + $0x3b8] sm:$0xff]  ;;  %v7621_v48 = vadd.f32 %v7473_v53, %v532_v57  ;;  %v536_v21 = vld [vmem:[#allocation2 + $0x3e8] sm:$0xff] }
 0x5f8   : > { %v7622_v20 = vadd.f32 %v7478_v29, %v533_v42  ;;  %v7481_v52 = vadd.f32 %v10663_v37, %v10503_v2  ;;  %7749 = vst.msk [vmem:[#allocation2 + $0x3c0] sm:$0xff] %vm282_vm3, %v7620_v51  ;;  %v8141_v60 = vmax.f32 %v8013_v5, 0.0  ;;  %v8014_v44 = vadd.f32 %v14758_v14, %v7879_v18  ;;  %v7877_v36 = vld [vmem:[#allocation2 + $0x3a8] sm:$0xff]  ;;  %v10506_v63 = vpop.f32.mrb[124].mxu1 }
 0x5f9   : > { %v8139_v8 = vmax.f32 %v8011_v28, 0.0  ;;  %v8012_v33 = vadd.f32 %v14758_v14, %v7877_v36  ;;  %7750 = vst.msk [vmem:[#allocation2 + $0x3c8] sm:$0xff] %vm282_vm3, %v7621_v48  ;;  %v7485_v6 = vpop.f32.mrb[125].mxu1 }
 0x5fa   : > { %7751 = vst.msk [vmem:[#allocation2 + $0x3d0] sm:$0xff] %vm282_vm3, %v7622_v20  ;;  %v7623_v25 = vadd.f32 %v7481_v52, %v534_v10  ;;  %v10300_v41 = vpack.c.bf16 %v8141_v60, %v8141_v60  ;;  %v8142_v62 = vmax.f32 %v8014_v44, 0.0  ;;  %v10507_v49 = vpop.f32.mrb[126].mxu1 }
 0x5fb   : > { %v6940_v27 = vpop.f32.mrb[248].mxu0  ;;  %v10298_v40 = vpack.c.bf16 %v8139_v8, %v8139_v8  ;;  %v8140_v55 = vmax.f32 %v8012_v33, 0.0  ;;  %v7488_v0 = vpop.f32.mrb[127].mxu1 }
 0x5fc   : > { %v10664_v61 = vadd.f32 %v6940_v27, %v15411_v46  ;;  %v6942_v11 = vpop.f32.mrb[249].mxu0  ;;  %7752 = vst.msk [vmem:[#allocation2 + $0x3d8] sm:$0xff] %vm282_vm3, %v7623_v25  ;;  %v10301_v32 = vpack.c.bf16 %v8142_v62, %v8142_v62  ;;  %v538_v27 = vld [vmem:[#allocation2 + $0x3f8] sm:$0xff] }
 0x5fd   : > { %v6943_v13 = vpop.f32.mrb[250].mxu0  ;;  %8782 = vst.msk [vmem:[%s14199_s6 + $0x1d8] sm:$0xf] %vm8663_vm4, %v10300_v41  ;;  %8780 = vst.msk [vmem:[%s14199_s6 + $0x1d0] sm:$0xf] %vm8663_vm4, %v10298_v40  ;;  %v10299_v17 = vpack.c.bf16 %v8140_v55, %v8140_v55 }
 0x5fe   : > { %v10665_v12 = vadd.f32 %v6943_v13, %v15412_v34  ;;  %v6945_v47 = vpop.f32.mrb[251].mxu0  ;;  %v7486_v23 = vadd.f32 %v10664_v61, %v7485_v6  ;;  %8783 = vst.msk [vmem:[%s14199_s6 + $0x1dc] sm:$0xf] %vm8663_vm4, %v10301_v32 }
 0x5ff   : > { %v7880_v30 = vld [vmem:[#allocation2 + $0x3c0] sm:$0xff]  ;;  %8781 = vst.msk [vmem:[%s14199_s6 + $0x1d4] sm:$0xf] %vm8663_vm4, %v10299_v17 }
 0x600   : > { %v7624_v26 = vadd.f32 %v7486_v23, %v535_v58  ;;  %v7489_v29 = vadd.f32 %v10665_v12, %v7488_v0  ;;  %v8015_v50 = vadd.f32 %v14758_v14, %v7880_v30  ;;  %v7881_v11 = vld [vmem:[#allocation2 + $0x3c8] sm:$0xff] }
 0x601   : > { %v7882_v31 = vld [vmem:[#allocation2 + $0x3d0] sm:$0xff]  ;;  %v8016_v2 = vadd.f32 %v14758_v14, %v7881_v11 }
 0x602   : > { %v8017_v15 = vadd.f32 %v14758_v14, %v7882_v31  ;;  %7753 = vst.msk [vmem:[#allocation2 + $0x3e0] sm:$0xff] %vm282_vm3, %v7624_v26  ;;  %v7625_v3 = vadd.f32 %v7489_v29, %v536_v21  ;;  %v8143_v10 = vmax.f32 %v8015_v50, 0.0 }
 0x603   : > { %v6948_v35 = vpop.f32.mrb[252].mxu0  ;;  %v7883_v45 = vld [vmem:[#allocation2 + $0x3d8] sm:$0xff]  ;;  %v8144_v57 = vmax.f32 %v8016_v2, 0.0 }
 0x604   : > { %v10666_v37 = vadd.f32 %v6948_v35, %v15413_v19  ;;  %v6950_v59 = vpop.f32.mrb[253].mxu0  ;;  %v8145_v46 = vmax.f32 %v8017_v15, 0.0  ;;  %v8018_v61 = vadd.f32 %v14758_v14, %v7883_v45  ;;  %7754 = vst.msk [vmem:[#allocation2 + $0x3e8] sm:$0xff] %vm282_vm3, %v7625_v3  ;;  %v10302_v52 = vpack.c.bf16 %v8143_v10, %v8143_v10 }
 0x605   : > { %v6951_v22 = vpop.f32.mrb[254].mxu0  ;;  %v10303_v39 = vpack.c.bf16 %v8144_v57, %v8144_v57 }
 0x606   : > { %v7494_v56 = vadd.f32 %v10666_v37, %v10506_v63  ;;  %v10667_v4 = vadd.f32 %v6951_v22, %v15414_v54  ;;  %v6953_v42 = vpop.f32.mrb[255].mxu0  ;;  %v10304_v20 = vpack.c.bf16 %v8145_v46, %v8145_v46  ;;  %v8146_v13 = vmax.f32 %v8018_v61, 0.0  ;;  %8784 = vst.msk [vmem:[%s14199_s6 + $0x1e0] sm:$0xf] %vm8663_vm4, %v10302_v52 }
 0x607   : > { %8785 = vst.msk [vmem:[%s14199_s6 + $0x1e4] sm:$0xf] %vm8663_vm4, %v10303_v39 }
 0x608   : > { %v7626_v7 = vadd.f32 %v7494_v56, %v537_v16  ;;  %v7497_v24 = vadd.f32 %v10667_v4, %v10507_v49  ;;  %8786 = vst.msk [vmem:[%s14199_s6 + $0x1e8] sm:$0xf] %vm8663_vm4, %v10304_v20  ;;  %v10305_v43 = vpack.c.bf16 %v8146_v13, %v8146_v13 }
 0x609   : > { %v7884_v9 = vld [vmem:[#allocation2 + $0x3e0] sm:$0xff] }
 0x60a   : > { %7755 = vst.msk [vmem:[#allocation2 + $0x3f0] sm:$0xff] %vm282_vm3, %v7626_v7  ;;  %v7627_v38 = vadd.f32 %v7497_v24, %v538_v27  ;;  %v8019_v51 = vadd.f32 %v14758_v14, %v7884_v9 }
 0x60b   : > { %8787 = vst.msk [vmem:[%s14199_s6 + $0x1ec] sm:$0xf] %vm8663_vm4, %v10305_v43  ;;  %v7885_v53 = vld [vmem:[#allocation2 + $0x3e8] sm:$0xff] }
 0x60c   : > { %7756 = vst.msk [vmem:[#allocation2 + $0x3f8] sm:$0xff] %vm282_vm3, %v7627_v38  ;;  %v8147_v47 = vmax.f32 %v8019_v51, 0.0  ;;  %v8020_v1 = vadd.f32 %v14758_v14, %v7885_v53 }
 0x60e   : > { %v10306_v28 = vpack.c.bf16 %v8147_v47, %v8147_v47  ;;  %v8148_v48 = vmax.f32 %v8020_v1, 0.0 }
 0x610   : > { %8788 = vst.msk [vmem:[%s14199_s6 + $0x1f0] sm:$0xf] %vm8663_vm4, %v10306_v28  ;;  %v10307_v36 = vpack.c.bf16 %v8148_v48, %v8148_v48 }
 0x611   : > { %v7886_v34 = vld [vmem:[#allocation2 + $0x3f0] sm:$0xff] }
 0x612   : > { %v8021_v12 = vadd.f32 %v14758_v14, %v7886_v34  ;;  %8789 = vst.msk [vmem:[%s14199_s6 + $0x1f4] sm:$0xf] %vm8663_vm4, %v10307_v36 }
 0x613   : > { %v7887_v5 = vld [vmem:[#allocation2 + $0x3f8] sm:$0xff] }
 0x614   : > { %v8149_v25 = vmax.f32 %v8021_v12, 0.0  ;;  %v8022_v18 = vadd.f32 %v14758_v14, %v7887_v5  ;;  %8798 = sbr.rel (!%p12416_p9) target bundleno = 1654 (0x676), region = 48 }
 0x616   : > { %v10308_v60 = vpack.c.bf16 %v8149_v25, %v8149_v25  ;;  %v8150_v44 = vmax.f32 %v8022_v18, 0.0 }
 0x618   : > { %8790 = vst.msk [vmem:[%s14199_s6 + $0x1f8] sm:$0xf] %vm8663_vm4, %v10308_v60  ;;  %v10309_v8 = vpack.c.bf16 %v8150_v44, %v8150_v44 }
 0x61a   : > { %8791 = vst.msk [vmem:[%s14199_s6 + $0x1fc] sm:$0xf] %vm8663_vm4, %v10309_v8 }
 0x61b   : > { %s15428_s7 = smov (!%p8801_p8, %s8800_s7), 128 }
 0x61c   : > { %s10167_s22 = sshll.u32 %s15428_s7, 6 }
 0x61d   : > { %p10170_p12 = scmp.eq.s32.totalorder %s10167_s22, 0 }
 0x61e   : > { %s15013_s24 = sshrl.u32 (!%p10170_p12), %s15428_s7, 6 }
 0x61f   : > { %8810 = sbr.rel (%p10170_p12) target bundleno = 1654 (0x676), region = 52  ;;  %p10171_p9 = scmp.le.s32.totalorder (!%p10170_p12), %s15013_s24, 0 }
 0x626   : > { %9240 = sbr.rel (%p10171_p9) target bundleno = 1633 (0x661), region = 136  ;;  %s15415_s15 = smov (!%p10171_p9), %s15007_s20 }
 0x627   : > { %s15416_s21 = smov (!%p10171_p9), %s14199_s6  ;;  %s15022_s25 = smov (!%p10171_p9), 0  }
 0x628   : > { %s15024_s26 = smov (!%p10171_p9), 0  }
 0x62d LB: >> { %v8826_v14 = vld [vmem:[%s12318_s21] sm:$0xf]  ;;  %v8828_v33 = vld [vmem:[%s12318_s21 + $0x4] sm:$0xf]  ;;  %v8830_v63 = vld [vmem:[%s12318_s21 + $0x8] sm:$0xf]  ;;  %s12326_s26 = sphi %s15024_s26, %s8820_s26   ;;  %s12322_s25 = sphi %s15022_s25, %s15417_s25   ;;  %s12318_s21 = sphi %s15416_s21, %s8959_s21   ;;  %s12314_s15 = sphi %s15415_s15, %s8960_s15  }
 0x62e   : >> { %8827 = vst [vmem:[%s12314_s15] sm:$0xf] %v8826_v14  ;;  %8829 = vst [vmem:[%s12314_s15 + $0x4] sm:$0xf] %v8828_v33  ;;  %v8832_v41 = vld [vmem:[%s12318_s21 + $0xc] sm:$0xf]  ;;  %s8954_s27 = sadd.s32 1, %s12322_s25 }
 0x62f   : >> { %8831 = vst [vmem:[%s12314_s15 + $0x8] sm:$0xf] %v8830_v63  ;;  %v8834_v62 = vld [vmem:[%s12318_s21 + $0x10] sm:$0xf]  ;;  %v8836_v35 = vld [vmem:[%s12318_s21 + $0x14] sm:$0xf]  ;;  %p8955_p7 = scmp.ge.s32.totalorder %s8954_s27, %s15013_s24 }
 0x630   : >> { %8833 = vst [vmem:[%s12314_s15 + $0xc] sm:$0xf] %v8832_v41  ;;  %8835 = vst [vmem:[%s12314_s15 + $0x10] sm:$0xf] %v8834_v62  ;;  %v8838_v58 = vld [vmem:[%s12318_s21 + $0x18] sm:$0xf] }
 0x631   : >> { %8837 = vst [vmem:[%s12314_s15 + $0x14] sm:$0xf] %v8836_v35  ;;  %v8840_v6 = vld [vmem:[%s12318_s21 + $0x1c] sm:$0xf]  ;;  %v8842_v40 = vld [vmem:[%s12318_s21 + $0x20] sm:$0xf] }
 0x632   : >> { %8839 = vst [vmem:[%s12314_s15 + $0x18] sm:$0xf] %v8838_v58  ;;  %8841 = vst [vmem:[%s12314_s15 + $0x1c] sm:$0xf] %v8840_v6  ;;  %v8844_v55 = vld [vmem:[%s12318_s21 + $0x24] sm:$0xf] }
 0x633   : >> { %8843 = vst [vmem:[%s12314_s15 + $0x20] sm:$0xf] %v8842_v40  ;;  %v8846_v19 = vld [vmem:[%s12318_s21 + $0x28] sm:$0xf]  ;;  %v8848_v37 = vld [vmem:[%s12318_s21 + $0x2c] sm:$0xf] }
 0x634   : >> { %8845 = vst [vmem:[%s12314_s15 + $0x24] sm:$0xf] %v8844_v55  ;;  %8847 = vst [vmem:[%s12314_s15 + $0x28] sm:$0xf] %v8846_v19  ;;  %v8850_v59 = vld [vmem:[%s12318_s21 + $0x30] sm:$0xf] }
 0x635   : >> { %8849 = vst [vmem:[%s12314_s15 + $0x2c] sm:$0xf] %v8848_v37  ;;  %v8852_v23 = vld [vmem:[%s12318_s21 + $0x34] sm:$0xf]  ;;  %v8854_v49 = vld [vmem:[%s12318_s21 + $0x38] sm:$0xf] }
 0x636   : >> { %8851 = vst [vmem:[%s12314_s15 + $0x30] sm:$0xf] %v8850_v59  ;;  %8853 = vst [vmem:[%s12314_s15 + $0x34] sm:$0xf] %v8852_v23  ;;  %v8856_v32 = vld [vmem:[%s12318_s21 + $0x3c] sm:$0xf] }
 0x637   : >> { %8855 = vst [vmem:[%s12314_s15 + $0x38] sm:$0xf] %v8854_v49  ;;  %v8858_v16 = vld [vmem:[%s12318_s21 + $0x40] sm:$0xf]  ;;  %v8860_v22 = vld [vmem:[%s12318_s21 + $0x44] sm:$0xf] }
 0x638   : >> { %8857 = vst [vmem:[%s12314_s15 + $0x3c] sm:$0xf] %v8856_v32  ;;  %8859 = vst [vmem:[%s12314_s15 + $0x40] sm:$0xf] %v8858_v16  ;;  %v8862_v0 = vld [vmem:[%s12318_s21 + $0x48] sm:$0xf] }
 0x639   : >> { %8861 = vst [vmem:[%s12314_s15 + $0x44] sm:$0xf] %v8860_v22  ;;  %v8864_v17 = vld [vmem:[%s12318_s21 + $0x4c] sm:$0xf]  ;;  %v8866_v31 = vld [vmem:[%s12318_s21 + $0x50] sm:$0xf] }
 0x63a   : >> { %8863 = vst [vmem:[%s12314_s15 + $0x48] sm:$0xf] %v8862_v0  ;;  %8865 = vst [vmem:[%s12314_s15 + $0x4c] sm:$0xf] %v8864_v17  ;;  %v8868_v56 = vld [vmem:[%s12318_s21 + $0x54] sm:$0xf] }
 0x63b   : >> { %8867 = vst [vmem:[%s12314_s15 + $0x50] sm:$0xf] %v8866_v31  ;;  %v8870_v26 = vld [vmem:[%s12318_s21 + $0x58] sm:$0xf]  ;;  %v8872_v54 = vld [vmem:[%s12318_s21 + $0x5c] sm:$0xf] }
 0x63c   : >> { %8869 = vst [vmem:[%s12314_s15 + $0x54] sm:$0xf] %v8868_v56  ;;  %8871 = vst [vmem:[%s12314_s15 + $0x58] sm:$0xf] %v8870_v26  ;;  %v8874_v4 = vld [vmem:[%s12318_s21 + $0x60] sm:$0xf] }
 0x63d   : >> { %8873 = vst [vmem:[%s12314_s15 + $0x5c] sm:$0xf] %v8872_v54  ;;  %v8876_v42 = vld [vmem:[%s12318_s21 + $0x64] sm:$0xf]  ;;  %v8878_v21 = vld [vmem:[%s12318_s21 + $0x68] sm:$0xf] }
 0x63e   : >> { %8875 = vst [vmem:[%s12314_s15 + $0x60] sm:$0xf] %v8874_v4  ;;  %8877 = vst [vmem:[%s12314_s15 + $0x64] sm:$0xf] %v8876_v42  ;;  %v8880_v15 = vld [vmem:[%s12318_s21 + $0x6c] sm:$0xf] }
 0x63f   : >> { %8879 = vst [vmem:[%s12314_s15 + $0x68] sm:$0xf] %v8878_v21  ;;  %v8882_v30 = vld [vmem:[%s12318_s21 + $0x70] sm:$0xf]  ;;  %v8884_v27 = vld [vmem:[%s12318_s21 + $0x74] sm:$0xf] }
 0x640   : >> { %8881 = vst [vmem:[%s12314_s15 + $0x6c] sm:$0xf] %v8880_v15  ;;  %8883 = vst [vmem:[%s12314_s15 + $0x70] sm:$0xf] %v8882_v30  ;;  %v8886_v29 = vld [vmem:[%s12318_s21 + $0x78] sm:$0xf] }
 0x641   : >> { %8885 = vst [vmem:[%s12314_s15 + $0x74] sm:$0xf] %v8884_v27  ;;  %v8888_v50 = vld [vmem:[%s12318_s21 + $0x7c] sm:$0xf]  ;;  %v8890_v45 = vld [vmem:[%s12318_s21 + $0x80] sm:$0xf] }
 0x642   : >> { %8887 = vst [vmem:[%s12314_s15 + $0x78] sm:$0xf] %v8886_v29  ;;  %8889 = vst [vmem:[%s12314_s15 + $0x7c] sm:$0xf] %v8888_v50  ;;  %v8892_v7 = vld [vmem:[%s12318_s21 + $0x84] sm:$0xf] }
 0x643   : >> { %8891 = vst [vmem:[%s12314_s15 + $0x80] sm:$0xf] %v8890_v45  ;;  %v8894_v24 = vld [vmem:[%s12318_s21 + $0x88] sm:$0xf]  ;;  %v8896_v46 = vld [vmem:[%s12318_s21 + $0x8c] sm:$0xf] }
 0x644   : >> { %8893 = vst [vmem:[%s12314_s15 + $0x84] sm:$0xf] %v8892_v7  ;;  %8895 = vst [vmem:[%s12314_s15 + $0x88] sm:$0xf] %v8894_v24  ;;  %v8898_v61 = vld [vmem:[%s12318_s21 + $0x90] sm:$0xf] }
 0x645   : >> { %8897 = vst [vmem:[%s12314_s15 + $0x8c] sm:$0xf] %v8896_v46  ;;  %v8900_v11 = vld [vmem:[%s12318_s21 + $0x94] sm:$0xf]  ;;  %v8902_v3 = vld [vmem:[%s12318_s21 + $0x98] sm:$0xf] }
 0x646   : >> { %8899 = vst [vmem:[%s12314_s15 + $0x90] sm:$0xf] %v8898_v61  ;;  %8901 = vst [vmem:[%s12314_s15 + $0x94] sm:$0xf] %v8900_v11  ;;  %v8904_v10 = vld [vmem:[%s12318_s21 + $0x9c] sm:$0xf] }
 0x647   : >> { %8903 = vst [vmem:[%s12314_s15 + $0x98] sm:$0xf] %v8902_v3  ;;  %v8906_v2 = vld [vmem:[%s12318_s21 + $0xa0] sm:$0xf]  ;;  %v8908_v38 = vld [vmem:[%s12318_s21 + $0xa4] sm:$0xf] }
 0x648   : >> { %8905 = vst [vmem:[%s12314_s15 + $0x9c] sm:$0xf] %v8904_v10  ;;  %8907 = vst [vmem:[%s12314_s15 + $0xa0] sm:$0xf] %v8906_v2  ;;  %v8910_v20 = vld [vmem:[%s12318_s21 + $0xa8] sm:$0xf] }
 0x649   : >> { %8909 = vst [vmem:[%s12314_s15 + $0xa4] sm:$0xf] %v8908_v38  ;;  %v8912_v13 = vld [vmem:[%s12318_s21 + $0xac] sm:$0xf]  ;;  %v8914_v52 = vld [vmem:[%s12318_s21 + $0xb0] sm:$0xf] }
 0x64a   : >> { %8911 = vst [vmem:[%s12314_s15 + $0xa8] sm:$0xf] %v8910_v20  ;;  %8913 = vst [vmem:[%s12314_s15 + $0xac] sm:$0xf] %v8912_v13  ;;  %v8916_v57 = vld [vmem:[%s12318_s21 + $0xb4] sm:$0xf] }
 0x64b   : >> { %8915 = vst [vmem:[%s12314_s15 + $0xb0] sm:$0xf] %v8914_v52  ;;  %v8918_v43 = vld [vmem:[%s12318_s21 + $0xb8] sm:$0xf]  ;;  %v8920_v39 = vld [vmem:[%s12318_s21 + $0xbc] sm:$0xf] }
 0x64c   : >> { %8917 = vst [vmem:[%s12314_s15 + $0xb4] sm:$0xf] %v8916_v57  ;;  %8919 = vst [vmem:[%s12314_s15 + $0xb8] sm:$0xf] %v8918_v43  ;;  %v8922_v9 = vld [vmem:[%s12318_s21 + $0xc0] sm:$0xf] }
 0x64d   : >> { %8921 = vst [vmem:[%s12314_s15 + $0xbc] sm:$0xf] %v8920_v39  ;;  %v8924_v51 = vld [vmem:[%s12318_s21 + $0xc4] sm:$0xf]  ;;  %v8926_v34 = vld [vmem:[%s12318_s21 + $0xc8] sm:$0xf] }
 0x64e   : >> { %8923 = vst [vmem:[%s12314_s15 + $0xc0] sm:$0xf] %v8922_v9  ;;  %8925 = vst [vmem:[%s12314_s15 + $0xc4] sm:$0xf] %v8924_v51  ;;  %v8928_v12 = vld [vmem:[%s12318_s21 + $0xcc] sm:$0xf] }
 0x64f   : >> { %8927 = vst [vmem:[%s12314_s15 + $0xc8] sm:$0xf] %v8926_v34  ;;  %v8930_v47 = vld [vmem:[%s12318_s21 + $0xd0] sm:$0xf]  ;;  %v8932_v53 = vld [vmem:[%s12318_s21 + $0xd4] sm:$0xf] }
 0x650   : >> { %8929 = vst [vmem:[%s12314_s15 + $0xcc] sm:$0xf] %v8928_v12  ;;  %8931 = vst [vmem:[%s12314_s15 + $0xd0] sm:$0xf] %v8930_v47  ;;  %v8934_v5 = vld [vmem:[%s12318_s21 + $0xd8] sm:$0xf] }
 0x651   : >> { %8933 = vst [vmem:[%s12314_s15 + $0xd4] sm:$0xf] %v8932_v53  ;;  %v8936_v1 = vld [vmem:[%s12318_s21 + $0xdc] sm:$0xf]  ;;  %v8938_v25 = vld [vmem:[%s12318_s21 + $0xe0] sm:$0xf] }
 0x652   : >> { %8935 = vst [vmem:[%s12314_s15 + $0xd8] sm:$0xf] %v8934_v5  ;;  %8937 = vst [vmem:[%s12314_s15 + $0xdc] sm:$0xf] %v8936_v1  ;;  %v8940_v28 = vld [vmem:[%s12318_s21 + $0xe4] sm:$0xf] }
 0x653   : >> { %8939 = vst [vmem:[%s12314_s15 + $0xe0] sm:$0xf] %v8938_v25  ;;  %v8942_v18 = vld [vmem:[%s12318_s21 + $0xe8] sm:$0xf]  ;;  %v8944_v48 = vld [vmem:[%s12318_s21 + $0xec] sm:$0xf] }
 0x654   : >> { %8941 = vst [vmem:[%s12314_s15 + $0xe4] sm:$0xf] %v8940_v28  ;;  %8943 = vst [vmem:[%s12314_s15 + $0xe8] sm:$0xf] %v8942_v18  ;;  %v8946_v60 = vld [vmem:[%s12318_s21 + $0xf0] sm:$0xf] }
 0x655   : >> { %8945 = vst [vmem:[%s12314_s15 + $0xec] sm:$0xf] %v8944_v48  ;;  %v8948_v44 = vld [vmem:[%s12318_s21 + $0xf4] sm:$0xf]  ;;  %v8950_v36 = vld [vmem:[%s12318_s21 + $0xf8] sm:$0xf] }
 0x656   : >> { %8947 = vst [vmem:[%s12314_s15 + $0xf0] sm:$0xf] %v8946_v60  ;;  %8949 = vst [vmem:[%s12314_s15 + $0xf4] sm:$0xf] %v8948_v44  ;;  %v8952_v8 = vld [vmem:[%s12318_s21 + $0xfc] sm:$0xf] }
 0x657   : >> { %8951 = vst [vmem:[%s12314_s15 + $0xf8] sm:$0xf] %v8950_v36  ;;  %8953 = vst [vmem:[%s12314_s15 + $0xfc] sm:$0xf] %v8952_v8  ;;  %s15430_s27 = smov (%p8955_p7, %s8954_s27), 0  ;;  %s8820_s26 = sadd.s32 1, %s12326_s26  }
 0x658   : >> { %s10172_s28 = sshll.u32 %s15430_s27, 8  ;;  %p8819_p10 = scmp.ge.s32.totalorder %s8820_s26, %s15013_s24 }
 0x659   : >> { %s8959_s21 = scalar_lea.vmem %s14199_s6, %s10172_s28 [#allocation5]   ;;  %s8960_s15 = scalar_lea.vmem %s15007_s20, %s10172_s28  }
 0x65a   : >> { %s15417_s25 = smov %s15430_s27  ;;  %8822 = sbr.rel (!%p8819_p10) target bundleno = 1581 (0x62d), region = 142 }
 0x661 PF: > { %s15181_s30 = sand.u32 63, %s15428_s7   ;;  %s10311_s5 = sshll.u32 %s15013_s24, 8 }
 0x662   : > { %s8965_s8 = scalar_lea.vmem %s14199_s6, %s10311_s5 [#allocation5]   ;;  %s8967_s12 = scalar_lea.vmem %s15007_s20, %s10311_s5  }
 0x663   : > { %p10177_p11 = scmp.le.s32.totalorder %s15181_s30, 0 }
 0x664   : > { %s12328_s9 = smov (!%p10177_p11), %s8967_s12   ;;  %s12332_s11 = smov (!%p10177_p11), %s8965_s8  }
 0x665   : > { %9254 = sbr.rel (%p10177_p11) target bundleno = 1654 (0x676), region = 147  ;;  %s12336_s29 = smov (!%p10177_p11), 0  }
 0x666   : > { %s12340_s4 = smov (!%p10177_p11), 0  }
 0x66c LB: >> { %v8977_v14 = vld [vmem:[%s12334_s11] sm:$0xf]  ;;  %s8979_s7 = sadd.s32 1, %s12338_s29  ;;  %s8971_s4 = sadd.s32 1, %s12342_s4   ;;  %s12342_s4 = sphi %s12340_s4, %s8971_s4   ;;  %s12338_s29 = sphi %s12336_s29, %s12337_s29   ;;  %s12334_s11 = sphi %s12332_s11, %s8984_s11   ;;  %s12330_s9 = sphi %s12328_s9, %s8985_s9  }
 0x66d   : >> { %8978 = vst [vmem:[%s12330_s9] sm:$0xf] %v8977_v14  ;;  %p8980_p13 = scmp.ge.s32.totalorder %s8979_s7, %s15181_s30  ;;  %p8970_p0 = scmp.ge.s32.totalorder %s8971_s4, %s15181_s30 }
 0x66f   : >> { %s15432_s7 = smov (%p8980_p13, %s8979_s7), 0  ;;  %8973 = sbr.rel (!%p8970_p0) target bundleno = 1644 (0x66c), region = 153 }
 0x670   : >> { %s10178_s6 = sshll.u32 %s15432_s7, 2  ;;  %s12337_s29 = smov %s15432_s7  }
 0x671   : >> { %s8984_s11 = scalar_lea.vmem %s8965_s8, %s10178_s6 [#allocation5]   ;;  %s8985_s9 = scalar_lea.vmem %s8967_s12, %s10178_s6  }
 0x676 PF: > { %s16_s17 = sadd.s32 1, %s12310_s17   ;;  %s15418_s12 = smov %s12294_s13 }
 0x677   : > { %p13_p2 = scmp.ge.s32.totalorder %s16_s17, 39   ;;  %s15419_s13 = smov %s12298_s14 }
 0x678   : > { %s15420_s14 = smov %s12414_s23  ;;  %s15421_s15 = smov %s12306_s16 }
 0x679   : > { %s15422_s16 = smov %s15424_s19  ;;  %15 = sbr.rel (!%p13_p2) target bundleno = 4 (0x4), region = 164 }
 0x680   :  { %9172 = vsyncpa [#allocation4], 1 }
 0x681   :  { %9174 = vsyncpa [#allocation4 + $0x1], 1 }

</bundles_post_ra>
